<compile_context>
chip_gen: v7x
topology: tpu7x:2x2x1
jax: 0.10.0
libtpu: 0.0.40
codegen_flags: <defaults>
</compile_context>

<pallas_src>
import math
from functools import partial

import jax
import jax.numpy as jnp
from jax import lax
from jax.experimental import pallas as pl
from jax.experimental.pallas import tpu as pltpu


def _self_attn_layer_kernel(tgt_ref, pos_ref, wqk_ref, wv_ref, wo_ref, rows_ref,
                            out_ref, attn_ref,
                            q_scr, k_scr, v_scr,
                            *, nhead: int, head_dim: int, seq_len: int,
                            tq: int, n_qt: int):
    f32 = jnp.float32
    bf16 = jnp.bfloat16
    D = nhead * head_dim
    qi = pl.program_id(1)

    # ---- Q/K/V projections: once per batch element (qi == 0) ----------------
    # Fused [Wq^T*scale | Wk^T] matmul over the full sequence; results cached in
    # persistent bf16 VMEM scratch and reused by every query tile of this batch.
    @pl.when(qi == 0)
    def _project():
        bq = rows_ref[0:1, :]                 # scale already folded in
        bk = rows_ref[1:2, :]
        bv = rows_ref[2:3, :]
        x = tgt_ref[0]                        # (L, D) f32
        qk_in = (x + pos_ref[0]).astype(bf16)
        qk = jnp.dot(qk_in, wqk_ref[...], preferred_element_type=f32)  # (L, 2D)
        q_scr[...] = (qk[:, :D] + bq).astype(bf16)
        k_scr[...] = (qk[:, D:] + bk).astype(bf16)
        v = jnp.dot(x.astype(bf16), wv_ref[...], preferred_element_type=f32)
        v_scr[...] = (v + bv).astype(bf16)

    # ---- query-row window for this grid step ---------------------------------
    if n_qt == 1:
        row_idx = slice(None)                 # whole sequence, static
    else:
        row_idx = pl.ds(pl.multiple_of(qi * tq, tq), tq)

    # ---- per-head attention (bounded live state; accumulate into outputs) ----
    for h in range(nhead):
        csl = slice(h * head_dim, (h + 1) * head_dim)
        q_h = q_scr[row_idx, csl]             # (TQ, hd) bf16
        k_h = k_scr[:, csl]                   # (L,  hd) bf16
        v_h = v_scr[:, csl]                   # (L,  hd) bf16

        # scores: contract the head dim of Q with the head dim of K (no transpose)
        s = lax.dot_general(q_h, k_h, (((1,), (1,)), ((), ())),
                            preferred_element_type=f32)               # (TQ, L)
        s = s - jnp.max(s, axis=-1, keepdims=True)
        p = jnp.exp(s)
        p = p * pl.reciprocal(jnp.sum(p, axis=-1, keepdims=True), approx=True)

        ctx_h = jnp.dot(p.astype(bf16), v_h, preferred_element_type=f32)  # (TQ, hd)
        # head merge fused into the output projection: per-head (hd, D) slice of Wo^T
        y_h = jnp.dot(ctx_h.astype(bf16), wo_ref[csl, :],
                      preferred_element_type=f32)                      # (TQ, D)

        if h == 0:
            attn_ref[0] = p
            out_ref[0] = y_h
        else:
            attn_ref[0] = attn_ref[0] + p
            out_ref[0] = out_ref[0] + y_h

    # head-averaged attention weights (average_attn_weights=True default)
    attn_ref[0] = (attn_ref[0] * (1.0 / nhead)).astype(attn_ref.dtype)

    # ---- output bias + residual + LayerNorm (f32) -----------------------------
    bo = rows_ref[3:4, :]
    lnw = rows_ref[4:5, :]
    lnb = rows_ref[5:6, :]
    x_q = tgt_ref[0, row_idx, :]              # residual rows (TQ, D) f32
    y = x_q + out_ref[0] + bo                 # dropout == 0
    mu = jnp.mean(y, axis=-1, keepdims=True)
    var = jnp.mean((y - mu) ** 2, axis=-1, keepdims=True)
    out_ref[0] = ((y - mu) * lax.rsqrt(var + 1e-5) * lnw + lnb).astype(out_ref.dtype)


def _vmem_limit_bytes() -> int:
    """Per-chip scoped VMEM limit: ~half of physical (v7x: 32 MiB; v5e/v6e: 64 MiB)."""
    try:
        cap = int(pltpu.get_tpu_info().vmem_capacity_bytes)
    except Exception:
        cap = 64 * 1024 * 1024
    return max(32 * 1024 * 1024, min(cap // 2, 64 * 1024 * 1024))


def _pick_tq(L: int, vmem_cap_bytes: int) -> int:
    """Query-tile size: single tile for modest L; smaller tiles on small-VMEM chips."""
    if L <= 512:
        return L
    small_vmem = vmem_cap_bytes < 48 * 1024 * 1024      # v7x-class budget
    for tq in ((256, 128) if small_vmem else (512, 256, 128)):
        if L % tq == 0:
            return tq
    return L


def prepare_params(params, nhead: int):
    """Fold 1/sqrt(head_dim) into Wq/bq (in f32), fuse [Wq|Wk], cast matmul weights
    to bf16, and pack the six (1,D) bias/LayerNorm rows into one (8,D) block."""
    D = params["wq_t"].shape[0]
    assert D % nhead == 0, "d_model must be divisible by nhead"
    scale = 1.0 / math.sqrt(D // nhead)
    f32 = jnp.float32
    wqk = jnp.concatenate([params["wq_t"] * scale, params["wk_t"]], axis=1)  # (D, 2D)
    rows = jnp.concatenate(
        [params["bq"] * scale, params["bk"], params["bv"], params["bo"],
         params["ln_w"], params["ln_b"], jnp.zeros((2, D), f32)], axis=0
    ).astype(f32)                                                            # (8, D)
    return dict(
        wqk_t=wqk.astype(jnp.bfloat16),
        wv_t=params["wv_t"].astype(jnp.bfloat16),
        wo_t=params["wo_t"].astype(jnp.bfloat16),
        rows=rows,
    )


def self_attention_layer(tgt, query_pos, prepped, *, nhead: int):
    """tgt, query_pos: (B, L, D) float32. Returns (out (B,L,D), attn (B,L,L))."""
    B, L, D = tgt.shape
    assert D % nhead == 0, "d_model must be divisible by nhead"
    hd = D // nhead
    vmem_limit = _vmem_limit_bytes()
    TQ = _pick_tq(L, vmem_limit)
    assert L % TQ == 0
    n_qt = L // TQ

    kernel = partial(_self_attn_layer_kernel, nhead=nhead, head_dim=hd,
                     seq_len=L, tq=TQ, n_qt=n_qt)

    w2d = lambda b, qi: (0, 0)        # weights / packed rows: constant block index
    full = lambda b, qi: (b, 0, 0)    # full sequence per batch, constant across qi
    qtile = lambda b, qi: (b, qi, 0)  # per-(batch, query-tile) output block

    out, attn = pl.pallas_call(
        kernel,
        out_shape=(jax.ShapeDtypeStruct((B, L, D), jnp.float32),
                   jax.ShapeDtypeStruct((B, L, L), jnp.float32)),
        grid_spec=pltpu.PrefetchScalarGridSpec(
            num_scalar_prefetch=0,
            grid=(B, n_qt),
            in_specs=[
                pl.BlockSpec((1, L, D), full),     # tgt (full seq: V input, residual)
                pl.BlockSpec((1, L, D), full),     # query_pos (full seq)
                pl.BlockSpec((D, 2 * D), w2d),     # fused [Wq^T*scale | Wk^T] bf16
                pl.BlockSpec((D, D), w2d),         # Wv^T bf16
                pl.BlockSpec((D, D), w2d),         # Wo^T bf16
                pl.BlockSpec((8, D), w2d),         # packed bq,bk,bv,bo,ln_w,ln_b
            ],
            out_specs=[
                pl.BlockSpec((1, TQ, D), qtile),   # out
                pl.BlockSpec((1, TQ, L), qtile),   # attn (lane-dense when L%128==0)
            ],
            scratch_shapes=[
                pltpu.VMEM((L, D), jnp.bfloat16),  # Q (all rows, persists over qi)
                pltpu.VMEM((L, D), jnp.bfloat16),  # K
                pltpu.VMEM((L, D), jnp.bfloat16),  # V
            ],
        ),
        compiler_params=pltpu.CompilerParams(
            # batch axis parallel (megacore); query-tile axis arbitrary because the
            # Q/K/V scratch is computed at qi==0 and reused across tiles.
            dimension_semantics=("parallel", "arbitrary"),
            vmem_limit_bytes=vmem_limit,
        ),
    )(tgt, query_pos,
      prepped["wqk_t"], prepped["wv_t"], prepped["wo_t"], prepped["rows"])
    return out, attn


def _xavier_uniform(key, shape):
    fan_out, fan_in = shape  # PyTorch Linear-style weight (out, in)
    bound = math.sqrt(6.0 / (fan_in + fan_out))
    return jax.random.uniform(key, shape, jnp.float32, -bound, bound)


def make_params(key, d_model):
    """Mirror the module's init: xavier_uniform on >1-dim params, zero biases,
    LayerNorm weight=1 / bias=0."""
    k1, k2 = jax.random.split(key, 2)
    in_proj_w = _xavier_uniform(k1, (3 * d_model, d_model))   # (3D, D)
    out_proj_w = _xavier_uniform(k2, (d_model, d_model))      # (D, D)
    wq, wk, wv = (in_proj_w[:d_model], in_proj_w[d_model:2 * d_model],
                  in_proj_w[2 * d_model:])
    zeros = jnp.zeros((1, d_model), jnp.float32)
    return dict(
        wq_t=wq.T, wk_t=wk.T, wv_t=wv.T,
        bq=zeros, bk=zeros, bv=zeros,
        wo_t=out_proj_w.T, bo=zeros,
        ln_w=jnp.ones((1, d_model), jnp.float32),
        ln_b=zeros,
    )


def reference(tgt, pos, params, nhead):
    """Pure-JAX reference with the same mixed precision (bf16 matmul operands,
    f32 accumulation/elementwise) for the correctness check."""
    B, L, D = tgt.shape
    hd = D // nhead
    f32 = jnp.float32
    c = lambda a: a.astype(jnp.bfloat16)

    qk = tgt + pos
    q = jnp.dot(c(qk), c(params["wq_t"]), preferred_element_type=f32) + params["bq"]
    k = jnp.dot(c(qk), c(params["wk_t"]), preferred_element_type=f32) + params["bk"]
    v = jnp.dot(c(tgt), c(params["wv_t"]), preferred_element_type=f32) + params["bv"]

    def heads(x):  # (B, L, D) -> (B, H, L, hd)
        return x.reshape(B, L, nhead, hd).transpose(0, 2, 1, 3)

    qh, kh, vh = heads(q), heads(k), heads(v)
    s = jnp.einsum("bhld,bhmd->bhlm", c(qh), c(kh),
                   preferred_element_type=f32) / math.sqrt(hd)
    p = jax.nn.softmax(s, axis=-1)
    ctx = jnp.einsum("bhlm,bhmd->bhld", c(p), c(vh), preferred_element_type=f32)
    ctx = ctx.transpose(0, 2, 1, 3).reshape(B, L, D)
    attn_out = jnp.dot(c(ctx), c(params["wo_t"]),
                       preferred_element_type=f32) + params["bo"]
    y = tgt + attn_out
    mu = jnp.mean(y, -1, keepdims=True)
    var = jnp.mean((y - mu) ** 2, -1, keepdims=True)
    out = (y - mu) / jnp.sqrt(var + 1e-5) * params["ln_w"] + params["ln_b"]
    return out, p.mean(axis=1)


if __name__ == "__main__":
    # Typical decoder-layer config (d_model=256, nhead=8); lane-dense seq length.
    B, L, D, NHEAD = 2, 128, 256, 8

    key = jax.random.PRNGKey(0)
    k_tgt, k_pos, k_par = jax.random.split(key, 3)
    tgt = jax.random.normal(k_tgt, (B, L, D), jnp.float32)
    query_pos = jax.random.normal(k_pos, (B, L, D), jnp.float32)
    params = make_params(k_par, D)
    prepped = prepare_params(params, NHEAD)

    out, attn = self_attention_layer(tgt, query_pos, prepped, nhead=NHEAD)
    out = jax.block_until_ready(out)
    attn = jax.block_until_ready(attn)

    ref_out, ref_attn = reference(tgt, query_pos, params, NHEAD)
    assert out.shape == (B, L, D) and attn.shape == (B, L, L)
    assert jnp.allclose(out, ref_out, atol=2e-2, rtol=2e-2), \
        float(jnp.max(jnp.abs(out - ref_out)))
    assert jnp.allclose(attn, ref_attn, atol=1e-2, rtol=1e-2), \
        float(jnp.max(jnp.abs(attn - ref_attn)))

    print("KERNEL_OK")
</pallas_src>

<mosaic_0001>
module attributes {stable_mosaic.version = 11 : i64} {
  func.func @_self_attn_layer_kernel(%arg0: i32, %arg1: i32, %arg2: memref<1x128x256xf32, #tpu.memory_space<vmem>>, %arg3: memref<1x128x256xf32, #tpu.memory_space<vmem>>, %arg4: memref<256x512xbf16, #tpu.memory_space<vmem>>, %arg5: memref<256x256xbf16, #tpu.memory_space<vmem>>, %arg6: memref<256x256xbf16, #tpu.memory_space<vmem>>, %arg7: memref<8x256xf32, #tpu.memory_space<vmem>>, %arg8: memref<1x128x256xf32, #tpu.memory_space<vmem>>, %arg9: memref<1x128x128xf32, #tpu.memory_space<vmem>>, %arg10: memref<128x256xbf16, #tpu.memory_space<vmem>>, %arg11: memref<128x256xbf16, #tpu.memory_space<vmem>>, %arg12: memref<128x256xbf16, #tpu.memory_space<vmem>>) attributes {dimension_semantics = [#tpu.dimension_semantics<parallel>, #tpu.dimension_semantics<arbitrary>], iteration_bounds = array<i64: 2, 1>, scalar_prefetch = 0 : i64, scratch_operands = 3 : i64, tpu.core_type = #tpu.core_type<tc>, window_params = [{transform_indices = @transform_0, window_bounds = array<i64: 1, 128, 256>}, {transform_indices = @transform_1, window_bounds = array<i64: 1, 128, 256>}, {pipeline_mode = #tpu.pipeline_mode<synchronous>, transform_indices = @transform_2, window_bounds = array<i64: 256, 512>}, {pipeline_mode = #tpu.pipeline_mode<synchronous>, transform_indices = @transform_3, window_bounds = array<i64: 256, 256>}, {pipeline_mode = #tpu.pipeline_mode<synchronous>, transform_indices = @transform_4, window_bounds = array<i64: 256, 256>}, {pipeline_mode = #tpu.pipeline_mode<synchronous>, transform_indices = @transform_5, window_bounds = array<i64: 8, 256>}, {transform_indices = @transform_6, window_bounds = array<i64: 1, 128, 256>}, {transform_indices = @transform_7, window_bounds = array<i64: 1, 128, 128>}]} {
    %c0_i32 = arith.constant 0 : i32
    %0 = arith.cmpi eq, %arg1, %c0_i32 : i32
    %1 = arith.extui %0 : i1 to i32
    %c0_i32_0 = arith.constant 0 : i32
    %2 = arith.cmpi ne, %1, %c0_i32_0 : i32
    scf.if %2 {
      %c0_210 = arith.constant 0 : index
      %c0_211 = arith.constant 0 : index
      %287 = vector.load %arg7[%c0_210, %c0_211] : memref<8x256xf32, #tpu.memory_space<vmem>>, vector<1x256xf32>
      %c1 = arith.constant 1 : index
      %c0_212 = arith.constant 0 : index
      %288 = vector.load %arg7[%c1, %c0_212] : memref<8x256xf32, #tpu.memory_space<vmem>>, vector<1x256xf32>
      %c2 = arith.constant 2 : index
      %c0_213 = arith.constant 0 : index
      %289 = vector.load %arg7[%c2, %c0_213] : memref<8x256xf32, #tpu.memory_space<vmem>>, vector<1x256xf32>
      %c0_214 = arith.constant 0 : index
      %c0_215 = arith.constant 0 : index
      %c0_216 = arith.constant 0 : index
      %290 = vector.load %arg2[%c0_214, %c0_215, %c0_216] : memref<1x128x256xf32, #tpu.memory_space<vmem>>, vector<1x128x256xf32>
      %291 = vector.shape_cast %290 : vector<1x128x256xf32> to vector<128x256xf32>
      %c0_217 = arith.constant 0 : index
      %c0_218 = arith.constant 0 : index
      %c0_219 = arith.constant 0 : index
      %292 = vector.load %arg3[%c0_217, %c0_218, %c0_219] : memref<1x128x256xf32, #tpu.memory_space<vmem>>, vector<1x128x256xf32>
      %293 = vector.shape_cast %292 : vector<1x128x256xf32> to vector<128x256xf32>
      %294 = arith.addf %291, %293 : vector<128x256xf32>
      %295 = arith.truncf %294 : vector<128x256xf32> to vector<128x256xbf16>
      %c0_220 = arith.constant 0 : index
      %c0_221 = arith.constant 0 : index
      %296 = vector.load %arg4[%c0_220, %c0_221] : memref<256x512xbf16, #tpu.memory_space<vmem>>, vector<256x512xbf16>
      %cst_222 = arith.constant dense<0.000000e+00> : vector<128x512xf32>
      %297 = tpu.matmul %295, %296, %cst_222 {dimension_numbers = #tpu.dot_dimension_numbers<[1], [0], [0], [1], [0, 0, 1, 1], [], []>} : vector<128x256xbf16>, vector<256x512xbf16>, vector<128x512xf32> -> vector<128x512xf32>
      %298 = vector.extract_strided_slice %297 {offsets = [0, 0], sizes = [128, 256], strides = [1, 1]} : vector<128x512xf32> to vector<128x256xf32>
      %299 = vector.broadcast %287 : vector<1x256xf32> to vector<128x256xf32>
      %300 = arith.addf %298, %299 : vector<128x256xf32>
      %301 = arith.truncf %300 : vector<128x256xf32> to vector<128x256xbf16>
      %c0_223 = arith.constant 0 : index
      %c0_224 = arith.constant 0 : index
      %302 = vector.load %arg10[%c0_223, %c0_224] : memref<128x256xbf16, #tpu.memory_space<vmem>>, vector<128x256xbf16>
      tpu.vector_store %arg10[%c0_223, %c0_224], %301 {strides = array<i32>} : memref<128x256xbf16, #tpu.memory_space<vmem>>, vector<128x256xbf16>,
      %303 = vector.extract_strided_slice %297 {offsets = [0, 256], sizes = [128, 256], strides = [1, 1]} : vector<128x512xf32> to vector<128x256xf32>
      %304 = vector.broadcast %288 : vector<1x256xf32> to vector<128x256xf32>
      %305 = arith.addf %303, %304 : vector<128x256xf32>
      %306 = arith.truncf %305 : vector<128x256xf32> to vector<128x256xbf16>
      %c0_225 = arith.constant 0 : index
      %c0_226 = arith.constant 0 : index
      %307 = vector.load %arg11[%c0_225, %c0_226] : memref<128x256xbf16, #tpu.memory_space<vmem>>, vector<128x256xbf16>
      tpu.vector_store %arg11[%c0_225, %c0_226], %306 {strides = array<i32>} : memref<128x256xbf16, #tpu.memory_space<vmem>>, vector<128x256xbf16>,
      %308 = arith.truncf %291 : vector<128x256xf32> to vector<128x256xbf16>
      %c0_227 = arith.constant 0 : index
      %c0_228 = arith.constant 0 : index
      %309 = vector.load %arg5[%c0_227, %c0_228] : memref<256x256xbf16, #tpu.memory_space<vmem>>, vector<256x256xbf16>
      %cst_229 = arith.constant dense<0.000000e+00> : vector<128x256xf32>
      %310 = tpu.matmul %308, %309, %cst_229 {dimension_numbers = #tpu.dot_dimension_numbers<[1], [0], [0], [1], [0, 0, 1, 1], [], []>} : vector<128x256xbf16>, vector<256x256xbf16>, vector<128x256xf32> -> vector<128x256xf32>
      %311 = vector.broadcast %289 : vector<1x256xf32> to vector<128x256xf32>
      %312 = arith.addf %310, %311 : vector<128x256xf32>
      %313 = arith.truncf %312 : vector<128x256xf32> to vector<128x256xbf16>
      %c0_230 = arith.constant 0 : index
      %c0_231 = arith.constant 0 : index
      %314 = vector.load %arg12[%c0_230, %c0_231] : memref<128x256xbf16, #tpu.memory_space<vmem>>, vector<128x256xbf16>
      tpu.vector_store %arg12[%c0_230, %c0_231], %313 {strides = array<i32>} : memref<128x256xbf16, #tpu.memory_space<vmem>>, vector<128x256xbf16>,
    } else {
    }
    %c0 = arith.constant 0 : index
    %c0_1 = arith.constant 0 : index
    %3 = vector.load %arg10[%c0, %c0_1] : memref<128x256xbf16, #tpu.memory_space<vmem>>, vector<128x32xbf16>
    %c0_2 = arith.constant 0 : index
    %c0_3 = arith.constant 0 : index
    %4 = vector.load %arg11[%c0_2, %c0_3] : memref<128x256xbf16, #tpu.memory_space<vmem>>, vector<128x32xbf16>
    %c0_4 = arith.constant 0 : index
    %c0_5 = arith.constant 0 : index
    %5 = vector.load %arg12[%c0_4, %c0_5] : memref<128x256xbf16, #tpu.memory_space<vmem>>, vector<128x32xbf16>
    %cst = arith.constant dense<0.000000e+00> : vector<128x128xf32>
    %6 = tpu.matmul %3, %4, %cst {dimension_numbers = #tpu.dot_dimension_numbers<[1], [1], [0], [0], [0, 0, 1, 0], [], []>} : vector<128x32xbf16>, vector<128x32xbf16>, vector<128x128xf32> -> vector<128x128xf32>
    %cst_6 = arith.constant dense<0xFF800000> : vector<128xf32>
    %7 = vector.multi_reduction <maximumf>, %6, %cst_6 [1] : vector<128x128xf32> to vector<128xf32>
    %8 = vector.shape_cast %7 : vector<128xf32> to vector<128x1xf32>
    %9 = vector.broadcast %8 : vector<128x1xf32> to vector<128x128xf32>
    %10 = arith.subf %6, %9 : vector<128x128xf32>
    %11 = math.exp %10 : vector<128x128xf32>
    %cst_7 = arith.constant dense<0.000000e+00> : vector<128xf32>
    %12 = vector.multi_reduction <add>, %11, %cst_7 [1] : vector<128x128xf32> to vector<128xf32>
    %13 = vector.shape_cast %12 : vector<128xf32> to vector<128x1xf32>
    %14 = tpu.reciprocal %13 {approx = true} : vector<128x1xf32> -> vector<128x1xf32>
    %15 = vector.broadcast %14 : vector<128x1xf32> to vector<128x128xf32>
    %16 = arith.mulf %11, %15 : vector<128x128xf32>
    %17 = arith.truncf %16 : vector<128x128xf32> to vector<128x128xbf16>
    %cst_8 = arith.constant dense<0.000000e+00> : vector<128x32xf32>
    %18 = tpu.matmul %17, %5, %cst_8 {dimension_numbers = #tpu.dot_dimension_numbers<[1], [0], [0], [1], [0, 0, 1, 1], [], []>} : vector<128x128xbf16>, vector<128x32xbf16>, vector<128x32xf32> -> vector<128x32xf32>
    %19 = arith.truncf %18 : vector<128x32xf32> to vector<128x32xbf16>
    %c0_9 = arith.constant 0 : index
    %c0_10 = arith.constant 0 : index
    %20 = vector.load %arg6[%c0_9, %c0_10] : memref<256x256xbf16, #tpu.memory_space<vmem>>, vector<32x256xbf16>
    %cst_11 = arith.constant dense<0.000000e+00> : vector<128x256xf32>
    %21 = tpu.matmul %19, %20, %cst_11 {dimension_numbers = #tpu.dot_dimension_numbers<[1], [0], [0], [1], [0, 0, 1, 1], [], []>} : vector<128x32xbf16>, vector<32x256xbf16>, vector<128x256xf32> -> vector<128x256xf32>
    %c0_12 = arith.constant 0 : index
    %c0_13 = arith.constant 0 : index
    %c0_14 = arith.constant 0 : index
    %22 = vector.load %arg9[%c0_12, %c0_13, %c0_14] : memref<1x128x128xf32, #tpu.memory_space<vmem>>, vector<1x128x128xf32>
    %23 = vector.shape_cast %22 : vector<1x128x128xf32> to vector<128x128xf32>
    %24 = vector.shape_cast %16 : vector<128x128xf32> to vector<1x128x128xf32>
    tpu.vector_store %arg9[%c0_12, %c0_13, %c0_14], %24 {strides = array<i32>} : memref<1x128x128xf32, #tpu.memory_space<vmem>>, vector<1x128x128xf32>,
    %c0_15 = arith.constant 0 : index
    %c0_16 = arith.constant 0 : index
    %c0_17 = arith.constant 0 : index
    %25 = vector.load %arg8[%c0_15, %c0_16, %c0_17] : memref<1x128x256xf32, #tpu.memory_space<vmem>>, vector<1x128x256xf32>
    %26 = vector.shape_cast %25 : vector<1x128x256xf32> to vector<128x256xf32>
    %27 = vector.shape_cast %21 : vector<128x256xf32> to vector<1x128x256xf32>
    tpu.vector_store %arg8[%c0_15, %c0_16, %c0_17], %27 {strides = array<i32>} : memref<1x128x256xf32, #tpu.memory_space<vmem>>, vector<1x128x256xf32>,
    %c0_18 = arith.constant 0 : index
    %c32 = arith.constant 32 : index
    %28 = vector.load %arg10[%c0_18, %c32] : memref<128x256xbf16, #tpu.memory_space<vmem>>, vector<128x32xbf16>
    %c0_19 = arith.constant 0 : index
    %c32_20 = arith.constant 32 : index
    %29 = vector.load %arg11[%c0_19, %c32_20] : memref<128x256xbf16, #tpu.memory_space<vmem>>, vector<128x32xbf16>
    %c0_21 = arith.constant 0 : index
    %c32_22 = arith.constant 32 : index
    %30 = vector.load %arg12[%c0_21, %c32_22] : memref<128x256xbf16, #tpu.memory_space<vmem>>, vector<128x32xbf16>
    %cst_23 = arith.constant dense<0.000000e+00> : vector<128x128xf32>
    %31 = tpu.matmul %28, %29, %cst_23 {dimension_numbers = #tpu.dot_dimension_numbers<[1], [1], [0], [0], [0, 0, 1, 0], [], []>} : vector<128x32xbf16>, vector<128x32xbf16>, vector<128x128xf32> -> vector<128x128xf32>
    %cst_24 = arith.constant dense<0xFF800000> : vector<128xf32>
    %32 = vector.multi_reduction <maximumf>, %31, %cst_24 [1] : vector<128x128xf32> to vector<128xf32>
    %33 = vector.shape_cast %32 : vector<128xf32> to vector<128x1xf32>
    %34 = vector.broadcast %33 : vector<128x1xf32> to vector<128x128xf32>
    %35 = arith.subf %31, %34 : vector<128x128xf32>
    %36 = math.exp %35 : vector<128x128xf32>
    %cst_25 = arith.constant dense<0.000000e+00> : vector<128xf32>
    %37 = vector.multi_reduction <add>, %36, %cst_25 [1] : vector<128x128xf32> to vector<128xf32>
    %38 = vector.shape_cast %37 : vector<128xf32> to vector<128x1xf32>
    %39 = tpu.reciprocal %38 {approx = true} : vector<128x1xf32> -> vector<128x1xf32>
    %40 = vector.broadcast %39 : vector<128x1xf32> to vector<128x128xf32>
    %41 = arith.mulf %36, %40 : vector<128x128xf32>
    %42 = arith.truncf %41 : vector<128x128xf32> to vector<128x128xbf16>
    %cst_26 = arith.constant dense<0.000000e+00> : vector<128x32xf32>
    %43 = tpu.matmul %42, %30, %cst_26 {dimension_numbers = #tpu.dot_dimension_numbers<[1], [0], [0], [1], [0, 0, 1, 1], [], []>} : vector<128x128xbf16>, vector<128x32xbf16>, vector<128x32xf32> -> vector<128x32xf32>
    %44 = arith.truncf %43 : vector<128x32xf32> to vector<128x32xbf16>
    %c32_27 = arith.constant 32 : index
    %c0_28 = arith.constant 0 : index
    %45 = vector.load %arg6[%c32_27, %c0_28] : memref<256x256xbf16, #tpu.memory_space<vmem>>, vector<32x256xbf16>
    %cst_29 = arith.constant dense<0.000000e+00> : vector<128x256xf32>
    %46 = tpu.matmul %44, %45, %cst_29 {dimension_numbers = #tpu.dot_dimension_numbers<[1], [0], [0], [1], [0, 0, 1, 1], [], []>} : vector<128x32xbf16>, vector<32x256xbf16>, vector<128x256xf32> -> vector<128x256xf32>
    %c0_30 = arith.constant 0 : index
    %c0_31 = arith.constant 0 : index
    %c0_32 = arith.constant 0 : index
    %47 = vector.load %arg9[%c0_30, %c0_31, %c0_32] : memref<1x128x128xf32, #tpu.memory_space<vmem>>, vector<1x128x128xf32>
    %48 = vector.shape_cast %47 : vector<1x128x128xf32> to vector<128x128xf32>
    %49 = arith.addf %48, %41 : vector<128x128xf32>
    %c0_33 = arith.constant 0 : index
    %c0_34 = arith.constant 0 : index
    %c0_35 = arith.constant 0 : index
    %50 = vector.load %arg9[%c0_33, %c0_34, %c0_35] : memref<1x128x128xf32, #tpu.memory_space<vmem>>, vector<1x128x128xf32>
    %51 = vector.shape_cast %50 : vector<1x128x128xf32> to vector<128x128xf32>
    %52 = vector.shape_cast %49 : vector<128x128xf32> to vector<1x128x128xf32>
    tpu.vector_store %arg9[%c0_33, %c0_34, %c0_35], %52 {strides = array<i32>} : memref<1x128x128xf32, #tpu.memory_space<vmem>>, vector<1x128x128xf32>,
    %c0_36 = arith.constant 0 : index
    %c0_37 = arith.constant 0 : index
    %c0_38 = arith.constant 0 : index
    %53 = vector.load %arg8[%c0_36, %c0_37, %c0_38] : memref<1x128x256xf32, #tpu.memory_space<vmem>>, vector<1x128x256xf32>
    %54 = vector.shape_cast %53 : vector<1x128x256xf32> to vector<128x256xf32>
    %55 = arith.addf %54, %46 : vector<128x256xf32>
    %c0_39 = arith.constant 0 : index
    %c0_40 = arith.constant 0 : index
    %c0_41 = arith.constant 0 : index
    %56 = vector.load %arg8[%c0_39, %c0_40, %c0_41] : memref<1x128x256xf32, #tpu.memory_space<vmem>>, vector<1x128x256xf32>
    %57 = vector.shape_cast %56 : vector<1x128x256xf32> to vector<128x256xf32>
    %58 = vector.shape_cast %55 : vector<128x256xf32> to vector<1x128x256xf32>
    tpu.vector_store %arg8[%c0_39, %c0_40, %c0_41], %58 {strides = array<i32>} : memref<1x128x256xf32, #tpu.memory_space<vmem>>, vector<1x128x256xf32>,
    %c0_42 = arith.constant 0 : index
    %c64 = arith.constant 64 : index
    %59 = vector.load %arg10[%c0_42, %c64] : memref<128x256xbf16, #tpu.memory_space<vmem>>, vector<128x32xbf16>
    %c0_43 = arith.constant 0 : index
    %c64_44 = arith.constant 64 : index
    %60 = vector.load %arg11[%c0_43, %c64_44] : memref<128x256xbf16, #tpu.memory_space<vmem>>, vector<128x32xbf16>
    %c0_45 = arith.constant 0 : index
    %c64_46 = arith.constant 64 : index
    %61 = vector.load %arg12[%c0_45, %c64_46] : memref<128x256xbf16, #tpu.memory_space<vmem>>, vector<128x32xbf16>
    %cst_47 = arith.constant dense<0.000000e+00> : vector<128x128xf32>
    %62 = tpu.matmul %59, %60, %cst_47 {dimension_numbers = #tpu.dot_dimension_numbers<[1], [1], [0], [0], [0, 0, 1, 0], [], []>} : vector<128x32xbf16>, vector<128x32xbf16>, vector<128x128xf32> -> vector<128x128xf32>
    %cst_48 = arith.constant dense<0xFF800000> : vector<128xf32>
    %63 = vector.multi_reduction <maximumf>, %62, %cst_48 [1] : vector<128x128xf32> to vector<128xf32>
    %64 = vector.shape_cast %63 : vector<128xf32> to vector<128x1xf32>
    %65 = vector.broadcast %64 : vector<128x1xf32> to vector<128x128xf32>
    %66 = arith.subf %62, %65 : vector<128x128xf32>
    %67 = math.exp %66 : vector<128x128xf32>
    %cst_49 = arith.constant dense<0.000000e+00> : vector<128xf32>
    %68 = vector.multi_reduction <add>, %67, %cst_49 [1] : vector<128x128xf32> to vector<128xf32>
    %69 = vector.shape_cast %68 : vector<128xf32> to vector<128x1xf32>
    %70 = tpu.reciprocal %69 {approx = true} : vector<128x1xf32> -> vector<128x1xf32>
    %71 = vector.broadcast %70 : vector<128x1xf32> to vector<128x128xf32>
    %72 = arith.mulf %67, %71 : vector<128x128xf32>
    %73 = arith.truncf %72 : vector<128x128xf32> to vector<128x128xbf16>
    %cst_50 = arith.constant dense<0.000000e+00> : vector<128x32xf32>
    %74 = tpu.matmul %73, %61, %cst_50 {dimension_numbers = #tpu.dot_dimension_numbers<[1], [0], [0], [1], [0, 0, 1, 1], [], []>} : vector<128x128xbf16>, vector<128x32xbf16>, vector<128x32xf32> -> vector<128x32xf32>
    %75 = arith.truncf %74 : vector<128x32xf32> to vector<128x32xbf16>
    %c64_51 = arith.constant 64 : index
    %c0_52 = arith.constant 0 : index
    %76 = vector.load %arg6[%c64_51, %c0_52] : memref<256x256xbf16, #tpu.memory_space<vmem>>, vector<32x256xbf16>
    %cst_53 = arith.constant dense<0.000000e+00> : vector<128x256xf32>
    %77 = tpu.matmul %75, %76, %cst_53 {dimension_numbers = #tpu.dot_dimension_numbers<[1], [0], [0], [1], [0, 0, 1, 1], [], []>} : vector<128x32xbf16>, vector<32x256xbf16>, vector<128x256xf32> -> vector<128x256xf32>
    %c0_54 = arith.constant 0 : index
    %c0_55 = arith.constant 0 : index
    %c0_56 = arith.constant 0 : index
    %78 = vector.load %arg9[%c0_54, %c0_55, %c0_56] : memref<1x128x128xf32, #tpu.memory_space<vmem>>, vector<1x128x128xf32>
    %79 = vector.shape_cast %78 : vector<1x128x128xf32> to vector<128x128xf32>
    %80 = arith.addf %79, %72 : vector<128x128xf32>
    %c0_57 = arith.constant 0 : index
    %c0_58 = arith.constant 0 : index
    %c0_59 = arith.constant 0 : index
    %81 = vector.load %arg9[%c0_57, %c0_58, %c0_59] : memref<1x128x128xf32, #tpu.memory_space<vmem>>, vector<1x128x128xf32>
    %82 = vector.shape_cast %81 : vector<1x128x128xf32> to vector<128x128xf32>
    %83 = vector.shape_cast %80 : vector<128x128xf32> to vector<1x128x128xf32>
    tpu.vector_store %arg9[%c0_57, %c0_58, %c0_59], %83 {strides = array<i32>} : memref<1x128x128xf32, #tpu.memory_space<vmem>>, vector<1x128x128xf32>,
    %c0_60 = arith.constant 0 : index
    %c0_61 = arith.constant 0 : index
    %c0_62 = arith.constant 0 : index
    %84 = vector.load %arg8[%c0_60, %c0_61, %c0_62] : memref<1x128x256xf32, #tpu.memory_space<vmem>>, vector<1x128x256xf32>
    %85 = vector.shape_cast %84 : vector<1x128x256xf32> to vector<128x256xf32>
    %86 = arith.addf %85, %77 : vector<128x256xf32>
    %c0_63 = arith.constant 0 : index
    %c0_64 = arith.constant 0 : index
    %c0_65 = arith.constant 0 : index
    %87 = vector.load %arg8[%c0_63, %c0_64, %c0_65] : memref<1x128x256xf32, #tpu.memory_space<vmem>>, vector<1x128x256xf32>
    %88 = vector.shape_cast %87 : vector<1x128x256xf32> to vector<128x256xf32>
    %89 = vector.shape_cast %86 : vector<128x256xf32> to vector<1x128x256xf32>
    tpu.vector_store %arg8[%c0_63, %c0_64, %c0_65], %89 {strides = array<i32>} : memref<1x128x256xf32, #tpu.memory_space<vmem>>, vector<1x128x256xf32>,
    %c0_66 = arith.constant 0 : index
    %c96 = arith.constant 96 : index
    %90 = vector.load %arg10[%c0_66, %c96] : memref<128x256xbf16, #tpu.memory_space<vmem>>, vector<128x32xbf16>
    %c0_67 = arith.constant 0 : index
    %c96_68 = arith.constant 96 : index
    %91 = vector.load %arg11[%c0_67, %c96_68] : memref<128x256xbf16, #tpu.memory_space<vmem>>, vector<128x32xbf16>
    %c0_69 = arith.constant 0 : index
    %c96_70 = arith.constant 96 : index
    %92 = vector.load %arg12[%c0_69, %c96_70] : memref<128x256xbf16, #tpu.memory_space<vmem>>, vector<128x32xbf16>
    %cst_71 = arith.constant dense<0.000000e+00> : vector<128x128xf32>
    %93 = tpu.matmul %90, %91, %cst_71 {dimension_numbers = #tpu.dot_dimension_numbers<[1], [1], [0], [0], [0, 0, 1, 0], [], []>} : vector<128x32xbf16>, vector<128x32xbf16>, vector<128x128xf32> -> vector<128x128xf32>
    %cst_72 = arith.constant dense<0xFF800000> : vector<128xf32>
    %94 = vector.multi_reduction <maximumf>, %93, %cst_72 [1] : vector<128x128xf32> to vector<128xf32>
    %95 = vector.shape_cast %94 : vector<128xf32> to vector<128x1xf32>
    %96 = vector.broadcast %95 : vector<128x1xf32> to vector<128x128xf32>
    %97 = arith.subf %93, %96 : vector<128x128xf32>
    %98 = math.exp %97 : vector<128x128xf32>
    %cst_73 = arith.constant dense<0.000000e+00> : vector<128xf32>
    %99 = vector.multi_reduction <add>, %98, %cst_73 [1] : vector<128x128xf32> to vector<128xf32>
    %100 = vector.shape_cast %99 : vector<128xf32> to vector<128x1xf32>
    %101 = tpu.reciprocal %100 {approx = true} : vector<128x1xf32> -> vector<128x1xf32>
    %102 = vector.broadcast %101 : vector<128x1xf32> to vector<128x128xf32>
    %103 = arith.mulf %98, %102 : vector<128x128xf32>
    %104 = arith.truncf %103 : vector<128x128xf32> to vector<128x128xbf16>
    %cst_74 = arith.constant dense<0.000000e+00> : vector<128x32xf32>
    %105 = tpu.matmul %104, %92, %cst_74 {dimension_numbers = #tpu.dot_dimension_numbers<[1], [0], [0], [1], [0, 0, 1, 1], [], []>} : vector<128x128xbf16>, vector<128x32xbf16>, vector<128x32xf32> -> vector<128x32xf32>
    %106 = arith.truncf %105 : vector<128x32xf32> to vector<128x32xbf16>
    %c96_75 = arith.constant 96 : index
    %c0_76 = arith.constant 0 : index
    %107 = vector.load %arg6[%c96_75, %c0_76] : memref<256x256xbf16, #tpu.memory_space<vmem>>, vector<32x256xbf16>
    %cst_77 = arith.constant dense<0.000000e+00> : vector<128x256xf32>
    %108 = tpu.matmul %106, %107, %cst_77 {dimension_numbers = #tpu.dot_dimension_numbers<[1], [0], [0], [1], [0, 0, 1, 1], [], []>} : vector<128x32xbf16>, vector<32x256xbf16>, vector<128x256xf32> -> vector<128x256xf32>
    %c0_78 = arith.constant 0 : index
    %c0_79 = arith.constant 0 : index
    %c0_80 = arith.constant 0 : index
    %109 = vector.load %arg9[%c0_78, %c0_79, %c0_80] : memref<1x128x128xf32, #tpu.memory_space<vmem>>, vector<1x128x128xf32>
    %110 = vector.shape_cast %109 : vector<1x128x128xf32> to vector<128x128xf32>
    %111 = arith.addf %110, %103 : vector<128x128xf32>
    %c0_81 = arith.constant 0 : index
    %c0_82 = arith.constant 0 : index
    %c0_83 = arith.constant 0 : index
    %112 = vector.load %arg9[%c0_81, %c0_82, %c0_83] : memref<1x128x128xf32, #tpu.memory_space<vmem>>, vector<1x128x128xf32>
    %113 = vector.shape_cast %112 : vector<1x128x128xf32> to vector<128x128xf32>
    %114 = vector.shape_cast %111 : vector<128x128xf32> to vector<1x128x128xf32>
    tpu.vector_store %arg9[%c0_81, %c0_82, %c0_83], %114 {strides = array<i32>} : memref<1x128x128xf32, #tpu.memory_space<vmem>>, vector<1x128x128xf32>,
    %c0_84 = arith.constant 0 : index
    %c0_85 = arith.constant 0 : index
    %c0_86 = arith.constant 0 : index
    %115 = vector.load %arg8[%c0_84, %c0_85, %c0_86] : memref<1x128x256xf32, #tpu.memory_space<vmem>>, vector<1x128x256xf32>
    %116 = vector.shape_cast %115 : vector<1x128x256xf32> to vector<128x256xf32>
    %117 = arith.addf %116, %108 : vector<128x256xf32>
    %c0_87 = arith.constant 0 : index
    %c0_88 = arith.constant 0 : index
    %c0_89 = arith.constant 0 : index
    %118 = vector.load %arg8[%c0_87, %c0_88, %c0_89] : memref<1x128x256xf32, #tpu.memory_space<vmem>>, vector<1x128x256xf32>
    %119 = vector.shape_cast %118 : vector<1x128x256xf32> to vector<128x256xf32>
    %120 = vector.shape_cast %117 : vector<128x256xf32> to vector<1x128x256xf32>
    tpu.vector_store %arg8[%c0_87, %c0_88, %c0_89], %120 {strides = array<i32>} : memref<1x128x256xf32, #tpu.memory_space<vmem>>, vector<1x128x256xf32>,
    %c0_90 = arith.constant 0 : index
    %c128 = arith.constant 128 : index
    %121 = vector.load %arg10[%c0_90, %c128] : memref<128x256xbf16, #tpu.memory_space<vmem>>, vector<128x32xbf16>
    %c0_91 = arith.constant 0 : index
    %c128_92 = arith.constant 128 : index
    %122 = vector.load %arg11[%c0_91, %c128_92] : memref<128x256xbf16, #tpu.memory_space<vmem>>, vector<128x32xbf16>
    %c0_93 = arith.constant 0 : index
    %c128_94 = arith.constant 128 : index
    %123 = vector.load %arg12[%c0_93, %c128_94] : memref<128x256xbf16, #tpu.memory_space<vmem>>, vector<128x32xbf16>
    %cst_95 = arith.constant dense<0.000000e+00> : vector<128x128xf32>
    %124 = tpu.matmul %121, %122, %cst_95 {dimension_numbers = #tpu.dot_dimension_numbers<[1], [1], [0], [0], [0, 0, 1, 0], [], []>} : vector<128x32xbf16>, vector<128x32xbf16>, vector<128x128xf32> -> vector<128x128xf32>
    %cst_96 = arith.constant dense<0xFF800000> : vector<128xf32>
    %125 = vector.multi_reduction <maximumf>, %124, %cst_96 [1] : vector<128x128xf32> to vector<128xf32>
    %126 = vector.shape_cast %125 : vector<128xf32> to vector<128x1xf32>
    %127 = vector.broadcast %126 : vector<128x1xf32> to vector<128x128xf32>
    %128 = arith.subf %124, %127 : vector<128x128xf32>
    %129 = math.exp %128 : vector<128x128xf32>
    %cst_97 = arith.constant dense<0.000000e+00> : vector<128xf32>
    %130 = vector.multi_reduction <add>, %129, %cst_97 [1] : vector<128x128xf32> to vector<128xf32>
    %131 = vector.shape_cast %130 : vector<128xf32> to vector<128x1xf32>
    %132 = tpu.reciprocal %131 {approx = true} : vector<128x1xf32> -> vector<128x1xf32>
    %133 = vector.broadcast %132 : vector<128x1xf32> to vector<128x128xf32>
    %134 = arith.mulf %129, %133 : vector<128x128xf32>
    %135 = arith.truncf %134 : vector<128x128xf32> to vector<128x128xbf16>
    %cst_98 = arith.constant dense<0.000000e+00> : vector<128x32xf32>
    %136 = tpu.matmul %135, %123, %cst_98 {dimension_numbers = #tpu.dot_dimension_numbers<[1], [0], [0], [1], [0, 0, 1, 1], [], []>} : vector<128x128xbf16>, vector<128x32xbf16>, vector<128x32xf32> -> vector<128x32xf32>
    %137 = arith.truncf %136 : vector<128x32xf32> to vector<128x32xbf16>
    %c128_99 = arith.constant 128 : index
    %c0_100 = arith.constant 0 : index
    %138 = vector.load %arg6[%c128_99, %c0_100] : memref<256x256xbf16, #tpu.memory_space<vmem>>, vector<32x256xbf16>
    %cst_101 = arith.constant dense<0.000000e+00> : vector<128x256xf32>
    %139 = tpu.matmul %137, %138, %cst_101 {dimension_numbers = #tpu.dot_dimension_numbers<[1], [0], [0], [1], [0, 0, 1, 1], [], []>} : vector<128x32xbf16>, vector<32x256xbf16>, vector<128x256xf32> -> vector<128x256xf32>
    %c0_102 = arith.constant 0 : index
    %c0_103 = arith.constant 0 : index
    %c0_104 = arith.constant 0 : index
    %140 = vector.load %arg9[%c0_102, %c0_103, %c0_104] : memref<1x128x128xf32, #tpu.memory_space<vmem>>, vector<1x128x128xf32>
    %141 = vector.shape_cast %140 : vector<1x128x128xf32> to vector<128x128xf32>
    %142 = arith.addf %141, %134 : vector<128x128xf32>
    %c0_105 = arith.constant 0 : index
    %c0_106 = arith.constant 0 : index
    %c0_107 = arith.constant 0 : index
    %143 = vector.load %arg9[%c0_105, %c0_106, %c0_107] : memref<1x128x128xf32, #tpu.memory_space<vmem>>, vector<1x128x128xf32>
    %144 = vector.shape_cast %143 : vector<1x128x128xf32> to vector<128x128xf32>
    %145 = vector.shape_cast %142 : vector<128x128xf32> to vector<1x128x128xf32>
    tpu.vector_store %arg9[%c0_105, %c0_106, %c0_107], %145 {strides = array<i32>} : memref<1x128x128xf32, #tpu.memory_space<vmem>>, vector<1x128x128xf32>,
    %c0_108 = arith.constant 0 : index
    %c0_109 = arith.constant 0 : index
    %c0_110 = arith.constant 0 : index
    %146 = vector.load %arg8[%c0_108, %c0_109, %c0_110] : memref<1x128x256xf32, #tpu.memory_space<vmem>>, vector<1x128x256xf32>
    %147 = vector.shape_cast %146 : vector<1x128x256xf32> to vector<128x256xf32>
    %148 = arith.addf %147, %139 : vector<128x256xf32>
    %c0_111 = arith.constant 0 : index
    %c0_112 = arith.constant 0 : index
    %c0_113 = arith.constant 0 : index
    %149 = vector.load %arg8[%c0_111, %c0_112, %c0_113] : memref<1x128x256xf32, #tpu.memory_space<vmem>>, vector<1x128x256xf32>
    %150 = vector.shape_cast %149 : vector<1x128x256xf32> to vector<128x256xf32>
    %151 = vector.shape_cast %148 : vector<128x256xf32> to vector<1x128x256xf32>
    tpu.vector_store %arg8[%c0_111, %c0_112, %c0_113], %151 {strides = array<i32>} : memref<1x128x256xf32, #tpu.memory_space<vmem>>, vector<1x128x256xf32>,
    %c0_114 = arith.constant 0 : index
    %c160 = arith.constant 160 : index
    %152 = vector.load %arg10[%c0_114, %c160] : memref<128x256xbf16, #tpu.memory_space<vmem>>, vector<128x32xbf16>
    %c0_115 = arith.constant 0 : index
    %c160_116 = arith.constant 160 : index
    %153 = vector.load %arg11[%c0_115, %c160_116] : memref<128x256xbf16, #tpu.memory_space<vmem>>, vector<128x32xbf16>
    %c0_117 = arith.constant 0 : index
    %c160_118 = arith.constant 160 : index
    %154 = vector.load %arg12[%c0_117, %c160_118] : memref<128x256xbf16, #tpu.memory_space<vmem>>, vector<128x32xbf16>
    %cst_119 = arith.constant dense<0.000000e+00> : vector<128x128xf32>
    %155 = tpu.matmul %152, %153, %cst_119 {dimension_numbers = #tpu.dot_dimension_numbers<[1], [1], [0], [0], [0, 0, 1, 0], [], []>} : vector<128x32xbf16>, vector<128x32xbf16>, vector<128x128xf32> -> vector<128x128xf32>
    %cst_120 = arith.constant dense<0xFF800000> : vector<128xf32>
    %156 = vector.multi_reduction <maximumf>, %155, %cst_120 [1] : vector<128x128xf32> to vector<128xf32>
    %157 = vector.shape_cast %156 : vector<128xf32> to vector<128x1xf32>
    %158 = vector.broadcast %157 : vector<128x1xf32> to vector<128x128xf32>
    %159 = arith.subf %155, %158 : vector<128x128xf32>
    %160 = math.exp %159 : vector<128x128xf32>
    %cst_121 = arith.constant dense<0.000000e+00> : vector<128xf32>
    %161 = vector.multi_reduction <add>, %160, %cst_121 [1] : vector<128x128xf32> to vector<128xf32>
    %162 = vector.shape_cast %161 : vector<128xf32> to vector<128x1xf32>
    %163 = tpu.reciprocal %162 {approx = true} : vector<128x1xf32> -> vector<128x1xf32>
    %164 = vector.broadcast %163 : vector<128x1xf32> to vector<128x128xf32>
    %165 = arith.mulf %160, %164 : vector<128x128xf32>
    %166 = arith.truncf %165 : vector<128x128xf32> to vector<128x128xbf16>
    %cst_122 = arith.constant dense<0.000000e+00> : vector<128x32xf32>
    %167 = tpu.matmul %166, %154, %cst_122 {dimension_numbers = #tpu.dot_dimension_numbers<[1], [0], [0], [1], [0, 0, 1, 1], [], []>} : vector<128x128xbf16>, vector<128x32xbf16>, vector<128x32xf32> -> vector<128x32xf32>
    %168 = arith.truncf %167 : vector<128x32xf32> to vector<128x32xbf16>
    %c160_123 = arith.constant 160 : index
    %c0_124 = arith.constant 0 : index
    %169 = vector.load %arg6[%c160_123, %c0_124] : memref<256x256xbf16, #tpu.memory_space<vmem>>, vector<32x256xbf16>
    %cst_125 = arith.constant dense<0.000000e+00> : vector<128x256xf32>
    %170 = tpu.matmul %168, %169, %cst_125 {dimension_numbers = #tpu.dot_dimension_numbers<[1], [0], [0], [1], [0, 0, 1, 1], [], []>} : vector<128x32xbf16>, vector<32x256xbf16>, vector<128x256xf32> -> vector<128x256xf32>
    %c0_126 = arith.constant 0 : index
    %c0_127 = arith.constant 0 : index
    %c0_128 = arith.constant 0 : index
    %171 = vector.load %arg9[%c0_126, %c0_127, %c0_128] : memref<1x128x128xf32, #tpu.memory_space<vmem>>, vector<1x128x128xf32>
    %172 = vector.shape_cast %171 : vector<1x128x128xf32> to vector<128x128xf32>
    %173 = arith.addf %172, %165 : vector<128x128xf32>
    %c0_129 = arith.constant 0 : index
    %c0_130 = arith.constant 0 : index
    %c0_131 = arith.constant 0 : index
    %174 = vector.load %arg9[%c0_129, %c0_130, %c0_131] : memref<1x128x128xf32, #tpu.memory_space<vmem>>, vector<1x128x128xf32>
    %175 = vector.shape_cast %174 : vector<1x128x128xf32> to vector<128x128xf32>
    %176 = vector.shape_cast %173 : vector<128x128xf32> to vector<1x128x128xf32>
    tpu.vector_store %arg9[%c0_129, %c0_130, %c0_131], %176 {strides = array<i32>} : memref<1x128x128xf32, #tpu.memory_space<vmem>>, vector<1x128x128xf32>,
    %c0_132 = arith.constant 0 : index
    %c0_133 = arith.constant 0 : index
    %c0_134 = arith.constant 0 : index
    %177 = vector.load %arg8[%c0_132, %c0_133, %c0_134] : memref<1x128x256xf32, #tpu.memory_space<vmem>>, vector<1x128x256xf32>
    %178 = vector.shape_cast %177 : vector<1x128x256xf32> to vector<128x256xf32>
    %179 = arith.addf %178, %170 : vector<128x256xf32>
    %c0_135 = arith.constant 0 : index
    %c0_136 = arith.constant 0 : index
    %c0_137 = arith.constant 0 : index
    %180 = vector.load %arg8[%c0_135, %c0_136, %c0_137] : memref<1x128x256xf32, #tpu.memory_space<vmem>>, vector<1x128x256xf32>
    %181 = vector.shape_cast %180 : vector<1x128x256xf32> to vector<128x256xf32>
    %182 = vector.shape_cast %179 : vector<128x256xf32> to vector<1x128x256xf32>
    tpu.vector_store %arg8[%c0_135, %c0_136, %c0_137], %182 {strides = array<i32>} : memref<1x128x256xf32, #tpu.memory_space<vmem>>, vector<1x128x256xf32>,
    %c0_138 = arith.constant 0 : index
    %c192 = arith.constant 192 : index
    %183 = vector.load %arg10[%c0_138, %c192] : memref<128x256xbf16, #tpu.memory_space<vmem>>, vector<128x32xbf16>
    %c0_139 = arith.constant 0 : index
    %c192_140 = arith.constant 192 : index
    %184 = vector.load %arg11[%c0_139, %c192_140] : memref<128x256xbf16, #tpu.memory_space<vmem>>, vector<128x32xbf16>
    %c0_141 = arith.constant 0 : index
    %c192_142 = arith.constant 192 : index
    %185 = vector.load %arg12[%c0_141, %c192_142] : memref<128x256xbf16, #tpu.memory_space<vmem>>, vector<128x32xbf16>
    %cst_143 = arith.constant dense<0.000000e+00> : vector<128x128xf32>
    %186 = tpu.matmul %183, %184, %cst_143 {dimension_numbers = #tpu.dot_dimension_numbers<[1], [1], [0], [0], [0, 0, 1, 0], [], []>} : vector<128x32xbf16>, vector<128x32xbf16>, vector<128x128xf32> -> vector<128x128xf32>
    %cst_144 = arith.constant dense<0xFF800000> : vector<128xf32>
    %187 = vector.multi_reduction <maximumf>, %186, %cst_144 [1] : vector<128x128xf32> to vector<128xf32>
    %188 = vector.shape_cast %187 : vector<128xf32> to vector<128x1xf32>
    %189 = vector.broadcast %188 : vector<128x1xf32> to vector<128x128xf32>
    %190 = arith.subf %186, %189 : vector<128x128xf32>
    %191 = math.exp %190 : vector<128x128xf32>
    %cst_145 = arith.constant dense<0.000000e+00> : vector<128xf32>
    %192 = vector.multi_reduction <add>, %191, %cst_145 [1] : vector<128x128xf32> to vector<128xf32>
    %193 = vector.shape_cast %192 : vector<128xf32> to vector<128x1xf32>
    %194 = tpu.reciprocal %193 {approx = true} : vector<128x1xf32> -> vector<128x1xf32>
    %195 = vector.broadcast %194 : vector<128x1xf32> to vector<128x128xf32>
    %196 = arith.mulf %191, %195 : vector<128x128xf32>
    %197 = arith.truncf %196 : vector<128x128xf32> to vector<128x128xbf16>
    %cst_146 = arith.constant dense<0.000000e+00> : vector<128x32xf32>
    %198 = tpu.matmul %197, %185, %cst_146 {dimension_numbers = #tpu.dot_dimension_numbers<[1], [0], [0], [1], [0, 0, 1, 1], [], []>} : vector<128x128xbf16>, vector<128x32xbf16>, vector<128x32xf32> -> vector<128x32xf32>
    %199 = arith.truncf %198 : vector<128x32xf32> to vector<128x32xbf16>
    %c192_147 = arith.constant 192 : index
    %c0_148 = arith.constant 0 : index
    %200 = vector.load %arg6[%c192_147, %c0_148] : memref<256x256xbf16, #tpu.memory_space<vmem>>, vector<32x256xbf16>
    %cst_149 = arith.constant dense<0.000000e+00> : vector<128x256xf32>
    %201 = tpu.matmul %199, %200, %cst_149 {dimension_numbers = #tpu.dot_dimension_numbers<[1], [0], [0], [1], [0, 0, 1, 1], [], []>} : vector<128x32xbf16>, vector<32x256xbf16>, vector<128x256xf32> -> vector<128x256xf32>
    %c0_150 = arith.constant 0 : index
    %c0_151 = arith.constant 0 : index
    %c0_152 = arith.constant 0 : index
    %202 = vector.load %arg9[%c0_150, %c0_151, %c0_152] : memref<1x128x128xf32, #tpu.memory_space<vmem>>, vector<1x128x128xf32>
    %203 = vector.shape_cast %202 : vector<1x128x128xf32> to vector<128x128xf32>
    %204 = arith.addf %203, %196 : vector<128x128xf32>
    %c0_153 = arith.constant 0 : index
    %c0_154 = arith.constant 0 : index
    %c0_155 = arith.constant 0 : index
    %205 = vector.load %arg9[%c0_153, %c0_154, %c0_155] : memref<1x128x128xf32, #tpu.memory_space<vmem>>, vector<1x128x128xf32>
    %206 = vector.shape_cast %205 : vector<1x128x128xf32> to vector<128x128xf32>
    %207 = vector.shape_cast %204 : vector<128x128xf32> to vector<1x128x128xf32>
    tpu.vector_store %arg9[%c0_153, %c0_154, %c0_155], %207 {strides = array<i32>} : memref<1x128x128xf32, #tpu.memory_space<vmem>>, vector<1x128x128xf32>,
    %c0_156 = arith.constant 0 : index
    %c0_157 = arith.constant 0 : index
    %c0_158 = arith.constant 0 : index
    %208 = vector.load %arg8[%c0_156, %c0_157, %c0_158] : memref<1x128x256xf32, #tpu.memory_space<vmem>>, vector<1x128x256xf32>
    %209 = vector.shape_cast %208 : vector<1x128x256xf32> to vector<128x256xf32>
    %210 = arith.addf %209, %201 : vector<128x256xf32>
    %c0_159 = arith.constant 0 : index
    %c0_160 = arith.constant 0 : index
    %c0_161 = arith.constant 0 : index
    %211 = vector.load %arg8[%c0_159, %c0_160, %c0_161] : memref<1x128x256xf32, #tpu.memory_space<vmem>>, vector<1x128x256xf32>
    %212 = vector.shape_cast %211 : vector<1x128x256xf32> to vector<128x256xf32>
    %213 = vector.shape_cast %210 : vector<128x256xf32> to vector<1x128x256xf32>
    tpu.vector_store %arg8[%c0_159, %c0_160, %c0_161], %213 {strides = array<i32>} : memref<1x128x256xf32, #tpu.memory_space<vmem>>, vector<1x128x256xf32>,
    %c0_162 = arith.constant 0 : index
    %c224 = arith.constant 224 : index
    %214 = vector.load %arg10[%c0_162, %c224] : memref<128x256xbf16, #tpu.memory_space<vmem>>, vector<128x32xbf16>
    %c0_163 = arith.constant 0 : index
    %c224_164 = arith.constant 224 : index
    %215 = vector.load %arg11[%c0_163, %c224_164] : memref<128x256xbf16, #tpu.memory_space<vmem>>, vector<128x32xbf16>
    %c0_165 = arith.constant 0 : index
    %c224_166 = arith.constant 224 : index
    %216 = vector.load %arg12[%c0_165, %c224_166] : memref<128x256xbf16, #tpu.memory_space<vmem>>, vector<128x32xbf16>
    %cst_167 = arith.constant dense<0.000000e+00> : vector<128x128xf32>
    %217 = tpu.matmul %214, %215, %cst_167 {dimension_numbers = #tpu.dot_dimension_numbers<[1], [1], [0], [0], [0, 0, 1, 0], [], []>} : vector<128x32xbf16>, vector<128x32xbf16>, vector<128x128xf32> -> vector<128x128xf32>
    %cst_168 = arith.constant dense<0xFF800000> : vector<128xf32>
    %218 = vector.multi_reduction <maximumf>, %217, %cst_168 [1] : vector<128x128xf32> to vector<128xf32>
    %219 = vector.shape_cast %218 : vector<128xf32> to vector<128x1xf32>
    %220 = vector.broadcast %219 : vector<128x1xf32> to vector<128x128xf32>
    %221 = arith.subf %217, %220 : vector<128x128xf32>
    %222 = math.exp %221 : vector<128x128xf32>
    %cst_169 = arith.constant dense<0.000000e+00> : vector<128xf32>
    %223 = vector.multi_reduction <add>, %222, %cst_169 [1] : vector<128x128xf32> to vector<128xf32>
    %224 = vector.shape_cast %223 : vector<128xf32> to vector<128x1xf32>
    %225 = tpu.reciprocal %224 {approx = true} : vector<128x1xf32> -> vector<128x1xf32>
    %226 = vector.broadcast %225 : vector<128x1xf32> to vector<128x128xf32>
    %227 = arith.mulf %222, %226 : vector<128x128xf32>
    %228 = arith.truncf %227 : vector<128x128xf32> to vector<128x128xbf16>
    %cst_170 = arith.constant dense<0.000000e+00> : vector<128x32xf32>
    %229 = tpu.matmul %228, %216, %cst_170 {dimension_numbers = #tpu.dot_dimension_numbers<[1], [0], [0], [1], [0, 0, 1, 1], [], []>} : vector<128x128xbf16>, vector<128x32xbf16>, vector<128x32xf32> -> vector<128x32xf32>
    %230 = arith.truncf %229 : vector<128x32xf32> to vector<128x32xbf16>
    %c224_171 = arith.constant 224 : index
    %c0_172 = arith.constant 0 : index
    %231 = vector.load %arg6[%c224_171, %c0_172] : memref<256x256xbf16, #tpu.memory_space<vmem>>, vector<32x256xbf16>
    %cst_173 = arith.constant dense<0.000000e+00> : vector<128x256xf32>
    %232 = tpu.matmul %230, %231, %cst_173 {dimension_numbers = #tpu.dot_dimension_numbers<[1], [0], [0], [1], [0, 0, 1, 1], [], []>} : vector<128x32xbf16>, vector<32x256xbf16>, vector<128x256xf32> -> vector<128x256xf32>
    %c0_174 = arith.constant 0 : index
    %c0_175 = arith.constant 0 : index
    %c0_176 = arith.constant 0 : index
    %233 = vector.load %arg9[%c0_174, %c0_175, %c0_176] : memref<1x128x128xf32, #tpu.memory_space<vmem>>, vector<1x128x128xf32>
    %234 = vector.shape_cast %233 : vector<1x128x128xf32> to vector<128x128xf32>
    %235 = arith.addf %234, %227 : vector<128x128xf32>
    %c0_177 = arith.constant 0 : index
    %c0_178 = arith.constant 0 : index
    %c0_179 = arith.constant 0 : index
    %236 = vector.load %arg9[%c0_177, %c0_178, %c0_179] : memref<1x128x128xf32, #tpu.memory_space<vmem>>, vector<1x128x128xf32>
    %237 = vector.shape_cast %236 : vector<1x128x128xf32> to vector<128x128xf32>
    %238 = vector.shape_cast %235 : vector<128x128xf32> to vector<1x128x128xf32>
    tpu.vector_store %arg9[%c0_177, %c0_178, %c0_179], %238 {strides = array<i32>} : memref<1x128x128xf32, #tpu.memory_space<vmem>>, vector<1x128x128xf32>,
    %c0_180 = arith.constant 0 : index
    %c0_181 = arith.constant 0 : index
    %c0_182 = arith.constant 0 : index
    %239 = vector.load %arg8[%c0_180, %c0_181, %c0_182] : memref<1x128x256xf32, #tpu.memory_space<vmem>>, vector<1x128x256xf32>
    %240 = vector.shape_cast %239 : vector<1x128x256xf32> to vector<128x256xf32>
    %241 = arith.addf %240, %232 : vector<128x256xf32>
    %c0_183 = arith.constant 0 : index
    %c0_184 = arith.constant 0 : index
    %c0_185 = arith.constant 0 : index
    %242 = vector.load %arg8[%c0_183, %c0_184, %c0_185] : memref<1x128x256xf32, #tpu.memory_space<vmem>>, vector<1x128x256xf32>
    %243 = vector.shape_cast %242 : vector<1x128x256xf32> to vector<128x256xf32>
    %244 = vector.shape_cast %241 : vector<128x256xf32> to vector<1x128x256xf32>
    tpu.vector_store %arg8[%c0_183, %c0_184, %c0_185], %244 {strides = array<i32>} : memref<1x128x256xf32, #tpu.memory_space<vmem>>, vector<1x128x256xf32>,
    %c0_186 = arith.constant 0 : index
    %c0_187 = arith.constant 0 : index
    %c0_188 = arith.constant 0 : index
    %245 = vector.load %arg9[%c0_186, %c0_187, %c0_188] : memref<1x128x128xf32, #tpu.memory_space<vmem>>, vector<1x128x128xf32>
    %246 = vector.shape_cast %245 : vector<1x128x128xf32> to vector<128x128xf32>
    %cst_189 = arith.constant 1.250000e-01 : f32
    %247 = vector.broadcast %cst_189 : f32 to vector<128x128xf32>
    %248 = arith.mulf %246, %247 : vector<128x128xf32>
    %c0_190 = arith.constant 0 : index
    %c0_191 = arith.constant 0 : index
    %c0_192 = arith.constant 0 : index
    %249 = vector.load %arg9[%c0_190, %c0_191, %c0_192] : memref<1x128x128xf32, #tpu.memory_space<vmem>>, vector<1x128x128xf32>
    %250 = vector.shape_cast %249 : vector<1x128x128xf32> to vector<128x128xf32>
    %251 = vector.shape_cast %248 : vector<128x128xf32> to vector<1x128x128xf32>
    tpu.vector_store %arg9[%c0_190, %c0_191, %c0_192], %251 {strides = array<i32>} : memref<1x128x128xf32, #tpu.memory_space<vmem>>, vector<1x128x128xf32>,
    %c3 = arith.constant 3 : index
    %c0_193 = arith.constant 0 : index
    %252 = vector.load %arg7[%c3, %c0_193] : memref<8x256xf32, #tpu.memory_space<vmem>>, vector<1x256xf32>
    %c4 = arith.constant 4 : index
    %c0_194 = arith.constant 0 : index
    %253 = vector.load %arg7[%c4, %c0_194] : memref<8x256xf32, #tpu.memory_space<vmem>>, vector<1x256xf32>
    %c5 = arith.constant 5 : index
    %c0_195 = arith.constant 0 : index
    %254 = vector.load %arg7[%c5, %c0_195] : memref<8x256xf32, #tpu.memory_space<vmem>>, vector<1x256xf32>
    %c0_196 = arith.constant 0 : index
    %c0_197 = arith.constant 0 : index
    %c0_198 = arith.constant 0 : index
    %255 = vector.load %arg2[%c0_196, %c0_197, %c0_198] : memref<1x128x256xf32, #tpu.memory_space<vmem>>, vector<1x128x256xf32>
    %256 = vector.shape_cast %255 : vector<1x128x256xf32> to vector<128x256xf32>
    %c0_199 = arith.constant 0 : index
    %c0_200 = arith.constant 0 : index
    %c0_201 = arith.constant 0 : index
    %257 = vector.load %arg8[%c0_199, %c0_200, %c0_201] : memref<1x128x256xf32, #tpu.memory_space<vmem>>, vector<1x128x256xf32>
    %258 = vector.shape_cast %257 : vector<1x128x256xf32> to vector<128x256xf32>
    %259 = arith.addf %256, %258 : vector<128x256xf32>
    %260 = vector.broadcast %252 : vector<1x256xf32> to vector<128x256xf32>
    %261 = arith.addf %259, %260 : vector<128x256xf32>
    %cst_202 = arith.constant dense<0.000000e+00> : vector<128xf32>
    %262 = vector.multi_reduction <add>, %261, %cst_202 [1] : vector<128x256xf32> to vector<128xf32>
    %263 = vector.shape_cast %262 : vector<128xf32> to vector<128x1xf32>
    %cst_203 = arith.constant 2.560000e+02 : f32
    %264 = vector.broadcast %cst_203 : f32 to vector<128x1xf32>
    %265 = arith.divf %263, %264 : vector<128x1xf32>
    %266 = vector.broadcast %265 : vector<128x1xf32> to vector<128x256xf32>
    %267 = arith.subf %261, %266 : vector<128x256xf32>
    %268 = arith.mulf %267, %267 : vector<128x256xf32>
    %cst_204 = arith.constant dense<0.000000e+00> : vector<128xf32>
    %269 = vector.multi_reduction <add>, %268, %cst_204 [1] : vector<128x256xf32> to vector<128xf32>
    %270 = vector.shape_cast %269 : vector<128xf32> to vector<128x1xf32>
    %cst_205 = arith.constant 2.560000e+02 : f32
    %271 = vector.broadcast %cst_205 : f32 to vector<128x1xf32>
    %272 = arith.divf %270, %271 : vector<128x1xf32>
    %273 = vector.broadcast %265 : vector<128x1xf32> to vector<128x256xf32>
    %274 = arith.subf %261, %273 : vector<128x256xf32>
    %cst_206 = arith.constant 9.99999974E-6 : f32
    %275 = vector.broadcast %cst_206 : f32 to vector<128x1xf32>
    %276 = arith.addf %272, %275 : vector<128x1xf32>
    %277 = math.rsqrt %276 : vector<128x1xf32>
    %278 = vector.broadcast %277 : vector<128x1xf32> to vector<128x256xf32>
    %279 = arith.mulf %274, %278 : vector<128x256xf32>
    %280 = vector.broadcast %253 : vector<1x256xf32> to vector<128x256xf32>
    %281 = arith.mulf %279, %280 : vector<128x256xf32>
    %282 = vector.broadcast %254 : vector<1x256xf32> to vector<128x256xf32>
    %283 = arith.addf %281, %282 : vector<128x256xf32>
    %c0_207 = arith.constant 0 : index
    %c0_208 = arith.constant 0 : index
    %c0_209 = arith.constant 0 : index
    %284 = vector.load %arg8[%c0_207, %c0_208, %c0_209] : memref<1x128x256xf32, #tpu.memory_space<vmem>>, vector<1x128x256xf32>
    %285 = vector.shape_cast %284 : vector<1x128x256xf32> to vector<128x256xf32>
    %286 = vector.shape_cast %283 : vector<128x256xf32> to vector<1x128x256xf32>
    tpu.vector_store %arg8[%c0_207, %c0_208, %c0_209], %286 {strides = array<i32>} : memref<1x128x256xf32, #tpu.memory_space<vmem>>, vector<1x128x256xf32>,
    return
  }
  func.func @transform_0(%arg0: i32, %arg1: i32) -> (i32, i32, i32) {
    %c0_i32 = arith.constant 0 : i32
    %c0_i32_0 = arith.constant 0 : i32
    %c0_i32_1 = arith.constant 0 : i32
    return %arg0, %c0_i32, %c0_i32_0 : i32, i32, i32
  }
  func.func @transform_1(%arg0: i32, %arg1: i32) -> (i32, i32, i32) {
    %c0_i32 = arith.constant 0 : i32
    %c0_i32_0 = arith.constant 0 : i32
    %c0_i32_1 = arith.constant 0 : i32
    return %arg0, %c0_i32, %c0_i32_0 : i32, i32, i32
  }
  func.func @transform_2(%arg0: i32, %arg1: i32) -> (i32, i32) {
    %c0_i32 = arith.constant 0 : i32
    %c0_i32_0 = arith.constant 0 : i32
    %c0_i32_1 = arith.constant 0 : i32
    return %c0_i32, %c0_i32_0 : i32, i32
  }
  func.func @transform_3(%arg0: i32, %arg1: i32) -> (i32, i32) {
    %c0_i32 = arith.constant 0 : i32
    %c0_i32_0 = arith.constant 0 : i32
    %c0_i32_1 = arith.constant 0 : i32
    return %c0_i32, %c0_i32_0 : i32, i32
  }
  func.func @transform_4(%arg0: i32, %arg1: i32) -> (i32, i32) {
    %c0_i32 = arith.constant 0 : i32
    %c0_i32_0 = arith.constant 0 : i32
    %c0_i32_1 = arith.constant 0 : i32
    return %c0_i32, %c0_i32_0 : i32, i32
  }
  func.func @transform_5(%arg0: i32, %arg1: i32) -> (i32, i32) {
    %c0_i32 = arith.constant 0 : i32
    %c0_i32_0 = arith.constant 0 : i32
    %c0_i32_1 = arith.constant 0 : i32
    return %c0_i32, %c0_i32_0 : i32, i32
  }
  func.func @transform_6(%arg0: i32, %arg1: i32) -> (i32, i32, i32) {
    %c0_i32 = arith.constant 0 : i32
    %c0_i32_0 = arith.constant 0 : i32
    return %arg0, %arg1, %c0_i32 : i32, i32, i32
  }
  func.func @transform_7(%arg0: i32, %arg1: i32) -> (i32, i32, i32) {
    %c0_i32 = arith.constant 0 : i32
    %c0_i32_0 = arith.constant 0 : i32
    return %arg0, %arg1, %c0_i32 : i32, i32, i32
  }
}

</mosaic_0001>

<bundles_post_ra>
// kernel: tpu_custom_call.1
= control target key start
LH: loop header
LB: loop body
LE: loop exit
PB: predicated region body
PF: predicated region fallthrough
CT: control target
= control target key end

     0   :  { %s15146_s0 = inlined_call_operand.hbm [shape: f32[2,128,256], index: 0, kind: input, shape index: {}]   ;;  %s15147_s1 = inlined_call_operand.hbm [shape: f32[2,128,256], index: 1, kind: input, shape index: {}]   ;;  %s15148_s2 = inlined_call_operand.hbm [shape: bf16[256,512], index: 2, kind: input, shape index: {}]   ;;  %s15149_s3 = inlined_call_operand.hbm [shape: bf16[256,256], index: 3, kind: input, shape index: {}]   ;;  %s15150_s4 = inlined_call_operand.hbm [shape: bf16[256,256], index: 4, kind: input, shape index: {}]   ;;  %s15151_s5 = inlined_call_operand.vmem [shape: f32[8,256], index: 5, kind: input, shape index: {}]   ;;  %s15152_s6 = inlined_call_operand.hbm [shape: f32[2,128,256], index: 6, kind: output, shape index: {0}]   ;;  %s15153_s7 = inlined_call_operand.hbm [shape: f32[2,128,128], index: 7, kind: output, shape index: {1}]  }
   0x1   :  { %15318 = sst [smem:[#allocation112_spill]] %s15146_s0 }
   0x2   :  { %15319 = sst [smem:[#allocation113_spill]] %s15148_s2 }
   0x3   :  { %15320 = sst [smem:[#allocation114_spill]] %s15149_s3 }
   0x4   :  { %15321 = sst [smem:[#allocation115_spill]] %s15150_s4 }
   0x5   :  { %13 = vsyncpa [#allocation6], 0 }
   0x6   :  { %15 = vsyncpa [#allocation6 + $0x1], 0 }
   0x7   :  { %16 = vsyncpa [#allocation9], 0 }
   0x8   :  { %18 = vsyncpa [#allocation9 + $0x1], 0 }
   0x9   :  { %19 = vsyncpa [#allocation12], 0 }
   0xa   :  { %20 = vsyncpa [#allocation7], 0 }
   0xb   :  { %22 = vsyncpa [#allocation7 + $0x1], 0 }
   0xc   :  { %23 = vsyncpa [#allocation16], 0 }
   0xd   :  { %25 = vsyncpa [#allocation16 + $0x1], 0  ;;  %s11264_s24 = smov 0   ;;  %s11266_s25 = smov 0  }
   0xe   :  { %s11268_s26 = smov 0   ;;  %s11270_s27 = smov 0  }
   0xf   :  { %s11272_s28 = smov 0   ;;  %s11274_s29 = smov 0  }
  0x10 LB: > { %15322 = sst [smem:[#allocation23_spill]] %s11183_s24  ;;  %s11295_s30 = sadd.s32 4294967295, %s11203_s29   ;;  %s11203_s29 = sphi %s11274_s29, %s31_s29   ;;  %s11199_s28 = sphi %s11272_s28, %s15680_s28   ;;  %s11195_s27 = sphi %s11270_s27, %s15679_s27   ;;  %s11191_s26 = sphi %s11268_s26, %s15678_s26   ;;  %s11187_s25 = sphi %s11266_s25, %s15677_s25   ;;  %s11183_s24 = sphi %s11264_s24, %s15676_s24  }
  0x11   : > { %s8667_s8 = sadd.s32 4294967294, %s11203_s29   ;;  %p63_p0 = scmp.ne.s32.totalorder %s11187_s25, %s11183_s24 }
  0x12   : > { %p15154_p1 = scmp.eq.s32.totalorder %s11295_s30, 0  ;;  %p205_p3 = scmp.eq.s32.totalorder %s8667_s8, 1 }
  0x13   : > { %p8668_p5 = scmp.ge.s32.totalorder %s11203_s29, 1  ;;  %p240_p7 = scmp.lt.s32.totalorder %s11203_s29, 3 }
  0x14   : > { %p11304_p4 = por %p15154_p1, %p63_p0  ;;  %p11309_p6 = por %p205_p3, %p63_p0 }
  0x15   : > { %p11314_p8 = pnand %p8668_p5, %p240_p7  ;;  %s11205_s12 = smov [#allocation10]  }
  0x16   : > { %s15323_s9 = scalar_select %p11304_p4, 1, 0 }
  0x17   : > { %s15324_s10 = scalar_select %p11309_p6, 1, 0 }
  0x18   : > { %s15326_s11 = scalar_select %p11314_p8, 1, 0 }
  0x19   : > { %15325 = sst [smem:[#allocation24_spill]] %s15324_s10  ;;  %s252_s13 = sshll.u32 %s11205_s12, 4  ;;  %s11318_s13 = int_to_ptr.vmem [resolvable:$true] %s252_s13 }
  0x1a   : > { %p10100_p9 = pneg %p11314_p8  ;;  %s11206_s15 = smov [#allocation11]  }
  0x1b   : > { %s265_s16 = sshll.u32 %s11206_s15, 4  ;;  %s15328_s2 = sld [smem:[#allocation113_spill]]  ;;  %s11329_s16 = int_to_ptr.vmem [resolvable:$true] %s265_s16 }
  0x1c   : > { %p11325_p11 = pnand %p10100_p9, %p15154_p1 }
  0x1e   : > { %p11339_p13 = pneg %p11325_p11 }
  0x21   : > { %s10933_s19 = scalar_lea.hbm %s15328_s2, 8192 }
  0x22   : > { %p10934_p12 = scmp.ne.s32.totalorder %s15328_s2, %s10933_s19  ;;  %p10940_p5 = scmp.lt.u32.totalorder %s10933_s19, %s15328_s2 }
  0x24   : > { %p10936_p0 = pnand %p11339_p13, %p10934_p12 }
  0x26   : > { %p10937_p3 = pneg %p10936_p0 }
  0x28   : > { %p10942_p7 = pnand %p10940_p5, %p10937_p3 }
  0x2a   : > { %10945 = shalt.err (!%p10942_p7)
}
  0x2b   : > { %s10946_s12 = scalar_lea.vmem %s11318_s13, 8192  ;;  %p10954_p2 = scmp.lt.s32.totalorder %s11318_s13, %s11318_s13 }
  0x2c   : > { %p10947_p9 = scmp.ne.s32.totalorder %s11318_s13, %s10946_s12  ;;  %p10955_p6 = scmp.lt.s32.totalorder %s10946_s12, %s10946_s12 }
  0x2e   : > { %p10949_p10 = pnand %p10947_p9, %p11339_p13  ;;  %p10956_p12 = por %p10955_p6, %p10954_p2 }
  0x30   : > { %p10950_p1 = pneg %p10949_p10 }
  0x32   : > { %p10957_p0 = pnand %p10956_p12, %p10950_p1 }
  0x34   : > { %10960 = shalt.err (!%p10957_p0)
}
  0x35   : > { %s15157_s15 = smov 256   ;;  %s15159_s17 = smov 16  }
  0x36   : > { %10103 = dma.hbm_to_vmem [thread:$0]  (!%p11325_p11), %s15328_s2, 8192, %s11318_s13, [#allocation9], %s15157_s15, %s15157_s15, %s15159_s17  }
  0x37   : > { %s15330_s3 = sld [smem:[#allocation114_spill]] }
  0x3d   : > { %s10961_s23 = scalar_lea.hbm %s15330_s3, 4096 }
  0x3e   : > { %p10962_p1 = scmp.ne.s32.totalorder %s15330_s3, %s10961_s23  ;;  %p10968_p10 = scmp.lt.u32.totalorder %s10961_s23, %s15330_s3 }
  0x40   : > { %p10964_p2 = pnand %p10962_p1, %p11339_p13 }
  0x42   : > { %p10965_p6 = pneg %p10964_p2 }
  0x44   : > { %p10970_p3 = pnand %p10968_p10, %p10965_p6 }
  0x46   : > { %10973 = shalt.err (!%p10970_p3)
}
  0x47   : > { %s10974_s13 = scalar_lea.vmem %s11329_s16, 4096  ;;  %p10982_p12 = scmp.lt.s32.totalorder %s11329_s16, %s11329_s16 }
  0x48   : > { %p10975_p5 = scmp.ne.s32.totalorder %s11329_s16, %s10974_s13  ;;  %p10983_p0 = scmp.lt.s32.totalorder %s10974_s13, %s10974_s13 }
  0x4a   : > { %p10977_p7 = pnand %p10975_p5, %p11339_p13  ;;  %p10984_p1 = por %p10983_p0, %p10982_p12 }
  0x4c   : > { %p10978_p9 = pneg %p10977_p7 }
  0x4e   : > { %p10985_p2 = pnand %p10984_p1, %p10978_p9 }
  0x50   : > { %10988 = shalt.err (!%p10985_p2)
}
  0x51   : > { %s11209_s18 = smov 128   ;;  %s11210_s24 = smov 8  }
  0x52   : > { %10106 = dma.hbm_to_vmem [thread:$0]  (!%p11325_p11), %s15330_s3, 4096, %s11329_s16, [#allocation12], %s11209_s18, %s11209_s18, %s11210_s24  }
  0x53   : > { %s11211_s20 = smov [#allocation13]   ;;  %s15331_s4 = sld [smem:[#allocation115_spill]] }
  0x54   : > { %s278_s21 = sshll.u32 %s11211_s20, 4  ;;  %s279_s21 = int_to_ptr.vmem [resolvable:$true] %s278_s21 }
  0x59   : > { %s10989_s12 = scalar_lea.hbm %s15331_s4, 4096 }
  0x5a   : > { %p10990_p6 = scmp.ne.s32.totalorder %s15331_s4, %s10989_s12  ;;  %p10996_p5 = scmp.lt.u32.totalorder %s10989_s12, %s15331_s4 }
  0x5c   : > { %p10992_p10 = pnand %p10990_p6, %p11339_p13 }
  0x5e   : > { %p10993_p3 = pneg %p10992_p10 }
  0x60   : > { %p10998_p7 = pnand %p10996_p5, %p10993_p3 }
  0x62   : > { %11001 = shalt.err (!%p10998_p7)
}
  0x63   : > { %s11002_s16 = scalar_lea.vmem %s279_s21, 4096  ;;  %p11010_p1 = scmp.lt.s32.totalorder %s279_s21, %s279_s21 }
  0x64   : > { %p11003_p9 = scmp.ne.s32.totalorder %s279_s21, %s11002_s16  ;;  %p11011_p2 = scmp.lt.s32.totalorder %s11002_s16, %s11002_s16 }
  0x66   : > { %p11005_p12 = pnand %p11003_p9, %p11339_p13  ;;  %p11012_p4 = por %p11011_p2, %p11010_p1 }
  0x68   : > { %p11006_p0 = pneg %p11005_p12 }
  0x6a   : > { %p11013_p8 = pnand %p11012_p4, %p11006_p0 }
  0x6c   : > { %11016 = shalt.err (!%p11013_p8)
}
  0x6d   : > { %10109 = dma.hbm_to_vmem [thread:$0]  (!%p11325_p11), %s15331_s4, 4096, %s279_s21, [#allocation12], %s11209_s18, %s11209_s18, %s11210_s24  }
  0x6e   : > { %s43_s2 = sadd.s32 1, %s11199_s28  ;;  %s50_s22 = sadd.s32 1, %s11191_s26 }
  0x6f   : > { %p45_p4 = scmp.ge.s32.totalorder %s43_s2, 2  ;;  %p57_p8 = scmp.ne.s32.totalorder %s11191_s26, %s11187_s25 }
  0x70   : > { %p58_p13 = scmp.eq.s32.totalorder %s11203_s29, 0  ;;  %p15333_p10 = scmp.eq.s32.totalorder %s11295_s30, 1 }
  0x71   : > { %s15682_s2 = smov (%p45_p4, %s43_s2), 0  ;;  %p10127_p11 = scmp.lt.s32.totalorder %s11203_s29, 2 }
  0x72   : > { %p11411_p6 = por %p58_p13, %p57_p8  ;;  %p11417_p3 = por %p15333_p10, %p57_p8 }
  0x73   : > { %s47_s19 = ssub.s32 %s11199_s28, %s15682_s2  ;;  %s295_s18 = sand.u32 1, %s11191_s26  }
  0x74   : > { %p48_p5 = scmp.eq.s32.totalorder %s47_s19, 0  ;;  %s8673_s24 = sshll.u32 %s295_s18, 8 }
  0x75   : > { %s8956_s21 = sshll.u32 %s11199_s28, 12  ;;  %s15335_s0 = sld [smem:[#allocation112_spill]] }
  0x76   : > { %s11426_s20 = scalar_select %p48_p5, %s11191_s26, %s50_s22  }
  0x77   : > { %s299_s13 = scalar_lea.vmem [#allocation5], %s8673_s24  ;;  %p11438_p7 = pnand %p10127_p11, %p11411_p6 }
  0x78   : > { %s306_s16 = sshll.u32 %s299_s13, 4  ;;  %s11445_s19 = scalar_lea.hbm %s15147_s1, %s8956_s21  ;;  %s11434_s16 = int_to_ptr.vmem [resolvable:$true] %s306_s16 }
  0x79   : > { %s320_s23 = scalar_lea.vmem [#allocation8], %s8673_s24  ;;  %s11449_s3 = scalar_lea.sflag [#allocation6], %s295_s18 }
  0x7a   : > { %s11447_s8 = sshll.u32 %s320_s23, 4  ;;  %p11019_p12 = pneg %p11438_p7  ;;  %s11481_s8 = int_to_ptr.vmem [resolvable:$true] %s11447_s8 }
  0x7b   : > { %s11432_s12 = scalar_lea.hbm %s15335_s0, %s8956_s21  ;;  %s11022_s10 = scalar_lea.hbm %s15335_s0, 8192 }
  0x7c   : > { %s11017_s13 = scalar_lea.hbm %s11432_s12, 4096  ;;  %p11023_p2 = scmp.lt.u32.totalorder %s11432_s12, %s15335_s0 }
  0x7d   : > { %p11018_p9 = scmp.ne.s32.totalorder %s11432_s12, %s11017_s13  ;;  %p11024_p4 = scmp.lt.u32.totalorder %s11022_s10, %s11017_s13 }
  0x7e   : > { %p11026_p13 = scmp.lt.u32.totalorder %s11017_s13, %s11432_s12 }
  0x7f   : > { %p11020_p0 = pnand %p11019_p12, %p11018_p9  ;;  %p11025_p8 = por %p11024_p4, %p11023_p2 }
  0x81   : > { %p11021_p1 = pneg %p11020_p0  ;;  %p11027_p6 = por %p11026_p13, %p11025_p8 }
  0x83   : > { %p11028_p10 = pnand %p11027_p6, %p11021_p1 }
  0x85   : > { %11031 = shalt.err (!%p11028_p10)
}
  0x86   : > { %s11032_s18 = scalar_lea.vmem %s11434_s16, 4096  ;;  %s11212_s4 = smov [#allocation5]  }
  0x87   : > { %p11033_p11 = scmp.ne.s32.totalorder %s11434_s16, %s11032_s18  ;;  %s11037_s24 = sshll.u32 %s11212_s4, 4  ;;  %s11038_s24 = int_to_ptr.vmem [resolvable:$false] %s11037_s24 }
  0x88   : > { %s11039_s23 = scalar_lea.vmem %s11038_s24, 8192  ;;  %p11040_p0 = scmp.lt.s32.totalorder %s11434_s16, %s11038_s24 }
  0x89   : > { %p11035_p5 = pnand %p11033_p11, %p11019_p12  ;;  %p11041_p2 = scmp.lt.s32.totalorder %s11039_s23, %s11032_s18 }
  0x8b   : > { %p11036_p9 = pneg %p11035_p5  ;;  %p11042_p4 = por %p11041_p2, %p11040_p0 }
  0x8d   : > { %p11043_p8 = pnand %p11042_p4, %p11036_p9 }
  0x8f   : > { %11046 = shalt.err (!%p11043_p8)
}
  0x90   : > { %s15337_s13 = smov 16   ;;  %s15338_s14 = smov 256  }
  0x91   : > { %10113 = dma.hbm_to_vmem [thread:$0]  (!%p11438_p7), %s11432_s12, 4096, %s11434_s16, %s11449_s3, %s15338_s14, %s15338_s14, %s15337_s13  }
  0x92   : > { %s316_s10 = sand.u32 1, %s11203_s29   ;;  %s11047_s21 = scalar_lea.hbm %s11445_s19, 4096 }
  0x93   : > { %s11484_s22 = scalar_lea.sflag [#allocation9], %s316_s10  ;;  %p11048_p1 = scmp.ne.s32.totalorder %s11445_s19, %s11047_s21 }
  0x94   : > { %s11052_s24 = scalar_lea.hbm %s15147_s1, 8192  ;;  %p11053_p10 = scmp.lt.u32.totalorder %s11445_s19, %s15147_s1 }
  0x95   : > { %p11050_p13 = pnand %p11048_p1, %p11019_p12  ;;  %p11054_p11 = scmp.lt.u32.totalorder %s11052_s24, %s11047_s21 }
  0x96   : > { %p11056_p9 = scmp.lt.u32.totalorder %s11047_s21, %s11445_s19 }
  0x97   : > { %p11051_p6 = pneg %p11050_p13  ;;  %p11055_p5 = por %p11054_p11, %p11053_p10 }
  0x99   : > { %p11057_p0 = por %p11056_p9, %p11055_p5 }
  0x9b   : > { %p11058_p2 = pnand %p11057_p0, %p11051_p6 }
  0x9d   : > { %11061 = shalt.err (!%p11058_p2)
}
  0x9e   : > { %s11062_s3 = scalar_lea.vmem %s11481_s8, 4096  ;;  %s11213_s12 = smov [#allocation8]  }
  0x9f   : > { %p11063_p4 = scmp.ne.s32.totalorder %s11481_s8, %s11062_s3  ;;  %s11067_s16 = sshll.u32 %s11213_s12, 4  ;;  %s11068_s16 = int_to_ptr.vmem [resolvable:$false] %s11067_s16 }
  0xa0   : > { %s11069_s0 = scalar_lea.vmem %s11068_s16, 8192  ;;  %p11070_p13 = scmp.lt.s32.totalorder %s11481_s8, %s11068_s16 }
  0xa1   : > { %p11065_p8 = pnand %p11063_p4, %p11019_p12  ;;  %p11071_p10 = scmp.lt.s32.totalorder %s11069_s0, %s11062_s3 }
  0xa3   : > { %p11066_p1 = pneg %p11065_p8  ;;  %p11072_p11 = por %p11071_p10, %p11070_p13 }
  0xa5   : > { %p11073_p5 = pnand %p11072_p11, %p11066_p1 }
  0xa7   : > { %11076 = shalt.err (!%p11073_p5)
}
  0xa8   : > { %10116 = dma.hbm_to_vmem [thread:$0]  (!%p11438_p7), %s11445_s19, 4096, %s11481_s8, %s11484_s22, %s15338_s14, %s15338_s14, %s15337_s13  }
  0xa9   : > { %p15339_p12 = scmp.ne.s32.totalorder %s15326_s11, 0 }
  0xab   : > { %339 = sbr.rel (%p15339_p12) target bundleno = 4951 (0x1357), region = 44 }
  0xb2   : > { %s11516_s10 = sand.u32 1, %s11187_s25   ;;  %p15340_p6 = scmp.ne.s32.totalorder %s15323_s9, 0 }
  0xb3   : > { %s11519_s21 = sshll.u32 %s11516_s10, 8  ;;  %s342_s15 = scalar_lea.sflag [#allocation6], %s11516_s10 }
  0xb4   : > { %s11523_s18 = scalar_lea.vmem [#allocation5], %s11519_s21 }
  0xb5   : > { %11158 = dma.done.wait (%p15340_p6), %s342_s15, 4096  }
  0xb6   : > { %11160 = vsyncadd (%p15340_p6), %s342_s15, 4294963200  ;;  %s350_s11 = sand.u32 1, %s11295_s30   ;;  %s11531_s8 = scalar_lea.vmem [#allocation8], %s11519_s21 }
  0xb7   : > { %s351_s19 = scalar_lea.sflag [#allocation9], %s350_s11 }
  0xb8   : > { %11162 = dma.done.wait (%p15340_p6), %s351_s19, 4096  }
  0xb9   : > { %11164 = vsyncadd (%p15340_p6), %s351_s19, 4294963200  ;;  %p15341_p7 = scmp.eq.s32.totalorder %s11295_s30, 0 }
  0xbb   : > { %11166 = dma.done.wait (%p15341_p7), [#allocation9], 8192   ;;  %p15342_p9 = pmov %p15341_p7 }
  0xbc   : > { %p15343_p0 = pmov %p15341_p7 }
  0xbd   : > { %11168 = vsyncadd (%p15342_p9), [#allocation9], 4294959104 }
  0xbe   : > { %11170 = dma.done.wait (%p15343_p0), [#allocation12], 8192   ;;  %p15344_p2 = pmov %p15343_p0 }
  0xbf   : > { %v10195_v0 = vld [vmem:[#allocation10 + $0xc] ss:$16 sps:$4 sm:$0xff]   ;;  %v10197_v1 = vld [vmem:[#allocation10 + $0x8] ss:$16 sps:$4 sm:$0xff]   ;;  %v10219_v8 = vld [vmem:[#allocation10 + $0x4] ss:$16 sps:$4 sm:$0xff]  }
  0xc0   : > { %11172 = vsyncadd (%p15344_p2), [#allocation12], 4294959104  ;;  %1028 = vmatprep.subr.bf16.mxu1 %v10195_v0  ;;  %v10198_v2 = vld [vmem:[#allocation10 + $0x2c] ss:$16 sps:$4 sm:$0xff]   ;;  %v10200_v3 = vld [vmem:[#allocation10 + $0x28] ss:$16 sps:$4 sm:$0xff]   ;;  %915 = vmatprep.subr.bf16.mxu0 %v10219_v8 }
  0xc1   : > { %1029 = vmatpush1.bf16.msra.mxu1 %v10197_v1  ;;  %v10201_v4 = vld [vmem:[#allocation10 + $0x4c] ss:$16 sps:$4 sm:$0xff]   ;;  %v10203_v5 = vld [vmem:[#allocation10 + $0x48] ss:$16 sps:$4 sm:$0xff]   ;;  %v10223_v10 = vld [vmem:[#allocation10] ss:$16 sps:$4 sm:$0xff]  }
  0xc2   : > { %1030 = vmatprep.subr.bf16.mxu1 %v10198_v2  ;;  %v10204_v6 = vld [vmem:[#allocation10 + $0x6c] ss:$16 sps:$4 sm:$0xff]   ;;  %v10206_v7 = vld [vmem:[#allocation10 + $0x68] ss:$16 sps:$4 sm:$0xff]   ;;  %916 = vmatpush1.bf16.msra.mxu0 %v10223_v10  ;;  %v10225_v11 = vld [vmem:[#allocation10 + $0x24] ss:$16 sps:$4 sm:$0xff]  }
  0xc3   : > { %v10207_v9 = vld [vmem:[#allocation10 + $0x8c] ss:$16 sps:$4 sm:$0xff]   ;;  %v10209_v12 = vld [vmem:[#allocation10 + $0x88] ss:$16 sps:$4 sm:$0xff]   ;;  %v10229_v14 = vld [vmem:[#allocation10 + $0x20] ss:$16 sps:$4 sm:$0xff]   ;;  %917 = vmatprep.subr.bf16.mxu0 %v10225_v11 }
  0xc4   : > { %v10210_v13 = vld [vmem:[#allocation10 + $0xac] ss:$16 sps:$4 sm:$0xff]   ;;  %v10231_v15 = vld [vmem:[#allocation10 + $0x44] ss:$16 sps:$4 sm:$0xff]   ;;  %v10212_v16 = vld [vmem:[#allocation10 + $0xa8] ss:$16 sps:$4 sm:$0xff]  }
  0xc5   : > { %1031 = vmatpush1.bf16.msra.mxu1 %v10200_v3  ;;  %v10235_v17 = vld [vmem:[#allocation10 + $0x40] ss:$16 sps:$4 sm:$0xff]   ;;  %v10237_v18 = vld [vmem:[#allocation10 + $0x64] ss:$16 sps:$4 sm:$0xff]   ;;  %v10213_v19 = vld [vmem:[#allocation10 + $0xcc] ss:$16 sps:$4 sm:$0xff]  }
  0xc6   : > { %1032 = vmatprep.subr.bf16.mxu1 %v10201_v4  ;;  %918 = vmatpush1.bf16.msra.mxu0 %v10229_v14  ;;  %v10241_v20 = vld [vmem:[#allocation10 + $0x60] ss:$16 sps:$4 sm:$0xff]   ;;  %v10215_v21 = vld [vmem:[#allocation10 + $0xc8] ss:$16 sps:$4 sm:$0xff]   ;;  %v10243_v22 = vld [vmem:[#allocation10 + $0x84] ss:$16 sps:$4 sm:$0xff]  }
  0xc7   : > { %919 = vmatprep.subr.bf16.mxu0 %v10231_v15  ;;  %v10216_v23 = vld [vmem:[#allocation10 + $0xec] ss:$16 sps:$4 sm:$0xff]   ;;  %v10218_v24 = vld [vmem:[#allocation10 + $0xe8] ss:$16 sps:$4 sm:$0xff]   ;;  %v10247_v25 = vld [vmem:[#allocation10 + $0x80] ss:$16 sps:$4 sm:$0xff]  }
  0xc8   : > { %v10249_v26 = vld [vmem:[#allocation10 + $0xa4] ss:$16 sps:$4 sm:$0xff]   ;;  %v10221_v27 = vld [vmem:[#allocation10 + $0x10c] ss:$16 sps:$4 sm:$0xff]   ;;  %v10253_v28 = vld [vmem:[#allocation10 + $0xa0] ss:$16 sps:$4 sm:$0xff]  }
  0xc9   : > { %1033 = vmatpush1.bf16.msra.mxu1 %v10203_v5  ;;  %v10224_v29 = vld [vmem:[#allocation10 + $0x108] ss:$16 sps:$4 sm:$0xff]   ;;  %v10227_v30 = vld [vmem:[#allocation10 + $0x12c] ss:$16 sps:$4 sm:$0xff]   ;;  %v10255_v31 = vld [vmem:[#allocation10 + $0xc4] ss:$16 sps:$4 sm:$0xff]  }
  0xca   : > { %1034 = vmatprep.subr.bf16.mxu1 %v10204_v6  ;;  %920 = vmatpush1.bf16.msra.mxu0 %v10235_v17  ;;  %v420_v32 = vld [vmem:[%s11523_s18 + $0x8] sm:$0xff]  ;;  %v422_v33 = vld [vmem:[%s11523_s18 + $0x18] sm:$0xff]  ;;  %v10259_v37 = vld [vmem:[#allocation10 + $0xc0] ss:$16 sps:$4 sm:$0xff]   ;;  %vm1679_vm0 = vcmask 261120   ;;  %s11214_s24 = smov 96  }
  0xcb   : > { %921 = vmatprep.subr.bf16.mxu0 %v10237_v18  ;;  %v452_v34 = vld [vmem:[%s11531_s8 + $0x8] sm:$0xff]  ;;  %v454_v35 = vld [vmem:[%s11531_s8 + $0x18] sm:$0xff]  ;;  %v11550_v39 = vld [vmem:[%s11523_s18] sm:$0xff]  ;;  %s11215_s23 = smov 64   ;;  %s11216_s3 = smov 32  }
  0xcc   : > { %v484_v36 = vadd.f32 %v452_v34, %v420_v32  ;;  %v486_v38 = vadd.f32 %v454_v35, %v422_v33  ;;  %v11553_v40 = vld [vmem:[%s11523_s18 + $0x10] sm:$0xff]  ;;  %v10230_v41 = vld [vmem:[#allocation10 + $0x128] ss:$16 sps:$4 sm:$0xff]   ;;  %v10233_v44 = vld [vmem:[#allocation10 + $0x14c] ss:$16 sps:$4 sm:$0xff]   ;;  %s8686_s12 = sshll.u32 %s11516_s10, 7 }
  0xcd   : > { %1035 = vmatpush1.bf16.msra.mxu1 %v10206_v7  ;;  %v10261_v42 = vld [vmem:[#allocation10 + $0xe4] ss:$16 sps:$4 sm:$0xff]   ;;  %v10265_v46 = vld [vmem:[#allocation10 + $0xe0] ss:$16 sps:$4 sm:$0xff]   ;;  %v10236_v47 = vld [vmem:[#allocation10 + $0x148] ss:$16 sps:$4 sm:$0xff]  }
  0xce   : > { %1036 = vmatprep.subr.bf16.mxu1 %v10207_v9  ;;  %922 = vmatpush1.bf16.msra.mxu0 %v10241_v20  ;;  %v516_v45 = vpack.c.bf16 %v486_v38, %v484_v36  ;;  %v10267_v48 = vld [vmem:[#allocation10 + $0x104] ss:$16 sps:$4 sm:$0xff]   ;;  %v10239_v49 = vld [vmem:[#allocation10 + $0x16c] ss:$16 sps:$4 sm:$0xff]   ;;  %v10269_v50 = vld [vmem:[#allocation10 + $0x100] ss:$16 sps:$4 sm:$0xff]  }
  0xcf   : > { %923 = vmatprep.subr.bf16.mxu0 %v10243_v22  ;;  %v10242_v51 = vld [vmem:[#allocation10 + $0x168] ss:$16 sps:$4 sm:$0xff]   ;;  %v10270_v52 = vld [vmem:[#allocation10 + $0x124] ss:$16 sps:$4 sm:$0xff]   ;;  %v10245_v53 = vld [vmem:[#allocation10 + $0x18c] ss:$16 sps:$4 sm:$0xff]  }
  0xd0   : > { %1060 = vmatprep.mubr.bf16.mxu1 %v516_v45  ;;  %947 = vmatprep.mubr.bf16.mxu0 %v516_v45  ;;  %v10272_v54 = vld [vmem:[#allocation10 + $0x120] ss:$16 sps:$4 sm:$0xff]   ;;  %v10248_v55 = vld [vmem:[#allocation10 + $0x188] ss:$16 sps:$4 sm:$0xff]   ;;  %v10273_v56 = vld [vmem:[#allocation10 + $0x144] ss:$16 sps:$4 sm:$0xff]  }
  0xd1   : > { %1037 = vmatpush1.bf16.msra.mxu1 %v10209_v12  ;;  %v10251_v57 = vld [vmem:[#allocation10 + $0x1ac] ss:$16 sps:$4 sm:$0xff]   ;;  %v10275_v58 = vld [vmem:[#allocation10 + $0x140] ss:$16 sps:$4 sm:$0xff]   ;;  %v10254_v59 = vld [vmem:[#allocation10 + $0x1a8] ss:$16 sps:$4 sm:$0xff]  }
  0xd2   : > { %1038 = vmatprep.subr.bf16.mxu1 %v10210_v13  ;;  %924 = vmatpush1.bf16.msra.mxu0 %v10247_v25  ;;  %v10276_v60 = vld [vmem:[#allocation10 + $0x164] ss:$16 sps:$4 sm:$0xff]   ;;  %v10257_v61 = vld [vmem:[#allocation10 + $0x1cc] ss:$16 sps:$4 sm:$0xff]   ;;  %v10260_v62 = vld [vmem:[#allocation10 + $0x1c8] ss:$16 sps:$4 sm:$0xff]  }
  0xd3   : > { %925 = vmatprep.subr.bf16.mxu0 %v10249_v26  ;;  %v10263_v63 = vld [vmem:[#allocation10 + $0x1ec] ss:$16 sps:$4 sm:$0xff]   ;;  %v451_v0 = vld [vmem:[%s11531_s8] sm:$0xff]  ;;  %v453_v2 = vld [vmem:[%s11531_s8 + $0x10] sm:$0xff]  ;;  %s12224_s16 = scalar_lea.vmem [#allocation15], %s8686_s12  ;;  %s12326_s0 = scalar_lea.vmem [#allocation14], %s11519_s21 }
  0xd4   : > { %v10278_v1 = vld [vmem:[#allocation10 + $0x160] ss:$16 sps:$4 sm:$0xff]   ;;  %v11560_v3 = vld [vmem:[%s11523_s18 + $0x28] sm:$0xff]  ;;  %v10279_v4 = vld [vmem:[#allocation10 + $0x184] ss:$16 sps:$4 sm:$0xff]   ;;  %v483_v8 = vadd.f32 %v451_v0, %v11550_v39  ;;  %v485_v9 = vadd.f32 %v453_v2, %v11553_v40  ;;  %s8496_s11 = sshll.u32 %s12224_s16, 4  ;;  %s14918_s11 = int_to_ptr.vmem [resolvable:$true] %s8496_s11 }
  0xd5   : > { %1039 = vmatpush1.bf16.msra.mxu1 %v10212_v16  ;;  %v11563_v5 = vld [vmem:[%s11523_s18 + $0x38] sm:$0xff]  ;;  %v456_v6 = vld [vmem:[%s11531_s8 + $0x28] sm:$0xff]  ;;  %v10281_v10 = vld [vmem:[#allocation10 + $0x180] ss:$16 sps:$4 sm:$0xff]   ;;  %s8462_s9 = scalar_lea.sflag [#allocation16], %s11516_s10  ;;  %s11077_s13 = scalar_lea.vmem %s14918_s11, 2048 }
  0xd6   : > { %1040 = vmatprep.subr.bf16.mxu1 %v10213_v19  ;;  %926 = vmatpush1.bf16.msra.mxu0 %v10253_v28  ;;  %v458_v7 = vld [vmem:[%s11531_s8 + $0x38] sm:$0xff]  ;;  %v488_v12 = vadd.f32 %v456_v6, %v11560_v3  ;;  %v10282_v14 = vld [vmem:[#allocation10 + $0x1a4] ss:$16 sps:$4 sm:$0xff]   ;;  %v515_v19 = vpack.c.bf16 %v485_v9, %v483_v8  ;;  %v11580_v20 = vld [vmem:[%s11523_s18 + $0x48] sm:$0xff]  ;;  %p11078_p4 = scmp.ne.s32.totalorder %s14918_s11, %s11077_s13  ;;  %s11218_s14 = smov [#allocation15]  }
  0xd7   : > { %927 = vmatprep.subr.bf16.mxu0 %v10255_v31  ;;  %v10266_v11 = vld [vmem:[#allocation10 + $0x1e8] ss:$16 sps:$4 sm:$0xff]   ;;  %v490_v13 = vadd.f32 %v458_v7, %v11563_v5  ;;  %v11572_v15 = vld [vmem:[%s11523_s18 + $0x20] sm:$0xff]  ;;  %v11575_v16 = vld [vmem:[%s11523_s18 + $0x30] sm:$0xff]  ;;  %s11081_s22 = sshll.u32 %s11218_s14, 4  ;;  %s11082_s22 = int_to_ptr.vmem [resolvable:$false] %s11081_s22 }
  0xd8   : > { %v455_v17 = vld [vmem:[%s11531_s8 + $0x20] sm:$0xff]  ;;  %v457_v18 = vld [vmem:[%s11531_s8 + $0x30] sm:$0xff]  ;;  %v462_v25 = vld [vmem:[%s11531_s8 + $0x58] sm:$0xff]  ;;  %p11079_p8 = pnand %p11078_p4, %p11417_p3  ;;  %s11083_s4 = scalar_lea.vmem %s11082_s22, 4096 }
  0xd9   : > { %1041 = vmatpush1.bf16.msra.mxu1 %v10215_v21  ;;  %v11583_v21 = vld [vmem:[%s11523_s18 + $0x58] sm:$0xff]  ;;  %v10284_v22 = vld [vmem:[#allocation10 + $0x1a0] ss:$16 sps:$4 sm:$0xff]   ;;  %v10285_v26 = vld [vmem:[#allocation10 + $0x1c4] ss:$16 sps:$4 sm:$0xff]   ;;  %p11084_p13 = scmp.lt.s32.totalorder %s14918_s11, %s11082_s22  ;;  %p11085_p10 = scmp.lt.s32.totalorder %s11083_s4, %s11077_s13 }
  0xda   : > { %1042 = vmatprep.subr.bf16.mxu1 %v10216_v23  ;;  %928 = vmatpush1.bf16.msra.mxu0 %v10259_v37  ;;  %v518_v23 = vpack.c.bf16 %v490_v13, %v488_v12  ;;  %v10288_v28 = vld [vmem:[#allocation10 + $0x1e4] ss:$16 sps:$4 sm:$0xff]   ;;  %v494_v32 = vadd.f32 %v462_v25, %v11583_v21  ;;  %v10290_v33 = vld [vmem:[#allocation10 + $0x1e0] ss:$16 sps:$4 sm:$0xff]   ;;  %v466_v45 = vld [vmem:[%s11531_s8 + $0x78] sm:$0xff]  ;;  %p11080_p1 = pneg %p11079_p8 }
  0xdb   : > { %929 = vmatprep.subr.bf16.mxu0 %v10261_v42  ;;  %v11592_v34 = vld [vmem:[%s11523_s18 + $0x40] sm:$0xff]  ;;  %v11595_v35 = vld [vmem:[%s11523_s18 + $0x50] sm:$0xff]  ;;  %v11603_v42 = vld [vmem:[%s11523_s18 + $0x78] sm:$0xff]  ;;  %p11086_p11 = por %p11085_p10, %p11084_p13 }
  0xdc   : > { %v459_v36 = vld [vmem:[%s11531_s8 + $0x40] sm:$0xff]  ;;  %v461_v37 = vld [vmem:[%s11531_s8 + $0x50] sm:$0xff]  ;;  %v11640_v9 = vld [vmem:[%s11523_s18 + $0xa8] sm:$0xff] }
  0xdd   : > { %1043 = vmatpush1.bf16.msra.mxu1 %v10218_v24  ;;  %v460_v24 = vld [vmem:[%s11531_s8 + $0x48] sm:$0xff]  ;;  %v11632_v2 = vld [vmem:[%s11523_s18 + $0x80] sm:$0xff]  ;;  %v469_v8 = vld [vmem:[%s11531_s8 + $0x90] sm:$0xff]  ;;  %p11087_p5 = pnand %p11086_p11, %p11080_p1 }
  0xde   : > { %1044 = vmatprep.subr.bf16.mxu1 %v10221_v27  ;;  %930 = vmatpush1.bf16.msra.mxu0 %v10265_v46  ;;  %v10287_v27 = vld [vmem:[#allocation10 + $0x1c0] ss:$16 sps:$4 sm:$0xff]   ;;  %v492_v31 = vadd.f32 %v460_v24, %v11580_v20  ;;  %v474_v12 = vld [vmem:[%s11531_s8 + $0xb8] sm:$0xff] }
  0xdf   : > { %931 = vmatprep.subr.bf16.mxu0 %v10267_v48  ;;  %v493_v48 = vadd.f32 %v461_v37, %v11595_v35  ;;  %v467_v7 = vld [vmem:[%s11531_s8 + $0x80] sm:$0xff] }
  0xe0   : > { %v520_v46 = vpack.c.bf16 %v494_v32, %v492_v31  ;;  %v499_v13 = vadd.f32 %v467_v7, %v11632_v2  ;;  %v471_v25 = vld [vmem:[%s11531_s8 + $0xa0] sm:$0xff] }
  0xe1   : > { %1045 = vmatpush1.bf16.msra.mxu1 %v10224_v29  ;;  %v487_v29 = vadd.f32 %v455_v17, %v11572_v15 }
  0xe2   : > { %1046 = vmatprep.subr.bf16.mxu1 %v10227_v30  ;;  %932 = vmatpush1.bf16.msra.mxu0 %v10269_v50  ;;  %v489_v30 = vadd.f32 %v457_v18, %v11575_v16  ;;  %v498_v50 = vadd.f32 %v466_v45, %v11603_v42 }
  0xe3   : > { %933 = vmatprep.subr.bf16.mxu0 %v10270_v52  ;;  %v11615_v52 = vld [vmem:[%s11523_s18 + $0x70] sm:$0xff] }
  0xe4   : > { %v517_v38 = vpack.c.bf16 %v489_v30, %v487_v29  ;;  %v476_v29 = vld [vmem:[%s11531_s8 + $0xc8] sm:$0xff]  ;;  %v478_v30 = vld [vmem:[%s11531_s8 + $0xd8] sm:$0xff] }
  0xe5   : > { %1047 = vmatpush1.bf16.msra.mxu1 %v10230_v41  ;;  %v11600_v41 = vld [vmem:[%s11523_s18 + $0x68] sm:$0xff] }
  0xe6   : > { %1048 = vmatprep.subr.bf16.mxu1 %v10233_v44  ;;  %934 = vmatpush1.bf16.msra.mxu0 %v10272_v54  ;;  %v464_v44 = vld [vmem:[%s11531_s8 + $0x68] sm:$0xff]  ;;  %v465_v54 = vld [vmem:[%s11531_s8 + $0x70] sm:$0xff] }
  0xe7   : > { %935 = vmatprep.subr.bf16.mxu0 %v10273_v56  ;;  %v11620_v56 = vld [vmem:[%s11523_s18 + $0x88] sm:$0xff] }
  0xe9   : > { %1049 = vmatpush1.bf16.msra.mxu1 %v10236_v47  ;;  %v491_v47 = vadd.f32 %v459_v36, %v11592_v34 }
  0xea   : > { %1050 = vmatprep.subr.bf16.mxu1 %v10239_v49  ;;  %936 = vmatpush1.bf16.msra.mxu0 %v10275_v58  ;;  %v496_v49 = vadd.f32 %v464_v44, %v11600_v41  ;;  %v468_v58 = vld [vmem:[%s11531_s8 + $0x88] sm:$0xff]  ;;  %v11675_v44 = vld [vmem:[%s11523_s18 + $0xd0] sm:$0xff] }
  0xeb   : > { %937 = vmatprep.subr.bf16.mxu0 %v10276_v60 }
  0xec   : > { %v522_v60 = vpack.c.bf16 %v498_v50, %v496_v49  ;;  %v11683_v49 = vld [vmem:[%s11523_s18 + $0xf8] sm:$0xff]  ;;  %v480_v50 = vld [vmem:[%s11531_s8 + $0xe8] sm:$0xff] }
  0xed   : > { %1051 = vmatpush1.bf16.msra.mxu1 %v10242_v51  ;;  %v11612_v51 = vld [vmem:[%s11523_s18 + $0x60] sm:$0xff] }
  0xee   : > { %1052 = vmatprep.subr.bf16.mxu1 %v10245_v53  ;;  %938 = vmatpush1.bf16.msra.mxu0 %v10278_v1  ;;  %v463_v53 = vld [vmem:[%s11531_s8 + $0x60] sm:$0xff] }
  0xef   : > { %939 = vmatprep.subr.bf16.mxu0 %v10279_v4  ;;  %v11635_v4 = vld [vmem:[%s11523_s18 + $0x90] sm:$0xff] }
  0xf1   : > { %1053 = vmatpush1.bf16.msra.mxu1 %v10248_v55  ;;  %v519_v55 = vpack.c.bf16 %v493_v48, %v491_v47  ;;  %v477_v47 = vld [vmem:[%s11531_s8 + $0xd0] sm:$0xff]  ;;  %v11680_v48 = vld [vmem:[%s11523_s18 + $0xe8] sm:$0xff] }
  0xf2   : > { %1054 = vmatprep.subr.bf16.mxu1 %v10251_v57  ;;  %940 = vmatpush1.bf16.msra.mxu0 %v10281_v10  ;;  %v11623_v57 = vld [vmem:[%s11523_s18 + $0x98] sm:$0xff] }
  0xf3   : > { %941 = vmatprep.subr.bf16.mxu0 %v10282_v14  ;;  %v11643_v10 = vld [vmem:[%s11523_s18 + $0xb8] sm:$0xff]  ;;  %v501_v14 = vadd.f32 %v469_v8, %v11635_v4 }
  0xf4   : > { %v506_v18 = vadd.f32 %v474_v12, %v11643_v10  ;;  %v10293_v12 = vld [vmem:[#allocation11 + $0x4] ss:$8 sps:$4 sm:$0xff]  }
  0xf5   : > { %1055 = vmatpush1.bf16.msra.mxu1 %v10254_v59  ;;  %v470_v59 = vld [vmem:[%s11531_s8 + $0x98] sm:$0xff] }
  0xf6   : > { %1056 = vmatprep.subr.bf16.mxu1 %v10257_v61  ;;  %942 = vmatpush1.bf16.msra.mxu0 %v10284_v22  ;;  %v495_v61 = vadd.f32 %v463_v53, %v11612_v51  ;;  %v502_v0 = vadd.f32 %v470_v59, %v11623_v57  ;;  %v11652_v22 = vld [vmem:[%s11523_s18 + $0xa0] sm:$0xff]  ;;  %v482_v53 = vld [vmem:[%s11531_s8 + $0xf8] sm:$0xff] }
  0xf7   : > { %943 = vmatprep.subr.bf16.mxu0 %v10285_v26  ;;  %v473_v26 = vld [vmem:[%s11531_s8 + $0xb0] sm:$0xff]  ;;  %v503_v31 = vadd.f32 %v471_v25, %v11652_v22  ;;  %v514_v59 = vadd.f32 %v482_v53, %v11683_v49  ;;  %v10305_v25 = vld [vmem:[#allocation11 + $0x44] ss:$8 sps:$4 sm:$0xff]  }
  0xf8   : > { %v10317_v53 = vld [vmem:[#allocation11 + $0x84] ss:$8 sps:$4 sm:$0xff]  }
  0xf9   : > { %1057 = vmatpush1.bf16.msra.mxu1 %v10260_v62  ;;  %v497_v62 = vadd.f32 %v465_v54, %v11615_v52 }
  0xfa   : > { %1058 = vmatprep.subr.bf16.mxu1 %v10263_v63  ;;  %944 = vmatpush1.bf16.msra.mxu0 %v10287_v27  ;;  %v500_v63 = vadd.f32 %v468_v58, %v11620_v56  ;;  %v11660_v27 = vld [vmem:[%s11523_s18 + $0xc8] sm:$0xff]  ;;  %v512_v58 = vadd.f32 %v480_v50, %v11680_v48 }
  0xfb   : > { %945 = vmatprep.subr.bf16.mxu0 %v10288_v28  ;;  %v521_v1 = vpack.c.bf16 %v497_v62, %v495_v61  ;;  %v11663_v28 = vld [vmem:[%s11523_s18 + $0xd8] sm:$0xff]  ;;  %v11692_v61 = vld [vmem:[%s11523_s18 + $0xe0] sm:$0xff] }
  0xfc   : > { %v524_v6 = vpack.c.bf16 %v502_v0, %v500_v63  ;;  %v510_v36 = vadd.f32 %v478_v30, %v11663_v28  ;;  %v530_v62 = vpack.c.bf16 %v514_v59, %v512_v58  ;;  %v11695_v63 = vld [vmem:[%s11523_s18 + $0xf0] sm:$0xff]  ;;  %v479_v0 = vld [vmem:[%s11531_s8 + $0xe0] sm:$0xff]  ;;  %v1142_v30 = vlaneseq }
  0xfd   : > { %1059 = vmatpush1.bf16.msra.mxu1 %v10266_v11  ;;  %v472_v11 = vld [vmem:[%s11531_s8 + $0xa8] sm:$0xff]  ;;  %v10320_v59 = vld [vmem:[#allocation11 + $0x94] ss:$8 sps:$4 sm:$0xff]  }
  0xfe   : > { %946 = vmatpush1.bf16.msra.mxu0 %v10290_v33  ;;  %v504_v17 = vadd.f32 %v472_v11, %v11640_v9  ;;  %v508_v33 = vadd.f32 %v476_v29, %v11660_v27  ;;  %v10291_v11 = vld [vmem:[#allocation11] ss:$8 sps:$4 sm:$0xff]   ;;  %v10308_v29 = vld [vmem:[#allocation11 + $0x54] ss:$8 sps:$4 sm:$0xff]  }
  0xff   : > { %1510 = vmatprep.subr.bf16.mxu0 %v10293_v12  ;;  %v10323_v12 = vld [vmem:[#allocation11 + $0xa4] ss:$8 sps:$4 sm:$0xff]  }
 0x100   : > { %1061 = vmatmul.mubr.bf16.vlgmr.msra.gmra.mrb[0].mxu1 %v515_v19  ;;  %v526_v24 = vpack.c.bf16 %v506_v18, %v504_v17  ;;  %v528_v45 = vpack.c.bf16 %v510_v36, %v508_v33  ;;  %v10299_v17 = vld [vmem:[#allocation11 + $0x24] ss:$8 sps:$4 sm:$0xff]   ;;  %v10297_v18 = vld [vmem:[#allocation11 + $0x20] ss:$8 sps:$4 sm:$0xff]   ;;  %v1143_v33 = vshrl.u32 %v1142_v30, 7 }
 0x101   : > { %1070 = vmatprep.mubr.bf16.mxu1 %v518_v23  ;;  %948 = vmatmul.mubr.bf16.vlgmr.msra.gmra.mrb[0].mxu0 %v515_v19  ;;  %v523_v19 = vpack.c.bf16 %v501_v14, %v499_v13  ;;  %v10296_v13 = vld [vmem:[#allocation11 + $0x14] ss:$8 sps:$4 sm:$0xff]   ;;  %v10294_v14 = vld [vmem:[#allocation11 + $0x10] ss:$8 sps:$4 sm:$0xff]   ;;  %v10309_v36 = vld [vmem:[#allocation11 + $0x60] ss:$8 sps:$4 sm:$0xff]  }
 0x102   : > { %957 = vmatprep.mubr.bf16.mxu0 %v518_v23  ;;  %v11655_v23 = vld [vmem:[%s11523_s18 + $0xb0] sm:$0xff]  ;;  %1511 = vmatpush1.bf16.msra.mxu0 %v10291_v11  ;;  %v11706_v50 = vsub.s32 0, %v1143_v33 }
 0x103   : > { %v505_v32 = vadd.f32 %v473_v26, %v11655_v23  ;;  %1512 = vmatprep.subr.bf16.mxu0 %v10296_v13  ;;  %v10303_v26 = vld [vmem:[#allocation11 + $0x40] ss:$8 sps:$4 sm:$0xff]  }
 0x104   : > { %15346 = vst [vmem:[#allocation26_spill] sm:$0xff] %v11706_v50 }
 0x105   : > { %v525_v37 = vpack.c.bf16 %v505_v32, %v503_v31  ;;  %v10306_v31 = vld [vmem:[#allocation11 + $0x50] ss:$8 sps:$4 sm:$0xff]   ;;  %v10311_v32 = vld [vmem:[#allocation11 + $0x64] ss:$8 sps:$4 sm:$0xff]  }
 0x106   : > { %1513 = vmatpush1.bf16.msra.mxu0 %v10294_v14 }
 0x107   : > { %1514 = vmatprep.subr.bf16.mxu0 %v10299_v17  ;;  %v414_v17 = vld [vmem:[%s15151_s5] ss:$8 sm:$0x3] }
 0x108   : > { %1071 = vmatmul.mubr.bf16.gmra.mrb[4].mxu1 %v517_v38 }
 0x109   : > { %1080 = vmatprep.mubr.bf16.mxu1 %v520_v46  ;;  %958 = vmatmul.mubr.bf16.gmra.mrb[4].mxu0 %v517_v38  ;;  %v11672_v38 = vld [vmem:[%s11523_s18 + $0xc0] sm:$0xff] }
 0x10a   : > { %967 = vmatprep.mubr.bf16.mxu0 %v520_v46  ;;  %v475_v46 = vld [vmem:[%s11531_s8 + $0xc0] sm:$0xff]  ;;  %1515 = vmatpush1.bf16.msra.mxu0 %v10297_v18 }
 0x10b   : > { %v507_v54 = vadd.f32 %v475_v46, %v11672_v38  ;;  %v10312_v46 = vld [vmem:[#allocation11 + $0x70] ss:$8 sps:$4 sm:$0xff]  }
 0x110   : > { %1081 = vmatmul.mubr.bf16.gmra.mrb[8].mxu1 %v519_v55 }
 0x111   : > { %1090 = vmatprep.mubr.bf16.mxu1 %v522_v60  ;;  %968 = vmatmul.mubr.bf16.gmra.mrb[8].mxu0 %v519_v55  ;;  %v509_v55 = vadd.f32 %v477_v47, %v11675_v44  ;;  %v8687_v47 = vld [vmem:[%s15151_s5 + $0x1] ss:$8 sm:$0x3] }
 0x112   : > { %977 = vmatprep.mubr.bf16.mxu0 %v522_v60  ;;  %v11712_v58 = vrot.slane %v8687_v47, %v11706_v50 }
 0x113   : > { %v527_v60 = vpack.c.bf16 %v509_v55, %v507_v54  ;;  %v10315_v55 = vld [vmem:[#allocation11 + $0x80] ss:$8 sps:$4 sm:$0xff]  }
 0x118   : > { %1091 = vmatmul.mubr.bf16.gmra.mrb[12].mxu1 %v521_v1 }
 0x119   : > { %1100 = vmatprep.mubr.bf16.mxu1 %v524_v6  ;;  %978 = vmatmul.mubr.bf16.gmra.mrb[12].mxu0 %v521_v1  ;;  %v481_v1 = vld [vmem:[%s11531_s8 + $0xf0] sm:$0xff] }
 0x11a   : > { %987 = vmatprep.mubr.bf16.mxu0 %v524_v6  ;;  %v511_v6 = vadd.f32 %v479_v0, %v11692_v61  ;;  %v513_v7 = vadd.f32 %v481_v1, %v11695_v63 }
 0x11c   : > { %v529_v8 = vpack.c.bf16 %v513_v7, %v511_v6  ;;  %v10318_v6 = vld [vmem:[#allocation11 + $0x90] ss:$8 sps:$4 sm:$0xff]  }
 0x120   : > { %1101 = vmatmul.mubr.bf16.gmra.mrb[16].mxu1 %v523_v19 }
 0x121   : > { %1110 = vmatprep.mubr.bf16.mxu1 %v526_v24  ;;  %988 = vmatmul.mubr.bf16.gmra.mrb[16].mxu0 %v523_v19  ;;  %v10302_v19 = vld [vmem:[#allocation11 + $0x34] ss:$8 sps:$4 sm:$0xff]  }
 0x122   : > { %997 = vmatprep.mubr.bf16.mxu0 %v526_v24  ;;  %v10300_v24 = vld [vmem:[#allocation11 + $0x30] ss:$8 sps:$4 sm:$0xff]   ;;  %1516 = vmatprep.subr.bf16.mxu0 %v10302_v19  ;;  %v10321_v19 = vld [vmem:[#allocation11 + $0xa0] ss:$8 sps:$4 sm:$0xff]  }
 0x123   : > { %1517 = vmatpush1.bf16.msra.mxu0 %v10300_v24 }
 0x124   : > { %1518 = vmatprep.subr.bf16.mxu0 %v10305_v25  ;;  %v10326_v25 = vld [vmem:[#allocation11 + $0xb4] ss:$8 sps:$4 sm:$0xff]  }
 0x127   : > { %1519 = vmatpush1.bf16.msra.mxu0 %v10303_v26 }
 0x128   : > { %1111 = vmatmul.mubr.bf16.gmra.mrb[20].mxu1 %v525_v37  ;;  %1520 = vmatprep.subr.bf16.mxu0 %v10308_v29  ;;  %v11730_v29 = vrot.slane %v414_v17, %v11706_v50 }
 0x129   : > { %1120 = vmatprep.mubr.bf16.mxu1 %v528_v45  ;;  %998 = vmatmul.mubr.bf16.gmra.mrb[20].mxu0 %v525_v37  ;;  %v10314_v37 = vld [vmem:[#allocation11 + $0x74] ss:$8 sps:$4 sm:$0xff]  }
 0x12a   : > { %1007 = vmatprep.mubr.bf16.mxu0 %v528_v45  ;;  %v11701_v45 = vsub.s32 1, %v1143_v33 }
 0x12b   : > { %1521 = vmatpush1.bf16.msra.mxu0 %v10306_v31 }
 0x12c   : > { %1522 = vmatprep.subr.bf16.mxu0 %v10311_v32  ;;  %15345 = vst [vmem:[#allocation25_spill] sm:$0xff] %v11701_v45  ;;  %v11709_v54 = vrot.slane %v8687_v47, %v11701_v45  ;;  %v11733_v31 = vrot.slane %v414_v17, %v11701_v45 }
 0x12f   : > { %1523 = vmatpush1.bf16.msra.mxu0 %v10309_v36  ;;  %v10324_v36 = vld [vmem:[#allocation11 + $0xb0] ss:$8 sps:$4 sm:$0xff]  }
 0x130   : > { %1121 = vmatmul.mubr.bf16.gmra.mrb[24].mxu1 %v527_v60  ;;  %1524 = vmatprep.subr.bf16.mxu0 %v10314_v37 }
 0x131   : > { %1130 = vmatprep.mubr.bf16.mxu1 %v530_v62  ;;  %1008 = vmatmul.mubr.bf16.gmra.mrb[24].mxu0 %v527_v60 }
 0x132   : > { %1017 = vmatprep.mubr.bf16.mxu0 %v530_v62 }
 0x133   : > { %1525 = vmatpush1.bf16.msra.mxu0 %v10312_v46 }
 0x134   : > { %1526 = vmatprep.subr.bf16.mxu0 %v10317_v53 }
 0x137   : > { %1527 = vmatpush1.bf16.msra.mxu0 %v10315_v55  ;;  %v10329_v55 = vld [vmem:[#allocation11 + $0xc4] ss:$8 sps:$4 sm:$0xff]  }
 0x138   : > { %1131 = vmatmul.mubr.bf16.gmra.mrb[28].mxu1 %v529_v8  ;;  %1528 = vmatprep.subr.bf16.mxu0 %v10320_v59 }
 0x139   : > { %1018 = vmatmul.mubr.bf16.gmra.mrb[28].mxu0 %v529_v8 }
 0x13b   : > { %1529 = vmatpush1.bf16.msra.mxu0 %v10318_v6 }
 0x13c   : > { %1530 = vmatprep.subr.bf16.mxu0 %v10323_v12  ;;  %v10327_v12 = vld [vmem:[#allocation11 + $0xc0] ss:$8 sps:$4 sm:$0xff]  }
 0x13f   : > { %1531 = vmatpush1.bf16.msra.mxu0 %v10321_v19 }
 0x140   : > { %1532 = vmatprep.subr.bf16.mxu0 %v10326_v25 }
 0x143   : > { %1533 = vmatpush1.bf16.msra.mxu0 %v10324_v36 }
 0x144   : > { %1534 = vmatprep.subr.bf16.mxu0 %v10329_v55 }
 0x147   : > { %1535 = vmatpush1.bf16.msra.mxu0 %v10327_v12 }
 0x1d3   : > { %v1062_v60 = vpop.f32.mrb[0].mxu1 }
 0x1d4   : > { %v1064_v62 = vpop.f32.mrb[1].mxu1  ;;  %v1227_v7 = vadd.f32 %v11712_v58, %v1062_v60  ;;  %v949_v53 = vpop.f32.mrb[0].mxu0 }
 0x1d5   : > { %v1228_v0 = vadd.f32 %v11709_v54, %v1064_v62  ;;  %v1066_v1 = vpop.f32.mrb[2].mxu1  ;;  %v1152_v60 = vadd.f32 %v11730_v29, %v949_v53  ;;  %v951_v62 = vpop.f32.mrb[1].mxu0 }
 0x1d6   : > { %v1229_v8 = vadd.f32 %v11712_v58, %v1066_v1  ;;  %v1068_v11 = vpop.f32.mrb[3].mxu1  ;;  %v1153_v1 = vadd.f32 %v11733_v31, %v951_v62  ;;  %v953_v6 = vpop.f32.mrb[2].mxu0 }
 0x1d7   : > { %v1230_v13 = vadd.f32 %v11709_v54, %v1068_v11  ;;  %v955_v11 = vpop.f32.mrb[3].mxu0 }
 0x1d8   : > { %v11718_v14 = vpack.c.bf16 %v1229_v8, %v1227_v7  ;;  %v1154_v8 = vadd.f32 %v11730_v29, %v953_v6  ;;  %v1155_v17 = vadd.f32 %v11733_v31, %v955_v11 }
 0x1d9   : > { %v11723_v18 = vpack.c.bf16 %v1230_v13, %v1228_v0 }
 0x1da   : > { %10016 = vmatprep.subr.msk.bf16.mxu1 %vm1679_vm0, %v11718_v14  ;;  %v1705_v24 = vsel %vm1679_vm0, %v11718_v14, 0 }
 0x1db   : > { %15347 = vst [vmem:[#allocation27_spill] sm:$0xff] %v11723_v18  ;;  %v1072_v26 = vpop.f32.mrb[4].mxu1  ;;  %9217 = vmatpush3.bf16.xpose.msra.mxu1 %v1705_v24  ;;  %v11751_v24 = vpack.c.bf16 %v1154_v8, %v1152_v60 }
 0x1dc   : > { %v1074_v30 = vpop.f32.mrb[5].mxu1  ;;  %v1231_v37 = vadd.f32 %v11712_v58, %v1072_v26  ;;  %v11753_v26 = vpack.c.bf16 %v1155_v17, %v1153_v1 }
 0x1dd   : > { %v1232_v32 = vadd.f32 %v11709_v54, %v1074_v30  ;;  %v1076_v33 = vpop.f32.mrb[6].mxu1  ;;  %15349 = vst [vmem:[#allocation29_spill] sm:$0xff] %v11751_v24  ;;  %9232 = vmatprep.mubr.msk.bf16.mxu1 %vm1679_vm0, %v11751_v24 }
 0x1de   : > { %v1233_v46 = vadd.f32 %v11712_v58, %v1076_v33  ;;  %v1078_v47 = vpop.f32.mrb[7].mxu1  ;;  %15350 = vst [vmem:[#allocation30_spill] sm:$0xff] %v11753_v26 }
 0x1df   : > { %v1234_v59 = vadd.f32 %v11709_v54, %v1078_v47 }
 0x1e0   : > { %v11740_v0 = vpack.c.bf16 %v1233_v46, %v1231_v37  ;;  %v959_v46 = vpop.f32.mrb[4].mxu0 }
 0x1e1   : > { %v11743_v7 = vpack.c.bf16 %v1234_v59, %v1232_v32  ;;  %v1156_v53 = vadd.f32 %v11730_v29, %v959_v46  ;;  %v961_v55 = vpop.f32.mrb[5].mxu0 }
 0x1e2   : > { %10017 = vmatprep.subr.msk.bf16.mxu1 %vm1679_vm0, %v11740_v0  ;;  %v1708_v13 = vsel %vm1679_vm0, %v11740_v0, 0  ;;  %v1157_v60 = vadd.f32 %v11733_v31, %v961_v55  ;;  %v963_v62 = vpop.f32.mrb[6].mxu0 }
 0x1e3   : > { %15348 = vst [vmem:[#allocation28_spill] sm:$0xff] %v11743_v7  ;;  %v1082_v19 = vpop.f32.mrb[8].mxu1  ;;  %9219 = vmatpush3.bf16.xpose.msra.mxu1 %v1708_v13  ;;  %v1158_v6 = vadd.f32 %v11730_v29, %v963_v62  ;;  %v965_v8 = vpop.f32.mrb[7].mxu0 }
 0x1e4   : > { %v1084_v25 = vpop.f32.mrb[9].mxu1  ;;  %v1235_v33 = vadd.f32 %v11712_v58, %v1082_v19  ;;  %v1159_v12 = vadd.f32 %v11733_v31, %v965_v8  ;;  %v969_v46 = vpop.f32.mrb[8].mxu0 }
 0x1e5   : > { %v1236_v30 = vadd.f32 %v11709_v54, %v1084_v25  ;;  %v1086_v32 = vpop.f32.mrb[10].mxu1  ;;  %v11773_v17 = vpack.c.bf16 %v1158_v6, %v1156_v53  ;;  %v1160_v55 = vadd.f32 %v11730_v29, %v969_v46  ;;  %v971_v62 = vpop.f32.mrb[9].mxu0 }
 0x1e6   : > { %v1237_v36 = vadd.f32 %v11712_v58, %v1086_v32  ;;  %v1088_v37 = vpop.f32.mrb[11].mxu1  ;;  %v11775_v25 = vpack.c.bf16 %v1159_v12, %v1157_v60  ;;  %v1161_v53 = vadd.f32 %v11733_v31, %v971_v62  ;;  %v973_v60 = vpop.f32.mrb[10].mxu0 }
 0x1e7   : > { %v1238_v47 = vadd.f32 %v11709_v54, %v1088_v37  ;;  %v975_v12 = vpop.f32.mrb[11].mxu0 }
 0x1e8   : > { %v11762_v59 = vpack.c.bf16 %v1237_v36, %v1235_v33  ;;  %15352 = vst [vmem:[#allocation32_spill] sm:$0xff] %v11775_v25 }
 0x1e9   : > { %v11765_v1 = vpack.c.bf16 %v1238_v47, %v1236_v30 }
 0x1ea   : > { %10018 = vmatprep.subr.msk.bf16.mxu1 %vm1679_vm0, %v11762_v59  ;;  %v1711_v11 = vsel %vm1679_vm0, %v11762_v59, 0 }
 0x1eb   : > { %15351 = vst [vmem:[#allocation31_spill] sm:$0xff] %v11765_v1  ;;  %v1092_v13 = vpop.f32.mrb[12].mxu1  ;;  %9221 = vmatpush3.bf16.xpose.msra.mxu1 %v1711_v11  ;;  %v1162_v11 = vadd.f32 %v11730_v29, %v973_v60 }
 0x1ec   : > { %v1094_v19 = vpop.f32.mrb[13].mxu1  ;;  %v1239_v33 = vadd.f32 %v11712_v58, %v1092_v13  ;;  %v979_v43 = vpop.f32.mrb[12].mxu0 }
 0x1ed   : > { %v1240_v30 = vadd.f32 %v11709_v54, %v1094_v19  ;;  %v1096_v32 = vpop.f32.mrb[14].mxu1  ;;  %v1163_v19 = vadd.f32 %v11733_v31, %v975_v12  ;;  %v1164_v12 = vadd.f32 %v11730_v29, %v979_v43  ;;  %v981_v26 = vpop.f32.mrb[13].mxu0 }
 0x1ee   : > { %v1241_v36 = vadd.f32 %v11712_v58, %v1096_v32  ;;  %v1098_v37 = vpop.f32.mrb[15].mxu1 }
 0x1ef   : > { %v1242_v47 = vadd.f32 %v11709_v54, %v1098_v37  ;;  %v11795_v37 = vpack.c.bf16 %v1163_v19, %v1161_v53  ;;  %v983_v53 = vpop.f32.mrb[14].mxu0 }
 0x1f0   : > { %v11782_v8 = vpack.c.bf16 %v1241_v36, %v1239_v33  ;;  %v11793_v33 = vpack.c.bf16 %v1162_v11, %v1160_v55  ;;  %v1165_v55 = vadd.f32 %v11733_v31, %v981_v26  ;;  %v1166_v19 = vadd.f32 %v11730_v29, %v983_v53 }
 0x1f1   : > { %v11785_v6 = vpack.c.bf16 %v1242_v47, %v1240_v30  ;;  %15354 = vst [vmem:[#allocation34_spill] sm:$0xff] %v11795_v37 }
 0x1f2   : > { %10019 = vmatprep.subr.msk.bf16.mxu1 %vm1679_vm0, %v11782_v8  ;;  %v1714_v13 = vsel %vm1679_vm0, %v11782_v8, 0 }
 0x1f3   : > { %15353 = vst [vmem:[#allocation33_spill] sm:$0xff] %v11785_v6  ;;  %v1102_v32 = vpop.f32.mrb[16].mxu1  ;;  %9223 = vmatpush3.bf16.xpose.msra.mxu1 %v1714_v13 }
 0x1f4   : > { %v1104_v36 = vpop.f32.mrb[17].mxu1  ;;  %v1243_v47 = vadd.f32 %v11712_v58, %v1102_v32 }
 0x1f5   : > { %v1244_v30 = vadd.f32 %v11709_v54, %v1104_v36  ;;  %v1106_v46 = vpop.f32.mrb[18].mxu1  ;;  %v985_v36 = vpop.f32.mrb[15].mxu0 }
 0x1f6   : > { %v1245_v62 = vadd.f32 %v11712_v58, %v1106_v46  ;;  %v1108_v60 = vpop.f32.mrb[19].mxu1  ;;  %v1167_v46 = vadd.f32 %v11733_v31, %v985_v36 }
 0x1f7   : > { %v1246_v25 = vadd.f32 %v11709_v54, %v1108_v60 }
 0x1f8   : > { %v11802_v13 = vpack.c.bf16 %v1245_v62, %v1243_v47  ;;  %v11813_v47 = vpack.c.bf16 %v1166_v19, %v1164_v12  ;;  %v11815_v26 = vpack.c.bf16 %v1167_v46, %v1165_v55 }
 0x1f9   : > { %v11805_v11 = vpack.c.bf16 %v1246_v25, %v1244_v30 }
 0x1fa   : > { %10020 = vmatprep.subr.msk.bf16.mxu1 %vm1679_vm0, %v11802_v13  ;;  %v1717_v32 = vsel %vm1679_vm0, %v11802_v13, 0  ;;  %15356 = vst [vmem:[#allocation36_spill] sm:$0xff] %v11815_v26 }
 0x1fb   : > { %15355 = vst [vmem:[#allocation35_spill] sm:$0xff] %v11805_v11  ;;  %v1112_v43 = vpop.f32.mrb[20].mxu1  ;;  %9225 = vmatpush3.bf16.xpose.msra.mxu1 %v1717_v32  ;;  %v989_v11 = vpop.f32.mrb[16].mxu0 }
 0x1fc   : > { %v1114_v62 = vpop.f32.mrb[21].mxu1  ;;  %v1247_v60 = vadd.f32 %v11712_v58, %v1112_v43  ;;  %v1168_v36 = vadd.f32 %v11730_v29, %v989_v11  ;;  %v991_v1 = vpop.f32.mrb[17].mxu0 }
 0x1fd   : > { %v1248_v25 = vadd.f32 %v11709_v54, %v1114_v62  ;;  %v1116_v30 = vpop.f32.mrb[22].mxu1  ;;  %v1169_v12 = vadd.f32 %v11733_v31, %v991_v1  ;;  %v993_v55 = vpop.f32.mrb[18].mxu0 }
 0x1fe   : > { %v1249_v53 = vadd.f32 %v11712_v58, %v1116_v30  ;;  %v1118_v37 = vpop.f32.mrb[23].mxu1  ;;  %v1170_v46 = vadd.f32 %v11730_v29, %v993_v55  ;;  %v995_v62 = vpop.f32.mrb[19].mxu0 }
 0x1ff   : > { %v1250_v6 = vadd.f32 %v11709_v54, %v1118_v37  ;;  %v1171_v37 = vadd.f32 %v11733_v31, %v995_v62 }
 0x200   : > { %v11822_v32 = vpack.c.bf16 %v1249_v53, %v1247_v60  ;;  %v11833_v30 = vpack.c.bf16 %v1170_v46, %v1168_v36 }
 0x201   : > { %v11825_v19 = vpack.c.bf16 %v1250_v6, %v1248_v25  ;;  %v11835_v1 = vpack.c.bf16 %v1171_v37, %v1169_v12 }
 0x202   : > { %15357 = vst [vmem:[#allocation37_spill] sm:$0xff] %v11822_v32  ;;  %10021 = vmatprep.subr.msk.bf16.mxu1 %vm1679_vm0, %v11822_v32  ;;  %v1720_v43 = vsel %vm1679_vm0, %v11822_v32, 0 }
 0x203   : > { %15358 = vst [vmem:[#allocation38_spill] sm:$0xff] %v11825_v19  ;;  %v1122_v11 = vpop.f32.mrb[24].mxu1  ;;  %9227 = vmatpush3.bf16.xpose.msra.mxu1 %v1720_v43  ;;  %15359 = vst [vmem:[#allocation39_spill] sm:$0xff] %v11835_v1  ;;  %v999_v19 = vpop.f32.mrb[20].mxu0 }
 0x204   : > { %v1124_v60 = vpop.f32.mrb[25].mxu1  ;;  %v1251_v53 = vadd.f32 %v11712_v58, %v1122_v11  ;;  %v1172_v62 = vadd.f32 %v11730_v29, %v999_v19  ;;  %v1001_v18 = vpop.f32.mrb[21].mxu0 }
 0x205   : > { %v1252_v6 = vadd.f32 %v11709_v54, %v1124_v60  ;;  %v1126_v25 = vpop.f32.mrb[26].mxu1  ;;  %v1173_v36 = vadd.f32 %v11733_v31, %v1001_v18  ;;  %v1003_v12 = vpop.f32.mrb[22].mxu0 }
 0x206   : > { %v1253_v55 = vadd.f32 %v11712_v58, %v1126_v25  ;;  %v1128_v26 = vpop.f32.mrb[27].mxu1  ;;  %v1174_v37 = vadd.f32 %v11730_v29, %v1003_v12  ;;  %v1005_v60 = vpop.f32.mrb[23].mxu0 }
 0x207   : > { %v1254_v7 = vadd.f32 %v11709_v54, %v1128_v26  ;;  %v1175_v26 = vadd.f32 %v11733_v31, %v1005_v60 }
 0x208   : > { %v11842_v43 = vpack.c.bf16 %v1253_v55, %v1251_v53  ;;  %v11853_v25 = vpack.c.bf16 %v1174_v37, %v1172_v62 }
 0x209   : > { %v11845_v46 = vpack.c.bf16 %v1254_v7, %v1252_v6  ;;  %v11855_v18 = vpack.c.bf16 %v1175_v26, %v1173_v36 }
 0x20a   : > { %10022 = vmatprep.subr.msk.bf16.mxu1 %vm1679_vm0, %v11842_v43  ;;  %v1723_v11 = vsel %vm1679_vm0, %v11842_v43, 0 }
 0x20b   : > { %15360 = vst [vmem:[#allocation40_spill] sm:$0xff] %v11845_v46  ;;  %v1132_v19 = vpop.f32.mrb[28].mxu1  ;;  %9229 = vmatpush3.bf16.xpose.msra.mxu1 %v1723_v11  ;;  %15361 = vst [vmem:[#allocation41_spill] sm:$0xff] %v11855_v18  ;;  %v1009_v46 = vpop.f32.mrb[24].mxu0 }
 0x20c   : > { %v1134_v53 = vpop.f32.mrb[29].mxu1  ;;  %v1255_v55 = vadd.f32 %v11712_v58, %v1132_v19  ;;  %v1176_v60 = vadd.f32 %v11730_v29, %v1009_v46  ;;  %v1011_v32 = vpop.f32.mrb[25].mxu0 }
 0x20d   : > { %v1256_v7 = vadd.f32 %v11709_v54, %v1134_v53  ;;  %v1136_v6 = vpop.f32.mrb[30].mxu1  ;;  %v1177_v62 = vadd.f32 %v11733_v31, %v1011_v32  ;;  %v1013_v36 = vpop.f32.mrb[26].mxu0 }
 0x20e   : > { %v1257_v12 = vadd.f32 %v11712_v58, %v1136_v6  ;;  %v1138_v1 = vpop.f32.mrb[31].mxu1  ;;  %v1178_v26 = vadd.f32 %v11730_v29, %v1013_v36  ;;  %v1015_v53 = vpop.f32.mrb[27].mxu0 }
 0x20f   : > { %v1258_v24 = vadd.f32 %v11709_v54, %v1138_v1  ;;  %v1179_v54 = vadd.f32 %v11733_v31, %v1015_v53  ;;  %v1019_v32 = vpop.f32.mrb[28].mxu0  ;;  %v10333_v53 = vld [vmem:[#allocation11 + $0xe0] ss:$8 sps:$4 sm:$0xff]  }
 0x210   : > { %v11862_v11 = vpack.c.bf16 %v1257_v12, %v1255_v55  ;;  %v11873_v1 = vpack.c.bf16 %v1178_v26, %v1176_v60  ;;  %v1021_v19 = vpop.f32.mrb[29].mxu0  ;;  %v10335_v26 = vld [vmem:[#allocation11 + $0xe4] ss:$8 sps:$4 sm:$0xff]  }
 0x211   : > { %v11865_v37 = vpack.c.bf16 %v1258_v24, %v1256_v7  ;;  %v11875_v46 = vpack.c.bf16 %v1179_v54, %v1177_v62  ;;  %v1180_v24 = vadd.f32 %v11730_v29, %v1019_v32  ;;  %v1181_v7 = vadd.f32 %v11733_v31, %v1021_v19  ;;  %v1023_v6 = vpop.f32.mrb[30].mxu0  ;;  %v10336_v54 = vld [vmem:[#allocation11 + $0xf0] ss:$8 sps:$4 sm:$0xff]   ;;  %v10931_v32 = vld [vmem:[%s11523_s18 + $0x8] sm:$0xff] }
 0x212   : > { %10023 = vmatprep.subr.msk.bf16.mxu1 %vm1679_vm0, %v11862_v11  ;;  %v1726_v58 = vsel %vm1679_vm0, %v11862_v11, 0  ;;  %v1182_v55 = vadd.f32 %v11730_v29, %v1023_v6  ;;  %v1025_v12 = vpop.f32.mrb[31].mxu0  ;;  %v10332_v29 = vld [vmem:[#allocation11 + $0xd4] ss:$8 sps:$4 sm:$0xff]   ;;  %v1294_v6 = vpack.c.bf16 %v11563_v5, %v11560_v3  ;;  %v1300_v3 = vpack.c.bf16 %v11623_v57, %v11620_v56 }
 0x213   : > { %15362 = vst [vmem:[#allocation42_spill] sm:$0xff] %v11865_v37  ;;  %9231 = vmatpush3.bf16.xpose.msra.mxu1 %v1726_v58  ;;  %15363 = vst [vmem:[#allocation43_spill] sm:$0xff] %v11875_v46  ;;  %v1183_v36 = vadd.f32 %v11733_v31, %v1025_v12  ;;  %v10330_v31 = vld [vmem:[#allocation11 + $0xd0] ss:$8 sps:$4 sm:$0xff]   ;;  %1536 = vmatprep.subr.bf16.mxu0 %v10332_v29  ;;  %v10338_v58 = vld [vmem:[#allocation11 + $0xf4] ss:$8 sps:$4 sm:$0xff]   ;;  %v1296_v12 = vpack.c.bf16 %v11583_v21, %v11580_v20 }
 0x214   : > { %v11885_v60 = vpack.c.bf16 %v1182_v55, %v1180_v24  ;;  %1537 = vmatpush1.bf16.msra.mxu0 %v10330_v31  ;;  %v10932_v24 = vld [vmem:[%s11523_s18 + $0x18] sm:$0xff]  ;;  %v1293_v55 = vpack.c.bf16 %v11575_v16, %v11572_v15  ;;  %v1299_v5 = vpack.c.bf16 %v11635_v4, %v11632_v2  ;;  %v1302_v15 = vpack.c.bf16 %v11643_v10, %v11640_v9 }
 0x215   : > { %v11887_v62 = vpack.c.bf16 %v1183_v36, %v1181_v7  ;;  %1538 = vmatprep.subr.bf16.mxu0 %v10335_v26  ;;  %v1292_v19 = vpack.c.bf16 %v10932_v24, %v10931_v32  ;;  %v15365_v7 = vpack.c.bf16 %v11553_v40, %v11550_v39  ;;  %v1295_v36 = vpack.c.bf16 %v11595_v35, %v11592_v34 }
 0x216   : > { %v1298_v39 = vpack.c.bf16 %v11603_v42, %v11600_v41  ;;  %v1297_v40 = vpack.c.bf16 %v11615_v52, %v11612_v51  ;;  %v1301_v16 = vpack.c.bf16 %v11655_v23, %v11652_v22  ;;  %v1304_v20 = vpack.c.bf16 %v11663_v28, %v11660_v27 }
 0x217   : > { %15364 = vst [vmem:[#allocation44_spill] sm:$0xff] %v11887_v62  ;;  %1542 = vmatprep.mubr.bf16.mxu0 %v1292_v19  ;;  %v1303_v21 = vpack.c.bf16 %v11675_v44, %v11672_v38  ;;  %v1306_v34 = vpack.c.bf16 %v11683_v49, %v11680_v48  ;;  %v1305_v35 = vpack.c.bf16 %v11695_v63, %v11692_v61  ;;  %v8688_v48 = vld [vmem:[%s15151_s5 + $0x2] ss:$8 sm:$0x3] }
 0x218   : > { %1539 = vmatpush1.bf16.msra.mxu0 %v10333_v53  ;;  %v11984_v61 = vrot.slane %v8688_v48, %v11706_v50  ;;  %v11987_v63 = vrot.slane %v8688_v48, %v11701_v45 }
 0x219   : > { %1540 = vmatprep.subr.bf16.mxu0 %v10338_v58 }
 0x21a   : > { %9233 = vmatmul.mubr.msk.bf16.vlgmr.msra.gmra.mrb[32].mxu1 %vm1679_vm0, %v11773_v17 }
 0x21b   : > { %9236 = vmatprep.mubr.msk.bf16.mxu1 %vm1679_vm0, %v11793_v33 }
 0x21c   : > { %1541 = vmatpush1.bf16.msra.mxu0 %v10336_v54 }
 0x21f   : > { %1543 = vmatmul.mubr.bf16.vlgmr.msra.gmra.mrb[32].mxu0 %v15365_v7 }
 0x220   : > { %1552 = vmatprep.mubr.bf16.mxu0 %v1294_v6 }
 0x222   : > { %9237 = vmatmul.mubr.msk.bf16.gmra.mrb[36].mxu1 %vm1679_vm0, %v11813_v47 }
 0x223   : > { %9240 = vmatprep.mubr.msk.bf16.mxu1 %vm1679_vm0, %v11833_v30 }
 0x227   : > { %1553 = vmatmul.mubr.bf16.gmra.mrb[36].mxu0 %v1293_v55 }
 0x228   : > { %1562 = vmatprep.mubr.bf16.mxu0 %v1296_v12 }
 0x22a   : > { %9241 = vmatmul.mubr.msk.bf16.gmra.mrb[40].mxu1 %vm1679_vm0, %v11853_v25 }
 0x22b   : > { %9244 = vmatprep.mubr.msk.bf16.mxu1 %vm1679_vm0, %v11873_v1 }
 0x22f   : > { %1563 = vmatmul.mubr.bf16.gmra.mrb[40].mxu0 %v1295_v36 }
 0x230   : > { %1572 = vmatprep.mubr.bf16.mxu0 %v1298_v39 }
 0x232   : > { %9245 = vmatmul.mubr.msk.bf16.gmra.mrb[44].mxu1 %vm1679_vm0, %v11885_v60 }
 0x237   : > { %1573 = vmatmul.mubr.bf16.gmra.mrb[44].mxu0 %v1297_v40 }
 0x238   : > { %1582 = vmatprep.mubr.bf16.mxu0 %v1300_v3 }
 0x23f   : > { %1583 = vmatmul.mubr.bf16.gmra.mrb[48].mxu0 %v1299_v5 }
 0x240   : > { %1592 = vmatprep.mubr.bf16.mxu0 %v1302_v15 }
 0x247   : > { %1593 = vmatmul.mubr.bf16.gmra.mrb[52].mxu0 %v1301_v16 }
 0x248   : > { %1602 = vmatprep.mubr.bf16.mxu0 %v1304_v20 }
 0x24f   : > { %1603 = vmatmul.mubr.bf16.gmra.mrb[56].mxu0 %v1303_v21 }
 0x250   : > { %1612 = vmatprep.mubr.bf16.mxu0 %v1306_v34 }
 0x257   : > { %1613 = vmatmul.mubr.bf16.gmra.mrb[60].mxu0 %v1305_v35 }
 0x2ed   : > { %v11932_v41 = vpop.f32.mrb[32].mxu1 }
 0x2ee   : > { %1829 = vmax.xlane.f32.xlu1 %v11932_v41  ;;  %v11935_v42 = vpop.f32.mrb[33].mxu1 }
 0x2ef   : > { %1825 = vmax.xlane.f32.xlu0 %v11935_v42  ;;  %v11938_v51 = vpop.f32.mrb[34].mxu1 }
 0x2f0   : > { %v11940_v52 = vpop.f32.mrb[35].mxu1 }
 0x2f2   : > { %1831 = vmax.xlane.f32.xlu1 %v11938_v51  ;;  %v1544_v49 = vpop.f32.mrb[32].mxu0 }
 0x2f3   : > { %1827 = vmax.xlane.f32.xlu0 %v11940_v52  ;;  %v1546_v29 = vpop.f32.mrb[33].mxu0  ;;  %v1545_v26 = vadd.f32 %v1544_v49, %v11984_v61 }
 0x2f4   : > { %v1548_v31 = vpop.f32.mrb[34].mxu0  ;;  %v1547_v53 = vadd.f32 %v1546_v29, %v11987_v63 }
 0x2f5   : > { %v11944_v56 = vpop.f32.mrb[36].mxu1  ;;  %v1549_v58 = vadd.f32 %v1548_v31, %v11984_v61  ;;  %v1550_v54 = vpop.f32.mrb[35].mxu0 }
 0x2f6   : > { %v11946_v57 = vpop.f32.mrb[37].mxu1  ;;  %v1551_v32 = vadd.f32 %v1550_v54, %v11987_v63 }
 0x2f7   : > { %1833 = vmax.xlane.f32.xlu0 %v11946_v57  ;;  %v11949_v2 = vpop.f32.mrb[38].mxu1  ;;  %v11993_v19 = vpack.c.bf16 %v1549_v58, %v1545_v26 }
 0x2f8   : > { %v11951_v4 = vpop.f32.mrb[39].mxu1  ;;  %v11996_v55 = vpack.c.bf16 %v1551_v32, %v1547_v53 }
 0x2f9   : > { %1835 = vmax.xlane.f32.xlu1 %v11951_v4  ;;  %15366 = vst [vmem:[#allocation45_spill] sm:$0xff] %v11993_v19  ;;  %9248 = vmatprep.subr.bf16.mxu1 %v11993_v19 }
 0x2fa   : > { %v1554_v24 = vpop.f32.mrb[36].mxu0  ;;  %15367 = vst [vmem:[#allocation46_spill] sm:$0xff] %v11996_v55  ;;  %9249 = vmatpush3.bf16.msra.mxu1 %v11993_v19 }
 0x2fb   : > { %1837 = vmax.xlane.f32.xlu0 %v11944_v56  ;;  %v1555_v7 = vadd.f32 %v1554_v24, %v11984_v61  ;;  %v1556_v6 = vpop.f32.mrb[37].mxu0 }
 0x2fc   : > { %v1557_v12 = vadd.f32 %v1556_v6, %v11987_v63  ;;  %v1558_v36 = vpop.f32.mrb[38].mxu0 }
 0x2fd   : > { %1839 = vmax.xlane.f32.xlu1 %v11949_v2  ;;  %v11956_v9 = vpop.f32.mrb[40].mxu1  ;;  %v1559_v39 = vadd.f32 %v1558_v36, %v11984_v61  ;;  %v1560_v40 = vpop.f32.mrb[39].mxu0 }
 0x2fe   : > { %v11958_v10 = vpop.f32.mrb[41].mxu1  ;;  %v1561_v3 = vadd.f32 %v1560_v40, %v11987_v63 }
 0x2ff   : > { %1841 = vmax.xlane.f32.xlu0 %v11958_v10  ;;  %v11961_v22 = vpop.f32.mrb[42].mxu1  ;;  %v12003_v15 = vpack.c.bf16 %v1559_v39, %v1555_v7 }
 0x300   : > { %v11963_v23 = vpop.f32.mrb[43].mxu1  ;;  %v12006_v21 = vpack.c.bf16 %v1561_v3, %v1557_v12 }
 0x301   : > { %1843 = vmax.xlane.f32.xlu1 %v11963_v23  ;;  %15368 = vst [vmem:[#allocation47_spill] sm:$0xff] %v12003_v15  ;;  %9250 = vmatprep.subr.bf16.mxu1 %v12003_v15 }
 0x302   : > { %v1564_v5 = vpop.f32.mrb[40].mxu0  ;;  %15369 = vst [vmem:[#allocation48_spill] sm:$0xff] %v12006_v21  ;;  %9251 = vmatpush3.bf16.msra.mxu1 %v12003_v15 }
 0x303   : > { %1845 = vmax.xlane.f32.xlu0 %v11956_v9  ;;  %v1565_v16 = vadd.f32 %v1564_v5, %v11984_v61  ;;  %v1566_v20 = vpop.f32.mrb[41].mxu0 }
 0x304   : > { %v1567_v34 = vadd.f32 %v1566_v20, %v11987_v63  ;;  %v1568_v35 = vpop.f32.mrb[42].mxu0 }
 0x305   : > { %1847 = vmax.xlane.f32.xlu1 %v11961_v22  ;;  %v11968_v27 = vpop.f32.mrb[44].mxu1  ;;  %v1569_v48 = vadd.f32 %v1568_v35, %v11984_v61  ;;  %v1570_v49 = vpop.f32.mrb[43].mxu0 }
 0x306   : > { %v11970_v28 = vpop.f32.mrb[45].mxu1  ;;  %v1571_v29 = vadd.f32 %v1570_v49, %v11987_v63 }
 0x307   : > { %1849 = vmax.xlane.f32.xlu0 %v11970_v28  ;;  %v11973_v38 = vpop.f32.mrb[46].mxu1  ;;  %v12013_v26 = vpack.c.bf16 %v1569_v48, %v1565_v16 }
 0x308   : > { %v11975_v44 = vpop.f32.mrb[47].mxu1  ;;  %v12016_v54 = vpack.c.bf16 %v1571_v29, %v1567_v34 }
 0x309   : > { %1851 = vmax.xlane.f32.xlu1 %v11975_v44  ;;  %15370 = vst [vmem:[#allocation49_spill] sm:$0xff] %v12013_v26  ;;  %9252 = vmatprep.subr.bf16.mxu1 %v12013_v26 }
 0x30a   : > { %v1574_v31 = vpop.f32.mrb[44].mxu0  ;;  %15371 = vst [vmem:[#allocation50_spill] sm:$0xff] %v12016_v54  ;;  %9253 = vmatpush3.bf16.msra.mxu1 %v12013_v26 }
 0x30b   : > { %1853 = vmax.xlane.f32.xlu0 %v11968_v27  ;;  %v1575_v53 = vadd.f32 %v1574_v31, %v11984_v61  ;;  %v1576_v58 = vpop.f32.mrb[45].mxu0 }
 0x30c   : > { %v1577_v32 = vadd.f32 %v1576_v58, %v11987_v63  ;;  %v1578_v24 = vpop.f32.mrb[46].mxu0 }
 0x30d   : > { %1855 = vmax.xlane.f32.xlu1 %v11973_v38  ;;  %v1579_v7 = vadd.f32 %v1578_v24, %v11984_v61  ;;  %v1580_v6 = vpop.f32.mrb[47].mxu0 }
 0x30e   : > { %v1581_v12 = vadd.f32 %v1580_v6, %v11987_v63 }
 0x30f   : > { %v12023_v39 = vpack.c.bf16 %v1579_v7, %v1575_v53 }
 0x310   : > { %v12026_v5 = vpack.c.bf16 %v1581_v12, %v1577_v32 }
 0x311   : > { %15372 = vst [vmem:[#allocation51_spill] sm:$0xff] %v12023_v39  ;;  %9254 = vmatprep.subr.bf16.mxu1 %v12023_v39 }
 0x312   : > { %v1584_v36 = vpop.f32.mrb[48].mxu0  ;;  %15373 = vst [vmem:[#allocation52_spill] sm:$0xff] %v12026_v5  ;;  %9255 = vmatpush3.bf16.msra.mxu1 %v12023_v39 }
 0x313   : > { %v1585_v40 = vadd.f32 %v1584_v36, %v11984_v61  ;;  %v1586_v3 = vpop.f32.mrb[49].mxu0 }
 0x314   : > { %v1587_v16 = vadd.f32 %v1586_v3, %v11987_v63  ;;  %v1588_v20 = vpop.f32.mrb[50].mxu0 }
 0x315   : > { %v1589_v34 = vadd.f32 %v1588_v20, %v11984_v61  ;;  %v1590_v35 = vpop.f32.mrb[51].mxu0 }
 0x316   : > { %v1591_v48 = vadd.f32 %v1590_v35, %v11987_v63 }
 0x317   : > { %v12033_v31 = vpack.c.bf16 %v1589_v34, %v1585_v40 }
 0x318   : > { %v12037_v7 = vpack.c.bf16 %v1591_v48, %v1587_v16 }
 0x319   : > { %15374 = vst [vmem:[#allocation53_spill] sm:$0xff] %v12033_v31  ;;  %9256 = vmatprep.subr.bf16.mxu1 %v12033_v31 }
 0x31a   : > { %v1594_v49 = vpop.f32.mrb[52].mxu0  ;;  %15375 = vst [vmem:[#allocation54_spill] sm:$0xff] %v12037_v7  ;;  %9257 = vmatpush3.bf16.msra.mxu1 %v12033_v31 }
 0x31b   : > { %v1595_v53 = vadd.f32 %v1594_v49, %v11984_v61  ;;  %v1596_v58 = vpop.f32.mrb[53].mxu0 }
 0x31c   : > { %v1597_v6 = vadd.f32 %v1596_v58, %v11987_v63  ;;  %v1598_v12 = vpop.f32.mrb[54].mxu0 }
 0x31d   : > { %v1599_v3 = vadd.f32 %v1598_v12, %v11984_v61  ;;  %v1600_v20 = vpop.f32.mrb[55].mxu0 }
 0x31e   : > { %v1601_v40 = vadd.f32 %v1600_v20, %v11987_v63 }
 0x31f   : > { %v12045_v49 = vpack.c.bf16 %v1599_v3, %v1595_v53 }
 0x321   : > { %15376 = vst [vmem:[#allocation55_spill] sm:$0xff] %v12045_v49  ;;  %9258 = vmatprep.subr.bf16.mxu1 %v12045_v49 }
 0x322   : > { %v1604_v34 = vpop.f32.mrb[56].mxu0  ;;  %9259 = vmatpush3.bf16.msra.mxu1 %v12045_v49 }
 0x323   : > { %v1605_v16 = vadd.f32 %v1604_v34, %v11984_v61  ;;  %v1606_v48 = vpop.f32.mrb[57].mxu0 }
 0x324   : > { %v1607_v12 = vadd.f32 %v1606_v48, %v11987_v63  ;;  %v1608_v45 = vpop.f32.mrb[58].mxu0 }
 0x325   : > { %v1610_v53 = vpop.f32.mrb[59].mxu0 }
 0x37b   : > { %v1830_v29 = vpop.xlane.xlu1 %1829 }
 0x37c   : > { %v1859_v32 = vsub.f32 %v11932_v41, %v1830_v29  ;;  %v1826_v24 = vpop.xlane.xlu0 %1825 }
 0x37d   : > { %v1857_v36 = vsub.f32 %v11935_v42, %v1826_v24  ;;  %v12049_v24 = vpack.c.bf16 %v1601_v40, %v1597_v6 }
 0x37e   : > { %v1877_v29 = vmul.f32 1.442695, %v1859_v32 }
 0x37f   : > { %v1873_v35 = vmul.f32 1.442695, %v1857_v36  ;;  %v1832_v41 = vpop.xlane.xlu1 %1831  ;;  %15377 = vst [vmem:[#allocation56_spill] sm:$0xff] %v12049_v24  ;;  %v1609_v36 = vadd.f32 %v1608_v45, %v11984_v61 }
 0x380   : > { %v1860_v42 = vsub.f32 %v11938_v51, %v1832_v41  ;;  %v1828_v58 = vpop.xlane.xlu0 %1827  ;;  %v1611_v51 = vadd.f32 %v1610_v53, %v11987_v63 }
 0x381   : > { %10387 = vpow2.f32 %v1873_v35  ;;  %v1858_v20 = vsub.f32 %v11940_v52, %v1828_v58  ;;  %v12056_v32 = vpack.c.bf16 %v1609_v36, %v1605_v16  ;;  %v1614_v52 = vpop.f32.mrb[60].mxu0 }
 0x382   : > { %10389 = vpow2.f32 %v1877_v29  ;;  %v1879_v6 = vmul.f32 1.442695, %v1860_v42  ;;  %v12060_v35 = vpack.c.bf16 %v1611_v51, %v1607_v12  ;;  %v1615_v48 = vadd.f32 %v1614_v52, %v11984_v61  ;;  %v1616_v58 = vpop.f32.mrb[61].mxu0 }
 0x383   : > { %v1875_v3 = vmul.f32 1.442695, %v1858_v20  ;;  %15378 = vst [vmem:[#allocation57_spill] sm:$0xff] %v12056_v32  ;;  %9260 = vmatprep.subr.bf16.mxu1 %v12056_v32  ;;  %v12067_v42 = vadd.f32 %v1616_v58, %v11987_v63 }
 0x384   : > { %v1834_v40 = vpop.xlane.xlu0 %1833  ;;  %15379 = vst [vmem:[#allocation58_spill] sm:$0xff] %v12060_v35  ;;  %9261 = vmatpush3.bf16.msra.mxu1 %v12056_v32 }
 0x385   : > { %10391 = vpow2.f32 %v1875_v3  ;;  %v1861_v34 = vsub.f32 %v11946_v57, %v1834_v40  ;;  %v1618_v57 = vpop.f32.mrb[62].mxu0 }
 0x386   : > { %v1836_v45 = vpop.xlane.xlu1 %1835  ;;  %10393 = vpow2.f32 %v1879_v6  ;;  %v1619_v36 = vadd.f32 %v1618_v57, %v11984_v61 }
 0x387   : > { %v1881_v41 = vmul.f32 1.442695, %v1861_v34  ;;  %v1862_v16 = vsub.f32 %v11951_v4, %v1836_v45 }
 0x388   : > { %v1838_v29 = vpop.xlane.xlu0 %1837  ;;  %v12074_v40 = vpack.c.bf16 %v1619_v36, %v1615_v48 }
 0x389   : > { %10395 = vpow2.f32 %v1881_v41  ;;  %v1883_v12 = vmul.f32 1.442695, %v1862_v16  ;;  %v1863_v20 = vsub.f32 %v11944_v56, %v1838_v29 }
 0x38a   : > { %v1840_v53 = vpop.xlane.xlu1 %1839  ;;  %15380 = vst [vmem:[#allocation59_spill] sm:$0xff] %v12074_v40  ;;  %9262 = vmatprep.subr.bf16.mxu1 %v12074_v40 }
 0x38b   : > { %v12071_v3 = vpop.eup %10387  ;;  %v1885_v51 = vmul.f32 1.442695, %v1863_v20  ;;  %v1864_v4 = vsub.f32 %v11949_v2, %v1840_v53  ;;  %10397 = vpow2.f32 %v1883_v12  ;;  %9263 = vmatpush3.bf16.msra.mxu1 %v12074_v40 }
 0x38c   : > { %v1842_v6 = vpop.xlane.xlu0 %1841  ;;  %1905 = vadd.xlane.f32.xlu0 %v12071_v3  ;;  %v12079_v56 = vpop.eup %10389 }
 0x38d   : > { %10399 = vpow2.f32 %v1885_v51  ;;  %v1887_v34 = vmul.f32 1.442695, %v1864_v4  ;;  %v1865_v45 = vsub.f32 %v11958_v10, %v1842_v6 }
 0x38e   : > { %v1844_v61 = vpop.xlane.xlu1 %1843 }
 0x38f   : > { %v12082_v52 = vpop.eup %10391  ;;  %v1889_v2 = vmul.f32 1.442695, %v1865_v45  ;;  %v1866_v41 = vsub.f32 %v11963_v23, %v1844_v61  ;;  %10401 = vpow2.f32 %v1887_v34 }
 0x390   : > { %v1846_v16 = vpop.xlane.xlu0 %1845  ;;  %1909 = vadd.xlane.f32.xlu0 %v12079_v56  ;;  %1907 = vadd.xlane.f32.xlu1 %v12082_v52  ;;  %v12088_v58 = vpop.eup %10393 }
 0x391   : > { %10403 = vpow2.f32 %v1889_v2  ;;  %v1891_v10 = vmul.f32 1.442695, %v1866_v41  ;;  %v1867_v48 = vsub.f32 %v11956_v9, %v1846_v16 }
 0x392   : > { %v1848_v29 = vpop.xlane.xlu1 %1847 }
 0x393   : > { %v12090_v57 = vpop.eup %10395  ;;  %v1893_v12 = vmul.f32 1.442695, %v1867_v48  ;;  %v1868_v20 = vsub.f32 %v11961_v22, %v1848_v29  ;;  %10405 = vpow2.f32 %v1891_v10 }
 0x394   : > { %1913 = vadd.xlane.f32.xlu0 %v12090_v57  ;;  %v1850_v23 = vpop.xlane.xlu0 %1849  ;;  %1911 = vadd.xlane.f32.xlu1 %v12088_v58 }
 0x395   : > { %10407 = vpow2.f32 %v1893_v12  ;;  %v1895_v36 = vmul.f32 1.442695, %v1868_v20  ;;  %v1869_v53 = vsub.f32 %v11970_v28, %v1850_v23  ;;  %v12096_v51 = vpop.eup %10397  ;;  %v1620_v23 = vpop.f32.mrb[63].mxu0 }
 0x396   : > { %v1852_v9 = vpop.xlane.xlu1 %1851 }
 0x397   : > { %v12098_v4 = vpop.eup %10399  ;;  %v1897_v6 = vmul.f32 1.442695, %v1869_v53  ;;  %v1870_v34 = vsub.f32 %v11975_v44, %v1852_v9  ;;  %10409 = vpow2.f32 %v1895_v36  ;;  %v1621_v36 = vadd.f32 %v1620_v23, %v11987_v63  ;;  %v15382_v63 = vld [vmem:[#allocation37_spill] sm:$0xff] }
 0x398   : > { %1917 = vadd.xlane.f32.xlu0 %v12098_v4  ;;  %v1854_v22 = vpop.xlane.xlu0 %1853  ;;  %1915 = vadd.xlane.f32.xlu1 %v12096_v51 }
 0x399   : > { %10411 = vpow2.f32 %v1897_v6  ;;  %v1899_v45 = vmul.f32 1.442695, %v1870_v34  ;;  %v1871_v61 = vsub.f32 %v11968_v27, %v1854_v22  ;;  %v12104_v2 = vpop.eup %10401  ;;  %v12131_v53 = vpack.c.bf16 %v1621_v36, %v12067_v42  ;;  %v10341_v6 = vld [vmem:[#allocation13 + $0x4] ss:$8 sps:$4 sm:$0xff]  }
 0x39a   : > { %v1856_v28 = vpop.xlane.xlu1 %1855  ;;  %2130 = vmatprep.subr.bf16.mxu1 %v10341_v6  ;;  %v15383_v42 = vld [vmem:[#allocation29_spill] sm:$0xff] }
 0x39b   : > { %v12106_v41 = vpop.eup %10403  ;;  %v1901_v16 = vmul.f32 1.442695, %v1871_v61  ;;  %v1872_v10 = vsub.f32 %v11973_v38, %v1856_v28  ;;  %10413 = vpow2.f32 %v1899_v45  ;;  %15381 = vst [vmem:[#allocation60_spill] sm:$0xff] %v12131_v53 }
 0x39c   : > { %1921 = vadd.xlane.f32.xlu0 %v12106_v41  ;;  %1919 = vadd.xlane.f32.xlu1 %v12104_v2 }
 0x39d   : > { %10415 = vpow2.f32 %v1901_v16  ;;  %v1903_v44 = vmul.f32 1.442695, %v1872_v10  ;;  %v12111_v48 = vpop.eup %10405 }
 0x39f   : > { %v12113_v29 = vpop.eup %10407  ;;  %10417 = vpow2.f32 %v1903_v44 }
 0x3a0   : > { %1925 = vadd.xlane.f32.xlu0 %v12113_v29  ;;  %1923 = vadd.xlane.f32.xlu1 %v12111_v48 }
 0x3a1   : > { %v12117_v27 = vpop.eup %10409 }
 0x3a3   : > { %v12119_v12 = vpop.eup %10411 }
 0x3a4   : > { %1929 = vadd.xlane.f32.xlu0 %v12119_v12  ;;  %1927 = vadd.xlane.f32.xlu1 %v12117_v27 }
 0x3a5   : > { %v12123_v38 = vpop.eup %10413 }
 0x3a7   : > { %v12125_v20 = vpop.eup %10415 }
 0x3a8   : > { %1933 = vadd.xlane.f32.xlu0 %v12125_v20  ;;  %1931 = vadd.xlane.f32.xlu1 %v12123_v38 }
 0x3a9   : > { %v12133_v9 = vpop.eup %10417 }
 0x3ac   : > { %1935 = vadd.xlane.f32.xlu1 %v12133_v9 }
 0x3bd   : > { %2349 = vrot.lane.b32.xlu1 %v11740_v0, %s11214_s24 }
 0x3be   : > { %2347 = vrot.lane.b32.xlu0 %v11718_v14, %s11214_s24 }
 0x3c1   : > { %2351 = vrot.lane.b32.xlu1 %v11762_v59, %s11214_s24 }
 0x3c2   : > { %2355 = vrot.lane.b32.xlu0 %v11802_v13, %s11214_s24 }
 0x3c5   : > { %2353 = vrot.lane.b32.xlu1 %v11782_v8, %s11214_s24 }
 0x3c6   : > { %2359 = vrot.lane.b32.xlu0 %v11842_v43, %s11214_s24 }
 0x3c9   : > { %2357 = vrot.lane.b32.xlu1 %v15382_v63, %s11214_s24 }
 0x3ca   : > { %2323 = vrot.lane.b32.xlu0 %v15383_v42, %s11214_s24 }
 0x3cd   : > { %2361 = vrot.lane.b32.xlu1 %v11862_v11, %s11214_s24 }
 0x3ce   : > { %2325 = vrot.lane.b32.xlu0 %v11773_v17, %s11214_s24 }
 0x3d1   : > { %3158 = vrot.lane.b32.xlu1 %v11718_v14, %s11215_s23 }
 0x3d2   : > { %3162 = vrot.lane.b32.xlu0 %v11762_v59, %s11215_s23 }
 0x3d5   : > { %3160 = vrot.lane.b32.xlu1 %v11740_v0, %s11215_s23 }
 0x3d6   : > { %3166 = vrot.lane.b32.xlu0 %v11802_v13, %s11215_s23 }
 0x3d9   : > { %3164 = vrot.lane.b32.xlu1 %v11782_v8, %s11215_s23 }
 0x3da   : > { %2329 = vrot.lane.b32.xlu0 %v11813_v47, %s11214_s24 }
 0x3dd   : > { %2327 = vrot.lane.b32.xlu1 %v11793_v33, %s11214_s24 }
 0x3de   : > { %2331 = vrot.lane.b32.xlu0 %v11833_v30, %s11214_s24 }
 0x3e1   : > { %3168 = vrot.lane.b32.xlu1 %v15382_v63, %s11215_s23 }
 0x3e2   : > { %3170 = vrot.lane.b32.xlu0 %v11842_v43, %s11215_s23 }
 0x3e5   : > { %2333 = vrot.lane.b32.xlu1 %v11853_v25, %s11214_s24 }
 0x3e6   : > { %2337 = vrot.lane.b32.xlu0 %v11885_v60, %s11214_s24 }
 0x3e9   : > { %2335 = vrot.lane.b32.xlu1 %v11873_v1, %s11214_s24 }
 0x3ea   : > { %3134 = vrot.lane.b32.xlu0 %v15383_v42, %s11215_s23 }
 0x3ed   : > { %3172 = vrot.lane.b32.xlu1 %v11862_v11, %s11215_s23 }
 0x3ee   : > { %3138 = vrot.lane.b32.xlu0 %v11793_v33, %s11215_s23 }
 0x3f1   : > { %3136 = vrot.lane.b32.xlu1 %v11773_v17, %s11215_s23 }
 0x3f2   : > { %3142 = vrot.lane.b32.xlu0 %v11833_v30, %s11215_s23 }
 0x3f5   : > { %3140 = vrot.lane.b32.xlu1 %v11813_v47, %s11215_s23 }
 0x3f6   : > { %3146 = vrot.lane.b32.xlu0 %v11873_v1, %s11215_s23 }
 0x3f9   : > { %3144 = vrot.lane.b32.xlu1 %v11853_v25, %s11215_s23 }
 0x3fa   : > { %3479 = vrot.lane.b32.xlu0 %v11993_v19, %s11215_s23 }
 0x3fd   : > { %3148 = vrot.lane.b32.xlu1 %v11885_v60, %s11215_s23 }
 0x3fe   : > { %3483 = vrot.lane.b32.xlu0 %v12013_v26, %s11215_s23 }
 0x401   : > { %3481 = vrot.lane.b32.xlu1 %v12003_v15, %s11215_s23 }
 0x402   : > { %3487 = vrot.lane.b32.xlu0 %v12033_v31, %s11215_s23 }
 0x405   : > { %3485 = vrot.lane.b32.xlu1 %v12023_v39, %s11215_s23 }
 0x406   : > { %3491 = vrot.lane.b32.xlu0 %v12056_v32, %s11215_s23 }
 0x409   : > { %3489 = vrot.lane.b32.xlu1 %v12045_v49, %s11215_s23 }
 0x40a   : > { %3969 = vrot.lane.b32.xlu0 %v11718_v14, %s11216_s3 }
 0x40d   : > { %3493 = vrot.lane.b32.xlu1 %v12074_v40, %s11215_s23 }
 0x411   : > { %3971 = vrot.lane.b32.xlu1 %v11740_v0, %s11216_s3 }
 0x415   : > { %3975 = vrot.lane.b32.xlu1 %v11782_v8, %s11216_s3 }
 0x419   : > { %v1906_v34 = vpop.xlane.xlu0 %1905 }
 0x41a   : > { %10419 = vrcp.f32 %v1906_v34 }
 0x41d   : > { %v1910_v22 = vpop.xlane.xlu0 %1909  ;;  %v1908_v45 = vpop.xlane.xlu1 %1907 }
 0x41e   : > { %10421 = vrcp.f32 %v1910_v22 }
 0x41f   : > { %10423 = vrcp.f32 %v1908_v45 }
 0x421   : > { %v1914_v61 = vpop.xlane.xlu0 %1913  ;;  %v1912_v28 = vpop.xlane.xlu1 %1911 }
 0x422   : > { %10425 = vrcp.f32 %v1914_v61 }
 0x423   : > { %10427 = vrcp.f32 %v1912_v28 }
 0x424   : > { %v10420_v14 = vpop.eup %10419 }
 0x425   : > { %v1918_v16 = vpop.xlane.xlu0 %1917  ;;  %v1916_v10 = vpop.xlane.xlu1 %1915  ;;  %v1953_v44 = vmul.f32 %v10420_v14, %v12071_v3 }
 0x426   : > { %10429 = vrcp.f32 %v1918_v16 }
 0x427   : > { %10431 = vrcp.f32 %v1916_v10  ;;  %2243 = vst [vmem:[%s12224_s16] sm:$0xff] %v1953_v44 }
 0x428   : > { %v10422_v0 = vpop.eup %10421 }
 0x429   : > { %v10424_v8 = vpop.eup %10423  ;;  %v1955_v23 = vmul.f32 %v10422_v0, %v12079_v56  ;;  %v1922_v36 = vpop.xlane.xlu0 %1921  ;;  %v10339_v56 = vld [vmem:[#allocation13] ss:$8 sps:$4 sm:$0xff]   ;;  %v10344_v0 = vld [vmem:[#allocation13 + $0x14] ss:$8 sps:$4 sm:$0xff]  }
 0x42a   : > { %v1920_v6 = vpop.xlane.xlu1 %1919  ;;  %10433 = vrcp.f32 %v1922_v36  ;;  %v1954_v34 = vmul.f32 %v10424_v8, %v12082_v52 }
 0x42b   : > { %2245 = vst [vmem:[%s12224_s16 + $0x10] sm:$0xff] %v1955_v23  ;;  %10435 = vrcp.f32 %v1920_v6 }
 0x42c   : > { %v10426_v3 = vpop.eup %10425  ;;  %v1969_v22 = vpack.c.bf16 %v1954_v34, %v1953_v44  ;;  %2244 = vst [vmem:[%s12224_s16 + $0x8] sm:$0xff] %v1954_v34 }
 0x42d   : > { %v10428_v45 = vpop.eup %10427  ;;  %v1926_v61 = vpop.xlane.xlu0 %1925  ;;  %v1957_v14 = vmul.f32 %v10426_v3, %v12090_v57  ;;  %v10342_v57 = vld [vmem:[#allocation13 + $0x10] ss:$8 sps:$4 sm:$0xff]  }
 0x42e   : > { %v1924_v28 = vpop.xlane.xlu1 %1923  ;;  %v1956_v16 = vmul.f32 %v10428_v45, %v12088_v58  ;;  %10437 = vrcp.f32 %v1926_v61  ;;  %9264 = vmatprep.mubr.bf16.mxu1 %v1969_v22 }
 0x42f   : > { %10439 = vrcp.f32 %v1924_v28  ;;  %2247 = vst [vmem:[%s12224_s16 + $0x20] sm:$0xff] %v1957_v14 }
 0x430   : > { %v10430_v52 = vpop.eup %10429  ;;  %2246 = vst [vmem:[%s12224_s16 + $0x18] sm:$0xff] %v1956_v16  ;;  %v1970_v10 = vpack.c.bf16 %v1956_v16, %v1955_v23 }
 0x431   : > { %v10432_v44 = vpop.eup %10431  ;;  %v1930_v8 = vpop.xlane.xlu0 %1929  ;;  %v1959_v6 = vmul.f32 %v10430_v52, %v12098_v4 }
 0x432   : > { %v1928_v36 = vpop.xlane.xlu1 %1927  ;;  %10441 = vrcp.f32 %v1930_v8  ;;  %9265 = vmatmul.mubr.bf16.vlgmr.msra.gmra.mrb[48].mxu1 %v1970_v10  ;;  %v1958_v58 = vmul.f32 %v10432_v44, %v12096_v51 }
 0x433   : > { %10443 = vrcp.f32 %v1928_v36  ;;  %2131 = vmatpush1.bf16.msra.mxu1 %v10339_v56  ;;  %2249 = vst [vmem:[%s12224_s16 + $0x30] sm:$0xff] %v1959_v6 }
 0x434   : > { %v10434_v34 = vpop.eup %10433  ;;  %v1971_v3 = vpack.c.bf16 %v1958_v58, %v1957_v14  ;;  %2248 = vst [vmem:[%s12224_s16 + $0x28] sm:$0xff] %v1958_v58  ;;  %2132 = vmatprep.subr.bf16.mxu1 %v10344_v0 }
 0x435   : > { %v10436_v23 = vpop.eup %10435  ;;  %v1934_v22 = vpop.xlane.xlu0 %1933  ;;  %v1961_v61 = vmul.f32 %v10434_v34, %v12106_v41 }
 0x436   : > { %v1932_v45 = vpop.xlane.xlu1 %1931  ;;  %10445 = vrcp.f32 %v1934_v22  ;;  %9268 = vmatprep.mubr.bf16.mxu1 %v1971_v3  ;;  %v1960_v51 = vmul.f32 %v10436_v23, %v12104_v2 }
 0x437   : > { %10447 = vrcp.f32 %v1932_v45  ;;  %2133 = vmatpush1.bf16.msra.mxu1 %v10342_v57  ;;  %2251 = vst [vmem:[%s12224_s16 + $0x40] sm:$0xff] %v1961_v61 }
 0x438   : > { %v10438_v4 = vpop.eup %10437  ;;  %v1972_v28 = vpack.c.bf16 %v1960_v51, %v1959_v6  ;;  %2250 = vst [vmem:[%s12224_s16 + $0x38] sm:$0xff] %v1960_v51 }
 0x439   : > { %v10440_v14 = vpop.eup %10439  ;;  %v2348_v16 = vpop.permute.xlu0 %2347  ;;  %v1963_v52 = vmul.f32 %v10438_v4, %v12113_v29 }
 0x43a   : > { %v1936_v56 = vpop.xlane.xlu1 %1935  ;;  %9269 = vmatmul.mubr.bf16.gmra.mrb[52].mxu1 %v1972_v28  ;;  %10024 = vmatprep.subr.msk.bf16.mxu1 %vm1679_vm0, %v2348_v16  ;;  %v1962_v2 = vmul.f32 %v10440_v14, %v12111_v48 }
 0x43b   : > { %10449 = vrcp.f32 %v1936_v56  ;;  %2253 = vst [vmem:[%s12224_s16 + $0x50] sm:$0xff] %v1963_v52 }
 0x43c   : > { %v10442_v41 = vpop.eup %10441  ;;  %v1973_v10 = vpack.c.bf16 %v1962_v2, %v1961_v61  ;;  %2252 = vst [vmem:[%s12224_s16 + $0x48] sm:$0xff] %v1962_v2 }
 0x43d   : > { %v10444_v0 = vpop.eup %10443  ;;  %v1965_v44 = vmul.f32 %v10442_v41, %v12119_v12 }
 0x43e   : > { %9272 = vmatprep.mubr.bf16.mxu1 %v1973_v10  ;;  %v1964_v8 = vmul.f32 %v10444_v0, %v12117_v27  ;;  %v15181_v27 = vmov 0   ;;  %v2350_v4 = vpop.permute.xlu1 %2349 }
 0x43f   : > { %2255 = vst [vmem:[%s12224_s16 + $0x60] sm:$0xff] %v1965_v44  ;;  %v2391_v41 = vsel %vm1679_vm0, %v2350_v4, 0 }
 0x440   : > { %v10446_v29 = vpop.eup %10445  ;;  %v1974_v36 = vpack.c.bf16 %v1964_v8, %v1963_v52  ;;  %2254 = vst [vmem:[%s12224_s16 + $0x58] sm:$0xff] %v1964_v8 }
 0x441   : > { %v10448_v6 = vpop.eup %10447  ;;  %v1967_v48 = vmul.f32 %v10446_v29, %v12125_v20 }
 0x442   : > { %9273 = vmatmul.mubr.bf16.gmra.mrb[56].mxu1 %v1974_v36  ;;  %v1966_v58 = vmul.f32 %v10448_v6, %v12123_v38  ;;  %v2388_v38 = vsel %vm1679_vm0, %v2348_v16, 0  ;;  %v2352_v10 = vpop.permute.xlu1 %2351 }
 0x443   : > { %2257 = vst [vmem:[%s12224_s16 + $0x70] sm:$0xff] %v1967_v48  ;;  %v2394_v6 = vsel %vm1679_vm0, %v2352_v10, 0 }
 0x444   : > { %v1975_v34 = vpack.c.bf16 %v1966_v58, %v1965_v44  ;;  %2256 = vst [vmem:[%s12224_s16 + $0x68] sm:$0xff] %v1966_v58 }
 0x445   : > { %v10450_v57 = vpop.eup %10449 }
 0x446   : > { %v1968_v12 = vmul.f32 %v10450_v57, %v12133_v9  ;;  %9276 = vmatprep.mubr.bf16.mxu1 %v1975_v34 }
 0x448   : > { %v1976_v3 = vpack.c.bf16 %v1968_v12, %v1967_v48  ;;  %2258 = vst [vmem:[%s12224_s16 + $0x78] sm:$0xff] %v1968_v12  ;;  %v2354_v48 = vpop.permute.xlu1 %2353 }
 0x44a   : > { %9277 = vmatmul.mubr.bf16.gmra.mrb[60].mxu1 %v1976_v3 }
 0x44b   : > { %2162 = vmatprep.mubr.bf16.mxu1 %v15181_v27 }
 0x505   : > { %v9266_v23 = vpop.f32.mrb[48].mxu1 }
 0x506   : > { %v2011_v22 = vpop.f32.mrb[49].mxu1 }
 0x507   : > { %v9267_v45 = vpop.f32.mrb[50].mxu1 }
 0x508   : > { %v2075_v20 = vpack.c.bf16 %v9267_v45, %v9266_v23  ;;  %v2014_v61 = vpop.f32.mrb[51].mxu1  ;;  %v2356_v45 = vpop.permute.xlu0 %2355 }
 0x509   : > { %v2074_v51 = vpack.c.bf16 %v2014_v61, %v2011_v22  ;;  %v2397_v22 = vsel %vm1679_vm0, %v2354_v48, 0  ;;  %v2400_v61 = vsel %vm1679_vm0, %v2356_v45, 0 }
 0x50b   : > { %8797 = vmatmul.mubr.msk.bf16.vlgmr.msra.gmra.mrb[64].mxu1 %vm1679_vm0, %v2074_v51 }
 0x50c   : > { %9281 = vmatpush3.bf16.xpose.msra.mxu1 %v2388_v38  ;;  %2172 = vmatprep.mubr.bf16.mxu1 %v15181_v27  ;;  %v2360_v51 = vpop.permute.xlu0 %2359 }
 0x50d   : > { %10025 = vmatprep.subr.msk.bf16.mxu1 %vm1679_vm0, %v2350_v4  ;;  %v9270_v9 = vpop.f32.mrb[52].mxu1 }
 0x50e   : > { %v2027_v28 = vpop.f32.mrb[53].mxu1 }
 0x50f   : > { %v9271_v14 = vpop.f32.mrb[54].mxu1 }
 0x510   : > { %v2077_v56 = vpack.c.bf16 %v9271_v14, %v9270_v9  ;;  %v2030_v52 = vpop.f32.mrb[55].mxu1  ;;  %v2324_v4 = vpop.permute.xlu0 %2323 }
 0x511   : > { %v2076_v2 = vpack.c.bf16 %v2030_v52, %v2027_v28 }
 0x513   : > { %8798 = vmatmul.mubr.msk.bf16.gmra.mrb[68].mxu1 %vm1679_vm0, %v2075_v20  ;;  %v2358_v20 = vpop.permute.xlu1 %2357 }
 0x514   : > { %9283 = vmatpush3.bf16.xpose.msra.mxu1 %v2391_v41  ;;  %2182 = vmatprep.mubr.bf16.mxu1 %v15181_v27  ;;  %v2403_v9 = vsel %vm1679_vm0, %v2358_v20, 0  ;;  %v2326_v14 = vpop.permute.xlu0 %2325 }
 0x515   : > { %10026 = vmatprep.subr.msk.bf16.mxu1 %vm1679_vm0, %v2352_v10  ;;  %v9274_v16 = vpop.f32.mrb[56].mxu1 }
 0x516   : > { %v2043_v0 = vpop.f32.mrb[57].mxu1 }
 0x517   : > { %v9275_v44 = vpop.f32.mrb[58].mxu1  ;;  %v2362_v38 = vpop.permute.xlu1 %2361 }
 0x518   : > { %v2079_v8 = vpack.c.bf16 %v9275_v44, %v9274_v16  ;;  %v2046_v29 = vpop.f32.mrb[59].mxu1  ;;  %v2409_v10 = vsel %vm1679_vm0, %v2362_v38, 0 }
 0x519   : > { %v2078_v36 = vpack.c.bf16 %v2046_v29, %v2043_v0 }
 0x51b   : > { %8799 = vmatmul.mubr.msk.bf16.gmra.mrb[72].mxu1 %vm1679_vm0, %v2076_v2  ;;  %v3159_v28 = vpop.permute.xlu1 %3158  ;;  %v3163_v2 = vpop.permute.xlu0 %3162 }
 0x51c   : > { %9285 = vmatpush3.bf16.xpose.msra.mxu1 %v2394_v6  ;;  %2192 = vmatprep.mubr.bf16.mxu1 %v15181_v27 }
 0x51d   : > { %10027 = vmatprep.subr.msk.bf16.mxu1 %vm1679_vm0, %v2354_v48  ;;  %v9278_v58 = vpop.f32.mrb[60].mxu1 }
 0x51e   : > { %v2059_v57 = vpop.f32.mrb[61].mxu1 }
 0x51f   : > { %v9279_v34 = vpop.f32.mrb[62].mxu1  ;;  %v3161_v52 = vpop.permute.xlu1 %3160 }
 0x520   : > { %v2081_v12 = vpack.c.bf16 %v9279_v34, %v9278_v58  ;;  %v2062_v3 = vpop.f32.mrb[63].mxu1  ;;  %v3167_v16 = vpop.permute.xlu0 %3166  ;;  %v3202_v6 = vsel %vm1679_vm0, %v3161_v52, 0  ;;  %v3205_v34 = vsel %vm1679_vm0, %v3163_v2, 0 }
 0x521   : > { %v2080_v23 = vpack.c.bf16 %v2062_v3, %v2059_v57 }
 0x523   : > { %8800 = vmatmul.mubr.msk.bf16.gmra.mrb[76].mxu1 %vm1679_vm0, %v2077_v56  ;;  %v2406_v56 = vsel %vm1679_vm0, %v2360_v51, 0  ;;  %v3165_v41 = vpop.permute.xlu1 %3164 }
 0x524   : > { %9287 = vmatpush3.bf16.xpose.msra.mxu1 %v2397_v22  ;;  %2202 = vmatprep.mubr.bf16.mxu1 %v15181_v27  ;;  %v2330_v44 = vpop.permute.xlu0 %2329  ;;  %v3211_v22 = vsel %vm1679_vm0, %v3167_v16, 0 }
 0x525   : > { %10028 = vmatprep.subr.msk.bf16.mxu1 %vm1679_vm0, %v2356_v45 }
 0x527   : > { %v2328_v0 = vpop.permute.xlu1 %2327 }
 0x52b   : > { %8801 = vmatmul.mubr.msk.bf16.gmra.mrb[80].mxu1 %vm1679_vm0, %v2078_v36  ;;  %v3169_v29 = vpop.permute.xlu1 %3168  ;;  %v2332_v36 = vpop.permute.xlu0 %2331 }
 0x52c   : > { %9289 = vmatpush3.bf16.xpose.msra.mxu1 %v2400_v61  ;;  %2212 = vmatprep.mubr.bf16.mxu1 %v15181_v27  ;;  %v3214_v61 = vsel %vm1679_vm0, %v3169_v29, 0 }
 0x52d   : > { %10029 = vmatprep.subr.msk.bf16.mxu1 %vm1679_vm0, %v2358_v20 }
 0x52f   : > { %v2334_v48 = vpop.permute.xlu1 %2333  ;;  %v3171_v58 = vpop.permute.xlu0 %3170 }
 0x533   : > { %8802 = vmatmul.mubr.msk.bf16.gmra.mrb[84].mxu1 %vm1679_vm0, %v2079_v8  ;;  %v3199_v8 = vsel %vm1679_vm0, %v3159_v28, 0  ;;  %v2336_v57 = vpop.permute.xlu1 %2335 }
 0x534   : > { %9291 = vmatpush3.bf16.xpose.msra.mxu1 %v2403_v9  ;;  %2222 = vmatprep.mubr.bf16.mxu1 %v15181_v27  ;;  %v3217_v9 = vsel %vm1679_vm0, %v3171_v58, 0 }
 0x535   : > { %10030 = vmatprep.subr.msk.bf16.mxu1 %vm1679_vm0, %v2360_v51 }
 0x537   : > { %v3173_v45 = vpop.permute.xlu1 %3172 }
 0x53b   : > { %8803 = vmatmul.mubr.msk.bf16.gmra.mrb[88].mxu1 %vm1679_vm0, %v2080_v23  ;;  %v3208_v23 = vsel %vm1679_vm0, %v3165_v41, 0  ;;  %v3137_v51 = vpop.permute.xlu1 %3136 }
 0x53c   : > { %9293 = vmatpush3.bf16.xpose.msra.mxu1 %v2406_v56  ;;  %2232 = vmatprep.mubr.bf16.mxu1 %v15181_v27  ;;  %v3220_v56 = vsel %vm1679_vm0, %v3173_v45, 0 }
 0x53d   : > { %10031 = vmatprep.subr.msk.bf16.mxu1 %vm1679_vm0, %v2362_v38 }
 0x543   : > { %8804 = vmatmul.mubr.msk.bf16.gmra.mrb[92].mxu1 %vm1679_vm0, %v2081_v12  ;;  %v2338_v12 = vpop.permute.xlu0 %2337 }
 0x544   : > { %9295 = vmatpush3.bf16.xpose.msra.mxu1 %v2409_v10  ;;  %9296 = vmatprep.mubr.msk.bf16.mxu1 %vm1679_vm0, %v2324_v4  ;;  %v3141_v4 = vpop.permute.xlu1 %3140 }
 0x545   : > { %10032 = vmatprep.subr.msk.bf16.mxu1 %vm1679_vm0, %v3159_v28 }
 0x547   : > { %v3135_v3 = vpop.permute.xlu0 %3134 }
 0x54b   : > { %9297 = vmatmul.mubr.msk.bf16.vlgmr.msra.gmra.mrb[96].mxu1 %vm1679_vm0, %v2326_v14  ;;  %v3139_v20 = vpop.permute.xlu0 %3138  ;;  %v3145_v14 = vpop.permute.xlu1 %3144 }
 0x54c   : > { %9345 = vmatpush3.bf16.xpose.msra.mxu1 %v3199_v8  ;;  %9300 = vmatprep.mubr.msk.bf16.mxu1 %vm1679_vm0, %v2328_v0 }
 0x54d   : > { %10033 = vmatprep.subr.msk.bf16.mxu1 %vm1679_vm0, %v3161_v52 }
 0x54f   : > { %v3143_v38 = vpop.permute.xlu0 %3142 }
 0x553   : > { %9301 = vmatmul.mubr.msk.bf16.gmra.mrb[100].mxu1 %vm1679_vm0, %v2330_v44  ;;  %v3147_v28 = vpop.permute.xlu0 %3146 }
 0x554   : > { %9347 = vmatpush3.bf16.xpose.msra.mxu1 %v3202_v6  ;;  %9304 = vmatprep.mubr.msk.bf16.mxu1 %vm1679_vm0, %v2332_v36 }
 0x555   : > { %10034 = vmatprep.subr.msk.bf16.mxu1 %vm1679_vm0, %v3163_v2  ;;  %v3149_v2 = vpop.permute.xlu1 %3148 }
 0x557   : > { %v3480_v52 = vpop.permute.xlu0 %3479 }
 0x55b   : > { %9305 = vmatmul.mubr.msk.bf16.gmra.mrb[104].mxu1 %vm1679_vm0, %v2334_v48  ;;  %v3484_v10 = vpop.permute.xlu0 %3483 }
 0x55c   : > { %9349 = vmatpush3.bf16.xpose.msra.mxu1 %v3205_v34  ;;  %9308 = vmatprep.mubr.msk.bf16.mxu1 %vm1679_vm0, %v2336_v57 }
 0x55d   : > { %10035 = vmatprep.subr.msk.bf16.mxu1 %vm1679_vm0, %v3165_v41  ;;  %v3482_v41 = vpop.permute.xlu1 %3481 }
 0x55f   : > { %v3488_v0 = vpop.permute.xlu0 %3487 }
 0x563   : > { %9309 = vmatmul.mubr.msk.bf16.gmra.mrb[108].mxu1 %vm1679_vm0, %v2338_v12  ;;  %v3492_v8 = vpop.permute.xlu0 %3491 }
 0x564   : > { %9351 = vmatpush3.bf16.xpose.msra.mxu1 %v3208_v23  ;;  %9360 = vmatprep.mubr.msk.bf16.mxu1 %vm1679_vm0, %v3135_v3 }
 0x565   : > { %10036 = vmatprep.subr.msk.bf16.mxu1 %vm1679_vm0, %v3167_v16  ;;  %v3486_v16 = vpop.permute.xlu1 %3485 }
 0x567   : > { %v12321_v36 = vpop.permute.xlu0 %3969 }
 0x569   : > { %v3490_v44 = vpop.permute.xlu1 %3489 }
 0x56c   : > { %9353 = vmatpush3.bf16.xpose.msra.mxu1 %v3211_v22 }
 0x56d   : > { %10037 = vmatprep.subr.msk.bf16.mxu1 %vm1679_vm0, %v3169_v29  ;;  %v3494_v29 = vpop.permute.xlu1 %3493 }
 0x571   : > { %v12424_v40 = vpop.permute.xlu1 %3971 }
 0x574   : > { %9355 = vmatpush3.bf16.xpose.msra.mxu1 %v3214_v61 }
 0x575   : > { %10038 = vmatprep.subr.msk.bf16.mxu1 %vm1679_vm0, %v3171_v58  ;;  %v12426_v53 = vpop.permute.xlu1 %3975 }
 0x57c   : > { %9357 = vmatpush3.bf16.xpose.msra.mxu1 %v3217_v9 }
 0x57d   : > { %10039 = vmatprep.subr.msk.bf16.mxu1 %vm1679_vm0, %v3173_v45 }
 0x584   : > { %9359 = vmatpush3.bf16.xpose.msra.mxu1 %v3220_v56 }
 0x585   : > { %9376 = vmatprep.subr.bf16.mxu1 %v3480_v52 }
 0x58b   : > { %9361 = vmatmul.mubr.msk.bf16.vlgmr.msra.gmra.mrb[112].mxu1 %vm1679_vm0, %v3137_v51 }
 0x58c   : > { %9364 = vmatprep.mubr.msk.bf16.mxu1 %vm1679_vm0, %v3139_v20  ;;  %9377 = vmatpush3.bf16.msra.mxu1 %v3480_v52 }
 0x58d   : > { %9378 = vmatprep.subr.bf16.mxu1 %v3482_v41 }
 0x590   : > { %9379 = vmatpush3.bf16.msra.mxu1 %v3482_v41 }
 0x591   : > { %9380 = vmatprep.subr.bf16.mxu1 %v3484_v10 }
 0x593   : > { %9365 = vmatmul.mubr.msk.bf16.gmra.mrb[116].mxu1 %vm1679_vm0, %v3141_v4 }
 0x594   : > { %9368 = vmatprep.mubr.msk.bf16.mxu1 %vm1679_vm0, %v3143_v38  ;;  %9381 = vmatpush3.bf16.msra.mxu1 %v3484_v10 }
 0x595   : > { %9382 = vmatprep.subr.bf16.mxu1 %v3486_v16 }
 0x598   : > { %9383 = vmatpush3.bf16.msra.mxu1 %v3486_v16 }
 0x599   : > { %9384 = vmatprep.subr.bf16.mxu1 %v3488_v0 }
 0x59b   : > { %9369 = vmatmul.mubr.msk.bf16.gmra.mrb[120].mxu1 %vm1679_vm0, %v3145_v14 }
 0x59c   : > { %9372 = vmatprep.mubr.msk.bf16.mxu1 %vm1679_vm0, %v3147_v28  ;;  %9385 = vmatpush3.bf16.msra.mxu1 %v3488_v0 }
 0x59d   : > { %9386 = vmatprep.subr.bf16.mxu1 %v3490_v44 }
 0x5a0   : > { %9387 = vmatpush3.bf16.msra.mxu1 %v3490_v44 }
 0x5a1   : > { %9388 = vmatprep.subr.bf16.mxu1 %v3492_v8 }
 0x5a3   : > { %9373 = vmatmul.mubr.msk.bf16.gmra.mrb[124].mxu1 %vm1679_vm0, %v3149_v2 }
 0x5a4   : > { %9389 = vmatpush3.bf16.msra.mxu1 %v3492_v8 }
 0x5a5   : > { %9390 = vmatprep.subr.bf16.mxu1 %v3494_v29 }
 0x5a8   : > { %9391 = vmatpush3.bf16.msra.mxu1 %v3494_v29 }
 0x5a9   : > { %10040 = vmatprep.subr.msk.bf16.mxu1 %vm1679_vm0, %v12321_v36 }
 0x5de   : > { %v2164_v6 = vpop.f32.mrb[64].mxu1 }
 0x5df   : > { %9728 = vst [vmem:[%s12326_s0] sm:$0xff] %v2164_v6  ;;  %v2166_v48 = vpop.f32.mrb[65].mxu1 }
 0x5e0   : > { %9731 = vst [vmem:[%s12326_s0 + $0x8] sm:$0xff] %v2166_v48  ;;  %v2168_v58 = vpop.f32.mrb[66].mxu1 }
 0x5e1   : > { %9734 = vst [vmem:[%s12326_s0 + $0x10] sm:$0xff] %v2168_v58  ;;  %v2170_v57 = vpop.f32.mrb[67].mxu1 }
 0x5e2   : > { %9737 = vst [vmem:[%s12326_s0 + $0x18] sm:$0xff] %v2170_v57 }
 0x5e6   : > { %v2174_v34 = vpop.f32.mrb[68].mxu1 }
 0x5e7   : > { %9740 = vst [vmem:[%s12326_s0 + $0x20] sm:$0xff] %v2174_v34  ;;  %v2176_v12 = vpop.f32.mrb[69].mxu1 }
 0x5e8   : > { %9743 = vst [vmem:[%s12326_s0 + $0x28] sm:$0xff] %v2176_v12  ;;  %v2178_v3 = vpop.f32.mrb[70].mxu1 }
 0x5e9   : > { %9746 = vst [vmem:[%s12326_s0 + $0x30] sm:$0xff] %v2178_v3  ;;  %v2180_v23 = vpop.f32.mrb[71].mxu1 }
 0x5ea   : > { %9749 = vst [vmem:[%s12326_s0 + $0x38] sm:$0xff] %v2180_v23 }
 0x5ee   : > { %v2184_v22 = vpop.f32.mrb[72].mxu1 }
 0x5ef   : > { %9752 = vst [vmem:[%s12326_s0 + $0x40] sm:$0xff] %v2184_v22  ;;  %v2186_v45 = vpop.f32.mrb[73].mxu1 }
 0x5f0   : > { %9755 = vst [vmem:[%s12326_s0 + $0x48] sm:$0xff] %v2186_v45  ;;  %v2188_v20 = vpop.f32.mrb[74].mxu1 }
 0x5f1   : > { %9758 = vst [vmem:[%s12326_s0 + $0x50] sm:$0xff] %v2188_v20  ;;  %v2190_v61 = vpop.f32.mrb[75].mxu1 }
 0x5f2   : > { %9761 = vst [vmem:[%s12326_s0 + $0x58] sm:$0xff] %v2190_v61 }
 0x5f6   : > { %v2194_v51 = vpop.f32.mrb[76].mxu1 }
 0x5f7   : > { %9764 = vst [vmem:[%s12326_s0 + $0x60] sm:$0xff] %v2194_v51  ;;  %v2196_v38 = vpop.f32.mrb[77].mxu1 }
 0x5f8   : > { %9767 = vst [vmem:[%s12326_s0 + $0x68] sm:$0xff] %v2196_v38  ;;  %v2198_v4 = vpop.f32.mrb[78].mxu1 }
 0x5f9   : > { %9770 = vst [vmem:[%s12326_s0 + $0x70] sm:$0xff] %v2198_v4  ;;  %v2200_v9 = vpop.f32.mrb[79].mxu1 }
 0x5fa   : > { %9773 = vst [vmem:[%s12326_s0 + $0x78] sm:$0xff] %v2200_v9 }
 0x5fe   : > { %v2204_v28 = vpop.f32.mrb[80].mxu1 }
 0x5ff   : > { %9776 = vst [vmem:[%s12326_s0 + $0x80] sm:$0xff] %v2204_v28  ;;  %v2206_v14 = vpop.f32.mrb[81].mxu1 }
 0x600   : > { %9779 = vst [vmem:[%s12326_s0 + $0x88] sm:$0xff] %v2206_v14  ;;  %v2208_v56 = vpop.f32.mrb[82].mxu1 }
 0x601   : > { %9782 = vst [vmem:[%s12326_s0 + $0x90] sm:$0xff] %v2208_v56  ;;  %v2210_v52 = vpop.f32.mrb[83].mxu1 }
 0x602   : > { %9785 = vst [vmem:[%s12326_s0 + $0x98] sm:$0xff] %v2210_v52 }
 0x606   : > { %v2214_v2 = vpop.f32.mrb[84].mxu1 }
 0x607   : > { %9788 = vst [vmem:[%s12326_s0 + $0xa0] sm:$0xff] %v2214_v2  ;;  %v2216_v41 = vpop.f32.mrb[85].mxu1 }
 0x608   : > { %9791 = vst [vmem:[%s12326_s0 + $0xa8] sm:$0xff] %v2216_v41  ;;  %v2218_v10 = vpop.f32.mrb[86].mxu1 }
 0x609   : > { %9794 = vst [vmem:[%s12326_s0 + $0xb0] sm:$0xff] %v2218_v10  ;;  %v2220_v16 = vpop.f32.mrb[87].mxu1 }
 0x60a   : > { %9797 = vst [vmem:[%s12326_s0 + $0xb8] sm:$0xff] %v2220_v16 }
 0x60e   : > { %v2224_v0 = vpop.f32.mrb[88].mxu1 }
 0x60f   : > { %9800 = vst [vmem:[%s12326_s0 + $0xc0] sm:$0xff] %v2224_v0  ;;  %v2226_v44 = vpop.f32.mrb[89].mxu1 }
 0x610   : > { %9803 = vst [vmem:[%s12326_s0 + $0xc8] sm:$0xff] %v2226_v44  ;;  %v2228_v8 = vpop.f32.mrb[90].mxu1 }
 0x611   : > { %9806 = vst [vmem:[%s12326_s0 + $0xd0] sm:$0xff] %v2228_v8  ;;  %v2230_v29 = vpop.f32.mrb[91].mxu1 }
 0x612   : > { %9809 = vst [vmem:[%s12326_s0 + $0xd8] sm:$0xff] %v2230_v29 }
 0x616   : > { %v2234_v6 = vpop.f32.mrb[92].mxu1 }
 0x617   : > { %9812 = vst [vmem:[%s12326_s0 + $0xe0] sm:$0xff] %v2234_v6  ;;  %v2236_v48 = vpop.f32.mrb[93].mxu1 }
 0x618   : > { %9815 = vst [vmem:[%s12326_s0 + $0xe8] sm:$0xff] %v2236_v48  ;;  %v2238_v58 = vpop.f32.mrb[94].mxu1 }
 0x619   : > { %9818 = vst [vmem:[%s12326_s0 + $0xf0] sm:$0xff] %v2238_v58  ;;  %v2240_v57 = vpop.f32.mrb[95].mxu1 }
 0x61a   : > { %9821 = vst [vmem:[%s12326_s0 + $0xf8] sm:$0xff] %v2240_v57 }
 0x61e   : > { %v12360_v34 = vpop.f32.mrb[96].mxu1 }
 0x61f   : > { %v12362_v12 = vpop.f32.mrb[97].mxu1 }
 0x620   : > { %v12364_v3 = vpop.f32.mrb[98].mxu1 }
 0x621   : > { %v12366_v23 = vpop.f32.mrb[99].mxu1 }
 0x626   : > { %v12368_v22 = vpop.f32.mrb[100].mxu1 }
 0x627   : > { %v12370_v45 = vpop.f32.mrb[101].mxu1 }
 0x628   : > { %v12372_v20 = vpop.f32.mrb[102].mxu1 }
 0x629   : > { %v12374_v61 = vpop.f32.mrb[103].mxu1 }
 0x62e   : > { %v12376_v51 = vpop.f32.mrb[104].mxu1 }
 0x62f   : > { %v12378_v38 = vpop.f32.mrb[105].mxu1 }
 0x630   : > { %v12380_v4 = vpop.f32.mrb[106].mxu1 }
 0x631   : > { %v12382_v9 = vpop.f32.mrb[107].mxu1 }
 0x636   : > { %v12384_v28 = vpop.f32.mrb[108].mxu1 }
 0x637   : > { %v12386_v14 = vpop.f32.mrb[109].mxu1 }
 0x638   : > { %v12388_v56 = vpop.f32.mrb[110].mxu1 }
 0x639   : > { %15384 = vst [vmem:[#allocation37_spill] sm:$0xff] %v12388_v56  ;;  %v12390_v52 = vpop.f32.mrb[111].mxu1 }
 0x65e   : > { %v9362_v2 = vpop.f32.mrb[112].mxu1 }
 0x65f   : > { %3323 = vmax.xlane.f32.xlu0 %v9362_v2  ;;  %v3256_v41 = vpop.f32.mrb[113].mxu1 }
 0x660   : > { %v9363_v10 = vpop.f32.mrb[114].mxu1 }
 0x661   : > { %v3259_v16 = vpop.f32.mrb[115].mxu1 }
 0x662   : > { %3321 = vmax.xlane.f32.xlu1 %v3259_v16 }
 0x663   : > { %3319 = vmax.xlane.f32.xlu0 %v3256_v41 }
 0x666   : > { %v9366_v0 = vpop.f32.mrb[116].mxu1 }
 0x667   : > { %3325 = vmax.xlane.f32.xlu0 %v9363_v10  ;;  %v12392_v44 = vpop.f32.mrb[117].mxu1 }
 0x668   : > { %v12394_v8 = vpop.f32.mrb[118].mxu1 }
 0x669   : > { %3333 = vmax.xlane.f32.xlu1 %v12394_v8  ;;  %v3275_v29 = vpop.f32.mrb[119].mxu1 }
 0x66d   : > { %3329 = vmax.xlane.f32.xlu1 %v3275_v29 }
 0x66e   : > { %v12397_v6 = vpop.f32.mrb[120].mxu1 }
 0x66f   : > { %v12399_v48 = vpop.f32.mrb[121].mxu1 }
 0x670   : > { %v12401_v58 = vpop.f32.mrb[122].mxu1 }
 0x671   : > { %3341 = vmax.xlane.f32.xlu1 %v12401_v58  ;;  %v12404_v57 = vpop.f32.mrb[123].mxu1 }
 0x675   : > { %3337 = vmax.xlane.f32.xlu1 %v12404_v57 }
 0x676   : > { %v12407_v27 = vpop.f32.mrb[124].mxu1 }
 0x677   : > { %v12409_v50 = vpop.f32.mrb[125].mxu1 }
 0x678   : > { %v12411_v32 = vpop.f32.mrb[126].mxu1 }
 0x679   : > { %3349 = vmax.xlane.f32.xlu1 %v12411_v32  ;;  %v12414_v49 = vpop.f32.mrb[127].mxu1 }
 0x67d   : > { %3973 = vrot.lane.b32.xlu0 %v11762_v59, %s11216_s3  ;;  %3345 = vmax.xlane.f32.xlu1 %v12414_v49 }
 0x69c   : > { %3331 = vmax.xlane.f32.xlu0 %v9366_v0 }
 0x6a0   : > { %3327 = vmax.xlane.f32.xlu0 %v12392_v44 }
 0x6a4   : > { %3339 = vmax.xlane.f32.xlu0 %v12397_v6 }
 0x6a8   : > { %3335 = vmax.xlane.f32.xlu0 %v12399_v48 }
 0x6ac   : > { %3347 = vmax.xlane.f32.xlu0 %v12407_v27 }
 0x6b0   : > { %3343 = vmax.xlane.f32.xlu0 %v12409_v50 }
 0x6ec   : > { %v3324_v62 = vpop.xlane.xlu0 %3323 }
 0x6ed   : > { %v3353_v35 = vsub.f32 %v9362_v2, %v3324_v62 }
 0x6ef   : > { %v3371_v59 = vmul.f32 1.442695, %v3353_v35  ;;  %v3322_v15 = vpop.xlane.xlu1 %3321 }
 0x6f0   : > { %v3352_v24 = vsub.f32 %v3259_v16, %v3322_v15  ;;  %v3320_v46 = vpop.xlane.xlu0 %3319 }
 0x6f1   : > { %10451 = vpow2.f32 %v3371_v59  ;;  %v3351_v18 = vsub.f32 %v3256_v41, %v3320_v46 }
 0x6f2   : > { %v3369_v7 = vmul.f32 1.442695, %v3352_v24 }
 0x6f3   : > { %v3367_v5 = vmul.f32 1.442695, %v3351_v18 }
 0x6f4   : > { %10453 = vpow2.f32 %v3369_v7  ;;  %v3326_v54 = vpop.xlane.xlu0 %3325 }
 0x6f5   : > { %10455 = vpow2.f32 %v3367_v5  ;;  %v3354_v21 = vsub.f32 %v9363_v10, %v3326_v54 }
 0x6f6   : > { %v3334_v18 = vpop.xlane.xlu1 %3333 }
 0x6f7   : > { %v3373_v55 = vmul.f32 1.442695, %v3354_v21  ;;  %v3358_v35 = vsub.f32 %v12394_v8, %v3334_v18 }
 0x6f8   : > { %v12444_v15 = vpop.permute.xlu0 %3973 }
 0x6f9   : > { %10457 = vpow2.f32 %v3373_v55  ;;  %v3381_v16 = vmul.f32 1.442695, %v3358_v35 }
 0x6fa   : > { %v3330_v55 = vpop.xlane.xlu1 %3329 }
 0x6fb   : > { %v12428_v37 = vpop.eup %10451  ;;  %v3356_v21 = vsub.f32 %v3275_v29, %v3330_v55 }
 0x6fc   : > { %3403 = vadd.xlane.f32.xlu1 %v12428_v37 }
 0x6fd   : > { %v3377_v54 = vmul.f32 1.442695, %v3356_v21 }
 0x6fe   : > { %v12431_v56 = vpop.eup %10453 }
 0x6ff   : > { %v12433_v62 = vpop.eup %10455  ;;  %3401 = vadd.xlane.f32.xlu0 %v12431_v56  ;;  %10459 = vpow2.f32 %v3377_v54 }
 0x700   : > { %3399 = vadd.xlane.f32.xlu1 %v12433_v62 }
 0x703   : > { %v12437_v46 = vpop.eup %10457 }
 0x704   : > { %3405 = vadd.xlane.f32.xlu1 %v12437_v46 }
 0x709   : > { %v12451_v18 = vpop.eup %10459 }
 0x715   : > { %3979 = vrot.lane.b32.xlu1 %v15382_v63, %s11216_s3  ;;  %3977 = vrot.lane.b32.xlu0 %v11802_v13, %s11216_s3  ;;  %v3342_v63 = vpop.xlane.xlu1 %3341 }
 0x716   : > { %v3362_v29 = vsub.f32 %v12401_v58, %v3342_v63 }
 0x718   : > { %v3389_v54 = vmul.f32 1.442695, %v3362_v29 }
 0x729   : > { %v3332_v5 = vpop.xlane.xlu0 %3331 }
 0x72a   : > { %v3357_v7 = vsub.f32 %v9366_v0, %v3332_v5  ;;  %v3338_v0 = vpop.xlane.xlu1 %3337 }
 0x72b   : > { %v3360_v5 = vsub.f32 %v12404_v57, %v3338_v0 }
 0x72c   : > { %v3379_v24 = vmul.f32 1.442695, %v3357_v7 }
 0x72d   : > { %v3328_v2 = vpop.xlane.xlu0 %3327 }
 0x72e   : > { %10461 = vpow2.f32 %v3379_v24  ;;  %v3355_v41 = vsub.f32 %v12392_v44, %v3328_v2  ;;  %v3350_v58 = vpop.xlane.xlu1 %3349  ;;  %v3385_v24 = vmul.f32 1.442695, %v3360_v5 }
 0x72f   : > { %v3366_v2 = vsub.f32 %v12411_v32, %v3350_v58 }
 0x730   : > { %v3375_v10 = vmul.f32 1.442695, %v3355_v41 }
 0x731   : > { %v3340_v13 = vpop.xlane.xlu0 %3339 }
 0x732   : > { %10463 = vpow2.f32 %v3375_v10  ;;  %v3361_v59 = vsub.f32 %v12397_v6, %v3340_v13  ;;  %v3346_v0 = vpop.xlane.xlu1 %3345 }
 0x733   : > { %10465 = vpow2.f32 %v3381_v16 }
 0x734   : > { %v3387_v31 = vmul.f32 1.442695, %v3361_v59 }
 0x735   : > { %v3336_v55 = vpop.xlane.xlu0 %3335 }
 0x736   : > { %10467 = vpow2.f32 %v3387_v31  ;;  %v3359_v8 = vsub.f32 %v12399_v48, %v3336_v55  ;;  %v3364_v55 = vsub.f32 %v12414_v49, %v3346_v0 }
 0x738   : > { %v12453_v21 = vpop.eup %10461  ;;  %v3383_v44 = vmul.f32 1.442695, %v3359_v8  ;;  %v3393_v8 = vmul.f32 1.442695, %v3364_v55 }
 0x739   : > { %v3348_v7 = vpop.xlane.xlu0 %3347  ;;  %3411 = vadd.xlane.f32.xlu0 %v12453_v21  ;;  %3409 = vadd.xlane.f32.xlu1 %v12451_v18 }
 0x73a   : > { %10469 = vpow2.f32 %v3383_v44  ;;  %v3365_v6 = vsub.f32 %v12407_v27, %v3348_v7  ;;  %v3397_v27 = vmul.f32 1.442695, %v3366_v2 }
 0x73b   : > { %10471 = vpow2.f32 %v3389_v54 }
 0x73c   : > { %v12459_v31 = vpop.eup %10463  ;;  %v3395_v48 = vmul.f32 1.442695, %v3365_v6 }
 0x73d   : > { %v3344_v35 = vpop.xlane.xlu0 %3343  ;;  %3407 = vadd.xlane.f32.xlu0 %v12459_v31  ;;  %v12464_v41 = vpop.eup %10465 }
 0x73e   : > { %10473 = vpow2.f32 %v3395_v48  ;;  %v3363_v57 = vsub.f32 %v12409_v50, %v3344_v35 }
 0x73f   : > { %10475 = vpow2.f32 %v3385_v24 }
 0x740   : > { %v12466_v63 = vpop.eup %10467  ;;  %v3391_v10 = vmul.f32 1.442695, %v3363_v57 }
 0x741   : > { %3413 = vadd.xlane.f32.xlu0 %v12464_v41  ;;  %3419 = vadd.xlane.f32.xlu1 %v12466_v63 }
 0x742   : > { %10477 = vpow2.f32 %v3391_v10 }
 0x743   : > { %10479 = vpow2.f32 %v3397_v27 }
 0x744   : > { %v12470_v16 = vpop.eup %10469  ;;  %10481 = vpow2.f32 %v3393_v8 }
 0x745   : > { %3415 = vadd.xlane.f32.xlu1 %v12470_v16  ;;  %v12473_v32 = vpop.eup %10471 }
 0x748   : > { %v12475_v50 = vpop.eup %10473 }
 0x749   : > { %3427 = vadd.xlane.f32.xlu0 %v12475_v50  ;;  %3421 = vadd.xlane.f32.xlu1 %v12473_v32  ;;  %v12479_v13 = vpop.eup %10475 }
 0x74c   : > { %v12481_v59 = vpop.eup %10477 }
 0x74d   : > { %3423 = vadd.xlane.f32.xlu0 %v12481_v59  ;;  %3417 = vadd.xlane.f32.xlu1 %v12479_v13  ;;  %v12485_v29 = vpop.eup %10479 }
 0x751   : > { %3429 = vadd.xlane.f32.xlu0 %v12485_v29 }
 0x75e   : > { %3983 = vrot.lane.b32.xlu1 %v11862_v11, %s11216_s3  ;;  %v12501_v11 = vpop.eup %10481 }
 0x767   : > { %3981 = vrot.lane.b32.xlu0 %v11842_v43, %s11216_s3 }
 0x76b   : > { %3945 = vrot.lane.b32.xlu0 %v15383_v42, %s11216_s3 }
 0x76f   : > { %3949 = vrot.lane.b32.xlu0 %v11793_v33, %s11216_s3 }
 0x773   : > { %3953 = vrot.lane.b32.xlu0 %v11833_v30, %s11216_s3 }
 0x777   : > { %3957 = vrot.lane.b32.xlu0 %v11873_v1, %s11216_s3 }
 0x782   : > { %3425 = vadd.xlane.f32.xlu1 %v12501_v11 }
 0x789   : > { %v3404_v43 = vpop.xlane.xlu1 %3403 }
 0x78c   : > { %v3402_v42 = vpop.xlane.xlu0 %3401 }
 0x78d   : > { %10483 = vrcp.f32 %v3402_v42  ;;  %v3400_v44 = vpop.xlane.xlu1 %3399  ;;  %v15391_v42 = vld [vmem:[#allocation53_spill] sm:$0xff] }
 0x78e   : > { %10485 = vrcp.f32 %v3400_v44 }
 0x78f   : > { %10487 = vrcp.f32 %v3404_v43 }
 0x791   : > { %v3406_v49 = vpop.xlane.xlu1 %3405 }
 0x792   : > { %10489 = vrcp.f32 %v3406_v49 }
 0x793   : > { %3947 = vrot.lane.b32.xlu1 %v11773_v17, %s11216_s3 }
 0x796   : > { %2508 = vmax.xlane.f32.xlu0 %v12362_v12 }
 0x797   : > { %v10484_v33 = vpop.eup %10483  ;;  %3951 = vrot.lane.b32.xlu1 %v11813_v47, %s11216_s3 }
 0x798   : > { %v10486_v30 = vpop.eup %10485  ;;  %v12510_v1 = vmul.f32 %v10484_v33, %v12431_v56 }
 0x799   : > { %v12513_v54 = vmul.f32 %v10486_v30, %v12433_v62  ;;  %v10488_v5 = vpop.eup %10487 }
 0x79a   : > { %15385 = vst [vmem:[#allocation29_spill] sm:$0xff] %v12510_v1  ;;  %2512 = vmax.xlane.f32.xlu0 %v12360_v34  ;;  %v12521_v6 = vmul.f32 %v10488_v5, %v12428_v37  ;;  %v4013_v37 = vsel %vm1679_vm0, %v12424_v40, 0  ;;  %v15394_v5 = vld [vmem:[#allocation37_spill] sm:$0xff] }
 0x79b   : > { %15386 = vst [vmem:[#allocation61_spill] sm:$0xff] %v12513_v54  ;;  %3955 = vrot.lane.b32.xlu1 %v11853_v25, %s11216_s3  ;;  %v3463_v17 = vpack.c.bf16 %v12510_v1, %v12513_v54  ;;  %v4010_v25 = vsel %vm1679_vm0, %v12321_v36, 0  ;;  %v3978_v36 = vpop.permute.xlu0 %3977 }
 0x79c   : > { %v10490_v7 = vpop.eup %10489  ;;  %15387 = vst [vmem:[#allocation62_spill] sm:$0xff] %v12521_v6  ;;  %v4022_v62 = vsel %vm1679_vm0, %v3978_v36, 0 }
 0x79d   : > { %v12524_v47 = vmul.f32 %v10490_v7, %v12437_v46  ;;  %9392 = vmatprep.mubr.bf16.mxu1 %v3463_v17  ;;  %v3980_v46 = vpop.permute.xlu1 %3979 }
 0x79e   : > { %2514 = vmax.xlane.f32.xlu0 %v12364_v3  ;;  %v4025_v48 = vsel %vm1679_vm0, %v3980_v46, 0 }
 0x79f   : > { %15388 = vst [vmem:[#allocation63_spill] sm:$0xff] %v12524_v47  ;;  %3959 = vrot.lane.b32.xlu1 %v11885_v60, %s11216_s3  ;;  %v3464_v56 = vpack.c.bf16 %v12524_v47, %v12521_v6  ;;  %v4016_v60 = vsel %vm1679_vm0, %v12444_v15, 0 }
 0x7a1   : > { %9393 = vmatmul.mubr.bf16.vlgmr.msra.gmra.mrb[128].mxu1 %v3464_v56 }
 0x7a2   : > { %9409 = vmatpush3.bf16.xpose.msra.mxu1 %v4010_v25  ;;  %2516 = vmax.xlane.f32.xlu0 %v12370_v45 }
 0x7a3   : > { %10041 = vmatprep.subr.msk.bf16.mxu1 %vm1679_vm0, %v12424_v40  ;;  %v4019_v40 = vsel %vm1679_vm0, %v12426_v53, 0 }
 0x7a6   : > { %2520 = vmax.xlane.f32.xlu0 %v12368_v22 }
 0x7aa   : > { %9411 = vmatpush3.bf16.xpose.msra.mxu1 %v4013_v37  ;;  %2524 = vmax.xlane.f32.xlu0 %v12378_v38 }
 0x7ab   : > { %10042 = vmatprep.subr.msk.bf16.mxu1 %vm1679_vm0, %v12444_v15 }
 0x7ae   : > { %2528 = vmax.xlane.f32.xlu0 %v12376_v51 }
 0x7b2   : > { %9413 = vmatpush3.bf16.xpose.msra.mxu1 %v4016_v60  ;;  %2532 = vmax.xlane.f32.xlu0 %v12386_v14 }
 0x7b3   : > { %10043 = vmatprep.subr.msk.bf16.mxu1 %vm1679_vm0, %v12426_v53 }
 0x7b6   : > { %2536 = vmax.xlane.f32.xlu0 %v12384_v28 }
 0x7ba   : > { %9415 = vmatpush3.bf16.xpose.msra.mxu1 %v4019_v40 }
 0x7bb   : > { %10044 = vmatprep.subr.msk.bf16.mxu1 %vm1679_vm0, %v3978_v36 }
 0x7c2   : > { %9417 = vmatpush3.bf16.xpose.msra.mxu1 %v4022_v62 }
 0x7c3   : > { %10045 = vmatprep.subr.msk.bf16.mxu1 %vm1679_vm0, %v3980_v46  ;;  %2510 = vmax.xlane.f32.xlu1 %v12366_v23 }
 0x7c6   : > { %v3412_v15 = vpop.xlane.xlu0 %3411  ;;  %v3410_v58 = vpop.xlane.xlu1 %3409 }
 0x7c7   : > { %2518 = vmax.xlane.f32.xlu1 %v12374_v61  ;;  %10491 = vrcp.f32 %v3410_v58 }
 0x7ca   : > { %9419 = vmatpush3.bf16.xpose.msra.mxu1 %v4025_v48  ;;  %v3408_v53 = vpop.xlane.xlu0 %3407 }
 0x7cb   : > { %10493 = vrcp.f32 %v3408_v53  ;;  %2522 = vmax.xlane.f32.xlu1 %v12372_v20  ;;  %v15399_v53 = vld [vmem:[#allocation27_spill] sm:$0xff] }
 0x7cc   : > { %2668 = vrot.lane.b32.xlu0 %v11993_v19, %s11214_s24  ;;  %10495 = vrcp.f32 %v3412_v15  ;;  %v2962_v19 = vld [vmem:[%s12224_s16 + $0x20] sm:$0xff] }
 0x7ce   : > { %v3414_v24 = vpop.xlane.xlu0 %3413  ;;  %v3420_v35 = vpop.xlane.xlu1 %3419 }
 0x7cf   : > { %10497 = vrcp.f32 %v3414_v24  ;;  %2526 = vmax.xlane.f32.xlu1 %v12382_v9 }
 0x7d0   : > { %2672 = vrot.lane.b32.xlu0 %v12013_v26, %s11214_s24 }
 0x7d1   : > { %v10492_v57 = vpop.eup %10491 }
 0x7d2   : > { %v3416_v2 = vpop.xlane.xlu1 %3415  ;;  %v12570_v8 = vmul.f32 %v10492_v57, %v12451_v18 }
 0x7d3   : > { %2530 = vmax.xlane.f32.xlu1 %v12380_v4 }
 0x7d4   : > { %2674 = vrot.lane.b32.xlu0 %v12023_v39, %s11214_s24  ;;  %15390 = vst [vmem:[#allocation65_spill] sm:$0xff] %v12570_v8 }
 0x7d5   : > { %v10494_v10 = vpop.eup %10493 }
 0x7d6   : > { %v3428_v27 = vpop.xlane.xlu0 %3427  ;;  %v3422_v0 = vpop.xlane.xlu1 %3421  ;;  %v12567_v55 = vmul.f32 %v10494_v10, %v12459_v31 }
 0x7d7   : > { %v10496_v43 = vpop.eup %10495  ;;  %2534 = vmax.xlane.f32.xlu1 %v12390_v52  ;;  %10499 = vrcp.f32 %v3422_v0 }
 0x7d8   : > { %15389 = vst [vmem:[#allocation64_spill] sm:$0xff] %v12567_v55  ;;  %2676 = vrot.lane.b32.xlu0 %v15391_v42, %s11214_s24  ;;  %v3465_v44 = vpack.c.bf16 %v12570_v8, %v12567_v55  ;;  %10501 = vrcp.f32 %v3416_v2  ;;  %v12578_v31 = vmul.f32 %v10496_v43, %v12453_v21 }
 0x7d9   : > { %v10498_v49 = vpop.eup %10497  ;;  %10503 = vrcp.f32 %v3420_v35 }
 0x7da   : > { %v3424_v33 = vpop.xlane.xlu0 %3423  ;;  %9396 = vmatprep.mubr.bf16.mxu1 %v3465_v44  ;;  %v3418_v30 = vpop.xlane.xlu1 %3417  ;;  %15392 = vst [vmem:[#allocation66_spill] sm:$0xff] %v12578_v31  ;;  %v12581_v18 = vmul.f32 %v10498_v49, %v12464_v41 }
 0x7db   : > { %2538 = vmax.xlane.f32.xlu1 %v15394_v5  ;;  %10505 = vrcp.f32 %v3418_v30 }
 0x7dc   : > { %15393 = vst [vmem:[#allocation67_spill] sm:$0xff] %v12581_v18  ;;  %v3466_v17 = vpack.c.bf16 %v12581_v18, %v12578_v31 }
 0x7de   : > { %v3430_v7 = vpop.xlane.xlu0 %3429  ;;  %9397 = vmatmul.mubr.bf16.gmra.mrb[132].mxu1 %v3466_v17  ;;  %v3984_v60 = vpop.permute.xlu1 %3983 }
 0x7df   : > { %10507 = vrcp.f32 %v3430_v7 }
 0x7e0   : > { %10509 = vrcp.f32 %v3424_v33 }
 0x7e1   : > { %v10500_v25 = vpop.eup %10499  ;;  %10511 = vrcp.f32 %v3428_v27 }
 0x7e2   : > { %v3982_v56 = vpop.permute.xlu0 %3981  ;;  %v10502_v21 = vpop.eup %10501  ;;  %v12590_v36 = vmul.f32 %v10500_v25, %v12473_v32  ;;  %v4031_v32 = vsel %vm1679_vm0, %v3984_v60, 0 }
 0x7e3   : > { %10046 = vmatprep.subr.msk.bf16.mxu1 %vm1679_vm0, %v3982_v56  ;;  %v4028_v37 = vsel %vm1679_vm0, %v3982_v56, 0  ;;  %v10504_v41 = vpop.eup %10503  ;;  %v12593_v62 = vmul.f32 %v10502_v21, %v12470_v16  ;;  %v15404_v56 = vld [vmem:[#allocation28_spill] sm:$0xff] }
 0x7e4   : > { %9421 = vmatpush3.bf16.xpose.msra.mxu1 %v4028_v37  ;;  %15395 = vst [vmem:[#allocation37_spill] sm:$0xff] %v12590_v36  ;;  %v12599_v15 = vmul.f32 %v10504_v41, %v12466_v63  ;;  %v15405_v41 = vld [vmem:[#allocation31_spill] sm:$0xff] }
 0x7e5   : > { %10047 = vmatprep.subr.msk.bf16.mxu1 %vm1679_vm0, %v3984_v60  ;;  %v10506_v40 = vpop.eup %10505  ;;  %15396 = vst [vmem:[#allocation68_spill] sm:$0xff] %v12593_v62 }
 0x7e6   : > { %v12596_v46 = vmul.f32 %v10506_v40, %v12479_v13  ;;  %15398 = vst [vmem:[#allocation70_spill] sm:$0xff] %v12599_v15  ;;  %v3468_v48 = vpack.c.bf16 %v12590_v36, %v12599_v15  ;;  %v3946_v16 = vpop.permute.xlu0 %3945  ;;  %v15423_v36 = vld [vmem:[#allocation56_spill] sm:$0xff]  ;;  %v15428_v15 = vld [vmem:[#allocation59_spill] sm:$0xff] }
 0x7e8   : > { %15397 = vst [vmem:[#allocation69_spill] sm:$0xff] %v12596_v46  ;;  %v3467_v58 = vpack.c.bf16 %v12596_v46, %v12593_v62  ;;  %v15426_v62 = vld [vmem:[#allocation44_spill] sm:$0xff] }
 0x7e9   : > { %v10508_v24 = vpop.eup %10507 }
 0x7ea   : > { %9400 = vmatprep.mubr.bf16.mxu1 %v3467_v58  ;;  %v3950_v13 = vpop.permute.xlu0 %3949  ;;  %v10510_v35 = vpop.eup %10509  ;;  %v12609_v0 = vmul.f32 %v10508_v24, %v12485_v29 }
 0x7eb   : > { %9401 = vmatmul.mubr.bf16.gmra.mrb[136].mxu1 %v3468_v48  ;;  %v10512_v2 = vpop.eup %10511  ;;  %v12612_v43 = vmul.f32 %v10510_v35, %v12481_v59 }
 0x7ec   : > { %9423 = vmatpush3.bf16.xpose.msra.mxu1 %v4031_v32  ;;  %15400 = vst [vmem:[#allocation71_spill] sm:$0xff] %v12609_v0  ;;  %v12618_v49 = vmul.f32 %v10512_v2, %v12475_v50  ;;  %v4773_v50 = vsel %vm1679_vm0, %v15399_v53, 0  ;;  %v4779_v32 = vsel %vm1679_vm0, %v15405_v41, 0  ;;  %v15407_v2 = vld [vmem:[#allocation30_spill] sm:$0xff] }
 0x7ed   : > { %10048 = vmatprep.subr.msk.bf16.mxu1 %vm1679_vm0, %v15399_v53  ;;  %15401 = vst [vmem:[#allocation72_spill] sm:$0xff] %v12612_v43 }
 0x7ee   : > { %v3954_v57 = vpop.permute.xlu0 %3953  ;;  %15403 = vst [vmem:[#allocation74_spill] sm:$0xff] %v12618_v49  ;;  %v3470_v33 = vpack.c.bf16 %v12609_v0, %v12618_v49  ;;  %v15422_v49 = vld [vmem:[#allocation43_spill] sm:$0xff]  ;;  %v15427_v0 = vld [vmem:[#allocation60_spill] sm:$0xff] }
 0x7f2   : > { %v3958_v30 = vpop.permute.xlu0 %3957 }
 0x80f   : > { %v3426_v63 = vpop.xlane.xlu1 %3425 }
 0x810   : > { %10513 = vrcp.f32 %v3426_v63 }
 0x81a   : > { %v10514_v10 = vpop.eup %10513 }
 0x81b   : > { %v12615_v44 = vmul.f32 %v10514_v10, %v12501_v11  ;;  %v3948_v11 = vpop.permute.xlu1 %3947 }
 0x81d   : > { %15402 = vst [vmem:[#allocation73_spill] sm:$0xff] %v12615_v44  ;;  %v3469_v27 = vpack.c.bf16 %v12615_v44, %v12612_v43  ;;  %v15421_v44 = vld [vmem:[#allocation41_spill] sm:$0xff]  ;;  %v15424_v43 = vld [vmem:[#allocation47_spill] sm:$0xff] }
 0x81f   : > { %9404 = vmatprep.mubr.bf16.mxu1 %v3469_v27  ;;  %v3952_v37 = vpop.permute.xlu1 %3951 }
 0x820   : > { %9405 = vmatmul.mubr.bf16.gmra.mrb[140].mxu1 %v3470_v33 }
 0x821   : > { %9424 = vmatprep.mubr.msk.bf16.mxu1 %vm1679_vm0, %v3946_v16  ;;  %v15406_v16 = vld [vmem:[#allocation33_spill] sm:$0xff] }
 0x822   : > { %v4782_v35 = vsel %vm1679_vm0, %v15406_v16, 0 }
 0x823   : > { %v2509_v29 = vpop.xlane.xlu0 %2508  ;;  %v3956_v58 = vpop.permute.xlu1 %3955 }
 0x824   : > { %v2540_v59 = vsub.f32 %v12362_v12, %v2509_v29  ;;  %v4776_v12 = vsel %vm1679_vm0, %v15404_v56, 0 }
 0x826   : > { %v2556_v17 = vmul.f32 1.442695, %v2540_v59 }
 0x827   : > { %v2513_v7 = vpop.xlane.xlu0 %2512 }
 0x828   : > { %10515 = vpow2.f32 %v2556_v17  ;;  %9425 = vmatmul.mubr.msk.bf16.vlgmr.msra.gmra.mrb[144].mxu1 %vm1679_vm0, %v3948_v11  ;;  %v2542_v29 = vsub.f32 %v12360_v34, %v2513_v7 }
 0x829   : > { %9473 = vmatpush3.bf16.xpose.msra.mxu1 %v4773_v50  ;;  %9428 = vmatprep.mubr.msk.bf16.mxu1 %vm1679_vm0, %v3950_v13  ;;  %v3960_v13 = vpop.permute.xlu1 %3959  ;;  %v15410_v50 = vld [vmem:[#allocation40_spill] sm:$0xff] }
 0x82a   : > { %10049 = vmatprep.subr.msk.bf16.mxu1 %vm1679_vm0, %v15404_v56 }
 0x82b   : > { %v2515_v25 = vpop.xlane.xlu0 %2514 }
 0x82f   : > { %v12632_v21 = vpop.xlane.xlu0 %2516 }
 0x830   : > { %9429 = vmatmul.mubr.msk.bf16.gmra.mrb[148].mxu1 %vm1679_vm0, %v3952_v37  ;;  %v2544_v46 = vsub.f32 %v12370_v45, %v12632_v21 }
 0x831   : > { %9475 = vmatpush3.bf16.xpose.msra.mxu1 %v4776_v12  ;;  %9432 = vmatprep.mubr.msk.bf16.mxu1 %vm1679_vm0, %v3954_v57  ;;  %v15408_v57 = vld [vmem:[#allocation35_spill] sm:$0xff]  ;;  %v2560_v12 = vmul.f32 1.442695, %v2542_v29 }
 0x832   : > { %v12638_v60 = vpop.eup %10515  ;;  %10050 = vmatprep.subr.msk.bf16.mxu1 %vm1679_vm0, %v15405_v41  ;;  %v4785_v33 = vsel %vm1679_vm0, %v15408_v57, 0  ;;  %v2564_v18 = vmul.f32 1.442695, %v2544_v46 }
 0x833   : > { %v2521_v40 = vpop.xlane.xlu0 %2520  ;;  %2588 = vadd.xlane.f32.xlu1 %v12638_v60 }
 0x834   : > { %v2546_v34 = vsub.f32 %v12368_v22, %v2521_v40 }
 0x836   : > { %v2568_v29 = vmul.f32 1.442695, %v2546_v34  ;;  %v15417_v34 = vld [vmem:[#allocation36_spill] sm:$0xff] }
 0x837   : > { %v12643_v48 = vpop.xlane.xlu0 %2524 }
 0x838   : > { %9433 = vmatmul.mubr.msk.bf16.gmra.mrb[152].mxu1 %vm1679_vm0, %v3956_v58  ;;  %v2548_v47 = vsub.f32 %v12378_v38, %v12643_v48  ;;  %v2958_v38 = vld [vmem:[%s12224_s16] sm:$0xff] }
 0x839   : > { %9477 = vmatpush3.bf16.xpose.msra.mxu1 %v4779_v32  ;;  %9436 = vmatprep.mubr.msk.bf16.mxu1 %vm1679_vm0, %v3958_v30  ;;  %v15409_v30 = vld [vmem:[#allocation38_spill] sm:$0xff]  ;;  %v2543_v32 = vsub.f32 %v12364_v3, %v2515_v25 }
 0x83a   : > { %10051 = vmatprep.subr.msk.bf16.mxu1 %vm1679_vm0, %v15406_v16  ;;  %v4788_v59 = vsel %vm1679_vm0, %v15409_v30, 0  ;;  %v2572_v6 = vmul.f32 1.442695, %v2548_v47 }
 0x83b   : > { %v12651_v63 = vpop.xlane.xlu0 %2528 }
 0x83c   : > { %v2550_v31 = vsub.f32 %v12376_v51, %v12651_v63 }
 0x83e   : > { %v2576_v8 = vmul.f32 1.442695, %v2550_v31 }
 0x83f   : > { %v12653_v24 = vpop.xlane.xlu0 %2532 }
 0x840   : > { %9437 = vmatmul.mubr.msk.bf16.gmra.mrb[156].mxu1 %vm1679_vm0, %v3960_v13  ;;  %v2552_v55 = vsub.f32 %v12386_v14, %v12653_v24 }
 0x841   : > { %9479 = vmatpush3.bf16.xpose.msra.mxu1 %v4782_v35  ;;  %9488 = vmatprep.mubr.msk.bf16.mxu1 %vm1679_vm0, %v15407_v2  ;;  %v4791_v35 = vsel %vm1679_vm0, %v15410_v50, 0 }
 0x842   : > { %10052 = vmatprep.subr.msk.bf16.mxu1 %vm1679_vm0, %v15408_v57 }
 0x843   : > { %v12662_v10 = vpop.xlane.xlu0 %2536 }
 0x847   : > { %v2669_v27 = vpop.permute.xlu0 %2668 }
 0x848   : > { %9312 = vmatprep.subr.bf16.mxu0 %v2669_v27 }
 0x849   : > { %9481 = vmatpush3.bf16.xpose.msra.mxu1 %v4785_v33  ;;  %9313 = vmatpush3.bf16.msra.mxu0 %v2669_v27  ;;  %v15411_v33 = vld [vmem:[#allocation42_spill] sm:$0xff] }
 0x84a   : > { %10053 = vmatprep.subr.msk.bf16.mxu1 %vm1679_vm0, %v15409_v30 }
 0x850   : > { %v2511_v17 = vpop.xlane.xlu1 %2510 }
 0x851   : > { %9483 = vmatpush3.bf16.xpose.msra.mxu1 %v4788_v59  ;;  %v2541_v11 = vsub.f32 %v12366_v23, %v2511_v17  ;;  %v2562_v23 = vmul.f32 1.442695, %v2543_v32  ;;  %v15412_v59 = vld [vmem:[#allocation46_spill] sm:$0xff] }
 0x852   : > { %10054 = vmatprep.subr.msk.bf16.mxu1 %vm1679_vm0, %v15410_v50 }
 0x853   : > { %v2558_v37 = vmul.f32 1.442695, %v2541_v11  ;;  %v15413_v11 = vld [vmem:[#allocation32_spill] sm:$0xff] }
 0x854   : > { %v2519_v58 = vpop.xlane.xlu1 %2518 }
 0x855   : > { %10517 = vpow2.f32 %v2558_v37  ;;  %v2545_v13 = vsub.f32 %v12374_v61, %v2519_v58  ;;  %v4794_v61 = vsel %vm1679_vm0, %v15411_v33, 0  ;;  %v15415_v58 = vld [vmem:[#allocation48_spill] sm:$0xff] }
 0x856   : > { %10519 = vpow2.f32 %v2560_v12  ;;  %v15414_v12 = vld [vmem:[#allocation34_spill] sm:$0xff] }
 0x857   : > { %v2566_v7 = vmul.f32 1.442695, %v2545_v13  ;;  %v15416_v13 = vld [vmem:[#allocation50_spill] sm:$0xff] }
 0x858   : > { %v2523_v27 = vpop.xlane.xlu1 %2522 }
 0x859   : > { %10521 = vpow2.f32 %v2566_v7  ;;  %9485 = vmatpush3.bf16.xpose.msra.mxu1 %v4791_v35  ;;  %v2547_v3 = vsub.f32 %v12372_v20, %v2523_v27  ;;  %v15418_v7 = vld [vmem:[#allocation39_spill] sm:$0xff]  ;;  %v15419_v35 = vld [vmem:[#allocation52_spill] sm:$0xff] }
 0x85a   : > { %10055 = vmatprep.subr.msk.bf16.mxu1 %vm1679_vm0, %v15411_v33  ;;  %10523 = vpow2.f32 %v2562_v23 }
 0x85b   : > { %10525 = vpow2.f32 %v2568_v29  ;;  %v2570_v22 = vmul.f32 1.442695, %v2547_v3  ;;  %v15420_v29 = vld [vmem:[#allocation54_spill] sm:$0xff] }
 0x85d   : > { %10527 = vpow2.f32 %v2570_v22  ;;  %v15425_v22 = vld [vmem:[#allocation58_spill] sm:$0xff] }
 0x85e   : > { %10529 = vpow2.f32 %v2564_v18 }
 0x85f   : > { %v12682_v25 = vpop.eup %10517  ;;  %10531 = vpow2.f32 %v2576_v8 }
 0x860   : > { %2590 = vadd.xlane.f32.xlu1 %v12682_v25  ;;  %v12687_v40 = vpop.eup %10519 }
 0x861   : > { %9487 = vmatpush3.bf16.xpose.msra.mxu1 %v4794_v61 }
 0x862   : > { %9504 = vmatprep.subr.bf16.mxu1 %v15412_v59 }
 0x863   : > { %v12690_v17 = vpop.eup %10521 }
 0x864   : > { %2592 = vadd.xlane.f32.xlu1 %v12687_v40  ;;  %2598 = vadd.xlane.f32.xlu0 %v12690_v17  ;;  %v12694_v20 = vpop.eup %10523 }
 0x865   : > { %v12699_v37 = vpop.eup %10525 }
 0x867   : > { %v12706_v32 = vpop.eup %10527 }
 0x868   : > { %9489 = vmatmul.mubr.msk.bf16.vlgmr.msra.gmra.mrb[160].mxu1 %vm1679_vm0, %v15413_v11  ;;  %2594 = vadd.xlane.f32.xlu1 %v12694_v20 }
 0x869   : > { %9492 = vmatprep.mubr.msk.bf16.mxu1 %vm1679_vm0, %v15414_v12  ;;  %9505 = vmatpush3.bf16.msra.mxu1 %v15412_v59 }
 0x86a   : > { %2600 = vadd.xlane.f32.xlu0 %v12699_v37  ;;  %9506 = vmatprep.subr.bf16.mxu1 %v15415_v58 }
 0x86d   : > { %9507 = vmatpush3.bf16.msra.mxu1 %v15415_v58 }
 0x86e   : > { %2602 = vadd.xlane.f32.xlu0 %v12706_v32  ;;  %9508 = vmatprep.subr.bf16.mxu1 %v15416_v13 }
 0x870   : > { %9493 = vmatmul.mubr.msk.bf16.gmra.mrb[164].mxu1 %vm1679_vm0, %v15417_v34 }
 0x871   : > { %9496 = vmatprep.mubr.msk.bf16.mxu1 %vm1679_vm0, %v15418_v7  ;;  %9509 = vmatpush3.bf16.msra.mxu1 %v15416_v13 }
 0x872   : > { %9510 = vmatprep.subr.bf16.mxu1 %v15419_v35 }
 0x874   : > { %v12717_v27 = vpop.f32.mrb[128].mxu1 }
 0x875   : > { %9511 = vmatpush3.bf16.msra.mxu1 %v15419_v35  ;;  %v12720_v23 = vpop.f32.mrb[129].mxu1 }
 0x876   : > { %9512 = vmatprep.subr.bf16.mxu1 %v15420_v29  ;;  %v12723_v3 = vpop.f32.mrb[130].mxu1 }
 0x877   : > { %v12727_v61 = vpop.f32.mrb[131].mxu1 }
 0x878   : > { %9497 = vmatmul.mubr.msk.bf16.gmra.mrb[168].mxu1 %vm1679_vm0, %v15421_v44 }
 0x879   : > { %9500 = vmatprep.mubr.msk.bf16.mxu1 %vm1679_vm0, %v15422_v49  ;;  %9513 = vmatpush3.bf16.msra.mxu1 %v15420_v29  ;;  %v2554_v29 = vsub.f32 %v12384_v28, %v12662_v10  ;;  %v15429_v28 = vld [vmem:[#allocation55_spill] sm:$0xff] }
 0x87a   : > { %9514 = vmatprep.subr.bf16.mxu1 %v15423_v36  ;;  %2670 = vrot.lane.b32.xlu1 %v15424_v43, %s11214_s24 }
 0x87d   : > { %9515 = vmatpush3.bf16.msra.mxu1 %v15423_v36  ;;  %v2584_v36 = vmul.f32 1.442695, %v2554_v29 }
 0x87e   : > { %9516 = vmatprep.subr.bf16.mxu1 %v15425_v22 }
 0x880   : > { %9501 = vmatmul.mubr.msk.bf16.gmra.mrb[172].mxu1 %vm1679_vm0, %v15426_v62 }
 0x881   : > { %9517 = vmatpush3.bf16.msra.mxu1 %v15425_v22  ;;  %v2580_v22 = vmul.f32 1.442695, %v2552_v55  ;;  %v2527_v55 = vpop.xlane.xlu1 %2526 }
 0x882   : > { %9518 = vmatprep.subr.bf16.mxu1 %v15427_v0  ;;  %v2549_v1 = vsub.f32 %v12382_v9, %v2527_v55 }
 0x883   : > { %10533 = vpow2.f32 %v2580_v22 }
 0x884   : > { %2682 = vrot.lane.b32.xlu0 %v15428_v15, %s11214_s24  ;;  %10535 = vpow2.f32 %v2584_v36  ;;  %v15430_v36 = vld [vmem:[#allocation57_spill] sm:$0xff]  ;;  %v2574_v21 = vmul.f32 1.442695, %v2549_v1 }
 0x885   : > { %9519 = vmatpush3.bf16.msra.mxu1 %v15427_v0  ;;  %v12756_v0 = vpop.eup %10529  ;;  %v2531_v8 = vpop.xlane.xlu1 %2530 }
 0x886   : > { %v12759_v45 = vpop.eup %10531  ;;  %v2551_v54 = vsub.f32 %v12380_v4, %v2531_v8 }
 0x888   : > { %v2578_v47 = vmul.f32 1.442695, %v2551_v54 }
 0x889   : > { %v2535_v10 = vpop.xlane.xlu1 %2534 }
 0x88a   : > { %v2553_v9 = vsub.f32 %v12390_v52, %v2535_v10 }
 0x88c   : > { %v2582_v1 = vmul.f32 1.442695, %v2553_v9 }
 0x88d   : > { %v12762_v51 = vpop.eup %10533  ;;  %v2539_v29 = vpop.xlane.xlu1 %2538 }
 0x88e   : > { %v12765_v14 = vpop.eup %10535  ;;  %v2555_v4 = vsub.f32 %v15394_v5, %v2539_v29  ;;  %v2673_v5 = vpop.permute.xlu0 %2672 }
 0x89e   : > { %2596 = vadd.xlane.f32.xlu1 %v12756_v0 }
 0x8a3   : > { %2608 = vadd.xlane.f32.xlu0 %v12759_v45 }
 0x8a7   : > { %2612 = vadd.xlane.f32.xlu0 %v12762_v51 }
 0x8ab   : > { %2616 = vadd.xlane.f32.xlu0 %v12765_v14 }
 0x8af   : > { %2678 = vrot.lane.b32.xlu1 %v15429_v28, %s11214_s24 }
 0x8b1   : > { %v12770_v31 = vpop.f32.mrb[132].mxu1 }
 0x8b2   : > { %v12772_v18 = vpop.f32.mrb[133].mxu1 }
 0x8b3   : > { %2680 = vrot.lane.b32.xlu1 %v15430_v36, %s11214_s24  ;;  %v12776_v46 = vpop.f32.mrb[134].mxu1 }
 0x8b4   : > { %v12780_v63 = vpop.f32.mrb[135].mxu1 }
 0x8be   : > { %v12784_v22 = vpop.f32.mrb[136].mxu1 }
 0x8bf   : > { %v12786_v13 = vpop.f32.mrb[137].mxu1 }
 0x8c0   : > { %v2589_v35 = vpop.xlane.xlu1 %2588  ;;  %v12790_v59 = vpop.f32.mrb[138].mxu1 }
 0x8c1   : > { %5511 = vrot.lane.b32.xlu0 %v15399_v53, %s11214_s24  ;;  %10537 = vrcp.f32 %v2589_v35  ;;  %v12794_v58 = vpop.f32.mrb[139].mxu1 }
 0x8c2   : > { %10539 = vpow2.f32 %v2572_v6 }
 0x8c3   : > { %10541 = vpow2.f32 %v2574_v21  ;;  %v2675_v21 = vpop.permute.xlu0 %2674 }
 0x8c4   : > { %10543 = vpow2.f32 %v2578_v47 }
 0x8c5   : > { %5515 = vrot.lane.b32.xlu0 %v15405_v41, %s11214_s24  ;;  %10545 = vpow2.f32 %v2582_v1 }
 0x8c7   : > { %v12845_v10 = vpop.permute.xlu0 %2676 }
 0x8c9   : > { %5519 = vrot.lane.b32.xlu0 %v15408_v57, %s11214_s24 }
 0x8cb   : > { %v10538_v35 = vpop.eup %10537 }
 0x8cc   : > { %v12807_v24 = vmul.f32 %v10538_v35, %v12638_v60  ;;  %v12820_v6 = vpop.eup %10539  ;;  %v2586_v60 = vmul.f32 1.442695, %v2555_v4 }
 0x8cd   : > { %5523 = vrot.lane.b32.xlu0 %v15410_v50, %s11214_s24  ;;  %v12825_v52 = vpop.eup %10541 }
 0x8ce   : > { %v2974_v48 = vadd.f32 %v2958_v38, %v12807_v24  ;;  %10547 = vpow2.f32 %v2586_v60  ;;  %v12830_v54 = vpop.eup %10543 }
 0x8cf   : > { %v12835_v55 = vpop.eup %10545 }
 0x8d0   : > { %2990 = vst [vmem:[%s12224_s16] sm:$0xff] %v2974_v48 }
 0x8d1   : > { %5487 = vrot.lane.b32.xlu0 %v15407_v2, %s11214_s24 }
 0x8d5   : > { %5489 = vrot.lane.b32.xlu0 %v15413_v11, %s11214_s24 }
 0x8d7   : > { %2604 = vadd.xlane.f32.xlu1 %v12820_v6 }
 0x8d8   : > { %v12840_v8 = vpop.eup %10547 }
 0x8d9   : > { %6326 = vrot.lane.b32.xlu0 %v15405_v41, %s11215_s23 }
 0x8db   : > { %2606 = vadd.xlane.f32.xlu1 %v12825_v52 }
 0x8dd   : > { %6330 = vrot.lane.b32.xlu0 %v15408_v57, %s11215_s23  ;;  %v2959_v57 = vld [vmem:[%s12224_s16 + $0x8] sm:$0xff] }
 0x8df   : > { %2610 = vadd.xlane.f32.xlu1 %v12830_v54 }
 0x8e1   : > { %5493 = vrot.lane.b32.xlu0 %v15417_v34, %s11214_s24 }
 0x8e3   : > { %2614 = vadd.xlane.f32.xlu1 %v12835_v55 }
 0x8e5   : > { %5495 = vrot.lane.b32.xlu0 %v15418_v7, %s11214_s24 }
 0x8e7   : > { %2618 = vadd.xlane.f32.xlu1 %v12840_v8 }
 0x8e9   : > { %6334 = vrot.lane.b32.xlu0 %v15410_v50, %s11215_s23 }
 0x8ed   : > { %5501 = vrot.lane.b32.xlu0 %v15426_v62, %s11214_s24  ;;  %v2591_v29 = vpop.xlane.xlu1 %2590 }
 0x8ee   : > { %10549 = vrcp.f32 %v2591_v29 }
 0x8f1   : > { %v2599_v35 = vpop.xlane.xlu0 %2598  ;;  %v2593_v38 = vpop.xlane.xlu1 %2592 }
 0x8f2   : > { %10551 = vrcp.f32 %v2599_v35 }
 0x8f3   : > { %10553 = vrcp.f32 %v2593_v38  ;;  %v12849_v48 = vpop.f32.mrb[140].mxu1 }
 0x8f4   : > { %15431 = vst [vmem:[#allocation75_spill] sm:$0xff] %v12849_v48  ;;  %v12851_v47 = vpop.f32.mrb[141].mxu1 }
 0x8f5   : > { %15432 = vst [vmem:[#allocation76_spill] sm:$0xff] %v12851_v47  ;;  %v12853_v9 = vpop.f32.mrb[142].mxu1  ;;  %v2595_v1 = vpop.xlane.xlu1 %2594 }
 0x8f6   : > { %15433 = vst [vmem:[#allocation77_spill] sm:$0xff] %v12853_v9  ;;  %10555 = vrcp.f32 %v2595_v1  ;;  %v12857_v60 = vpop.f32.mrb[143].mxu1 }
 0x8f7   : > { %15434 = vst [vmem:[#allocation78_spill] sm:$0xff] %v12857_v60  ;;  %v2601_v50 = vpop.xlane.xlu0 %2600 }
 0x8f8   : > { %v10550_v35 = vpop.eup %10549  ;;  %10557 = vrcp.f32 %v2601_v50  ;;  %5513 = vrot.lane.b32.xlu1 %v15404_v56, %s11214_s24 }
 0x8f9   : > { %v2671_v38 = vpop.permute.xlu1 %2670  ;;  %v2637_v41 = vmul.f32 %v10550_v35, %v12682_v25 }
 0x8fa   : > { %9314 = vmatprep.subr.bf16.mxu0 %v2671_v38 }
 0x8fb   : > { %v2603_v36 = vpop.xlane.xlu0 %2602  ;;  %v12865_v4 = vpop.f32.mrb[144].mxu1  ;;  %9315 = vmatpush3.bf16.msra.mxu0 %v2671_v38  ;;  %v2652_v1 = vpack.c.bf16 %v2637_v41, %v12807_v24  ;;  %v2975_v29 = vadd.f32 %v2959_v57, %v2637_v41  ;;  %v2960_v24 = vld [vmem:[%s12224_s16 + $0x10] sm:$0xff] }
 0x8fc   : > { %v10552_v15 = vpop.eup %10551  ;;  %10559 = vrcp.f32 %v2603_v36  ;;  %5517 = vrot.lane.b32.xlu1 %v15406_v16, %s11214_s24  ;;  %9316 = vmatprep.subr.bf16.mxu0 %v2673_v5  ;;  %v12870_v50 = vpop.f32.mrb[145].mxu1  ;;  %v2963_v36 = vld [vmem:[%s12224_s16 + $0x28] sm:$0xff] }
 0x8fd   : > { %v10554_v25 = vpop.eup %10553  ;;  %v12872_v35 = vpop.f32.mrb[146].mxu1  ;;  %9328 = vmatprep.mubr.bf16.mxu0 %v2652_v1  ;;  %2991 = vst [vmem:[%s12224_s16 + $0x8] sm:$0xff] %v2975_v29  ;;  %v12876_v38 = vmul.f32 %v10552_v15, %v12690_v17  ;;  %v2961_v17 = vld [vmem:[%s12224_s16 + $0x18] sm:$0xff] }
 0x8fe   : > { %v12879_v41 = vmul.f32 %v10554_v25, %v12687_v40  ;;  %v12881_v57 = vpop.f32.mrb[147].mxu1 }
 0x8ff   : > { %9317 = vmatpush3.bf16.msra.mxu0 %v2673_v5  ;;  %v2979_v28 = vadd.f32 %v2963_v36, %v12876_v38 }
 0x900   : > { %v10556_v43 = vpop.eup %10555  ;;  %v2976_v1 = vadd.f32 %v2960_v24, %v12879_v41  ;;  %5521 = vrot.lane.b32.xlu1 %v15409_v30, %s11214_s24  ;;  %9318 = vmatprep.subr.bf16.mxu0 %v2675_v21 }
 0x901   : > { %v12890_v15 = vmul.f32 %v10556_v43, %v12694_v20  ;;  %2995 = vst [vmem:[%s12224_s16 + $0x28] sm:$0xff] %v2979_v28  ;;  %v2964_v20 = vld [vmem:[%s12224_s16 + $0x30] sm:$0xff] }
 0x902   : > { %v10558_v40 = vpop.eup %10557  ;;  %2992 = vst [vmem:[%s12224_s16 + $0x10] sm:$0xff] %v2976_v1 }
 0x903   : > { %v2977_v5 = vadd.f32 %v2961_v17, %v12890_v15  ;;  %v12896_v29 = vpop.f32.mrb[148].mxu1  ;;  %9319 = vmatpush3.bf16.msra.mxu0 %v2675_v21  ;;  %v12899_v25 = vmul.f32 %v10558_v40, %v12699_v37  ;;  %v2965_v21 = vld [vmem:[%s12224_s16 + $0x38] sm:$0xff] }
 0x904   : > { %5525 = vrot.lane.b32.xlu1 %v15411_v33, %s11214_s24  ;;  %9320 = vmatprep.subr.bf16.mxu0 %v12845_v10  ;;  %v12904_v43 = vpop.f32.mrb[149].mxu1 }
 0x905   : > { %2993 = vst [vmem:[%s12224_s16 + $0x18] sm:$0xff] %v2977_v5  ;;  %v12908_v28 = vpop.f32.mrb[150].mxu1  ;;  %v2980_v36 = vadd.f32 %v2964_v20, %v12899_v25 }
 0x906   : > { %v10560_v24 = vpop.eup %10559  ;;  %v12911_v1 = vpop.f32.mrb[151].mxu1 }
 0x907   : > { %9321 = vmatpush3.bf16.msra.mxu0 %v12845_v10  ;;  %v12915_v37 = vmul.f32 %v10560_v24, %v12706_v32  ;;  %2996 = vst [vmem:[%s12224_s16 + $0x30] sm:$0xff] %v2980_v36 }
 0x908   : > { %6322 = vrot.lane.b32.xlu1 %v15399_v53, %s11215_s23 }
 0x909   : > { %v2981_v40 = vadd.f32 %v2965_v21, %v12915_v37 }
 0x90b   : > { %v12922_v17 = vpop.f32.mrb[152].mxu1  ;;  %2997 = vst [vmem:[%s12224_s16 + $0x38] sm:$0xff] %v2981_v40 }
 0x90c   : > { %15435 = vst [vmem:[#allocation79_spill] sm:$0xff] %v12922_v17  ;;  %6324 = vrot.lane.b32.xlu1 %v15404_v56, %s11215_s23  ;;  %v12927_v5 = vpop.f32.mrb[153].mxu1 }
 0x90d   : > { %15436 = vst [vmem:[#allocation80_spill] sm:$0xff] %v12927_v5  ;;  %v12929_v20 = vpop.f32.mrb[154].mxu1 }
 0x90e   : > { %15437 = vst [vmem:[#allocation81_spill] sm:$0xff] %v12929_v20  ;;  %v12931_v10 = vpop.f32.mrb[155].mxu1  ;;  %v2966_v20 = vld [vmem:[%s12224_s16 + $0x40] sm:$0xff] }
 0x910   : > { %6328 = vrot.lane.b32.xlu1 %v15406_v16, %s11215_s23  ;;  %v2683_v16 = vpop.permute.xlu0 %2682 }
 0x913   : > { %v12935_v32 = vpop.f32.mrb[156].mxu1 }
 0x914   : > { %15438 = vst [vmem:[#allocation82_spill] sm:$0xff] %v12935_v32  ;;  %5491 = vrot.lane.b32.xlu1 %v15414_v12, %s11214_s24  ;;  %v12939_v36 = vpop.f32.mrb[157].mxu1 }
 0x915   : > { %15439 = vst [vmem:[#allocation83_spill] sm:$0xff] %v12939_v36  ;;  %v12941_v24 = vpop.f32.mrb[158].mxu1 }
 0x916   : > { %15440 = vst [vmem:[#allocation84_spill] sm:$0xff] %v12941_v24  ;;  %v12943_v21 = vpop.f32.mrb[159].mxu1 }
 0x917   : > { %15441 = vst [vmem:[#allocation85_spill] sm:$0xff] %v12943_v21 }
 0x918   : > { %6332 = vrot.lane.b32.xlu1 %v15409_v30, %s11215_s23 }
 0x91c   : > { %5497 = vrot.lane.b32.xlu1 %v15421_v44, %s11214_s24 }
 0x920   : > { %5499 = vrot.lane.b32.xlu1 %v15422_v49, %s11214_s24 }
 0x924   : > { %6336 = vrot.lane.b32.xlu1 %v15411_v33, %s11215_s23 }
 0x92b   : > { %v2597_v40 = vpop.xlane.xlu1 %2596 }
 0x92c   : > { %10561 = vrcp.f32 %v2597_v40 }
 0x92f   : > { %v2679_v53 = vpop.permute.xlu1 %2678 }
 0x930   : > { %v2609_v56 = vpop.xlane.xlu0 %2608  ;;  %9322 = vmatprep.subr.bf16.mxu0 %v2679_v53 }
 0x931   : > { %10563 = vrcp.f32 %v2609_v56  ;;  %9323 = vmatpush3.bf16.msra.mxu0 %v2679_v53  ;;  %v2653_v56 = vpack.c.bf16 %v12890_v15, %v12879_v41  ;;  %v2970_v41 = vld [vmem:[%s12224_s16 + $0x60] sm:$0xff]  ;;  %v2655_v15 = vpack.c.bf16 %v12915_v37, %v12899_v25 }
 0x933   : > { %v2681_v42 = vpop.permute.xlu1 %2680 }
 0x934   : > { %v2613_v30 = vpop.xlane.xlu0 %2612  ;;  %9324 = vmatprep.subr.bf16.mxu0 %v2681_v42 }
 0x935   : > { %10565 = vrcp.f32 %v2613_v30  ;;  %9325 = vmatpush3.bf16.msra.mxu0 %v2681_v42 }
 0x936   : > { %v10562_v39 = vpop.eup %10561  ;;  %9326 = vmatprep.subr.bf16.mxu0 %v2683_v16 }
 0x937   : > { %v2640_v26 = vmul.f32 %v10562_v39, %v12756_v0 }
 0x938   : > { %v2617_v33 = vpop.xlane.xlu0 %2616 }
 0x939   : > { %10567 = vrcp.f32 %v2617_v33  ;;  %9327 = vmatpush3.bf16.msra.mxu0 %v2683_v16  ;;  %v2978_v40 = vadd.f32 %v2962_v19, %v2640_v26  ;;  %v2654_v30 = vpack.c.bf16 %v12876_v38, %v2640_v26  ;;  %v2968_v26 = vld [vmem:[%s12224_s16 + $0x50] sm:$0xff] }
 0x93b   : > { %v10564_v53 = vpop.eup %10563  ;;  %v12957_v48 = vpop.f32.mrb[160].mxu1  ;;  %2994 = vst [vmem:[%s12224_s16 + $0x20] sm:$0xff] %v2978_v40 }
 0x93c   : > { %v12961_v42 = vpop.permute.xlu0 %5511  ;;  %v12963_v39 = vpop.f32.mrb[161].mxu1  ;;  %4897 = vmax.xlane.f32.xlu0 %v12957_v48  ;;  %9329 = vmatmul.mubr.bf16.vlgmr.msra.gmra.mrb[64].mxu0 %v2653_v56  ;;  %v12967_v19 = vmul.f32 %v10564_v53, %v12759_v45 }
 0x93d   : > { %10056 = vmatprep.subr.msk.bf16.mxu1 %vm1679_vm0, %v12961_v42  ;;  %9332 = vmatprep.mubr.bf16.mxu0 %v2654_v30  ;;  %v12971_v0 = vpop.f32.mrb[162].mxu1 }
 0x93e   : > { %v12974_v16 = vpop.f32.mrb[163].mxu1  ;;  %v2984_v33 = vadd.f32 %v2968_v26, %v12967_v19 }
 0x93f   : > { %v10566_v38 = vpop.eup %10565 }
 0x940   : > { %4893 = vmax.xlane.f32.xlu0 %v12963_v39  ;;  %3000 = vst [vmem:[%s12224_s16 + $0x50] sm:$0xff] %v2984_v33  ;;  %v12980_v45 = vmul.f32 %v10566_v38, %v12762_v51  ;;  %v2972_v51 = vld [vmem:[%s12224_s16 + $0x70] sm:$0xff] }
 0x942   : > { %v2986_v40 = vadd.f32 %v2970_v41, %v12980_v45 }
 0x943   : > { %v10568_v56 = vpop.eup %10567  ;;  %v12986_v53 = vpop.f32.mrb[164].mxu1 }
 0x944   : > { %9333 = vmatmul.mubr.bf16.gmra.mrb[68].mxu0 %v2655_v15  ;;  %v12988_v30 = vpop.f32.mrb[165].mxu1  ;;  %3002 = vst [vmem:[%s12224_s16 + $0x60] sm:$0xff] %v2986_v40  ;;  %v12992_v26 = vmul.f32 %v10568_v56, %v12765_v14 }
 0x945   : > { %v12994_v33 = vpop.f32.mrb[166].mxu1 }
 0x946   : > { %v12997_v38 = vpop.f32.mrb[167].mxu1  ;;  %v2988_v9 = vadd.f32 %v2972_v51, %v12992_v26 }
 0x948   : > { %4899 = vmax.xlane.f32.xlu1 %v12971_v0  ;;  %3004 = vst [vmem:[%s12224_s16 + $0x70] sm:$0xff] %v2988_v9 }
 0x94b   : > { %v13002_v25 = vpop.f32.mrb[168].mxu1 }
 0x94c   : > { %v13004_v37 = vpop.f32.mrb[169].mxu1  ;;  %4895 = vmax.xlane.f32.xlu1 %v12974_v16 }
 0x94d   : > { %v13007_v41 = vpop.f32.mrb[170].mxu1 }
 0x94e   : > { %v13009_v14 = vpop.f32.mrb[171].mxu1 }
 0x953   : > { %v13011_v15 = vpop.f32.mrb[172].mxu1 }
 0x954   : > { %v13013_v40 = vpop.f32.mrb[173].mxu1 }
 0x955   : > { %v13015_v56 = vpop.f32.mrb[174].mxu1 }
 0x956   : > { %v13017_v51 = vpop.f32.mrb[175].mxu1  ;;  %6298 = vrot.lane.b32.xlu0 %v15407_v2, %s11215_s23 }
 0x95d   : > { %6300 = vrot.lane.b32.xlu1 %v15413_v11, %s11215_s23 }
 0x964   : > { %v2605_v9 = vpop.xlane.xlu1 %2604 }
 0x965   : > { %10569 = vrcp.f32 %v2605_v9 }
 0x968   : > { %v2607_v24 = vpop.xlane.xlu1 %2606 }
 0x969   : > { %10571 = vrcp.f32 %v2607_v24  ;;  %v2967_v24 = vld [vmem:[%s12224_s16 + $0x48] sm:$0xff] }
 0x96c   : > { %v2611_v21 = vpop.xlane.xlu1 %2610 }
 0x96d   : > { %10573 = vrcp.f32 %v2611_v21 }
 0x96f   : > { %v10570_v32 = vpop.eup %10569 }
 0x970   : > { %v2615_v47 = vpop.xlane.xlu1 %2614  ;;  %v2644_v60 = vmul.f32 %v10570_v32, %v12820_v6 }
 0x971   : > { %10575 = vrcp.f32 %v2615_v47  ;;  %v2969_v47 = vld [vmem:[%s12224_s16 + $0x58] sm:$0xff] }
 0x972   : > { %v2982_v2 = vadd.f32 %v2966_v20, %v2644_v60 }
 0x973   : > { %v10572_v36 = vpop.eup %10571 }
 0x974   : > { %v2619_v5 = vpop.xlane.xlu1 %2618  ;;  %v2645_v11 = vmul.f32 %v10572_v36, %v12825_v52  ;;  %2998 = vst [vmem:[%s12224_s16 + $0x40] sm:$0xff] %v2982_v2  ;;  %v2973_v36 = vld [vmem:[%s12224_s16 + $0x78] sm:$0xff] }
 0x975   : > { %10577 = vrcp.f32 %v2619_v5  ;;  %4905 = vmax.xlane.f32.xlu0 %v12986_v53 }
 0x976   : > { %v2656_v21 = vpack.c.bf16 %v2645_v11, %v2644_v60  ;;  %v2983_v9 = vadd.f32 %v2967_v24, %v2645_v11  ;;  %v2971_v11 = vld [vmem:[%s12224_s16 + $0x68] sm:$0xff] }
 0x977   : > { %v10574_v17 = vpop.eup %10573 }
 0x978   : > { %9336 = vmatprep.mubr.bf16.mxu0 %v2656_v21  ;;  %2999 = vst [vmem:[%s12224_s16 + $0x48] sm:$0xff] %v2983_v9  ;;  %v2647_v6 = vmul.f32 %v10574_v17, %v12830_v54  ;;  %v13057_v9 = vpop.permute.xlu1 %5513 }
 0x979   : > { %4901 = vmax.xlane.f32.xlu0 %v12988_v30 }
 0x97a   : > { %v2657_v52 = vpack.c.bf16 %v2647_v6, %v12967_v19  ;;  %v2985_v2 = vadd.f32 %v2969_v47, %v2647_v6  ;;  %v10350_v6 = vld [vmem:[#allocation13 + $0x34] ss:$8 sps:$4 sm:$0xff]   ;;  %v10348_v47 = vld [vmem:[#allocation13 + $0x30] ss:$8 sps:$4 sm:$0xff]  }
 0x97b   : > { %v10576_v5 = vpop.eup %10575 }
 0x97c   : > { %9337 = vmatmul.mubr.bf16.gmra.mrb[72].mxu0 %v2657_v52  ;;  %3001 = vst [vmem:[%s12224_s16 + $0x58] sm:$0xff] %v2985_v2  ;;  %v2649_v60 = vmul.f32 %v10576_v5, %v12835_v55  ;;  %v15442_v55 = vmov 0   ;;  %v13063_v2 = vpop.permute.xlu1 %5517 }
 0x97d   : > { %4907 = vmax.xlane.f32.xlu0 %v12994_v33 }
 0x97e   : > { %v2658_v20 = vpack.c.bf16 %v2649_v60, %v12980_v45  ;;  %v2987_v32 = vadd.f32 %v2971_v11, %v2649_v60  ;;  %v13049_v45 = vpop.permute.xlu0 %5515 }
 0x97f   : > { %v10578_v54 = vpop.eup %10577 }
 0x980   : > { %9340 = vmatprep.mubr.bf16.mxu0 %v2658_v20  ;;  %3003 = vst [vmem:[%s12224_s16 + $0x68] sm:$0xff] %v2987_v32  ;;  %v2651_v17 = vmul.f32 %v10578_v54, %v12840_v8  ;;  %v10347_v8 = vld [vmem:[#allocation13 + $0x24] ss:$8 sps:$4 sm:$0xff]   ;;  %v13070_v60 = vpop.permute.xlu1 %5521 }
 0x981   : > { %4903 = vmax.xlane.f32.xlu0 %v12997_v38  ;;  %4132 = vmax.xlane.f32.xlu1 %v12881_v57 }
 0x982   : > { %v2659_v19 = vpack.c.bf16 %v2651_v17, %v12992_v26  ;;  %v2989_v24 = vadd.f32 %v2973_v36, %v2651_v17  ;;  %v10345_v26 = vld [vmem:[#allocation13 + $0x20] ss:$8 sps:$4 sm:$0xff]   ;;  %2845 = vmatprep.subr.bf16.mxu0 %v10347_v8  ;;  %v13055_v21 = vpop.permute.xlu0 %5519 }
 0x983   : > { %2846 = vmatpush1.bf16.msra.mxu0 %v10345_v26 }
 0x984   : > { %9341 = vmatmul.mubr.bf16.gmra.mrb[76].mxu0 %v2659_v19  ;;  %3005 = vst [vmem:[%s12224_s16 + $0x78] sm:$0xff] %v2989_v24  ;;  %2847 = vmatprep.subr.bf16.mxu0 %v10350_v6  ;;  %v13074_v20 = vpop.permute.xlu1 %5525 }
 0x985   : > { %4130 = vmax.xlane.f32.xlu0 %v12870_v50  ;;  %4913 = vmax.xlane.f32.xlu1 %v13002_v25  ;;  %15446 = vst [vmem:[#allocation89_spill] sm:$0xff] %v13074_v20 }
 0x986   : > { %2877 = vmatprep.mubr.bf16.mxu0 %v15442_v55  ;;  %v13061_v52 = vpop.permute.xlu0 %5523 }
 0x987   : > { %2848 = vmatpush1.bf16.msra.mxu0 %v10348_v47  ;;  %15443 = vst [vmem:[#allocation86_spill] sm:$0xff] %v13061_v52 }
 0x988   : > { %v13078_v54 = vpop.permute.xlu1 %6322 }
 0x989   : > { %4911 = vmax.xlane.f32.xlu0 %v13009_v14  ;;  %4909 = vmax.xlane.f32.xlu1 %v13004_v37  ;;  %15448 = vst [vmem:[#allocation91_spill] sm:$0xff] %v13078_v54 }
 0x98a   : > { %v13068_v5 = vpop.permute.xlu0 %5487 }
 0x98b   : > { %15444 = vst [vmem:[#allocation87_spill] sm:$0xff] %v13068_v5 }
 0x98c   : > { %v13082_v36 = vpop.permute.xlu1 %6324 }
 0x98d   : > { %4921 = vmax.xlane.f32.xlu0 %v13011_v15  ;;  %4915 = vmax.xlane.f32.xlu1 %v13007_v41  ;;  %15450 = vst [vmem:[#allocation93_spill] sm:$0xff] %v13082_v36 }
 0x98e   : > { %v13072_v11 = vpop.permute.xlu0 %5489 }
 0x98f   : > { %15445 = vst [vmem:[#allocation88_spill] sm:$0xff] %v13072_v11 }
 0x990   : > { %v13086_v24 = vpop.permute.xlu1 %6328 }
 0x991   : > { %4917 = vmax.xlane.f32.xlu0 %v13013_v40  ;;  %4923 = vmax.xlane.f32.xlu1 %v13015_v56  ;;  %15452 = vst [vmem:[#allocation95_spill] sm:$0xff] %v13086_v24 }
 0x992   : > { %v13076_v32 = vpop.permute.xlu0 %6326 }
 0x993   : > { %15447 = vst [vmem:[#allocation90_spill] sm:$0xff] %v13076_v32 }
 0x994   : > { %v13090_v26 = vpop.permute.xlu1 %5491 }
 0x995   : > { %4134 = vmax.xlane.f32.xlu0 %v12865_v4  ;;  %4919 = vmax.xlane.f32.xlu1 %v13017_v51  ;;  %15454 = vst [vmem:[#allocation97_spill] sm:$0xff] %v13090_v26 }
 0x996   : > { %v13080_v17 = vpop.permute.xlu0 %6330 }
 0x997   : > { %15449 = vst [vmem:[#allocation92_spill] sm:$0xff] %v13080_v17 }
 0x998   : > { %v13094_v47 = vpop.permute.xlu1 %6332 }
 0x999   : > { %4136 = vmax.xlane.f32.xlu0 %v12872_v35  ;;  %15456 = vst [vmem:[#allocation99_spill] sm:$0xff] %v13094_v47 }
 0x99a   : > { %v13084_v19 = vpop.permute.xlu0 %5493 }
 0x99b   : > { %15451 = vst [vmem:[#allocation94_spill] sm:$0xff] %v13084_v19 }
 0x99c   : > { %v13098_v32 = vpop.permute.xlu1 %5497 }
 0x99d   : > { %15458 = vst [vmem:[#allocation101_spill] sm:$0xff] %v13098_v32 }
 0x99e   : > { %v13088_v8 = vpop.permute.xlu0 %5495 }
 0x99f   : > { %15453 = vst [vmem:[#allocation96_spill] sm:$0xff] %v13088_v8 }
 0x9a0   : > { %v13101_v36 = vpop.permute.xlu1 %5499 }
 0x9a1   : > { %15459 = vst [vmem:[#allocation102_spill] sm:$0xff] %v13101_v36 }
 0x9a2   : > { %v13092_v6 = vpop.permute.xlu0 %6334 }
 0x9a3   : > { %15455 = vst [vmem:[#allocation98_spill] sm:$0xff] %v13092_v6 }
 0x9a4   : > { %v13104_v26 = vpop.permute.xlu1 %6336 }
 0x9a5   : > { %15460 = vst [vmem:[#allocation103_spill] sm:$0xff] %v13104_v26 }
 0x9a6   : > { %v13096_v11 = vpop.permute.xlu0 %5501 }
 0x9a7   : > { %15457 = vst [vmem:[#allocation100_spill] sm:$0xff] %v13096_v11 }
 0x9c9   : > { %v4898_v5 = vpop.xlane.xlu0 %4897 }
 0x9ca   : > { %v4927_v17 = vsub.f32 %v12957_v48, %v4898_v5 }
 0x9cc   : > { %v4945_v19 = vmul.f32 1.442695, %v4927_v17 }
 0x9cd   : > { %v4894_v54 = vpop.xlane.xlu0 %4893 }
 0x9ce   : > { %10579 = vpow2.f32 %v4945_v19  ;;  %v4925_v24 = vsub.f32 %v12963_v39, %v4894_v54  ;;  %v10353_v54 = vld [vmem:[#allocation13 + $0x44] ss:$8 sps:$4 sm:$0xff]  }
 0x9cf   : > { %3656 = vmatprep.subr.bf16.mxu0 %v10353_v54 }
 0x9d0   : > { %v4941_v8 = vmul.f32 1.442695, %v4925_v24 }
 0x9d1   : > { %v13120_v24 = vpop.permute.xlu0 %6298 }
 0x9d2   : > { %10581 = vpow2.f32 %v4941_v8  ;;  %15461 = vst [vmem:[#allocation104_spill] sm:$0xff] %v13120_v24 }
 0x9d5   : > { %v4900_v6 = vpop.xlane.xlu1 %4899 }
 0x9d6   : > { %v4928_v47 = vsub.f32 %v12971_v0, %v4900_v6 }
 0x9d8   : > { %v13107_v11 = vpop.eup %10579  ;;  %v4947_v32 = vmul.f32 1.442695, %v4928_v47 }
 0x9d9   : > { %4977 = vadd.xlane.f32.xlu0 %v13107_v11  ;;  %v4896_v48 = vpop.xlane.xlu1 %4895 }
 0x9da   : > { %10583 = vpow2.f32 %v4947_v32  ;;  %v4926_v5 = vsub.f32 %v12974_v16, %v4896_v48 }
 0x9dc   : > { %v13111_v17 = vpop.eup %10581  ;;  %v4943_v19 = vmul.f32 1.442695, %v4926_v5 }
 0x9dd   : > { %4973 = vadd.xlane.f32.xlu0 %v13111_v17 }
 0x9de   : > { %10585 = vpow2.f32 %v4943_v19 }
 0x9e4   : > { %v13114_v39 = vpop.eup %10583 }
 0x9e5   : > { %4979 = vadd.xlane.f32.xlu1 %v13114_v39 }
 0x9e8   : > { %v13117_v0 = vpop.eup %10585 }
 0x9e9   : > { %4975 = vadd.xlane.f32.xlu1 %v13117_v0 }
 0xa02   : > { %v4906_v32 = vpop.xlane.xlu0 %4905 }
 0xa03   : > { %v4931_v16 = vsub.f32 %v12986_v53, %v4906_v32 }
 0xa05   : > { %v4953_v8 = vmul.f32 1.442695, %v4931_v16 }
 0xa06   : > { %v4902_v6 = vpop.xlane.xlu0 %4901 }
 0xa07   : > { %10587 = vpow2.f32 %v4953_v8  ;;  %v4929_v47 = vsub.f32 %v12988_v30, %v4902_v6  ;;  %v10351_v6 = vld [vmem:[#allocation13 + $0x40] ss:$8 sps:$4 sm:$0xff]  }
 0xa09   : > { %v4949_v48 = vmul.f32 1.442695, %v4929_v47  ;;  %v10356_v47 = vld [vmem:[#allocation13 + $0x54] ss:$8 sps:$4 sm:$0xff]  }
 0xa0a   : > { %v4908_v5 = vpop.xlane.xlu0 %4907 }
 0xa0b   : > { %10589 = vpow2.f32 %v4949_v48  ;;  %v4932_v19 = vsub.f32 %v12994_v33, %v4908_v5 }
 0xa0d   : > { %v4955_v26 = vmul.f32 1.442695, %v4932_v19 }
 0xa0e   : > { %v4904_v36 = vpop.xlane.xlu0 %4903 }
 0xa0f   : > { %10591 = vpow2.f32 %v4955_v26  ;;  %v4930_v54 = vsub.f32 %v12997_v38, %v4904_v36  ;;  %v9330_v20 = vpop.f32.mrb[64].mxu0  ;;  %v10354_v36 = vld [vmem:[#allocation13 + $0x50] ss:$8 sps:$4 sm:$0xff]  }
 0xa10   : > { %v2726_v24 = vpop.f32.mrb[65].mxu0 }
 0xa11   : > { %v13126_v52 = vpop.eup %10587  ;;  %v4951_v53 = vmul.f32 1.442695, %v4930_v54  ;;  %v9331_v32 = vpop.f32.mrb[66].mxu0 }
 0xa12   : > { %15462 = vst [vmem:[#allocation105_spill] sm:$0xff] %v13126_v52  ;;  %v2790_v16 = vpack.c.bf16 %v9331_v32, %v9330_v20  ;;  %4985 = vadd.xlane.f32.xlu0 %v13126_v52  ;;  %v2729_v30 = vpop.f32.mrb[67].mxu0 }
 0xa13   : > { %10593 = vpow2.f32 %v4951_v53  ;;  %v2789_v8 = vpack.c.bf16 %v2729_v30, %v2726_v24  ;;  %v13146_v53 = vpop.permute.xlu1 %6300 }
 0xa14   : > { %15464 = vst [vmem:[#allocation107_spill] sm:$0xff] %v13146_v53 }
 0xa15   : > { %v13129_v33 = vpop.eup %10589  ;;  %8817 = vmatmul.mubr.msk.bf16.vlgmr.msra.gmra.mrb[80].mxu0 %vm1679_vm0, %v2789_v8 }
 0xa16   : > { %4981 = vadd.xlane.f32.xlu1 %v13129_v33  ;;  %2887 = vmatprep.mubr.bf16.mxu0 %v15442_v55 }
 0xa17   : > { %v9334_v38 = vpop.f32.mrb[68].mxu0  ;;  %3657 = vmatpush1.bf16.msra.mxu0 %v10351_v6  ;;  %v13152_v32 = vpop.xlane.xlu1 %4132 }
 0xa18   : > { %v2742_v26 = vpop.f32.mrb[69].mxu0  ;;  %3658 = vmatprep.subr.bf16.mxu0 %v10356_v47 }
 0xa19   : > { %v13134_v20 = vpop.eup %10591  ;;  %v9335_v48 = vpop.f32.mrb[70].mxu0 }
 0xa1a   : > { %v2792_v5 = vpack.c.bf16 %v9335_v48, %v9334_v38  ;;  %v2745_v24 = vpop.f32.mrb[71].mxu0  ;;  %4987 = vadd.xlane.f32.xlu1 %v13134_v20 }
 0xa1b   : > { %v2791_v19 = vpack.c.bf16 %v2745_v24, %v2742_v26  ;;  %3659 = vmatpush1.bf16.msra.mxu0 %v10354_v36  ;;  %v4914_v30 = vpop.xlane.xlu1 %4913 }
 0xa1c   : > { %v4935_v48 = vsub.f32 %v13002_v25, %v4914_v30 }
 0xa1d   : > { %v13137_v54 = vpop.eup %10593  ;;  %8818 = vmatmul.mubr.msk.bf16.gmra.mrb[84].mxu0 %vm1679_vm0, %v2790_v16  ;;  %v13154_v16 = vpop.xlane.xlu0 %4130 }
 0xa1e   : > { %15463 = vst [vmem:[#allocation106_spill] sm:$0xff] %v13137_v54  ;;  %4983 = vadd.xlane.f32.xlu0 %v13137_v54  ;;  %2897 = vmatprep.mubr.bf16.mxu0 %v15442_v55 }
 0xa1f   : > { %v4910_v6 = vpop.xlane.xlu1 %4909 }
 0xa21   : > { %v4912_v8 = vpop.xlane.xlu0 %4911 }
 0xa23   : > { %v4916_v38 = vpop.xlane.xlu1 %4915 }
 0xa24   : > { %v4936_v54 = vsub.f32 %v13007_v41, %v4916_v38 }
 0xa25   : > { %8819 = vmatmul.mubr.msk.bf16.gmra.mrb[88].mxu0 %vm1679_vm0, %v2791_v19  ;;  %v4922_v47 = vpop.xlane.xlu0 %4921 }
 0xa26   : > { %2907 = vmatprep.mubr.bf16.mxu0 %v15442_v55  ;;  %v4939_v36 = vsub.f32 %v13011_v15, %v4922_v47 }
 0xa27   : > { %v4924_v19 = vpop.xlane.xlu1 %4923 }
 0xa29   : > { %v4918_v26 = vpop.xlane.xlu0 %4917 }
 0xa2a   : > { %v4937_v24 = vsub.f32 %v13013_v40, %v4918_v26 }
 0xa2b   : > { %6304 = vrot.lane.b32.xlu1 %v15417_v34, %s11215_s23 }
 0xa2c   : > { %v4965_v34 = vmul.f32 1.442695, %v4937_v24 }
 0xa2d   : > { %8820 = vmatmul.mubr.msk.bf16.gmra.mrb[92].mxu0 %vm1679_vm0, %v2792_v5  ;;  %v4969_v5 = vmul.f32 1.442695, %v4939_v36  ;;  %v13191_v24 = vpop.xlane.xlu0 %4134 }
 0xa2e   : > { %2917 = vmatprep.mubr.bf16.mxu0 %v15442_v55 }
 0xa2f   : > { %6306 = vrot.lane.b32.xlu1 %v15418_v7, %s11215_s23  ;;  %v4961_v7 = vmul.f32 1.442695, %v4935_v48  ;;  %10595 = vpow2.f32 %v4969_v5 }
 0xa31   : > { %10597 = vpow2.f32 %v4961_v7 }
 0xa32   : > { %10599 = vpow2.f32 %v4965_v34 }
 0xa33   : > { %6308 = vrot.lane.b32.xlu1 %v15421_v44, %s11215_s23  ;;  %v4933_v44 = vsub.f32 %v13004_v37, %v4910_v6  ;;  %v4934_v37 = vsub.f32 %v13009_v14, %v4912_v8  ;;  %v4963_v6 = vmul.f32 1.442695, %v4936_v54 }
 0xa34   : > { %6302 = vrot.lane.b32.xlu0 %v15414_v12, %s11215_s23  ;;  %v4940_v12 = vsub.f32 %v13015_v56, %v4924_v19  ;;  %v4920_v56 = vpop.xlane.xlu1 %4919 }
 0xa35   : > { %v4957_v53 = vmul.f32 1.442695, %v4933_v44  ;;  %v4959_v34 = vmul.f32 1.442695, %v4934_v37  ;;  %v4938_v7 = vsub.f32 %v13017_v51, %v4920_v56 }
 0xa36   : > { %v4971_v15 = vmul.f32 1.442695, %v4940_v12 }
 0xa37   : > { %10601 = vpow2.f32 %v4957_v53  ;;  %v4967_v26 = vmul.f32 1.442695, %v4938_v7 }
 0xa38   : > { %10603 = vpow2.f32 %v4971_v15  ;;  %v13201_v15 = vpop.xlane.xlu0 %4136 }
 0xa39   : > { %v13169_v44 = vpop.eup %10595  ;;  %10605 = vpow2.f32 %v4963_v6  ;;  %v15466_v6 = vpack.c.bf16 %v12723_v3, %v12717_v27 }
 0xa3a   : > { %10607 = vpow2.f32 %v4959_v34 }
 0xa3b   : > { %v13175_v14 = vpop.eup %10597  ;;  %10609 = vpow2.f32 %v4967_v26 }
 0xa3c   : > { %v13177_v54 = vpop.eup %10599 }
 0xa41   : > { %v13181_v48 = vpop.eup %10601 }
 0xa42   : > { %v13184_v51 = vpop.eup %10603 }
 0xa43   : > { %v13189_v5 = vpop.eup %10605 }
 0xa44   : > { %v13196_v19 = vpop.eup %10607 }
 0xa4f   : > { %v9338_v52 = vpop.f32.mrb[72].mxu0 }
 0xa50   : > { %v2758_v47 = vpop.f32.mrb[73].mxu0 }
 0xa51   : > { %v9339_v25 = vpop.f32.mrb[74].mxu0 }
 0xa52   : > { %v2794_v30 = vpack.c.bf16 %v9339_v25, %v9338_v52  ;;  %v2761_v36 = vpop.f32.mrb[75].mxu0 }
 0xa53   : > { %v2793_v40 = vpack.c.bf16 %v2761_v36, %v2758_v47  ;;  %4138 = vmax.xlane.f32.xlu0 %v12904_v43  ;;  %v13203_v47 = vpop.eup %10609 }
 0xa55   : > { %8821 = vmatmul.mubr.msk.bf16.gmra.mrb[96].mxu0 %vm1679_vm0, %v2793_v40  ;;  %v15465_v40 = vpack.c.bf16 %v12727_v61, %v12720_v23 }
 0xa56   : > { %2927 = vmatprep.mubr.bf16.mxu0 %v15442_v55 }
 0xa57   : > { %5001 = vadd.xlane.f32.xlu0 %v13169_v44  ;;  %v9342_v12 = vpop.f32.mrb[76].mxu0  ;;  %4140 = vmax.xlane.f32.xlu1 %v12911_v1 }
 0xa58   : > { %v2774_v41 = vpop.f32.mrb[77].mxu0 }
 0xa59   : > { %v9343_v52 = vpop.f32.mrb[78].mxu0 }
 0xa5a   : > { %v2796_v53 = vpack.c.bf16 %v9343_v52, %v9342_v12  ;;  %v2777_v8 = vpop.f32.mrb[79].mxu0  ;;  %v15471_v52 = vpack.c.bf16 %v12780_v63, %v12772_v18  ;;  %v5555_v18 = vsel %vm1679_vm0, %v13057_v9, 0  ;;  %v15473_v63 = vpack.c.bf16 %v12794_v58, %v12786_v13 }
 0xa5b   : > { %v2795_v38 = vpack.c.bf16 %v2777_v8, %v2774_v41  ;;  %4997 = vadd.xlane.f32.xlu0 %v13177_v54  ;;  %4993 = vadd.xlane.f32.xlu1 %v13175_v14  ;;  %v4162_v58 = vsub.f32 %v12870_v50, %v13154_v16  ;;  %v5561_v13 = vsel %vm1679_vm0, %v13063_v2, 0  ;;  %v15477_v50 = vld [vmem:[#allocation83_spill] sm:$0xff]  ;;  %v15478_v16 = vld [vmem:[#allocation81_spill] sm:$0xff] }
 0xa5d   : > { %8822 = vmatmul.mubr.msk.bf16.gmra.mrb[100].mxu0 %vm1679_vm0, %v2794_v30 }
 0xa5e   : > { %2937 = vmatprep.mubr.bf16.mxu0 %v15442_v55 }
 0xa5f   : > { %4989 = vadd.xlane.f32.xlu1 %v13181_v48  ;;  %5003 = vadd.xlane.f32.xlu0 %v13184_v51 }
 0xa63   : > { %4995 = vadd.xlane.f32.xlu1 %v13189_v5  ;;  %4142 = vmax.xlane.f32.xlu0 %v12896_v29 }
 0xa65   : > { %8823 = vmatmul.mubr.msk.bf16.gmra.mrb[104].mxu0 %vm1679_vm0, %v2795_v38  ;;  %v5564_v38 = vsel %vm1679_vm0, %v13055_v21, 0 }
 0xa66   : > { %2947 = vmatprep.mubr.bf16.mxu0 %v15442_v55  ;;  %v4978_v25 = vpop.xlane.xlu0 %4977 }
 0xa67   : > { %4991 = vadd.xlane.f32.xlu1 %v13196_v19  ;;  %4144 = vmax.xlane.f32.xlu0 %v12908_v28 }
 0xa6a   : > { %v4974_v30 = vpop.xlane.xlu0 %4973 }
 0xa6b   : > { %4999 = vadd.xlane.f32.xlu1 %v13203_v47 }
 0xa6d   : > { %8824 = vmatmul.mubr.msk.bf16.gmra.mrb[108].mxu0 %vm1679_vm0, %v2796_v53  ;;  %v15479_v53 = vld [vmem:[#allocation78_spill] sm:$0xff] }
 0xa6e   : > { %3688 = vmatprep.mubr.bf16.mxu0 %v15442_v55 }
 0xa72   : > { %v4980_v36 = vpop.xlane.xlu1 %4979 }
 0xa73   : > { %10611 = vrcp.f32 %v4980_v36 }
 0xa74   : > { %10613 = vrcp.f32 %v4974_v30  ;;  %v15483_v30 = vld [vmem:[#allocation85_spill] sm:$0xff] }
 0xa75   : > { %8837 = vmatmul.mubr.msk.bf16.vlgmr.msra.gmra.mrb[80].mxu0 %vm1679_vm0, %v15465_v40  ;;  %10615 = vrcp.f32 %v4978_v25  ;;  %v15482_v25 = vld [vmem:[#allocation82_spill] sm:$0xff]  ;;  %v15485_v40 = vld [vmem:[#allocation77_spill] sm:$0xff] }
 0xa76   : > { %v4976_v37 = vpop.xlane.xlu1 %4975  ;;  %3698 = vmatprep.mubr.bf16.mxu0 %v15442_v55 }
 0xa77   : > { %10617 = vrcp.f32 %v4976_v37  ;;  %v15486_v37 = vld [vmem:[#allocation75_spill] sm:$0xff] }
 0xa7c   : > { %6312 = vrot.lane.b32.xlu1 %v15426_v62, %s11215_s23 }
 0xa7d   : > { %8838 = vmatmul.mubr.msk.bf16.gmra.mrb[84].mxu0 %vm1679_vm0, %v15466_v6  ;;  %6310 = vrot.lane.b32.xlu0 %v15422_v49, %s11215_s23  ;;  %v10612_v56 = vpop.eup %10611  ;;  %v15487_v6 = vpack.c.bf16 %v15485_v40, %v15486_v37 }
 0xa7e   : > { %3708 = vmatprep.mubr.bf16.mxu0 %v15442_v55  ;;  %v10614_v23 = vpop.eup %10613  ;;  %v13223_v34 = vmul.f32 %v10612_v56, %v13114_v39 }
 0xa7f   : > { %v10616_v61 = vpop.eup %10615  ;;  %v13226_v7 = vmul.f32 %v10614_v23, %v13111_v17  ;;  %v5552_v17 = vsel %vm1679_vm0, %v12961_v42, 0  ;;  %v4163_v42 = vsub.f32 %v12881_v57, %v13152_v32  ;;  %v4164_v57 = vsub.f32 %v12865_v4, %v13191_v24 }
 0xa80   : > { %15467 = vst [vmem:[#allocation108_spill] sm:$0xff] %v13223_v34  ;;  %v13232_v27 = vmul.f32 %v10616_v61, %v13107_v11  ;;  %v15472_v11 = vpack.c.bf16 %v12776_v46, %v12770_v31  ;;  %v5558_v31 = vsel %vm1679_vm0, %v13049_v45, 0  ;;  %v15474_v46 = vpack.c.bf16 %v12790_v59, %v12784_v22 }
 0xa81   : > { %v10618_v12 = vpop.eup %10617  ;;  %15468 = vst [vmem:[#allocation109_spill] sm:$0xff] %v13226_v7  ;;  %v4178_v59 = vmul.f32 1.442695, %v4162_v58  ;;  %v4182_v36 = vmul.f32 1.442695, %v4164_v57  ;;  %v4165_v4 = vsub.f32 %v12872_v35, %v13201_v15  ;;  %v5567_v23 = vsel %vm1679_vm0, %v13070_v60, 0 }
 0xa82   : > { %v13229_v41 = vmul.f32 %v10618_v12, %v13117_v0  ;;  %15470 = vst [vmem:[#allocation111_spill] sm:$0xff] %v13232_v27  ;;  %v5038_v39 = vpack.c.bf16 %v13223_v34, %v13232_v27  ;;  %v4180_v0 = vmul.f32 1.442695, %v4163_v42  ;;  %v15488_v35 = vld [vmem:[#allocation86_spill] sm:$0xff]  ;;  %v15501_v57 = vld [vmem:[#allocation47_spill] sm:$0xff] }
 0xa83   : > { %10619 = vpow2.f32 %v4178_v59  ;;  %v4184_v56 = vmul.f32 1.442695, %v4165_v4  ;;  %v15496_v59 = vld [vmem:[#allocation45_spill] sm:$0xff] }
 0xa84   : > { %15469 = vst [vmem:[#allocation110_spill] sm:$0xff] %v13229_v41  ;;  %v5037_v3 = vpack.c.bf16 %v13229_v41, %v13226_v7  ;;  %10621 = vpow2.f32 %v4180_v0  ;;  %v15497_v0 = vld [vmem:[#allocation91_spill] sm:$0xff]  ;;  %v10363_v41 = vld [vmem:[#allocation13 + $0x80] ss:$8 sps:$4 sm:$0xff]  }
 0xa85   : > { %8839 = vmatmul.mubr.msk.bf16.gmra.mrb[88].mxu0 %vm1679_vm0, %v15471_v52 }
 0xa86   : > { %9520 = vmatprep.mubr.bf16.mxu1 %v5037_v3  ;;  %3718 = vmatprep.mubr.bf16.mxu0 %v15442_v55 }
 0xa87   : > { %9521 = vmatmul.mubr.bf16.vlgmr.msra.gmra.mrb[176].mxu1 %v5038_v39 }
 0xa88   : > { %9537 = vmatpush3.bf16.xpose.msra.mxu1 %v5552_v17 }
 0xa89   : > { %10057 = vmatprep.subr.msk.bf16.mxu1 %vm1679_vm0, %v13057_v9  ;;  %v15476_v9 = vld [vmem:[#allocation80_spill] sm:$0xff] }
 0xa8d   : > { %8840 = vmatmul.mubr.msk.bf16.gmra.mrb[92].mxu0 %vm1679_vm0, %v15472_v11  ;;  %v13305_v61 = vpop.eup %10619 }
 0xa8e   : > { %3728 = vmatprep.mubr.bf16.mxu0 %v15442_v55  ;;  %v13310_v15 = vpop.eup %10621 }
 0xa90   : > { %9539 = vmatpush3.bf16.xpose.msra.mxu1 %v5555_v18  ;;  %v15491_v18 = vld [vmem:[#allocation106_spill] sm:$0xff] }
 0xa91   : > { %10058 = vmatprep.subr.msk.bf16.mxu1 %vm1679_vm0, %v13049_v45  ;;  %v15475_v45 = vld [vmem:[#allocation79_spill] sm:$0xff] }
 0xa95   : > { %8841 = vmatmul.mubr.msk.bf16.gmra.mrb[96].mxu0 %vm1679_vm0, %v15473_v63 }
 0xa96   : > { %3738 = vmatprep.mubr.bf16.mxu0 %v15442_v55 }
 0xa98   : > { %9541 = vmatpush3.bf16.xpose.msra.mxu1 %v5558_v31 }
 0xa99   : > { %10059 = vmatprep.subr.msk.bf16.mxu1 %vm1679_vm0, %v13063_v2  ;;  %v15480_v2 = vld [vmem:[#allocation76_spill] sm:$0xff] }
 0xa9a   : > { %v15481_v8 = vpack.c.bf16 %v15479_v53, %v15480_v2  ;;  %v15498_v53 = vld [vmem:[#allocation49_spill] sm:$0xff]  ;;  %v15499_v2 = vld [vmem:[#allocation51_spill] sm:$0xff] }
 0xa9c   : > { %4148 = vmax.xlane.f32.xlu0 %v12931_v10 }
 0xa9d   : > { %8842 = vmatmul.mubr.msk.bf16.gmra.mrb[100].mxu0 %vm1679_vm0, %v15474_v46  ;;  %v15493_v46 = vld [vmem:[#allocation105_spill] sm:$0xff] }
 0xa9e   : > { %3748 = vmatprep.mubr.bf16.mxu0 %v15442_v55 }
 0xa9f   : > { %v4986_v32 = vpop.xlane.xlu0 %4985 }
 0xaa0   : > { %9543 = vmatpush3.bf16.xpose.msra.mxu1 %v5561_v13  ;;  %4150 = vmax.xlane.f32.xlu0 %v15475_v45  ;;  %v15495_v13 = vld [vmem:[#allocation89_spill] sm:$0xff] }
 0xaa1   : > { %4146 = vmax.xlane.f32.xlu1 %v15476_v9  ;;  %10060 = vmatprep.subr.msk.bf16.mxu1 %vm1679_vm0, %v13055_v21  ;;  %v15484_v21 = vld [vmem:[#allocation84_spill] sm:$0xff] }
 0xaa3   : > { %v4982_v22 = vpop.xlane.xlu1 %4981 }
 0xaa4   : > { %4154 = vmax.xlane.f32.xlu0 %v15477_v50 }
 0xaa5   : > { %4152 = vmax.xlane.f32.xlu1 %v15478_v16  ;;  %8843 = vmatmul.mubr.msk.bf16.gmra.mrb[104].mxu0 %vm1679_vm0, %v15481_v8  ;;  %v15500_v8 = vld [vmem:[#allocation53_spill] sm:$0xff] }
 0xaa6   : > { %3758 = vmatprep.mubr.bf16.mxu0 %v15442_v55 }
 0xaa7   : > { %v4988_v26 = vpop.xlane.xlu1 %4987 }
 0xaa8   : > { %9545 = vmatpush3.bf16.xpose.msra.mxu1 %v5564_v38  ;;  %4158 = vmax.xlane.f32.xlu0 %v15482_v25  ;;  %10623 = vrcp.f32 %v4988_v26 }
 0xaa9   : > { %4156 = vmax.xlane.f32.xlu1 %v15483_v30  ;;  %10061 = vmatprep.subr.msk.bf16.mxu1 %vm1679_vm0, %v13070_v60  ;;  %10625 = vrcp.f32 %v4982_v22  ;;  %v5570_v60 = vsel %vm1679_vm0, %v15488_v35, 0  ;;  %v5573_v22 = vsel %vm1679_vm0, %v15495_v13, 0 }
 0xaaa   : > { %10627 = vrcp.f32 %v4986_v32 }
 0xaab   : > { %v4984_v24 = vpop.xlane.xlu0 %4983  ;;  %v13353_v32 = vpop.permute.xlu1 %6304 }
 0xaac   : > { %10629 = vrcp.f32 %v4984_v24 }
 0xaad   : > { %4160 = vmax.xlane.f32.xlu1 %v15484_v21  ;;  %8844 = vmatmul.mubr.msk.bf16.gmra.mrb[108].mxu0 %vm1679_vm0, %v15487_v6  ;;  %10631 = vpow2.f32 %v4182_v36 }
 0xaae   : > { %10633 = vpow2.f32 %v4184_v56 }
 0xaaf   : > { %v13355_v38 = vpop.permute.xlu1 %6306  ;;  %v13357_v26 = vpop.permute.xlu0 %6302 }
 0xab0   : > { %9547 = vmatpush3.bf16.xpose.msra.mxu1 %v5567_v23 }
 0xab1   : > { %4210 = vadd.xlane.f32.xlu1 %v13305_v61  ;;  %10062 = vmatprep.subr.msk.bf16.mxu1 %vm1679_vm0, %v15488_v35 }
 0xab2   : > { %v10624_v12 = vpop.eup %10623 }
 0xab3   : > { %v10626_v3 = vpop.eup %10625  ;;  %v13314_v17 = vmul.f32 %v10624_v12, %v13134_v20  ;;  %v13359_v36 = vpop.permute.xlu1 %6308 }
 0xab4   : > { %v10628_v52 = vpop.eup %10627  ;;  %v13319_v11 = vmul.f32 %v10626_v3, %v13129_v33 }
 0xab5   : > { %4212 = vadd.xlane.f32.xlu1 %v13310_v15  ;;  %15489 = vst [vmem:[#allocation79_spill] sm:$0xff] %v13314_v17  ;;  %v13327_v58 = vmul.f32 %v10628_v52, %v15493_v46 }
 0xab6   : > { %v10630_v39 = vpop.eup %10629  ;;  %15490 = vst [vmem:[#allocation80_spill] sm:$0xff] %v13319_v11 }
 0xab7   : > { %v13322_v63 = vmul.f32 %v10630_v39, %v15491_v18  ;;  %v13324_v31 = vpop.eup %10631  ;;  %15494 = vst [vmem:[#allocation81_spill] sm:$0xff] %v13327_v58  ;;  %v5040_v33 = vpack.c.bf16 %v13314_v17, %v13327_v58 }
 0xab8   : > { %9549 = vmatpush3.bf16.xpose.msra.mxu1 %v5570_v60  ;;  %v13336_v42 = vpop.eup %10633 }
 0xab9   : > { %15492 = vst [vmem:[#allocation83_spill] sm:$0xff] %v13322_v63  ;;  %4214 = vadd.xlane.f32.xlu1 %v13324_v31  ;;  %10063 = vmatprep.subr.msk.bf16.mxu1 %vm1679_vm0, %v15495_v13  ;;  %v5039_v20 = vpack.c.bf16 %v13322_v63, %v13319_v11  ;;  %v15573_v63 = vld [vmem:[#allocation34_spill] sm:$0xff] }
 0xabb   : > { %9524 = vmatprep.mubr.bf16.mxu1 %v5039_v20 }
 0xabc   : > { %9525 = vmatmul.mubr.bf16.gmra.mrb[180].mxu1 %v5040_v33 }
 0xabd   : > { %4216 = vadd.xlane.f32.xlu1 %v13336_v42 }
 0xabe   : > { %4290 = vrot.lane.b32.xlu0 %v15496_v59, %s11216_s3 }
 0xac0   : > { %9551 = vmatpush3.bf16.xpose.msra.mxu1 %v5573_v22 }
 0xac1   : > { %10064 = vmatprep.subr.msk.bf16.mxu1 %vm1679_vm0, %v15497_v0 }
 0xac2   : > { %4294 = vrot.lane.b32.xlu0 %v15498_v53, %s11216_s3 }
 0xac6   : > { %4296 = vrot.lane.b32.xlu0 %v15499_v2, %s11216_s3 }
 0xaca   : > { %4298 = vrot.lane.b32.xlu0 %v15500_v8, %s11216_s3 }
 0xace   : > { %4292 = vrot.lane.b32.xlu1 %v15501_v57, %s11216_s3 }
 0xae0   : > { %v4139_v4 = vpop.xlane.xlu0 %4138 }
 0xae1   : > { %v4166_v24 = vsub.f32 %v12904_v43, %v4139_v4 }
 0xae3   : > { %v4186_v40 = vmul.f32 1.442695, %v4166_v24 }
 0xae4   : > { %v5002_v37 = vpop.xlane.xlu0 %5001  ;;  %v4141_v6 = vpop.xlane.xlu1 %4140 }
 0xae5   : > { %10635 = vpow2.f32 %v4186_v40  ;;  %v4167_v56 = vsub.f32 %v12911_v1, %v4141_v6 }
 0xae7   : > { %v4188_v23 = vmul.f32 1.442695, %v4167_v56  ;;  %v15506_v56 = vld [vmem:[#allocation55_spill] sm:$0xff] }
 0xae8   : > { %v4998_v35 = vpop.xlane.xlu0 %4997  ;;  %v4994_v12 = vpop.xlane.xlu1 %4993 }
 0xae9   : > { %10637 = vpow2.f32 %v4188_v23 }
 0xaea   : > { %10639 = vrcp.f32 %v4994_v12 }
 0xaec   : > { %v5004_v3 = vpop.xlane.xlu0 %5003  ;;  %v4990_v52 = vpop.xlane.xlu1 %4989 }
 0xaef   : > { %v13363_v39 = vpop.eup %10635 }
 0xaf0   : > { %v4143_v60 = vpop.xlane.xlu0 %4142  ;;  %v4996_v18 = vpop.xlane.xlu1 %4995 }
 0xaf1   : > { %v4168_v46 = vsub.f32 %v12896_v29, %v4143_v60  ;;  %10641 = vrcp.f32 %v4996_v18 }
 0xaf2   : > { %4218 = vadd.xlane.f32.xlu1 %v13363_v39  ;;  %10643 = vrcp.f32 %v4990_v52 }
 0xaf3   : > { %v13367_v43 = vpop.eup %10637  ;;  %v4190_v13 = vmul.f32 1.442695, %v4168_v46  ;;  %v15513_v46 = vld [vmem:[#allocation88_spill] sm:$0xff] }
 0xaf4   : > { %v4145_v1 = vpop.xlane.xlu0 %4144  ;;  %4220 = vadd.xlane.f32.xlu0 %v13367_v43  ;;  %v4992_v20 = vpop.xlane.xlu1 %4991 }
 0xaf5   : > { %10645 = vpow2.f32 %v4190_v13  ;;  %v4169_v33 = vsub.f32 %v12908_v28, %v4145_v1  ;;  %v10640_v29 = vpop.eup %10639  ;;  %v6363_v13 = vsel %vm1679_vm0, %v15497_v0, 0  ;;  %v15515_v1 = vld [vmem:[#allocation93_spill] sm:$0xff]  ;;  %v15519_v0 = vld [vmem:[#allocation90_spill] sm:$0xff] }
 0xaf6   : > { %10647 = vrcp.f32 %v4992_v20  ;;  %v13384_v6 = vmul.f32 %v10640_v29, %v13175_v14  ;;  %v15517_v20 = vld [vmem:[#allocation94_spill] sm:$0xff]  ;;  %v15520_v29 = vld [vmem:[#allocation101_spill] sm:$0xff] }
 0xaf7   : > { %v4192_v59 = vmul.f32 1.442695, %v4169_v33  ;;  %10649 = vrcp.f32 %v4998_v35  ;;  %v6366_v33 = vsel %vm1679_vm0, %v15515_v1, 0 }
 0xaf8   : > { %v5000_v22 = vpop.xlane.xlu1 %4999  ;;  %15505 = vst [vmem:[#allocation85_spill] sm:$0xff] %v13384_v6 }
 0xaf9   : > { %10651 = vpow2.f32 %v4192_v59  ;;  %v15518_v59 = vld [vmem:[#allocation96_spill] sm:$0xff] }
 0xafa   : > { %10653 = vrcp.f32 %v5000_v22  ;;  %v13433_v22 = vpop.permute.xlu0 %6310 }
 0xafb   : > { %10655 = vrcp.f32 %v5004_v3  ;;  %v10642_v53 = vpop.eup %10641  ;;  %v15509_v3 = vld [vmem:[#allocation59_spill] sm:$0xff] }
 0xafc   : > { %10657 = vrcp.f32 %v5002_v37  ;;  %v10644_v2 = vpop.eup %10643  ;;  %v13375_v4 = vmul.f32 %v10642_v53, %v13189_v5  ;;  %v6369_v53 = vsel %vm1679_vm0, %v15519_v0, 0 }
 0xafd   : > { %v13378_v28 = vmul.f32 %v10644_v2, %v13181_v48  ;;  %v15521_v2 = vld [vmem:[#allocation102_spill] sm:$0xff] }
 0xafe   : > { %15502 = vst [vmem:[#allocation78_spill] sm:$0xff] %v13375_v4  ;;  %v5042_v48 = vpack.c.bf16 %v13375_v4, %v13384_v6 }
 0xaff   : > { %v13371_v8 = vpop.eup %10645  ;;  %15503 = vst [vmem:[#allocation76_spill] sm:$0xff] %v13378_v28 }
 0xb00   : > { %v10648_v57 = vpop.eup %10647  ;;  %4222 = vadd.xlane.f32.xlu0 %v13371_v8 }
 0xb01   : > { %v13381_v24 = vmul.f32 %v10648_v57, %v13196_v19  ;;  %v10650_v40 = vpop.eup %10649  ;;  %v15522_v57 = vld [vmem:[#allocation95_spill] sm:$0xff] }
 0xb02   : > { %v13396_v35 = vmul.f32 %v10650_v40, %v13177_v54 }
 0xb03   : > { %15504 = vst [vmem:[#allocation82_spill] sm:$0xff] %v13381_v24  ;;  %v13386_v37 = vpop.eup %10651  ;;  %4300 = vrot.lane.b32.xlu1 %v15506_v56, %s11216_s3  ;;  %v5041_v23 = vpack.c.bf16 %v13381_v24, %v13378_v28  ;;  %v13443_v56 = vpop.permute.xlu1 %6312 }
 0xb04   : > { %v10654_v5 = vpop.eup %10653  ;;  %4224 = vadd.xlane.f32.xlu0 %v13386_v37  ;;  %15507 = vst [vmem:[#allocation84_spill] sm:$0xff] %v13396_v35 }
 0xb05   : > { %v10656_v19 = vpop.eup %10655  ;;  %9528 = vmatprep.mubr.bf16.mxu1 %v5041_v23  ;;  %v13399_v14 = vmul.f32 %v10654_v5, %v13203_v47  ;;  %v15512_v47 = vld [vmem:[#allocation87_spill] sm:$0xff] }
 0xb06   : > { %9529 = vmatmul.mubr.bf16.gmra.mrb[184].mxu1 %v5042_v48  ;;  %v10658_v12 = vpop.eup %10657  ;;  %v13406_v60 = vmul.f32 %v10656_v19, %v13184_v51  ;;  %v15514_v51 = vld [vmem:[#allocation97_spill] sm:$0xff] }
 0xb07   : > { %15508 = vst [vmem:[#allocation77_spill] sm:$0xff] %v13399_v14  ;;  %4304 = vrot.lane.b32.xlu1 %v15509_v3, %s11216_s3  ;;  %v5043_v52 = vpack.c.bf16 %v13399_v14, %v13396_v35  ;;  %v13409_v18 = vmul.f32 %v10658_v12, %v13169_v44  ;;  %v15516_v44 = vld [vmem:[#allocation57_spill] sm:$0xff]  ;;  %v15523_v12 = vld [vmem:[#allocation100_spill] sm:$0xff]  ;;  %v6372_v3 = vsel %vm1679_vm0, %v15522_v57, 0 }
 0xb08   : > { %15510 = vst [vmem:[#allocation75_spill] sm:$0xff] %v13406_v60 }
 0xb09   : > { %9532 = vmatprep.mubr.bf16.mxu1 %v5043_v52  ;;  %15511 = vst [vmem:[#allocation86_spill] sm:$0xff] %v13409_v18  ;;  %v5044_v54 = vpack.c.bf16 %v13406_v60, %v13409_v18 }
 0xb0e   : > { %9533 = vmatmul.mubr.bf16.gmra.mrb[188].mxu1 %v5044_v54 }
 0xb0f   : > { %9552 = vmatprep.mubr.msk.bf16.mxu1 %vm1679_vm0, %v15512_v47  ;;  %v15524_v47 = vld [vmem:[#allocation104_spill] sm:$0xff] }
 0xb16   : > { %9553 = vmatmul.mubr.msk.bf16.vlgmr.msra.gmra.mrb[192].mxu1 %vm1679_vm0, %v15513_v46 }
 0xb17   : > { %9601 = vmatpush3.bf16.xpose.msra.mxu1 %v6363_v13  ;;  %9556 = vmatprep.mubr.msk.bf16.mxu1 %vm1679_vm0, %v15514_v51 }
 0xb18   : > { %10065 = vmatprep.subr.msk.bf16.mxu1 %vm1679_vm0, %v15515_v1 }
 0xb1a   : > { %4302 = vrot.lane.b32.xlu0 %v15516_v44, %s11216_s3 }
 0xb1e   : > { %9557 = vmatmul.mubr.msk.bf16.gmra.mrb[196].mxu1 %vm1679_vm0, %v15517_v20 }
 0xb1f   : > { %9603 = vmatpush3.bf16.xpose.msra.mxu1 %v6366_v33  ;;  %9560 = vmatprep.mubr.msk.bf16.mxu1 %vm1679_vm0, %v15518_v59 }
 0xb20   : > { %10066 = vmatprep.subr.msk.bf16.mxu1 %vm1679_vm0, %v15519_v0 }
 0xb26   : > { %9561 = vmatmul.mubr.msk.bf16.gmra.mrb[200].mxu1 %vm1679_vm0, %v15520_v29 }
 0xb27   : > { %9605 = vmatpush3.bf16.xpose.msra.mxu1 %v6369_v53  ;;  %9564 = vmatprep.mubr.msk.bf16.mxu1 %vm1679_vm0, %v15521_v2 }
 0xb28   : > { %10067 = vmatprep.subr.msk.bf16.mxu1 %vm1679_vm0, %v15522_v57  ;;  %v15526_v57 = vld [vmem:[#allocation99_spill] sm:$0xff] }
 0xb29   : > { %v4149_v40 = vpop.xlane.xlu0 %4148 }
 0xb2a   : > { %v4171_v23 = vsub.f32 %v12931_v10, %v4149_v40  ;;  %v15525_v10 = vld [vmem:[#allocation92_spill] sm:$0xff] }
 0xb2b   : > { %v6375_v0 = vsel %vm1679_vm0, %v15525_v10, 0 }
 0xb2c   : > { %v4196_v5 = vmul.f32 1.442695, %v4171_v23 }
 0xb2d   : > { %v4151_v48 = vpop.xlane.xlu0 %4150 }
 0xb2e   : > { %10659 = vpow2.f32 %v4196_v5  ;;  %v4172_v19 = vsub.f32 %v15475_v45, %v4151_v48  ;;  %9565 = vmatmul.mubr.msk.bf16.gmra.mrb[204].mxu1 %vm1679_vm0, %v15523_v12  ;;  %v4147_v52 = vpop.xlane.xlu1 %4146 }
 0xb2f   : > { %9607 = vmatpush3.bf16.xpose.msra.mxu1 %v6372_v3  ;;  %v4170_v54 = vsub.f32 %v15476_v9, %v4147_v52  ;;  %9616 = vmatprep.mubr.msk.bf16.mxu1 %vm1679_vm0, %v15524_v47 }
 0xb30   : > { %v4198_v46 = vmul.f32 1.442695, %v4172_v19  ;;  %10068 = vmatprep.subr.msk.bf16.mxu1 %vm1679_vm0, %v15525_v10  ;;  %v6378_v19 = vsel %vm1679_vm0, %v15526_v57, 0 }
 0xb31   : > { %v4194_v13 = vmul.f32 1.442695, %v4170_v54  ;;  %v4155_v51 = vpop.xlane.xlu0 %4154 }
 0xb32   : > { %10661 = vpow2.f32 %v4198_v46  ;;  %v4174_v45 = vsub.f32 %v15477_v50, %v4155_v51  ;;  %v4153_v1 = vpop.xlane.xlu1 %4152  ;;  %v15528_v51 = vld [vmem:[#allocation103_spill] sm:$0xff] }
 0xb33   : > { %10663 = vpow2.f32 %v4194_v13  ;;  %v4173_v44 = vsub.f32 %v15478_v16, %v4153_v1 }
 0xb34   : > { %v4202_v20 = vmul.f32 1.442695, %v4174_v45  ;;  %v3769_v45 = vld [vmem:[%s12224_s16] sm:$0xff] }
 0xb35   : > { %v4200_v33 = vmul.f32 1.442695, %v4173_v44  ;;  %v4159_v59 = vpop.xlane.xlu0 %4158 }
 0xb36   : > { %10665 = vpow2.f32 %v4202_v20  ;;  %v4176_v9 = vsub.f32 %v15482_v25, %v4159_v59  ;;  %v4157_v29 = vpop.xlane.xlu1 %4156  ;;  %v15529_v59 = vld [vmem:[#allocation61_spill] sm:$0xff] }
 0xb37   : > { %10667 = vpow2.f32 %v4200_v33  ;;  %9609 = vmatpush3.bf16.xpose.msra.mxu1 %v6375_v0  ;;  %v4175_v53 = vsub.f32 %v15483_v30, %v4157_v29  ;;  %v3770_v33 = vld [vmem:[%s12224_s16 + $0x8] sm:$0xff] }
 0xb38   : > { %v13462_v2 = vpop.eup %10659  ;;  %v4206_v50 = vmul.f32 1.442695, %v4176_v9  ;;  %10069 = vmatprep.subr.msk.bf16.mxu1 %vm1679_vm0, %v15526_v57  ;;  %v3785_v9 = vadd.f32 %v3769_v45, %v15529_v59  ;;  %v6384_v57 = vsel %vm1679_vm0, %v15528_v51, 0  ;;  %v15533_v59 = vld [vmem:[#allocation107_spill] sm:$0xff] }
 0xb39   : > { %v4204_v16 = vmul.f32 1.442695, %v4175_v53  ;;  %v4291_v40 = vpop.permute.xlu0 %4290  ;;  %4228 = vadd.xlane.f32.xlu0 %v13462_v2 }
 0xb3a   : > { %10669 = vpow2.f32 %v4206_v50  ;;  %v4161_v25 = vpop.xlane.xlu1 %4160  ;;  %9440 = vmatprep.subr.bf16.mxu0 %v4291_v40 }
 0xb3b   : > { %10671 = vpow2.f32 %v4204_v16  ;;  %v4177_v23 = vsub.f32 %v15484_v21, %v4161_v25  ;;  %9441 = vmatpush3.bf16.msra.mxu0 %v4291_v40  ;;  %v15527_v21 = vld [vmem:[#allocation98_spill] sm:$0xff]  ;;  %v15530_v40 = vld [vmem:[#allocation29_spill] sm:$0xff] }
 0xb3c   : > { %v13468_v5 = vpop.eup %10661  ;;  %v6381_v10 = vsel %vm1679_vm0, %v15527_v21, 0  ;;  %v3786_v25 = vadd.f32 %v3770_v33, %v15530_v40 }
 0xb3d   : > { %v13470_v30 = vpop.eup %10663  ;;  %v4208_v48 = vmul.f32 1.442695, %v4177_v23  ;;  %4230 = vadd.xlane.f32.xlu0 %v13468_v5  ;;  %v4295_v29 = vpop.permute.xlu0 %4294 }
 0xb3e   : > { %4226 = vadd.xlane.f32.xlu1 %v13470_v30  ;;  %v4211_v12 = vpop.xlane.xlu1 %4210 }
 0xb3f   : > { %10673 = vpow2.f32 %v4208_v48  ;;  %9611 = vmatpush3.bf16.xpose.msra.mxu1 %v6378_v19  ;;  %v3771_v48 = vld [vmem:[%s12224_s16 + $0x10] sm:$0xff] }
 0xb40   : > { %v13476_v3 = vpop.eup %10665  ;;  %10675 = vrcp.f32 %v4211_v12  ;;  %10070 = vmatprep.subr.msk.bf16.mxu1 %vm1679_vm0, %v15527_v21 }
 0xb41   : > { %v13480_v52 = vpop.eup %10667  ;;  %4234 = vadd.xlane.f32.xlu0 %v13476_v3  ;;  %v4297_v21 = vpop.permute.xlu0 %4296 }
 0xb42   : > { %4232 = vadd.xlane.f32.xlu1 %v13480_v52  ;;  %v4213_v54 = vpop.xlane.xlu1 %4212 }
 0xb43   : > { %10677 = vrcp.f32 %v4213_v54  ;;  %v15531_v54 = vld [vmem:[#allocation62_spill] sm:$0xff] }
 0xb44   : > { %v13484_v47 = vpop.eup %10669 }
 0xb45   : > { %v13486_v46 = vpop.eup %10671  ;;  %4238 = vadd.xlane.f32.xlu0 %v13484_v47 }
 0xb46   : > { %4236 = vadd.xlane.f32.xlu1 %v13486_v46  ;;  %v4215_v13 = vpop.xlane.xlu1 %4214 }
 0xb47   : > { %9613 = vmatpush3.bf16.xpose.msra.mxu1 %v6381_v10  ;;  %10679 = vrcp.f32 %v4215_v13  ;;  %v3787_v10 = vadd.f32 %v3771_v48, %v15531_v54  ;;  %v15538_v48 = vld [vmem:[#allocation56_spill] sm:$0xff]  ;;  %v15547_v54 = vld [vmem:[#allocation33_spill] sm:$0xff] }
 0xb48   : > { %10071 = vmatprep.subr.msk.bf16.mxu1 %vm1679_vm0, %v15528_v51 }
 0xb49   : > { %v13495_v1 = vpop.eup %10673 }
 0xb4a   : > { %v10676_v44 = vpop.eup %10675  ;;  %4240 = vadd.xlane.f32.xlu1 %v13495_v1  ;;  %v4217_v20 = vpop.xlane.xlu1 %4216 }
 0xb4b   : > { %10681 = vrcp.f32 %v4217_v20  ;;  %v4258_v0 = vmul.f32 %v10676_v44, %v13305_v61  ;;  %v15532_v44 = vld [vmem:[#allocation63_spill] sm:$0xff] }
 0xb4d   : > { %v10678_v53 = vpop.eup %10677  ;;  %v4596_v50 = vadd.f32 %v4258_v0, %v3785_v9 }
 0xb4e   : > { %v4293_v16 = vpop.permute.xlu1 %4292  ;;  %v4259_v23 = vmul.f32 %v10678_v53, %v13310_v15  ;;  %v3772_v15 = vld [vmem:[%s12224_s16 + $0x18] sm:$0xff] }
 0xb4f   : > { %9615 = vmatpush3.bf16.xpose.msra.mxu1 %v6384_v57  ;;  %9442 = vmatprep.subr.bf16.mxu0 %v4293_v16  ;;  %4612 = vst [vmem:[%s12224_s16] sm:$0xff] %v4596_v50  ;;  %v3788_v20 = vadd.f32 %v3772_v15, %v15532_v44  ;;  %v15535_v50 = vld [vmem:[#allocation46_spill] sm:$0xff]  ;;  %v15555_v57 = vld [vmem:[#allocation67_spill] sm:$0xff] }
 0xb50   : > { %9443 = vmatpush3.bf16.msra.mxu0 %v4293_v16  ;;  %v4274_v61 = vpack.c.bf16 %v4259_v23, %v4258_v0  ;;  %v4597_v19 = vadd.f32 %v4259_v23, %v3786_v25  ;;  %v15536_v25 = vld [vmem:[#allocation52_spill] sm:$0xff]  ;;  %v15537_v23 = vld [vmem:[#allocation50_spill] sm:$0xff] }
 0xb51   : > { %v10680_v12 = vpop.eup %10679  ;;  %9444 = vmatprep.subr.bf16.mxu0 %v4295_v29 }
 0xb52   : > { %v13509_v13 = vmul.f32 %v10680_v12, %v13324_v31  ;;  %9456 = vmatprep.mubr.bf16.mxu0 %v4274_v61  ;;  %4613 = vst [vmem:[%s12224_s16 + $0x8] sm:$0xff] %v4597_v19  ;;  %v4299_v31 = vpop.permute.xlu0 %4298  ;;  %v15539_v61 = vld [vmem:[#allocation54_spill] sm:$0xff]  ;;  %v15542_v19 = vld [vmem:[#allocation28_spill] sm:$0xff]  ;;  %v15543_v12 = vld [vmem:[#allocation27_spill] sm:$0xff] }
 0xb54   : > { %v4598_v51 = vadd.f32 %v13509_v13, %v3787_v10  ;;  %9445 = vmatpush3.bf16.msra.mxu0 %v4295_v29  ;;  %v15548_v10 = vld [vmem:[#allocation40_spill] sm:$0xff] }
 0xb55   : > { %v10682_v45 = vpop.eup %10681  ;;  %9446 = vmatprep.subr.bf16.mxu0 %v4297_v21 }
 0xb56   : > { %4614 = vst [vmem:[%s12224_s16 + $0x10] sm:$0xff] %v4598_v51  ;;  %v13517_v33 = vmul.f32 %v10682_v45, %v13336_v42  ;;  %9617 = vmatmul.mubr.msk.bf16.vlgmr.msra.gmra.mrb[208].mxu1 %vm1679_vm0, %v15533_v59  ;;  %v15534_v42 = vld [vmem:[#allocation48_spill] sm:$0xff]  ;;  %v15550_v51 = vld [vmem:[#allocation30_spill] sm:$0xff]  ;;  %v3773_v59 = vld [vmem:[%s12224_s16 + $0x20] sm:$0xff] }
 0xb57   : > { %9620 = vmatprep.mubr.msk.bf16.mxu1 %vm1679_vm0, %v13357_v26 }
 0xb58   : > { %v4599_v9 = vadd.f32 %v13517_v33, %v3788_v20  ;;  %9447 = vmatpush3.bf16.msra.mxu0 %v4297_v21  ;;  %v4275_v0 = vpack.c.bf16 %v13517_v33, %v13509_v13  ;;  %v15546_v21 = vld [vmem:[#allocation38_spill] sm:$0xff]  ;;  %v15551_v20 = vld [vmem:[#allocation32_spill] sm:$0xff] }
 0xb59   : > { %9448 = vmatprep.subr.bf16.mxu0 %v4299_v31  ;;  %v3778_v13 = vld [vmem:[%s12224_s16 + $0x48] sm:$0xff] }
 0xb5a   : > { %4615 = vst [vmem:[%s12224_s16 + $0x18] sm:$0xff] %v4599_v9  ;;  %v13527_v29 = vpop.f32.mrb[176].mxu1  ;;  %v3774_v9 = vld [vmem:[%s12224_s16 + $0x28] sm:$0xff] }
 0xb5b   : > { %6645 = vrot.lane.b32.xlu1 %v15534_v42, %s11215_s23  ;;  %v13531_v53 = vpop.f32.mrb[177].mxu1  ;;  %6643 = vrot.lane.b32.xlu0 %v15535_v50, %s11215_s23 }
 0xb5c   : > { %9449 = vmatpush3.bf16.msra.mxu0 %v4299_v31  ;;  %v13535_v26 = vpop.f32.mrb[178].mxu1 }
 0xb5d   : > { %v13539_v16 = vpop.f32.mrb[179].mxu1 }
 0xb5e   : > { %9621 = vmatmul.mubr.msk.bf16.gmra.mrb[212].mxu1 %vm1679_vm0, %v13353_v32  ;;  %v15540_v32 = vld [vmem:[#allocation60_spill] sm:$0xff] }
 0xb5f   : > { %9624 = vmatprep.mubr.msk.bf16.mxu1 %vm1679_vm0, %v13355_v38  ;;  %6649 = vrot.lane.b32.xlu1 %v15536_v25, %s11215_s23  ;;  %v15541_v38 = vld [vmem:[#allocation58_spill] sm:$0xff] }
 0xb60   : > { %6647 = vrot.lane.b32.xlu0 %v15537_v23, %s11215_s23 }
 0xb63   : > { %6653 = vrot.lane.b32.xlu1 %v15538_v48, %s11215_s23 }
 0xb64   : > { %6651 = vrot.lane.b32.xlu0 %v15539_v61, %s11215_s23 }
 0xb66   : > { %9625 = vmatmul.mubr.msk.bf16.gmra.mrb[216].mxu1 %vm1679_vm0, %v13359_v36  ;;  %v15544_v36 = vld [vmem:[#allocation35_spill] sm:$0xff] }
 0xb67   : > { %9628 = vmatprep.mubr.msk.bf16.mxu1 %vm1679_vm0, %v13433_v22  ;;  %6657 = vrot.lane.b32.xlu1 %v15540_v32, %s11215_s23  ;;  %v15545_v22 = vld [vmem:[#allocation31_spill] sm:$0xff] }
 0xb68   : > { %6655 = vrot.lane.b32.xlu0 %v15541_v38, %s11215_s23 }
 0xb6b   : > { %7135 = vrot.lane.b32.xlu1 %v15542_v19, %s11216_s3  ;;  %v15552_v19 = vld [vmem:[#allocation64_spill] sm:$0xff] }
 0xb6c   : > { %7133 = vrot.lane.b32.xlu0 %v15543_v12, %s11216_s3  ;;  %v3789_v12 = vadd.f32 %v3773_v59, %v15552_v19  ;;  %v3775_v19 = vld [vmem:[%s12224_s16 + $0x30] sm:$0xff] }
 0xb6e   : > { %9629 = vmatmul.mubr.msk.bf16.gmra.mrb[220].mxu1 %vm1679_vm0, %v13443_v56  ;;  %v15549_v56 = vld [vmem:[#allocation42_spill] sm:$0xff] }
 0xb6f   : > { %7141 = vrot.lane.b32.xlu1 %v15544_v36, %s11216_s3 }
 0xb70   : > { %7137 = vrot.lane.b32.xlu0 %v15545_v22, %s11216_s3 }
 0xb73   : > { %7143 = vrot.lane.b32.xlu1 %v15546_v21, %s11216_s3 }
 0xb74   : > { %7139 = vrot.lane.b32.xlu0 %v15547_v54, %s11216_s3  ;;  %v15553_v54 = vld [vmem:[#allocation65_spill] sm:$0xff] }
 0xb77   : > { %5832 = vrot.lane.b32.xlu1 %v15535_v50, %s11214_s24 }
 0xb78   : > { %7145 = vrot.lane.b32.xlu0 %v15548_v10, %s11216_s3  ;;  %v3790_v10 = vadd.f32 %v3774_v9, %v15553_v54 }
 0xb7c   : > { %7147 = vrot.lane.b32.xlu0 %v15549_v56, %s11216_s3 }
 0xb7f   : > { %v4219_v15 = vpop.xlane.xlu1 %4218 }
 0xb80   : > { %10683 = vrcp.f32 %v4219_v15  ;;  %7109 = vrot.lane.b32.xlu0 %v15550_v51, %s11216_s3 }
 0xb81   : > { %v4221_v45 = vpop.xlane.xlu0 %4220 }
 0xb82   : > { %10685 = vrcp.f32 %v4221_v45 }
 0xb83   : > { %v4301_v44 = vpop.permute.xlu1 %4300 }
 0xb84   : > { %7111 = vrot.lane.b32.xlu0 %v15551_v20, %s11216_s3  ;;  %9450 = vmatprep.subr.bf16.mxu0 %v4301_v44 }
 0xb85   : > { %9451 = vmatpush3.bf16.msra.mxu0 %v4301_v44 }
 0xb8a   : > { %v10684_v31 = vpop.eup %10683 }
 0xb8b   : > { %v4262_v36 = vmul.f32 %v10684_v31, %v13363_v39 }
 0xb8c   : > { %v10686_v22 = vpop.eup %10685 }
 0xb8d   : > { %v4223_v21 = vpop.xlane.xlu0 %4222  ;;  %v4263_v56 = vmul.f32 %v10686_v22, %v13367_v43  ;;  %v4600_v15 = vadd.f32 %v4262_v36, %v3789_v12  ;;  %v4305_v12 = vpop.permute.xlu1 %4304 }
 0xb8e   : > { %10687 = vrcp.f32 %v4223_v21  ;;  %v15554_v21 = vld [vmem:[#allocation66_spill] sm:$0xff] }
 0xb8f   : > { %v13593_v51 = vpop.f32.mrb[180].mxu1  ;;  %v4601_v45 = vadd.f32 %v4263_v56, %v3790_v10  ;;  %4616 = vst [vmem:[%s12224_s16 + $0x20] sm:$0xff] %v4600_v15  ;;  %v3791_v54 = vadd.f32 %v3775_v19, %v15554_v21  ;;  %v3776_v15 = vld [vmem:[%s12224_s16 + $0x38] sm:$0xff]  ;;  %v4276_v39 = vpack.c.bf16 %v4263_v56, %v4262_v36  ;;  %v15556_v56 = vld [vmem:[#allocation69_spill] sm:$0xff] }
 0xb90   : > { %v13596_v44 = vpop.f32.mrb[181].mxu1  ;;  %v3792_v43 = vadd.f32 %v3776_v15, %v15555_v57  ;;  %v3777_v21 = vld [vmem:[%s12224_s16 + $0x40] sm:$0xff] }
 0xb91   : > { %v13598_v20 = vpop.f32.mrb[182].mxu1  ;;  %v4225_v59 = vpop.xlane.xlu0 %4224  ;;  %4617 = vst [vmem:[%s12224_s16 + $0x28] sm:$0xff] %v4601_v45 }
 0xb92   : > { %10689 = vrcp.f32 %v4225_v59  ;;  %v13603_v31 = vpop.f32.mrb[183].mxu1 }
 0xb95   : > { %v4303_v9 = vpop.permute.xlu0 %4302 }
 0xb96   : > { %9452 = vmatprep.subr.bf16.mxu0 %v4303_v9 }
 0xb97   : > { %9453 = vmatpush3.bf16.msra.mxu0 %v4303_v9 }
 0xb98   : > { %v10688_v22 = vpop.eup %10687  ;;  %9454 = vmatprep.subr.bf16.mxu0 %v4305_v12 }
 0xb99   : > { %v4264_v10 = vmul.f32 %v10688_v22, %v13371_v8  ;;  %v3779_v22 = vld [vmem:[%s12224_s16 + $0x50] sm:$0xff] }
 0xb9b   : > { %9455 = vmatpush3.bf16.msra.mxu0 %v4305_v12  ;;  %v4602_v45 = vadd.f32 %v4264_v10, %v3791_v54 }
 0xb9c   : > { %v10690_v59 = vpop.eup %10689 }
 0xb9d   : > { %v4265_v40 = vmul.f32 %v10690_v59, %v13386_v37  ;;  %4618 = vst [vmem:[%s12224_s16 + $0x30] sm:$0xff] %v4602_v45  ;;  %v15557_v59 = vld [vmem:[#allocation70_spill] sm:$0xff] }
 0xb9e   : > { %9457 = vmatmul.mubr.bf16.vlgmr.msra.gmra.mrb[112].mxu0 %v4275_v0 }
 0xb9f   : > { %9460 = vmatprep.mubr.bf16.mxu0 %v4276_v39  ;;  %v4603_v9 = vadd.f32 %v4265_v40, %v3792_v43  ;;  %v4277_v19 = vpack.c.bf16 %v4265_v40, %v4264_v10  ;;  %v3794_v39 = vadd.f32 %v3778_v13, %v15556_v56 }
 0xba1   : > { %4619 = vst [vmem:[%s12224_s16 + $0x38] sm:$0xff] %v4603_v9  ;;  %v3795_v9 = vadd.f32 %v3779_v22, %v15557_v59  ;;  %v15559_v22 = vld [vmem:[#allocation72_spill] sm:$0xff]  ;;  %v3783_v59 = vld [vmem:[%s12224_s16 + $0x70] sm:$0xff] }
 0xba6   : > { %9461 = vmatmul.mubr.bf16.gmra.mrb[116].mxu0 %v4277_v19 }
 0xbc6   : > { %v4229_v8 = vpop.xlane.xlu0 %4228 }
 0xbc7   : > { %10691 = vrcp.f32 %v4229_v8 }
 0xbca   : > { %v4231_v12 = vpop.xlane.xlu0 %4230 }
 0xbcb   : > { %10693 = vrcp.f32 %v4231_v12  ;;  %v4227_v57 = vpop.xlane.xlu1 %4226 }
 0xbcc   : > { %10695 = vrcp.f32 %v4227_v57 }
 0xbce   : > { %v4235_v37 = vpop.xlane.xlu0 %4234 }
 0xbcf   : > { %10697 = vrcp.f32 %v4235_v37  ;;  %v4233_v36 = vpop.xlane.xlu1 %4232  ;;  %v3781_v37 = vld [vmem:[%s12224_s16 + $0x60] sm:$0xff] }
 0xbd0   : > { %10699 = vrcp.f32 %v4233_v36  ;;  %v3780_v36 = vld [vmem:[%s12224_s16 + $0x58] sm:$0xff] }
 0xbd1   : > { %v10692_v33 = vpop.eup %10691 }
 0xbd2   : > { %v4239_v0 = vpop.xlane.xlu0 %4238  ;;  %v4267_v40 = vmul.f32 %v10692_v33, %v13462_v2  ;;  %v15558_v2 = vld [vmem:[#allocation68_spill] sm:$0xff] }
 0xbd3   : > { %10701 = vrcp.f32 %v4239_v0  ;;  %v4237_v43 = vpop.xlane.xlu1 %4236  ;;  %v3793_v12 = vadd.f32 %v3777_v21, %v15558_v2  ;;  %v3797_v21 = vadd.f32 %v3781_v37, %v15559_v22  ;;  %v3782_v2 = vld [vmem:[%s12224_s16 + $0x68] sm:$0xff] }
 0xbd4   : > { %10703 = vrcp.f32 %v4237_v43  ;;  %v4605_v54 = vadd.f32 %v4267_v40, %v3794_v39 }
 0xbd5   : > { %v10694_v10 = vpop.eup %10693 }
 0xbd6   : > { %v10696_v15 = vpop.eup %10695  ;;  %v6644_v45 = vpop.permute.xlu0 %6643  ;;  %4621 = vst [vmem:[%s12224_s16 + $0x48] sm:$0xff] %v4605_v54  ;;  %v4268_v19 = vmul.f32 %v10694_v10, %v13468_v5 }
 0xbd7   : > { %v4241_v8 = vpop.xlane.xlu1 %4240  ;;  %9632 = vmatprep.subr.bf16.mxu1 %v6644_v45  ;;  %v4266_v57 = vmul.f32 %v10696_v15, %v13470_v30  ;;  %v15560_v15 = vld [vmem:[#allocation37_spill] sm:$0xff] }
 0xbd8   : > { %10705 = vrcp.f32 %v4241_v8  ;;  %9633 = vmatpush3.bf16.msra.mxu1 %v6644_v45  ;;  %v4606_v13 = vadd.f32 %v4268_v19, %v3795_v9  ;;  %v3796_v45 = vadd.f32 %v3780_v36, %v15560_v15  ;;  %v3784_v15 = vld [vmem:[%s12224_s16 + $0x78] sm:$0xff] }
 0xbd9   : > { %v10698_v33 = vpop.eup %10697  ;;  %v13630_v0 = vpop.f32.mrb[184].mxu1  ;;  %v4278_v56 = vpack.c.bf16 %v4267_v40, %v4266_v57  ;;  %v4604_v39 = vadd.f32 %v4266_v57, %v3793_v12 }
 0xbda   : > { %v10700_v5 = vpop.eup %10699  ;;  %v13632_v43 = vpop.f32.mrb[185].mxu1  ;;  %4622 = vst [vmem:[%s12224_s16 + $0x50] sm:$0xff] %v4606_v13  ;;  %v4270_v30 = vmul.f32 %v10698_v33, %v13476_v3  ;;  %v15561_v33 = vld [vmem:[#allocation74_spill] sm:$0xff] }
 0xbdb   : > { %9464 = vmatprep.mubr.bf16.mxu0 %v4278_v56  ;;  %4620 = vst [vmem:[%s12224_s16 + $0x40] sm:$0xff] %v4604_v39  ;;  %v13638_v54 = vpop.f32.mrb[186].mxu1  ;;  %v6646_v10 = vpop.permute.xlu1 %6645  ;;  %v4269_v40 = vmul.f32 %v10700_v5, %v13480_v52  ;;  %v3799_v56 = vadd.f32 %v3783_v59, %v15561_v33  ;;  %v15562_v5 = vld [vmem:[#allocation73_spill] sm:$0xff] }
 0xbdc   : > { %v13645_v8 = vpop.f32.mrb[187].mxu1  ;;  %9634 = vmatprep.subr.bf16.mxu1 %v6646_v10  ;;  %v4608_v3 = vadd.f32 %v4270_v30, %v3797_v21  ;;  %v6648_v57 = vpop.permute.xlu0 %6647  ;;  %v3798_v22 = vadd.f32 %v3782_v2, %v15562_v5  ;;  %v15563_v2 = vld [vmem:[#allocation71_spill] sm:$0xff] }
 0xbdd   : > { %v10702_v12 = vpop.eup %10701  ;;  %9635 = vmatpush3.bf16.msra.mxu1 %v6646_v10  ;;  %v4279_v36 = vpack.c.bf16 %v4269_v40, %v4268_v19  ;;  %v4607_v13 = vadd.f32 %v4269_v40, %v3796_v45 }
 0xbde   : > { %v10704_v52 = vpop.eup %10703  ;;  %9636 = vmatprep.subr.bf16.mxu1 %v6648_v57  ;;  %4624 = vst [vmem:[%s12224_s16 + $0x60] sm:$0xff] %v4608_v3  ;;  %v4272_v39 = vmul.f32 %v10702_v12, %v13484_v47 }
 0xbdf   : > { %9465 = vmatmul.mubr.bf16.gmra.mrb[120].mxu0 %v4279_v36  ;;  %4623 = vst [vmem:[%s12224_s16 + $0x58] sm:$0xff] %v4607_v13  ;;  %v4271_v21 = vmul.f32 %v10704_v52, %v13486_v46  ;;  %v6650_v10 = vpop.permute.xlu1 %6649  ;;  %v3800_v46 = vadd.f32 %v3784_v15, %v15563_v2  ;;  %v10357_v15 = vld [vmem:[#allocation13 + $0x60] ss:$8 sps:$4 sm:$0xff]  }
 0xbe0   : > { %v4610_v9 = vadd.f32 %v4272_v39, %v3799_v56 }
 0xbe1   : > { %v13657_v19 = vpop.f32.mrb[188].mxu1  ;;  %9637 = vmatpush3.bf16.msra.mxu1 %v6648_v57  ;;  %v4280_v45 = vpack.c.bf16 %v4271_v21, %v4270_v30  ;;  %v4609_v40 = vadd.f32 %v4271_v21, %v3798_v22  ;;  %v6652_v30 = vpop.permute.xlu0 %6651  ;;  %v10359_v21 = vld [vmem:[#allocation13 + $0x64] ss:$8 sps:$4 sm:$0xff]  }
 0xbe2   : > { %v10706_v3 = vpop.eup %10705  ;;  %v13659_v59 = vpop.f32.mrb[189].mxu1  ;;  %9638 = vmatprep.subr.bf16.mxu1 %v6650_v10  ;;  %4626 = vst [vmem:[%s12224_s16 + $0x70] sm:$0xff] %v4610_v9  ;;  %4467 = vmatprep.subr.bf16.mxu0 %v10359_v21 }
 0xbe3   : > { %9468 = vmatprep.mubr.bf16.mxu0 %v4280_v45  ;;  %4625 = vst [vmem:[%s12224_s16 + $0x68] sm:$0xff] %v4609_v40  ;;  %v13663_v47 = vpop.f32.mrb[190].mxu1  ;;  %v4273_v12 = vmul.f32 %v10706_v3, %v13495_v1  ;;  %v6654_v33 = vpop.permute.xlu1 %6653  ;;  %4468 = vmatpush1.bf16.msra.mxu0 %v10357_v15  ;;  %v10362_v3 = vld [vmem:[#allocation13 + $0x74] ss:$8 sps:$4 sm:$0xff]  }
 0xbe4   : > { %v13669_v57 = vpop.f32.mrb[191].mxu1  ;;  %4469 = vmatprep.subr.bf16.mxu0 %v10362_v3 }
 0xbe5   : > { %9639 = vmatpush3.bf16.msra.mxu1 %v6650_v10  ;;  %v4281_v52 = vpack.c.bf16 %v4273_v12, %v4272_v39  ;;  %v4611_v9 = vadd.f32 %v4273_v12, %v3800_v46  ;;  %v6656_v39 = vpop.permute.xlu0 %6655  ;;  %v10360_v46 = vld [vmem:[#allocation13 + $0x70] ss:$8 sps:$4 sm:$0xff]  }
 0xbe6   : > { %9640 = vmatprep.subr.bf16.mxu1 %v6652_v30 }
 0xbe7   : > { %9469 = vmatmul.mubr.bf16.gmra.mrb[124].mxu0 %v4281_v52  ;;  %4627 = vst [vmem:[%s12224_s16 + $0x78] sm:$0xff] %v4611_v9  ;;  %v6658_v10 = vpop.permute.xlu1 %6657  ;;  %v10365_v52 = vld [vmem:[#allocation13 + $0x84] ss:$8 sps:$4 sm:$0xff]  }
 0xbe8   : > { %4499 = vmatprep.mubr.bf16.mxu0 %v15442_v55  ;;  %4470 = vmatpush1.bf16.msra.mxu0 %v10360_v46 }
 0xbe9   : > { %v13675_v56 = vpop.f32.mrb[192].mxu1  ;;  %9641 = vmatpush3.bf16.msra.mxu1 %v6652_v30  ;;  %v13696_v30 = vpop.permute.xlu0 %7133  ;;  %5198 = vmatprep.subr.bf16.mxu0 %v10365_v52  ;;  %v15572_v52 = vld [vmem:[#allocation36_spill] sm:$0xff] }
 0xbea   : > { %5676 = vmax.xlane.f32.xlu0 %v13675_v56  ;;  %v13678_v1 = vpop.f32.mrb[193].mxu1  ;;  %9642 = vmatprep.subr.bf16.mxu1 %v6654_v33  ;;  %15564 = vst [vmem:[#allocation106_spill] sm:$0xff] %v13696_v30 }
 0xbeb   : > { %v13680_v5 = vpop.f32.mrb[194].mxu1 }
 0xbec   : > { %v13682_v22 = vpop.f32.mrb[195].mxu1 }
 0xbed   : > { %5674 = vmax.xlane.f32.xlu1 %v13682_v22  ;;  %9643 = vmatpush3.bf16.msra.mxu1 %v6654_v33  ;;  %v13773_v11 = vpop.permute.xlu0 %7137 }
 0xbee   : > { %5672 = vmax.xlane.f32.xlu0 %v13678_v1  ;;  %9644 = vmatprep.subr.bf16.mxu1 %v6656_v39  ;;  %15574 = vst [vmem:[#allocation47_spill] sm:$0xff] %v13773_v11 }
 0xbf1   : > { %v13686_v45 = vpop.f32.mrb[196].mxu1  ;;  %9645 = vmatpush3.bf16.msra.mxu1 %v6656_v39 }
 0xbf2   : > { %5678 = vmax.xlane.f32.xlu0 %v13680_v5  ;;  %v13689_v40 = vpop.f32.mrb[197].mxu1  ;;  %9646 = vmatprep.subr.bf16.mxu1 %v6658_v10 }
 0xbf3   : > { %v13691_v2 = vpop.f32.mrb[198].mxu1  ;;  %5680 = vmax.xlane.f32.xlu1 %v13689_v40 }
 0xbf4   : > { %v13694_v12 = vpop.f32.mrb[199].mxu1 }
 0xbf5   : > { %9647 = vmatpush3.bf16.msra.mxu1 %v6658_v10 }
 0xbf6   : > { %5684 = vmax.xlane.f32.xlu0 %v13686_v45  ;;  %10072 = vmatprep.subr.msk.bf16.mxu1 %vm1679_vm0, %v13696_v30 }
 0xbf7   : > { %5686 = vmax.xlane.f32.xlu1 %v13691_v2 }
 0xbf9   : > { %v13702_v9 = vpop.f32.mrb[200].mxu1 }
 0xbfa   : > { %15565 = vst [vmem:[#allocation105_spill] sm:$0xff] %v13702_v9  ;;  %v13704_v33 = vpop.f32.mrb[201].mxu1 }
 0xbfb   : > { %v13706_v39 = vpop.f32.mrb[202].mxu1  ;;  %5682 = vmax.xlane.f32.xlu1 %v13694_v12 }
 0xbfc   : > { %15566 = vst [vmem:[#allocation89_spill] sm:$0xff] %v13706_v39  ;;  %5694 = vmax.xlane.f32.xlu0 %v13706_v39  ;;  %v13710_v21 = vpop.f32.mrb[203].mxu1 }
 0xbfd   : > { %15567 = vst [vmem:[#allocation45_spill] sm:$0xff] %v13710_v21 }
 0xbff   : > { %5692 = vmax.xlane.f32.xlu1 %v13702_v9  ;;  %v10368_v9 = vld [vmem:[#allocation13 + $0x94] ss:$8 sps:$4 sm:$0xff]  }
 0xc01   : > { %v13713_v15 = vpop.f32.mrb[204].mxu1 }
 0xc02   : > { %15568 = vst [vmem:[#allocation91_spill] sm:$0xff] %v13713_v15  ;;  %5700 = vmax.xlane.f32.xlu0 %v13713_v15  ;;  %v13716_v10 = vpop.f32.mrb[205].mxu1 }
 0xc03   : > { %15569 = vst [vmem:[#allocation49_spill] sm:$0xff] %v13716_v10  ;;  %v13718_v3 = vpop.f32.mrb[206].mxu1  ;;  %5688 = vmax.xlane.f32.xlu1 %v13704_v33 }
 0xc04   : > { %15570 = vst [vmem:[#allocation51_spill] sm:$0xff] %v13718_v3  ;;  %v13721_v46 = vpop.f32.mrb[207].mxu1 }
 0xc05   : > { %15571 = vst [vmem:[#allocation53_spill] sm:$0xff] %v13721_v46 }
 0xc06   : > { %5696 = vmax.xlane.f32.xlu0 %v13716_v10 }
 0xc07   : > { %5690 = vmax.xlane.f32.xlu1 %v13710_v21 }
 0xc0a   : > { %5698 = vmax.xlane.f32.xlu0 %v13721_v46 }
 0xc0b   : > { %5702 = vmax.xlane.f32.xlu1 %v13718_v3  ;;  %v13787_v3 = vpop.permute.xlu1 %7135 }
 0xc0c   : > { %15578 = vst [vmem:[#allocation88_spill] sm:$0xff] %v13787_v3 }
 0xc1c   : > { %7115 = vrot.lane.b32.xlu1 %v15572_v52, %s11216_s3 }
 0xc20   : > { %5834 = vrot.lane.b32.xlu1 %v15534_v42, %s11214_s24  ;;  %v13776_v42 = vpop.permute.xlu0 %7139 }
 0xc21   : > { %15575 = vst [vmem:[#allocation55_spill] sm:$0xff] %v13776_v42  ;;  %v13793_v42 = vpop.permute.xlu1 %7141 }
 0xc22   : > { %15580 = vst [vmem:[#allocation93_spill] sm:$0xff] %v13793_v42 }
 0xc24   : > { %5836 = vrot.lane.b32.xlu1 %v15537_v23, %s11214_s24 }
 0xc29   : > { %v13733_v36 = vpop.f32.mrb[208].mxu1 }
 0xc2a   : > { %6487 = vmax.xlane.f32.xlu0 %v13733_v36  ;;  %v13736_v13 = vpop.f32.mrb[209].mxu1 }
 0xc2b   : > { %v13738_v37 = vpop.f32.mrb[210].mxu1 }
 0xc2c   : > { %v13740_v60 = vpop.f32.mrb[211].mxu1 }
 0xc2e   : > { %6483 = vmax.xlane.f32.xlu0 %v13736_v13 }
 0xc31   : > { %v13743_v14 = vpop.f32.mrb[212].mxu1 }
 0xc32   : > { %v13745_v52 = vpop.f32.mrb[213].mxu1 }
 0xc33   : > { %v13747_v18 = vpop.f32.mrb[214].mxu1 }
 0xc34   : > { %v13749_v35 = vpop.f32.mrb[215].mxu1 }
 0xc39   : > { %v13751_v4 = vpop.f32.mrb[216].mxu1 }
 0xc3a   : > { %v13753_v6 = vpop.f32.mrb[217].mxu1 }
 0xc3b   : > { %v13755_v28 = vpop.f32.mrb[218].mxu1 }
 0xc3c   : > { %v13757_v24 = vpop.f32.mrb[219].mxu1 }
 0xc41   : > { %v13759_v17 = vpop.f32.mrb[220].mxu1 }
 0xc42   : > { %v13761_v58 = vpop.f32.mrb[221].mxu1 }
 0xc43   : > { %v13763_v23 = vpop.f32.mrb[222].mxu1 }
 0xc44   : > { %7113 = vrot.lane.b32.xlu0 %v15573_v63, %s11216_s3  ;;  %v13767_v50 = vpop.f32.mrb[223].mxu1  ;;  %v13780_v63 = vpop.permute.xlu0 %7145 }
 0xc45   : > { %15576 = vst [vmem:[#allocation59_spill] sm:$0xff] %v13780_v63 }
 0xc48   : > { %6489 = vmax.xlane.f32.xlu1 %v13738_v37  ;;  %v13784_v46 = vpop.permute.xlu0 %7147 }
 0xc49   : > { %15577 = vst [vmem:[#allocation87_spill] sm:$0xff] %v13784_v46 }
 0xc4c   : > { %6485 = vmax.xlane.f32.xlu1 %v13740_v60  ;;  %v13790_v11 = vpop.permute.xlu0 %7109 }
 0xc4d   : > { %15579 = vst [vmem:[#allocation97_spill] sm:$0xff] %v13790_v11  ;;  %v13800_v11 = vpop.permute.xlu1 %7143 }
 0xc4e   : > { %15582 = vst [vmem:[#allocation94_spill] sm:$0xff] %v13800_v11 }
 0xc50   : > { %6497 = vmax.xlane.f32.xlu1 %v13747_v18  ;;  %v13795_v30 = vpop.permute.xlu0 %7111 }
 0xc51   : > { %15581 = vst [vmem:[#allocation57_spill] sm:$0xff] %v13795_v30  ;;  %v10366_v30 = vld [vmem:[#allocation13 + $0x90] ss:$8 sps:$4 sm:$0xff]   ;;  %v13805_v7 = vpop.permute.xlu1 %5832 }
 0xc54   : > { %6493 = vmax.xlane.f32.xlu1 %v13749_v35 }
 0xc58   : > { %6505 = vmax.xlane.f32.xlu1 %v13755_v28 }
 0xc5c   : > { %6501 = vmax.xlane.f32.xlu1 %v13757_v24 }
 0xc60   : > { %6513 = vmax.xlane.f32.xlu1 %v13763_v23 }
 0xc63   : > { %6495 = vmax.xlane.f32.xlu0 %v13743_v14 }
 0xc64   : > { %6509 = vmax.xlane.f32.xlu1 %v13767_v50 }
 0xc67   : > { %6491 = vmax.xlane.f32.xlu0 %v13745_v52 }
 0xc6b   : > { %6503 = vmax.xlane.f32.xlu0 %v13751_v4 }
 0xc6f   : > { %6499 = vmax.xlane.f32.xlu0 %v13753_v6 }
 0xc71   : > { %v9458_v62 = vpop.f32.mrb[112].mxu0 }
 0xc72   : > { %v4348_v63 = vpop.f32.mrb[113].mxu0 }
 0xc73   : > { %6511 = vmax.xlane.f32.xlu0 %v13759_v17  ;;  %v9459_v15 = vpop.f32.mrb[114].mxu0 }
 0xc74   : > { %v4412_v46 = vpack.c.bf16 %v9459_v15, %v9458_v62  ;;  %v4351_v10 = vpop.f32.mrb[115].mxu0 }
 0xc75   : > { %5838 = vrot.lane.b32.xlu1 %v15536_v25, %s11214_s24  ;;  %v4411_v3 = vpack.c.bf16 %v4351_v10, %v4348_v63 }
 0xc77   : > { %6507 = vmax.xlane.f32.xlu0 %v13761_v58  ;;  %v5677_v42 = vpop.xlane.xlu0 %5676  ;;  %8857 = vmatmul.mubr.msk.bf16.vlgmr.msra.gmra.mrb[80].mxu0 %vm1679_vm0, %v4411_v3 }
 0xc78   : > { %5199 = vmatpush1.bf16.msra.mxu0 %v10363_v41  ;;  %4509 = vmatprep.mubr.bf16.mxu0 %v15442_v55  ;;  %v5706_v27 = vsub.f32 %v13675_v56, %v5677_v42 }
 0xc79   : > { %v9462_v34 = vpop.f32.mrb[116].mxu0  ;;  %5200 = vmatprep.subr.bf16.mxu0 %v10368_v9 }
 0xc7a   : > { %v4364_v62 = vpop.f32.mrb[117].mxu0 }
 0xc7b   : > { %v5673_v15 = vpop.xlane.xlu0 %5672  ;;  %v9463_v49 = vpop.f32.mrb[118].mxu0 }
 0xc7c   : > { %v5704_v10 = vsub.f32 %v13678_v1, %v5673_v15  ;;  %v4414_v63 = vpack.c.bf16 %v9463_v49, %v9462_v34  ;;  %5201 = vmatpush1.bf16.msra.mxu0 %v10366_v30  ;;  %v4367_v25 = vpop.f32.mrb[119].mxu0  ;;  %v5675_v1 = vpop.xlane.xlu1 %5674  ;;  %v5724_v34 = vmul.f32 1.442695, %v5706_v27 }
 0xc7d   : > { %v4413_v11 = vpack.c.bf16 %v4367_v25, %v4364_v62  ;;  %9568 = vmatprep.subr.bf16.mxu0 %v13805_v7  ;;  %v5705_v25 = vsub.f32 %v13682_v22, %v5675_v1 }
 0xc7e   : > { %v5720_v3 = vmul.f32 1.442695, %v5704_v10 }
 0xc7f   : > { %v5679_v41 = vpop.xlane.xlu0 %5678  ;;  %8858 = vmatmul.mubr.msk.bf16.gmra.mrb[84].mxu0 %vm1679_vm0, %v4412_v46 }
 0xc80   : > { %10707 = vpow2.f32 %v5720_v3  ;;  %v5707_v9 = vsub.f32 %v13680_v5, %v5679_v41  ;;  %4519 = vmatprep.mubr.bf16.mxu0 %v15442_v55  ;;  %v5722_v5 = vmul.f32 1.442695, %v5705_v25  ;;  %v5681_v27 = vpop.xlane.xlu1 %5680 }
 0xc82   : > { %v5726_v39 = vmul.f32 1.442695, %v5707_v9 }
 0xc83   : > { %v13830_v56 = vpop.xlane.xlu0 %5684 }
 0xc84   : > { %10709 = vpow2.f32 %v5726_v39  ;;  %v13832_v22 = vpop.xlane.xlu1 %5686 }
 0xc85   : > { %10711 = vpow2.f32 %v5724_v34 }
 0xc86   : > { %10713 = vpow2.f32 %v5722_v5 }
 0xc87   : > { %8859 = vmatmul.mubr.msk.bf16.gmra.mrb[88].mxu0 %vm1679_vm0, %v4413_v11 }
 0xc88   : > { %4529 = vmatprep.mubr.bf16.mxu0 %v15442_v55  ;;  %v13836_v46 = vpop.xlane.xlu1 %5682 }
 0xc89   : > { %v13834_v39 = vpop.xlane.xlu0 %5694 }
 0xc8a   : > { %v13815_v49 = vpop.eup %10707  ;;  %15585 = vst [vmem:[#allocation101_spill] sm:$0xff] %v13834_v39 }
 0xc8b   : > { %5752 = vadd.xlane.f32.xlu0 %v13815_v49 }
 0xc8c   : > { %v13840_v15 = vpop.xlane.xlu1 %5692 }
 0xc8d   : > { %15587 = vst [vmem:[#allocation95_spill] sm:$0xff] %v13840_v15 }
 0xc8e   : > { %v13819_v30 = vpop.eup %10709 }
 0xc8f   : > { %15583 = vst [vmem:[#allocation96_spill] sm:$0xff] %v13819_v30  ;;  %5758 = vadd.xlane.f32.xlu0 %v13819_v30  ;;  %8860 = vmatmul.mubr.msk.bf16.gmra.mrb[92].mxu0 %vm1679_vm0, %v4414_v63  ;;  %v13824_v11 = vpop.eup %10711  ;;  %v13838_v62 = vpop.xlane.xlu0 %5700 }
 0xc90   : > { %4539 = vmatprep.mubr.bf16.mxu0 %v15442_v55  ;;  %15584 = vst [vmem:[#allocation90_spill] sm:$0xff] %v13824_v11  ;;  %v13827_v42 = vpop.eup %10713  ;;  %15586 = vst [vmem:[#allocation102_spill] sm:$0xff] %v13838_v62  ;;  %v13844_v63 = vpop.xlane.xlu1 %5688 }
 0xc93   : > { %v13842_v10 = vpop.xlane.xlu0 %5696 }
 0xc94   : > { %15588 = vst [vmem:[#allocation100_spill] sm:$0xff] %v13842_v10  ;;  %v13850_v62 = vpop.xlane.xlu1 %5690 }
 0xc97   : > { %v13846_v41 = vpop.xlane.xlu0 %5698 }
 0xc98   : > { %15589 = vst [vmem:[#allocation104_spill] sm:$0xff] %v13846_v41  ;;  %v13854_v38 = vpop.xlane.xlu1 %5702 }
 0xc99   : > { %5756 = vadd.xlane.f32.xlu1 %v13824_v11 }
 0xc9d   : > { %5754 = vadd.xlane.f32.xlu1 %v13827_v42 }
 0xcb2   : > { %v9466_v3 = vpop.f32.mrb[120].mxu0 }
 0xcb3   : > { %v4380_v9 = vpop.f32.mrb[121].mxu0 }
 0xcb4   : > { %v9467_v1 = vpop.f32.mrb[122].mxu0 }
 0xcb5   : > { %v4416_v34 = vpack.c.bf16 %v9467_v1, %v9466_v3  ;;  %v4383_v25 = vpop.f32.mrb[123].mxu0 }
 0xcb6   : > { %v4415_v5 = vpack.c.bf16 %v4383_v25, %v4380_v9 }
 0xcb7   : > { %v6488_v30 = vpop.xlane.xlu0 %6487 }
 0xcb8   : > { %v6517_v39 = vsub.f32 %v13733_v36, %v6488_v30  ;;  %8861 = vmatmul.mubr.msk.bf16.gmra.mrb[96].mxu0 %vm1679_vm0, %v4415_v5  ;;  %v13858_v36 = vpop.permute.xlu1 %7115 }
 0xcb9   : > { %4549 = vmatprep.mubr.bf16.mxu0 %v15442_v55 }
 0xcba   : > { %v6535_v10 = vmul.f32 1.442695, %v6517_v39  ;;  %v9470_v15 = vpop.f32.mrb[124].mxu0 }
 0xcbb   : > { %v6484_v11 = vpop.xlane.xlu0 %6483  ;;  %v4396_v21 = vpop.f32.mrb[125].mxu0 }
 0xcbc   : > { %10715 = vpow2.f32 %v6535_v10  ;;  %v6515_v41 = vsub.f32 %v13736_v13, %v6484_v11  ;;  %v9471_v32 = vpop.f32.mrb[126].mxu0  ;;  %v5835_v13 = vpop.permute.xlu1 %5834  ;;  %v5708_v11 = vsub.f32 %v13689_v40, %v5681_v27  ;;  %v15591_v27 = vpack.c.bf16 %v13535_v26, %v13527_v29 }
 0xcbd   : > { %v4418_v3 = vpack.c.bf16 %v9471_v32, %v9470_v15  ;;  %v4399_v1 = vpop.f32.mrb[127].mxu0  ;;  %v15592_v29 = vpack.c.bf16 %v13603_v31, %v13596_v44  ;;  %v15593_v44 = vpack.c.bf16 %v13598_v20, %v13593_v51 }
 0xcbe   : > { %v6531_v9 = vmul.f32 1.442695, %v6515_v41  ;;  %v4417_v25 = vpack.c.bf16 %v4399_v1, %v4396_v21  ;;  %v15590_v41 = vpack.c.bf16 %v13539_v16, %v13531_v53 }
 0xcc0   : > { %10717 = vpow2.f32 %v6531_v9  ;;  %8862 = vmatmul.mubr.msk.bf16.gmra.mrb[100].mxu0 %vm1679_vm0, %v4416_v34  ;;  %v5837_v21 = vpop.permute.xlu1 %5836  ;;  %v5728_v34 = vmul.f32 1.442695, %v5708_v11 }
 0xcc1   : > { %4559 = vmatprep.mubr.bf16.mxu0 %v15442_v55 }
 0xcc6   : > { %v13860_v30 = vpop.eup %10715 }
 0xcc7   : > { %6567 = vadd.xlane.f32.xlu1 %v13860_v30 }
 0xcc8   : > { %8863 = vmatmul.mubr.msk.bf16.gmra.mrb[104].mxu0 %vm1679_vm0, %v4417_v25 }
 0xcc9   : > { %4569 = vmatprep.mubr.bf16.mxu0 %v15442_v55 }
 0xcca   : > { %v13865_v32 = vpop.eup %10717 }
 0xccb   : > { %6563 = vadd.xlane.f32.xlu1 %v13865_v32 }
 0xcd0   : > { %8864 = vmatmul.mubr.msk.bf16.gmra.mrb[108].mxu0 %vm1679_vm0, %v4418_v3 }
 0xcd1   : > { %5230 = vmatprep.mubr.bf16.mxu0 %v15442_v55 }
 0xcd5   : > { %v6490_v39 = vpop.xlane.xlu1 %6489 }
 0xcd6   : > { %v6518_v15 = vsub.f32 %v13738_v37, %v6490_v39 }
 0xcd8   : > { %v6537_v10 = vmul.f32 1.442695, %v6518_v15  ;;  %8877 = vmatmul.mubr.msk.bf16.vlgmr.msra.gmra.mrb[80].mxu0 %vm1679_vm0, %v15590_v41  ;;  %v15594_v41 = vpack.c.bf16 %v13645_v8, %v13632_v43  ;;  %v15595_v43 = vpack.c.bf16 %v13638_v54, %v13630_v0  ;;  %v15596_v0 = vpack.c.bf16 %v13669_v57, %v13659_v59 }
 0xcd9   : > { %9569 = vmatpush3.bf16.msra.mxu0 %v13805_v7  ;;  %v6486_v5 = vpop.xlane.xlu1 %6485  ;;  %5240 = vmatprep.mubr.bf16.mxu0 %v15442_v55 }
 0xcda   : > { %10719 = vpow2.f32 %v6537_v10  ;;  %9570 = vmatprep.subr.bf16.mxu0 %v5835_v13  ;;  %v6516_v3 = vsub.f32 %v13740_v60, %v6486_v5 }
 0xcdb   : > { %10721 = vpow2.f32 %v5728_v34 }
 0xcdc   : > { %v6533_v40 = vmul.f32 1.442695, %v6516_v3 }
 0xcdd   : > { %9571 = vmatpush3.bf16.msra.mxu0 %v5835_v13  ;;  %v6498_v37 = vpop.xlane.xlu1 %6497  ;;  %v13903_v13 = vpop.permute.xlu0 %7113 }
 0xcde   : > { %10723 = vpow2.f32 %v6533_v40  ;;  %9572 = vmatprep.subr.bf16.mxu0 %v5837_v21  ;;  %v6522_v53 = vsub.f32 %v13747_v18, %v6498_v37 }
 0xce0   : > { %v6545_v16 = vmul.f32 1.442695, %v6522_v53  ;;  %8878 = vmatmul.mubr.msk.bf16.gmra.mrb[84].mxu0 %vm1679_vm0, %v15591_v27 }
 0xce1   : > { %9573 = vmatpush3.bf16.msra.mxu0 %v5837_v21  ;;  %v13884_v7 = vpop.xlane.xlu1 %6493  ;;  %5250 = vmatprep.mubr.bf16.mxu0 %v15442_v55 }
 0xce2   : > { %10725 = vpow2.f32 %v6545_v16 }
 0xce4   : > { %v13887_v60 = vpop.eup %10719 }
 0xce5   : > { %6569 = vadd.xlane.f32.xlu1 %v13887_v60  ;;  %v6506_v1 = vpop.xlane.xlu1 %6505  ;;  %v13890_v9 = vpop.eup %10721 }
 0xce6   : > { %v6526_v5 = vsub.f32 %v13755_v28, %v6506_v1 }
 0xce8   : > { %v13892_v18 = vpop.eup %10723  ;;  %8879 = vmatmul.mubr.msk.bf16.gmra.mrb[88].mxu0 %vm1679_vm0, %v15592_v29 }
 0xce9   : > { %5760 = vadd.xlane.f32.xlu1 %v13890_v9  ;;  %6565 = vadd.xlane.f32.xlu0 %v13892_v18  ;;  %v6502_v26 = vpop.xlane.xlu1 %6501 }
 0xcea   : > { %5260 = vmatprep.mubr.bf16.mxu0 %v15442_v55  ;;  %v6524_v8 = vsub.f32 %v13757_v24, %v6502_v26 }
 0xcec   : > { %v13901_v25 = vpop.eup %10725  ;;  %v6549_v28 = vmul.f32 1.442695, %v6524_v8  ;;  %v15599_v8 = vld [vmem:[#allocation41_spill] sm:$0xff] }
 0xced   : > { %6577 = vadd.xlane.f32.xlu1 %v13901_v25  ;;  %v6514_v21 = vpop.xlane.xlu1 %6513 }
 0xcee   : > { %v6530_v1 = vsub.f32 %v13763_v23, %v6514_v21 }
 0xcf0   : > { %v6496_v11 = vpop.xlane.xlu0 %6495  ;;  %8880 = vmatmul.mubr.msk.bf16.gmra.mrb[92].mxu0 %vm1679_vm0, %v15593_v44  ;;  %v6561_v44 = vmul.f32 1.442695, %v6530_v1 }
 0xcf1   : > { %v6510_v31 = vpop.xlane.xlu1 %6509  ;;  %5270 = vmatprep.mubr.bf16.mxu0 %v15442_v55  ;;  %v6521_v26 = vsub.f32 %v13743_v14, %v6496_v11 }
 0xcf3   : > { %v6543_v23 = vmul.f32 1.442695, %v6521_v26  ;;  %v15604_v26 = vld [vmem:[#allocation111_spill] sm:$0xff] }
 0xcf4   : > { %v6492_v39 = vpop.xlane.xlu0 %6491 }
 0xcf5   : > { %v5839_v15 = vpop.permute.xlu1 %5838  ;;  %v6519_v21 = vsub.f32 %v13745_v52, %v6492_v39 }
 0xcf6   : > { %9574 = vmatprep.subr.bf16.mxu0 %v5839_v15 }
 0xcf7   : > { %9575 = vmatpush3.bf16.msra.mxu0 %v5839_v15 }
 0xcf8   : > { %v6504_v10 = vpop.xlane.xlu0 %6503  ;;  %8881 = vmatmul.mubr.msk.bf16.gmra.mrb[96].mxu0 %vm1679_vm0, %v15594_v41 }
 0xcf9   : > { %v6525_v34 = vsub.f32 %v13751_v4, %v6504_v10  ;;  %5280 = vmatprep.mubr.bf16.mxu0 %v15442_v55  ;;  %v6553_v4 = vmul.f32 1.442695, %v6526_v5 }
 0xcfb   : > { %v6551_v51 = vmul.f32 1.442695, %v6525_v34 }
 0xcfc   : > { %v6500_v20 = vpop.xlane.xlu0 %6499 }
 0xcfd   : > { %10727 = vpow2.f32 %v6551_v51  ;;  %v6523_v3 = vsub.f32 %v13753_v6, %v6500_v20 }
 0xcff   : > { %v6547_v40 = vmul.f32 1.442695, %v6523_v3  ;;  %5840 = vrot.lane.b32.xlu0 %v15539_v61, %s11214_s24 }
 0xd00   : > { %v6512_v37 = vpop.xlane.xlu0 %6511  ;;  %8882 = vmatmul.mubr.msk.bf16.gmra.mrb[100].mxu0 %vm1679_vm0, %v15595_v43 }
 0xd01   : > { %10729 = vpow2.f32 %v6547_v40  ;;  %5290 = vmatprep.mubr.bf16.mxu0 %v15442_v55  ;;  %v6529_v6 = vsub.f32 %v13759_v17, %v6512_v37  ;;  %v5709_v17 = vsub.f32 %v13694_v12, %v13836_v46  ;;  %v6528_v12 = vsub.f32 %v13767_v50, %v6510_v31  ;;  %v15598_v40 = vld [vmem:[#allocation39_spill] sm:$0xff] }
 0xd02   : > { %10731 = vpow2.f32 %v6553_v4  ;;  %v5710_v31 = vsub.f32 %v13686_v45, %v13830_v56 }
 0xd03   : > { %10733 = vpow2.f32 %v6549_v28  ;;  %v6559_v54 = vmul.f32 1.442695, %v6529_v6  ;;  %v5730_v57 = vmul.f32 1.442695, %v5709_v17  ;;  %v6557_v14 = vmul.f32 1.442695, %v6528_v12 }
 0xd04   : > { %v6508_v53 = vpop.xlane.xlu0 %6507  ;;  %v5711_v28 = vsub.f32 %v13691_v2, %v13832_v22  ;;  %v15602_v17 = vld [vmem:[#allocation45_spill] sm:$0xff] }
 0xd05   : > { %v6527_v24 = vsub.f32 %v13761_v58, %v6508_v53  ;;  %10735 = vpow2.f32 %v6559_v54  ;;  %v15597_v58 = vpack.c.bf16 %v13663_v47, %v13657_v19  ;;  %v6520_v19 = vsub.f32 %v13749_v35, %v13884_v7  ;;  %v5311_v12 = vld [vmem:[%s12224_s16] sm:$0xff] }
 0xd06   : > { %v6539_v47 = vmul.f32 1.442695, %v6519_v21  ;;  %v5732_v35 = vmul.f32 1.442695, %v5710_v31  ;;  %v5734_v6 = vmul.f32 1.442695, %v5711_v28  ;;  %v5713_v1 = vsub.f32 %v15602_v17, %v13850_v62 }
 0xd07   : > { %v13928_v16 = vpop.eup %10727  ;;  %v6555_v29 = vmul.f32 1.442695, %v6527_v24  ;;  %v6541_v52 = vmul.f32 1.442695, %v6520_v19  ;;  %v15606_v21 = vld [vmem:[#allocation89_spill] sm:$0xff]  ;;  %v5312_v17 = vld [vmem:[%s12224_s16 + $0x8] sm:$0xff] }
 0xd08   : > { %6583 = vadd.xlane.f32.xlu1 %v13928_v16  ;;  %8883 = vmatmul.mubr.msk.bf16.gmra.mrb[104].mxu0 %vm1679_vm0, %v15596_v0  ;;  %v15601_v0 = vld [vmem:[#allocation60_spill] sm:$0xff]  ;;  %v5738_v19 = vmul.f32 1.442695, %v5713_v1 }
 0xd09   : > { %5300 = vmatprep.mubr.bf16.mxu0 %v15442_v55  ;;  %10737 = vpow2.f32 %v6555_v29  ;;  %v15603_v29 = vld [vmem:[#allocation90_spill] sm:$0xff] }
 0xd0a   : > { %10739 = vpow2.f32 %v5730_v57 }
 0xd0b   : > { %v13937_v27 = vpop.eup %10729  ;;  %10741 = vpow2.f32 %v6561_v44 }
 0xd0c   : > { %6579 = vadd.xlane.f32.xlu1 %v13937_v27  ;;  %v13943_v59 = vpop.eup %10731  ;;  %10743 = vpow2.f32 %v6543_v23  ;;  %v15605_v23 = vld [vmem:[#allocation101_spill] sm:$0xff] }
 0xd0d   : > { %v13952_v46 = vpop.eup %10733  ;;  %10745 = vpow2.f32 %v6557_v14  ;;  %v5715_v14 = vsub.f32 %v15606_v21, %v15605_v23 }
 0xd0e   : > { %10747 = vpow2.f32 %v6539_v47 }
 0xd0f   : > { %v13956_v11 = vpop.eup %10735  ;;  %10749 = vpow2.f32 %v6541_v52  ;;  %v15607_v52 = vld [vmem:[#allocation109_spill] sm:$0xff] }
 0xd10   : > { %6585 = vadd.xlane.f32.xlu1 %v13943_v59  ;;  %8884 = vmatmul.mubr.msk.bf16.gmra.mrb[108].mxu0 %vm1679_vm0, %v15597_v58  ;;  %10751 = vpow2.f32 %v5732_v35  ;;  %v5327_v35 = vadd.f32 %v5311_v12, %v15607_v52  ;;  %v15613_v12 = vld [vmem:[#allocation110_spill] sm:$0xff] }
 0xd11   : > { %v5328_v23 = vadd.f32 %v5312_v17, %v15613_v12 }
 0xd13   : > { %v13961_v50 = vpop.eup %10737 }
 0xd14   : > { %6581 = vadd.xlane.f32.xlu1 %v13952_v46  ;;  %v13966_v39 = vpop.eup %10739 }
 0xd15   : > { %v13969_v15 = vpop.eup %10741 }
 0xd16   : > { %v13972_v7 = vpop.eup %10743 }
 0xd17   : > { %v13975_v10 = vpop.eup %10745 }
 0xd18   : > { %6591 = vadd.xlane.f32.xlu1 %v13956_v11  ;;  %v13978_v45 = vpop.eup %10747  ;;  %v5753_v56 = vpop.xlane.xlu0 %5752 }
 0xd19   : > { %v13981_v34 = vpop.eup %10749  ;;  %10753 = vrcp.f32 %v5753_v56 }
 0xd1a   : > { %v13984_v20 = vpop.eup %10751 }
 0xd1c   : > { %6587 = vadd.xlane.f32.xlu1 %v13961_v50 }
 0xd1e   : > { %5762 = vadd.xlane.f32.xlu0 %v13966_v39 }
 0xd20   : > { %6593 = vadd.xlane.f32.xlu1 %v13969_v15 }
 0xd22   : > { %6575 = vadd.xlane.f32.xlu0 %v13972_v7 }
 0xd23   : > { %v10754_v5 = vpop.eup %10753 }
 0xd24   : > { %6589 = vadd.xlane.f32.xlu1 %v13975_v10  ;;  %v5800_v37 = vmul.f32 %v10754_v5, %v13815_v49  ;;  %v5712_v49 = vsub.f32 %v13704_v33, %v13844_v63  ;;  %v5313_v33 = vld [vmem:[%s12224_s16 + $0x10] sm:$0xff] }
 0xd25   : > { %v5329_v58 = vadd.f32 %v5313_v33, %v15604_v26  ;;  %v15611_v26 = vld [vmem:[#allocation95_spill] sm:$0xff] }
 0xd26   : > { %6571 = vadd.xlane.f32.xlu0 %v13978_v45  ;;  %v5757_v41 = vpop.xlane.xlu1 %5756  ;;  %v5736_v53 = vmul.f32 1.442695, %v5712_v49  ;;  %v15609_v49 = vld [vmem:[#allocation96_spill] sm:$0xff] }
 0xd2a   : > { %6573 = vadd.xlane.f32.xlu0 %v13981_v34  ;;  %v5755_v51 = vpop.xlane.xlu1 %5754 }
 0xd2b   : > { %10755 = vrcp.f32 %v5755_v51  ;;  %v6138_v51 = vadd.f32 %v5800_v37, %v5327_v35  ;;  %v15614_v35 = vld [vmem:[#allocation100_spill] sm:$0xff] }
 0xd2c   : > { %10757 = vpow2.f32 %v5734_v6  ;;  %v5314_v6 = vld [vmem:[%s12224_s16 + $0x18] sm:$0xff] }
 0xd2d   : > { %10759 = vrcp.f32 %v5757_v41  ;;  %v5742_v41 = vmul.f32 1.442695, %v5715_v14 }
 0xd2e   : > { %5764 = vadd.xlane.f32.xlu0 %v13984_v20  ;;  %10761 = vpow2.f32 %v5736_v53 }
 0xd35   : > { %v10756_v3 = vpop.eup %10755  ;;  %7117 = vrot.lane.b32.xlu1 %v15598_v40, %s11216_s3  ;;  %v5759_v40 = vpop.xlane.xlu0 %5758 }
 0xd36   : > { %v13991_v43 = vmul.f32 %v10756_v3, %v13827_v42  ;;  %v15600_v42 = vld [vmem:[#allocation58_spill] sm:$0xff]  ;;  %v14006_v22 = vpop.eup %10757 }
 0xd37   : > { %v10760_v24 = vpop.eup %10759 }
 0xd38   : > { %v5816_v4 = vpack.c.bf16 %v13991_v43, %v5800_v37  ;;  %v14010_v63 = vpop.eup %10761  ;;  %v14015_v57 = vmul.f32 %v10760_v24, %v15603_v29 }
 0xd3a   : > { %9584 = vmatprep.mubr.bf16.mxu0 %v5816_v4  ;;  %v6140_v47 = vadd.f32 %v14015_v57, %v5329_v58  ;;  %v15612_v58 = vld [vmem:[#allocation105_spill] sm:$0xff] }
 0xd44   : > { %7119 = vrot.lane.b32.xlu0 %v15599_v8, %s11216_s3 }
 0xd48   : > { %5842 = vrot.lane.b32.xlu0 %v15538_v48, %s11214_s24 }
 0xd4c   : > { %5844 = vrot.lane.b32.xlu0 %v15600_v42, %s11214_s24 }
 0xd50   : > { %5846 = vrot.lane.b32.xlu0 %v15601_v0, %s11214_s24 }
 0xd54   : > { %v6568_v2 = vpop.xlane.xlu1 %6567 }
 0xd55   : > { %10763 = vrcp.f32 %v6568_v2 }
 0xd58   : > { %v6564_v54 = vpop.xlane.xlu1 %6563 }
 0xd59   : > { %10765 = vrcp.f32 %v6564_v54  ;;  %5766 = vadd.xlane.f32.xlu1 %v14006_v22  ;;  %v15610_v54 = vld [vmem:[#allocation108_spill] sm:$0xff] }
 0xd5a   : > { %10767 = vpow2.f32 %v5738_v19  ;;  %v5330_v24 = vadd.f32 %v5314_v6, %v15610_v54  ;;  %v6139_v19 = vadd.f32 %v13991_v43, %v5328_v23  ;;  %v15618_v6 = vld [vmem:[#allocation106_spill] sm:$0xff] }
 0xd5b   : > { %10769 = vpow2.f32 %v5742_v41  ;;  %v7174_v43 = vsel %vm1679_vm0, %v15618_v6, 0 }
 0xd5c   : > { %10771 = vrcp.f32 %v5759_v40 }
 0xd5d   : > { %5768 = vadd.xlane.f32.xlu1 %v14010_v63 }
 0xd5f   : > { %v10764_v44 = vpop.eup %10763 }
 0xd60   : > { %v6613_v31 = vmul.f32 %v10764_v44, %v13860_v30  ;;  %v15608_v30 = vld [vmem:[#allocation43_spill] sm:$0xff]  ;;  %v5714_v44 = vsub.f32 %v15612_v58, %v15611_v26  ;;  %v15623_v58 = vld [vmem:[#allocation104_spill] sm:$0xff] }
 0xd62   : > { %v14025_v62 = vadd.f32 %v6613_v31, %v6140_v47  ;;  %v5740_v52 = vmul.f32 1.442695, %v5714_v44 }
 0xd63   : > { %v10766_v56 = vpop.eup %10765 }
 0xd64   : > { %v6611_v5 = vmul.f32 %v10766_v56, %v13865_v32  ;;  %v14030_v4 = vpop.eup %10767  ;;  %v15615_v56 = vld [vmem:[#allocation49_spill] sm:$0xff] }
 0xd65   : > { %v14035_v8 = vpop.eup %10769  ;;  %v5716_v41 = vsub.f32 %v15615_v56, %v15614_v35 }
 0xd66   : > { %v14028_v3 = vadd.f32 %v6611_v5, %v6138_v51  ;;  %v10772_v37 = vpop.eup %10771 }
 0xd67   : > { %v14040_v53 = vmul.f32 %v10772_v37, %v15609_v49  ;;  %v5744_v37 = vmul.f32 1.442695, %v5716_v41  ;;  %v15620_v49 = vld [vmem:[#allocation44_spill] sm:$0xff] }
 0xd69   : > { %v6141_v1 = vadd.f32 %v14040_v53, %v5330_v24 }
 0xd6e   : > { %7121 = vrot.lane.b32.xlu1 %v15608_v30, %s11216_s3  ;;  %v15616_v30 = vld [vmem:[#allocation102_spill] sm:$0xff] }
 0xd6f   : > { %5770 = vadd.xlane.f32.xlu0 %v14030_v4 }
 0xd72   : > { %v6570_v28 = vpop.xlane.xlu1 %6569 }
 0xd73   : > { %10773 = vrcp.f32 %v6570_v28  ;;  %5774 = vadd.xlane.f32.xlu0 %v14035_v8  ;;  %v15617_v28 = vld [vmem:[#allocation91_spill] sm:$0xff] }
 0xd76   : > { %v6566_v32 = vpop.xlane.xlu0 %6565  ;;  %v5761_v54 = vpop.xlane.xlu1 %5760 }
 0xd77   : > { %10775 = vrcp.f32 %v6566_v32  ;;  %v5718_v32 = vsub.f32 %v15617_v28, %v15616_v30 }
 0xd78   : > { %10777 = vpow2.f32 %v5740_v52 }
 0xd79   : > { %10779 = vpow2.f32 %v5744_v37  ;;  %v15627_v37 = vld [vmem:[#allocation94_spill] sm:$0xff] }
 0xd7a   : > { %v5841_v2 = vpop.permute.xlu0 %5840 }
 0xd7b   : > { %9576 = vmatprep.subr.bf16.mxu0 %v5841_v2 }
 0xd7c   : > { %9577 = vmatpush3.bf16.msra.mxu0 %v5841_v2 }
 0xd7d   : > { %v10774_v33 = vpop.eup %10773 }
 0xd7e   : > { %v6614_v29 = vmul.f32 %v10774_v33, %v13887_v60 }
 0xd80   : > { %v14049_v21 = vadd.f32 %v6614_v29, %v6141_v1  ;;  %v6628_v60 = vpack.c.bf16 %v6614_v29, %v6613_v31  ;;  %v15621_v31 = vld [vmem:[#allocation51_spill] sm:$0xff]  ;;  %v6578_v1 = vpop.xlane.xlu1 %6577 }
 0xd81   : > { %v10776_v14 = vpop.eup %10775  ;;  %v5719_v2 = vsub.f32 %v15621_v31, %v13854_v38  ;;  %v15622_v29 = vld [vmem:[#allocation47_spill] sm:$0xff]  ;;  %v15624_v38 = vld [vmem:[#allocation53_spill] sm:$0xff] }
 0xd82   : > { %v6612_v47 = vmul.f32 %v10776_v14, %v13892_v18  ;;  %v15619_v18 = vld [vmem:[#allocation88_spill] sm:$0xff]  ;;  %v14069_v17 = vpop.eup %10777  ;;  %v5717_v44 = vsub.f32 %v15624_v38, %v15623_v58  ;;  %v7180_v23 = vsel %vm1679_vm0, %v15622_v29, 0  ;;  %v15629_v31 = vld [vmem:[#allocation59_spill] sm:$0xff]  ;;  %v5315_v38 = vld [vmem:[%s12224_s16 + $0x20] sm:$0xff] }
 0xd83   : > { %v5750_v24 = vmul.f32 1.442695, %v5719_v2  ;;  %v7177_v33 = vsel %vm1679_vm0, %v15619_v18, 0  ;;  %v14074_v26 = vpop.eup %10779  ;;  %v15630_v58 = vld [vmem:[#allocation87_spill] sm:$0xff] }
 0xd84   : > { %v6627_v51 = vpack.c.bf16 %v6612_v47, %v6611_v5  ;;  %v14055_v40 = vadd.f32 %v6612_v47, %v6139_v19  ;;  %v5748_v5 = vmul.f32 1.442695, %v5718_v32  ;;  %v5746_v19 = vmul.f32 1.442695, %v5717_v44  ;;  %v15625_v47 = vld [vmem:[#allocation55_spill] sm:$0xff] }
 0xd85   : > { %v7183_v41 = vsel %vm1679_vm0, %v15625_v47, 0 }
 0xd86   : > { %9648 = vmatprep.mubr.bf16.mxu1 %v6627_v51  ;;  %10781 = vpow2.f32 %v5748_v5  ;;  %v15626_v51 = vld [vmem:[#allocation93_spill] sm:$0xff]  ;;  %v7189_v5 = vsel %vm1679_vm0, %v15627_v37, 0 }
 0xd87   : > { %9649 = vmatmul.mubr.bf16.vlgmr.msra.gmra.mrb[224].mxu1 %v6628_v60  ;;  %10783 = vpow2.f32 %v5750_v24  ;;  %v7186_v28 = vsel %vm1679_vm0, %v15626_v51, 0 }
 0xd88   : > { %9665 = vmatpush3.bf16.xpose.msra.mxu1 %v7174_v43  ;;  %10785 = vpow2.f32 %v5746_v19 }
 0xd89   : > { %10073 = vmatprep.subr.msk.bf16.mxu1 %vm1679_vm0, %v15619_v18  ;;  %7123 = vrot.lane.b32.xlu0 %v15620_v49, %s11216_s3  ;;  %10787 = vrcp.f32 %v5761_v54  ;;  %v15628_v18 = vld [vmem:[#allocation48_spill] sm:$0xff] }
 0xd90   : > { %9667 = vmatpush3.bf16.xpose.msra.mxu1 %v7177_v33  ;;  %v14081_v14 = vpop.eup %10781  ;;  %v7192_v33 = vsel %vm1679_vm0, %v15629_v31, 0 }
 0xd91   : > { %10074 = vmatprep.subr.msk.bf16.mxu1 %vm1679_vm0, %v15622_v29  ;;  %v14086_v35 = vpop.eup %10783 }
 0xd92   : > { %5772 = vadd.xlane.f32.xlu1 %v14069_v17  ;;  %v14093_v30 = vpop.eup %10785 }
 0xd93   : > { %v10788_v29 = vpop.eup %10787 }
 0xd95   : > { %v6584_v12 = vpop.xlane.xlu1 %6583 }
 0xd96   : > { %5776 = vadd.xlane.f32.xlu1 %v14074_v26 }
 0xd98   : > { %9669 = vmatpush3.bf16.xpose.msra.mxu1 %v7180_v23  ;;  %v14114_v23 = vmul.f32 %v10788_v29, %v13890_v9 }
 0xd99   : > { %10075 = vmatprep.subr.msk.bf16.mxu1 %vm1679_vm0, %v15625_v47  ;;  %v6580_v52 = vpop.xlane.xlu1 %6579 }
 0xd9a   : > { %5780 = vadd.xlane.f32.xlu1 %v14081_v14 }
 0xd9d   : > { %v6586_v56 = vpop.xlane.xlu1 %6585 }
 0xd9e   : > { %5782 = vadd.xlane.f32.xlu1 %v14086_v35 }
 0xda0   : > { %9671 = vmatpush3.bf16.xpose.msra.mxu1 %v7183_v41 }
 0xda1   : > { %10076 = vmatprep.subr.msk.bf16.mxu1 %vm1679_vm0, %v15626_v51  ;;  %v6582_v60 = vpop.xlane.xlu1 %6581 }
 0xda5   : > { %v14098_v32 = vpop.xlane.xlu1 %6591 }
 0xda8   : > { %9673 = vmatpush3.bf16.xpose.msra.mxu1 %v7186_v28  ;;  %5778 = vadd.xlane.f32.xlu0 %v14093_v30  ;;  %v7195_v28 = vsel %vm1679_vm0, %v15630_v58, 0 }
 0xda9   : > { %10077 = vmatprep.subr.msk.bf16.mxu1 %vm1679_vm0, %v15627_v37  ;;  %v6588_v43 = vpop.xlane.xlu1 %6587  ;;  %v5316_v37 = vld [vmem:[%s12224_s16 + $0x28] sm:$0xff] }
 0xdab   : > { %v5763_v6 = vpop.xlane.xlu0 %5762 }
 0xdac   : > { %10789 = vrcp.f32 %v5763_v6 }
 0xdad   : > { %10791 = vrcp.f32 %v6578_v1  ;;  %v6594_v24 = vpop.xlane.xlu1 %6593 }
 0xdaf   : > { %7456 = vrot.lane.b32.xlu1 %v15628_v18, %s11216_s3  ;;  %v6576_v49 = vpop.xlane.xlu0 %6575 }
 0xdb0   : > { %9675 = vmatpush3.bf16.xpose.msra.mxu1 %v7189_v5 }
 0xdb1   : > { %10078 = vmatprep.subr.msk.bf16.mxu1 %vm1679_vm0, %v15629_v31  ;;  %v6590_v44 = vpop.xlane.xlu1 %6589 }
 0xdb3   : > { %v6572_v2 = vpop.xlane.xlu0 %6571 }
 0xdb4   : > { %10793 = vrcp.f32 %v6572_v2  ;;  %v15633_v2 = vld [vmem:[#allocation83_spill] sm:$0xff] }
 0xdb5   : > { %10795 = vrcp.f32 %v6576_v49 }
 0xdb6   : > { %10797 = vrcp.f32 %v6582_v60  ;;  %v10790_v19 = vpop.eup %10789  ;;  %v15632_v60 = vld [vmem:[#allocation46_spill] sm:$0xff] }
 0xdb7   : > { %10799 = vrcp.f32 %v6580_v52  ;;  %v6574_v54 = vpop.xlane.xlu0 %6573  ;;  %v10792_v47 = vpop.eup %10791  ;;  %v15631_v52 = vld [vmem:[#allocation80_spill] sm:$0xff]  ;;  %v5805_v49 = vmul.f32 %v10790_v19, %v13966_v39 }
 0xdb8   : > { %10801 = vrcp.f32 %v6574_v54  ;;  %9677 = vmatpush3.bf16.xpose.msra.mxu1 %v7192_v33  ;;  %v5331_v41 = vadd.f32 %v5315_v38, %v15631_v52  ;;  %v5332_v54 = vadd.f32 %v5316_v37, %v15633_v2 }
 0xdb9   : > { %10079 = vmatprep.subr.msk.bf16.mxu1 %vm1679_vm0, %v15630_v58 }
 0xdbb   : > { %v5765_v1 = vpop.xlane.xlu0 %5764 }
 0xdbc   : > { %10803 = vrcp.f32 %v5765_v1  ;;  %v5317_v1 = vld [vmem:[%s12224_s16 + $0x30] sm:$0xff] }
 0xdbd   : > { %10805 = vrcp.f32 %v6586_v56  ;;  %v6142_v56 = vadd.f32 %v14114_v23, %v5331_v41 }
 0xdbe   : > { %v10794_v51 = vpop.eup %10793  ;;  %10807 = vrcp.f32 %v6590_v44  ;;  %7454 = vrot.lane.b32.xlu0 %v15632_v60, %s11216_s3  ;;  %v6143_v44 = vadd.f32 %v5805_v49, %v5332_v54  ;;  %v5817_v54 = vpack.c.bf16 %v14040_v53, %v14015_v57 }
 0xdbf   : > { %v10796_v6 = vpop.eup %10795  ;;  %10809 = vrcp.f32 %v6584_v12  ;;  %v14122_v18 = vpop.permute.xlu0 %7119  ;;  %v6615_v9 = vmul.f32 %v10794_v51, %v13978_v45  ;;  %v15634_v12 = vld [vmem:[#allocation50_spill] sm:$0xff] }
 0xdc0   : > { %v10798_v5 = vpop.eup %10797  ;;  %10811 = vrcp.f32 %v6588_v43  ;;  %9679 = vmatpush3.bf16.xpose.msra.mxu1 %v7195_v28  ;;  %v6617_v58 = vmul.f32 %v10796_v6, %v13972_v7  ;;  %v14138_v43 = vmul.f32 %v10792_v47, %v13901_v25  ;;  %v15636_v47 = vld [vmem:[#allocation81_spill] sm:$0xff] }
 0xdc1   : > { %v10800_v31 = vpop.eup %10799  ;;  %v14128_v33 = vadd.f32 %v6615_v9, %v6142_v56  ;;  %v14135_v38 = vmul.f32 %v10798_v5, %v13952_v46  ;;  %10813 = vrcp.f32 %v6594_v24  ;;  %v5333_v60 = vadd.f32 %v5317_v1, %v15636_v47  ;;  %v15643_v1 = vld [vmem:[#allocation79_spill] sm:$0xff] }
 0xdc2   : > { %v10802_v29 = vpop.eup %10801  ;;  %7458 = vrot.lane.b32.xlu0 %v15634_v12, %s11216_s3  ;;  %v14142_v52 = vmul.f32 %v10800_v31, %v13937_v27  ;;  %v6630_v46 = vpack.c.bf16 %v14138_v43, %v6617_v58  ;;  %10815 = vrcp.f32 %v14098_v32 }
 0xdc3   : > { %v5843_v45 = vpop.permute.xlu0 %5842  ;;  %v6616_v39 = vmul.f32 %v10802_v29, %v13981_v34  ;;  %v15635_v34 = vld [vmem:[#allocation52_spill] sm:$0xff] }
 0xdc4   : > { %9578 = vmatprep.subr.bf16.mxu0 %v5843_v45  ;;  %v6631_v24 = vpack.c.bf16 %v14135_v38, %v14142_v52 }
 0xdc5   : > { %9579 = vmatpush3.bf16.msra.mxu0 %v5843_v45  ;;  %v6629_v19 = vpack.c.bf16 %v6616_v39, %v6615_v9  ;;  %v14144_v41 = vadd.f32 %v6616_v39, %v6143_v44 }
 0xdc6   : > { %v10804_v7 = vpop.eup %10803  ;;  %7460 = vrot.lane.b32.xlu0 %v15635_v34, %s11216_s3 }
 0xdc7   : > { %v10806_v51 = vpop.eup %10805  ;;  %v5845_v25 = vpop.permute.xlu0 %5844  ;;  %9652 = vmatprep.mubr.bf16.mxu1 %v6629_v19  ;;  %v5806_v27 = vmul.f32 %v10804_v7, %v13984_v20 }
 0xdc8   : > { %v10808_v28 = vpop.eup %10807  ;;  %9580 = vmatprep.subr.bf16.mxu0 %v5845_v25  ;;  %9653 = vmatmul.mubr.bf16.gmra.mrb[228].mxu1 %v6630_v46  ;;  %v14155_v56 = vmul.f32 %v10806_v51, %v13943_v59 }
 0xdc9   : > { %v10810_v37 = vpop.eup %10809  ;;  %9581 = vmatpush3.bf16.msra.mxu0 %v5845_v25  ;;  %9656 = vmatprep.mubr.bf16.mxu1 %v6631_v24  ;;  %v6144_v6 = vadd.f32 %v5806_v27, %v5333_v60  ;;  %v14158_v5 = vmul.f32 %v10808_v28, %v13975_v10  ;;  %v5818_v10 = vpack.c.bf16 %v5805_v49, %v14114_v23  ;;  %v15641_v23 = vld [vmem:[#allocation97_spill] sm:$0xff] }
 0xdca   : > { %v10812_v9 = vpop.eup %10811  ;;  %v14163_v20 = vmul.f32 %v10810_v37, %v13928_v16  ;;  %v15642_v49 = vld [vmem:[#allocation57_spill] sm:$0xff]  ;;  %v10374_v37 = vld [vmem:[#allocation13 + $0xb4] ss:$8 sps:$4 sm:$0xff]  }
 0xdcb   : > { %v5847_v32 = vpop.permute.xlu0 %5846  ;;  %15637 = vst [vmem:[#allocation92_spill] sm:$0xff] %v14158_v5  ;;  %v14160_v31 = vadd.f32 %v6617_v58, %v6144_v6  ;;  %v14166_v2 = vmul.f32 %v10812_v9, %v13961_v50  ;;  %v10814_v29 = vpop.eup %10813  ;;  %v10371_v28 = vld [vmem:[#allocation13 + $0xa4] ss:$8 sps:$4 sm:$0xff]   ;;  %v10372_v9 = vld [vmem:[#allocation13 + $0xb0] ss:$8 sps:$4 sm:$0xff]  }
 0xdcc   : > { %9582 = vmatprep.subr.bf16.mxu0 %v5847_v32  ;;  %v6632_v59 = vpack.c.bf16 %v14155_v56, %v14163_v20  ;;  %v10816_v16 = vpop.eup %10815  ;;  %v14176_v50 = vmul.f32 %v10814_v29, %v13969_v15  ;;  %v7118_v58 = vpop.permute.xlu1 %7117  ;;  %v5318_v15 = vld [vmem:[%s12224_s16 + $0x38] sm:$0xff] }
 0xdcd   : > { %9583 = vmatpush3.bf16.msra.mxu0 %v5847_v32  ;;  %15638 = vst [vmem:[#allocation99_spill] sm:$0xff] %v14166_v2  ;;  %v6633_v12 = vpack.c.bf16 %v14158_v5, %v14166_v2  ;;  %v14179_v57 = vmul.f32 %v10816_v16, %v13956_v11  ;;  %v5334_v19 = vadd.f32 %v5318_v15, %v15643_v1 }
 0xdce   : > { %15639 = vst [vmem:[#allocation98_spill] sm:$0xff] %v14176_v50  ;;  %6009 = vmatprep.subr.bf16.mxu0 %v10371_v28 }
 0xdcf   : > { %15640 = vst [vmem:[#allocation103_spill] sm:$0xff] %v14179_v57  ;;  %v6634_v53 = vpack.c.bf16 %v14176_v50, %v14179_v57 }
 0xdd0   : > { %9585 = vmatmul.mubr.bf16.vlgmr.msra.gmra.mrb[128].mxu0 %v5817_v54  ;;  %9657 = vmatmul.mubr.bf16.gmra.mrb[232].mxu1 %v6632_v59 }
 0xdd1   : > { %9588 = vmatprep.mubr.bf16.mxu0 %v5818_v10  ;;  %9660 = vmatprep.mubr.bf16.mxu1 %v6633_v12 }
 0xdd8   : > { %9661 = vmatmul.mubr.bf16.gmra.mrb[236].mxu1 %v6634_v53 }
 0xdd9   : > { %9680 = vmatprep.mubr.msk.bf16.mxu1 %vm1679_vm0, %v15641_v23 }
 0xde0   : > { %9681 = vmatmul.mubr.msk.bf16.vlgmr.msra.gmra.mrb[240].mxu1 %vm1679_vm0, %v15642_v49 }
 0xde1   : > { %9684 = vmatprep.mubr.msk.bf16.mxu1 %vm1679_vm0, %v13903_v13 }
 0xde6   : > { %v5767_v45 = vpop.xlane.xlu1 %5766 }
 0xde7   : > { %10817 = vrcp.f32 %v5767_v45 }
 0xde8   : > { %9685 = vmatmul.mubr.msk.bf16.gmra.mrb[244].mxu1 %vm1679_vm0, %v13858_v36 }
 0xde9   : > { %9688 = vmatprep.mubr.msk.bf16.mxu1 %vm1679_vm0, %v7118_v58 }
 0xdea   : > { %v5769_v11 = vpop.xlane.xlu1 %5768 }
 0xdeb   : > { %10819 = vrcp.f32 %v5769_v11 }
 0xdee   : > { %v7122_v39 = vpop.permute.xlu1 %7121 }
 0xdf0   : > { %9689 = vmatmul.mubr.msk.bf16.gmra.mrb[248].mxu1 %vm1679_vm0, %v14122_v18 }
 0xdf1   : > { %v10818_v44 = vpop.eup %10817  ;;  %9692 = vmatprep.mubr.msk.bf16.mxu1 %vm1679_vm0, %v7122_v39 }
 0xdf2   : > { %v5807_v13 = vmul.f32 %v10818_v44, %v14006_v22 }
 0xdf4   : > { %v5819_v7 = vpack.c.bf16 %v5807_v13, %v5806_v27  ;;  %v6145_v34 = vadd.f32 %v5807_v13, %v5334_v19  ;;  %v10369_v27 = vld [vmem:[#allocation13 + $0xa0] ss:$8 sps:$4 sm:$0xff]  }
 0xdf5   : > { %v10820_v24 = vpop.eup %10819  ;;  %6010 = vmatpush1.bf16.msra.mxu0 %v10369_v27 }
 0xdf6   : > { %9589 = vmatmul.mubr.bf16.gmra.mrb[132].mxu0 %v5819_v7  ;;  %v14199_v36 = vadd.f32 %v14138_v43, %v6145_v34  ;;  %v14203_v47 = vmul.f32 %v10820_v24, %v14010_v63  ;;  %6011 = vmatprep.subr.bf16.mxu0 %v10374_v37  ;;  %v10377_v63 = vld [vmem:[#allocation13 + $0xc4] ss:$8 sps:$4 sm:$0xff]  }
 0xdf9   : > { %6012 = vmatpush1.bf16.msra.mxu0 %v10372_v9 }
 0xdfa   : > { %6820 = vmatprep.subr.bf16.mxu0 %v10377_v63  ;;  %v10375_v63 = vld [vmem:[#allocation13 + $0xc0] ss:$8 sps:$4 sm:$0xff]  }
 0xdfc   : > { %v5771_v46 = vpop.xlane.xlu0 %5770 }
 0xdfd   : > { %10821 = vrcp.f32 %v5771_v46 }
 0xe00   : > { %v5775_v51 = vpop.xlane.xlu0 %5774 }
 0xe01   : > { %10823 = vrcp.f32 %v5775_v51 }
 0xe04   : > { %v7124_v25 = vpop.permute.xlu0 %7123 }
 0xe05   : > { %9693 = vmatmul.mubr.msk.bf16.gmra.mrb[252].mxu1 %vm1679_vm0, %v7124_v25 }
 0xe07   : > { %v10822_v18 = vpop.eup %10821 }
 0xe08   : > { %v14206_v22 = vmul.f32 %v10822_v18, %v14030_v4 }
 0xe0a   : > { %v5820_v60 = vpack.c.bf16 %v14206_v22, %v14203_v47 }
 0xe0b   : > { %v10824_v32 = vpop.eup %10823 }
 0xe0c   : > { %9592 = vmatprep.mubr.bf16.mxu0 %v5820_v60  ;;  %v14214_v29 = vmul.f32 %v10824_v32, %v14035_v8 }
 0xe1f   : > { %v5773_v43 = vpop.xlane.xlu1 %5772 }
 0xe20   : > { %10825 = vrcp.f32 %v5773_v43 }
 0xe23   : > { %v5777_v6 = vpop.xlane.xlu1 %5776 }
 0xe27   : > { %v5781_v54 = vpop.xlane.xlu1 %5780 }
 0xe2a   : > { %v10826_v4 = vpop.eup %10825 }
 0xe2b   : > { %v14211_v59 = vmul.f32 %v10826_v4, %v14069_v17  ;;  %v5783_v12 = vpop.xlane.xlu1 %5782 }
 0xe2c   : > { %10827 = vrcp.f32 %v5783_v12 }
 0xe2d   : > { %v5821_v10 = vpack.c.bf16 %v14214_v29, %v14211_v59  ;;  %10829 = vrcp.f32 %v5777_v6 }
 0xe2e   : > { %10831 = vrcp.f32 %v5781_v54  ;;  %v10380_v54 = vld [vmem:[#allocation13 + $0xd4] ss:$8 sps:$4 sm:$0xff]  }
 0xe2f   : > { %9593 = vmatmul.mubr.bf16.gmra.mrb[136].mxu0 %v5821_v10  ;;  %v10378_v10 = vld [vmem:[#allocation13 + $0xd0] ss:$8 sps:$4 sm:$0xff]  }
 0xe35   : > { %v5779_v16 = vpop.xlane.xlu0 %5778 }
 0xe36   : > { %10833 = vrcp.f32 %v5779_v16  ;;  %v10828_v53 = vpop.eup %10827 }
 0xe37   : > { %v10830_v23 = vpop.eup %10829  ;;  %v14219_v17 = vmul.f32 %v10828_v53, %v14086_v35 }
 0xe38   : > { %v10832_v49 = vpop.eup %10831  ;;  %v14222_v8 = vmul.f32 %v10830_v23, %v14074_v26 }
 0xe39   : > { %15644 = vst [vmem:[#allocation61_spill] sm:$0xff] %v14219_v17  ;;  %v14228_v11 = vmul.f32 %v10832_v49, %v14081_v14  ;;  %v14279_v23 = vpop.permute.xlu0 %7454 }
 0xe3b   : > { %15646 = vst [vmem:[#allocation62_spill] sm:$0xff] %v14228_v11  ;;  %v5823_v39 = vpack.c.bf16 %v14219_v17, %v14228_v11 }
 0xe40   : > { %v10834_v58 = vpop.eup %10833 }
 0xe41   : > { %v14225_v45 = vmul.f32 %v10834_v58, %v14093_v30 }
 0xe43   : > { %15645 = vst [vmem:[#allocation29_spill] sm:$0xff] %v14225_v45  ;;  %v5822_v15 = vpack.c.bf16 %v14225_v45, %v14222_v8 }
 0xe45   : > { %9596 = vmatprep.mubr.bf16.mxu0 %v5822_v15 }
 0xe46   : > { %9597 = vmatmul.mubr.bf16.gmra.mrb[140].mxu0 %v5823_v39 }
 0xe47   : > { %6041 = vmatprep.mubr.bf16.mxu0 %v15442_v55 }
 0xe5a   : > { %v14235_v35 = vpop.f32.mrb[224].mxu1 }
 0xe5b   : > { %v14237_v26 = vpop.f32.mrb[225].mxu1 }
 0xe5c   : > { %v14239_v44 = vpop.f32.mrb[226].mxu1 }
 0xe5d   : > { %v14243_v30 = vpop.f32.mrb[227].mxu1 }
 0xe9b   : > { %v14247_v19 = vpop.f32.mrb[228].mxu1 }
 0xe9c   : > { %v14249_v13 = vpop.f32.mrb[229].mxu1 }
 0xe9d   : > { %v14251_v7 = vpop.f32.mrb[230].mxu1 }
 0xe9e   : > { %v14255_v46 = vpop.f32.mrb[231].mxu1 }
 0xea3   : > { %v9586_v25 = vpop.f32.mrb[128].mxu0  ;;  %v14259_v24 = vpop.f32.mrb[232].mxu1 }
 0xea4   : > { %v5890_v18 = vpop.f32.mrb[129].mxu0  ;;  %v14261_v60 = vpop.f32.mrb[233].mxu1 }
 0xea5   : > { %v9587_v43 = vpop.f32.mrb[130].mxu0  ;;  %v14263_v27 = vpop.f32.mrb[234].mxu1 }
 0xea6   : > { %v5954_v28 = vpack.c.bf16 %v9587_v43, %v9586_v25  ;;  %v5893_v6 = vpop.f32.mrb[131].mxu0  ;;  %v14267_v9 = vpop.f32.mrb[235].mxu1 }
 0xea7   : > { %v5953_v32 = vpack.c.bf16 %v5893_v6, %v5890_v18 }
 0xea9   : > { %8897 = vmatmul.mubr.msk.bf16.vlgmr.msra.gmra.mrb[80].mxu0 %vm1679_vm0, %v5953_v32 }
 0xeaa   : > { %6821 = vmatpush1.bf16.msra.mxu0 %v10375_v63  ;;  %6051 = vmatprep.mubr.bf16.mxu0 %v15442_v55 }
 0xeab   : > { %v14273_v12 = vpop.f32.mrb[236].mxu1  ;;  %6822 = vmatprep.subr.bf16.mxu0 %v10380_v54 }
 0xeac   : > { %v14275_v16 = vpop.f32.mrb[237].mxu1 }
 0xead   : > { %v14277_v53 = vpop.f32.mrb[238].mxu1 }
 0xeae   : > { %6823 = vmatpush1.bf16.msra.mxu0 %v10378_v10  ;;  %v14283_v58 = vpop.f32.mrb[239].mxu1 }
 0xeaf   : > { %9696 = vmatprep.subr.bf16.mxu0 %v14279_v23 }
 0xeb1   : > { %8898 = vmatmul.mubr.msk.bf16.gmra.mrb[84].mxu0 %vm1679_vm0, %v5954_v28 }
 0xeb2   : > { %6061 = vmatprep.mubr.bf16.mxu0 %v15442_v55 }
 0xeb3   : > { %v14290_v39 = vpop.f32.mrb[240].mxu1 }
 0xeb4   : > { %7298 = vmax.xlane.f32.xlu1 %v14290_v39  ;;  %v14293_v25 = vpop.f32.mrb[241].mxu1 }
 0xeb5   : > { %v14295_v18 = vpop.f32.mrb[242].mxu1 }
 0xeb6   : > { %v14297_v43 = vpop.f32.mrb[243].mxu1 }
 0xeb8   : > { %7294 = vmax.xlane.f32.xlu1 %v14293_v25 }
 0xebb   : > { %v14300_v6 = vpop.f32.mrb[244].mxu1 }
 0xebc   : > { %7300 = vmax.xlane.f32.xlu1 %v14295_v18  ;;  %7306 = vmax.xlane.f32.xlu0 %v14300_v6  ;;  %v14304_v28 = vpop.f32.mrb[245].mxu1 }
 0xebd   : > { %v14306_v63 = vpop.f32.mrb[246].mxu1 }
 0xebe   : > { %v14308_v32 = vpop.f32.mrb[247].mxu1 }
 0xec0   : > { %7296 = vmax.xlane.f32.xlu1 %v14297_v43 }
 0xec3   : > { %v14311_v54 = vpop.f32.mrb[248].mxu1 }
 0xec4   : > { %7302 = vmax.xlane.f32.xlu1 %v14304_v28  ;;  %7314 = vmax.xlane.f32.xlu0 %v14311_v54  ;;  %v14315_v10 = vpop.f32.mrb[249].mxu1 }
 0xec5   : > { %v14317_v49 = vpop.f32.mrb[250].mxu1 }
 0xec6   : > { %v14319_v15 = vpop.f32.mrb[251].mxu1 }
 0xec8   : > { %7308 = vmax.xlane.f32.xlu1 %v14306_v63  ;;  %7310 = vmax.xlane.f32.xlu0 %v14315_v10 }
 0xec9   : > { %v9590_v37 = vpop.f32.mrb[132].mxu0 }
 0xeca   : > { %v5906_v4 = vpop.f32.mrb[133].mxu0 }
 0xecb   : > { %v9591_v34 = vpop.f32.mrb[134].mxu0 }
 0xecc   : > { %v5956_v51 = vpack.c.bf16 %v9591_v34, %v9590_v37  ;;  %v5909_v14 = vpop.f32.mrb[135].mxu0  ;;  %7304 = vmax.xlane.f32.xlu1 %v14308_v32 }
 0xecd   : > { %v5955_v1 = vpack.c.bf16 %v5909_v14, %v5906_v4 }
 0xecf   : > { %8899 = vmatmul.mubr.msk.bf16.gmra.mrb[88].mxu0 %vm1679_vm0, %v5955_v1 }
 0xed0   : > { %7316 = vmax.xlane.f32.xlu1 %v14317_v49  ;;  %6071 = vmatprep.mubr.bf16.mxu0 %v15442_v55 }
 0xed4   : > { %7312 = vmax.xlane.f32.xlu1 %v14319_v15 }
 0xed7   : > { %8900 = vmatmul.mubr.msk.bf16.gmra.mrb[92].mxu0 %vm1679_vm0, %v5956_v51 }
 0xed8   : > { %v14329_v50 = vpop.f32.mrb[252].mxu1  ;;  %6081 = vmatprep.mubr.bf16.mxu0 %v15442_v55 }
 0xed9   : > { %7322 = vmax.xlane.f32.xlu0 %v14329_v50  ;;  %v14333_v34 = vpop.f32.mrb[253].mxu1 }
 0xeda   : > { %v14335_v37 = vpop.f32.mrb[254].mxu1 }
 0xedb   : > { %v14337_v14 = vpop.f32.mrb[255].mxu1 }
 0xedd   : > { %7318 = vmax.xlane.f32.xlu0 %v14333_v34 }
 0xee5   : > { %7464 = vrot.lane.b32.xlu1 %v15538_v48, %s11216_s3 }
 0xef3   : > { %7462 = vrot.lane.b32.xlu0 %v15539_v61, %s11216_s3 }
 0xf02   : > { %v9594_v1 = vpop.f32.mrb[136].mxu0 }
 0xf03   : > { %v5922_v51 = vpop.f32.mrb[137].mxu0 }
 0xf04   : > { %v9595_v4 = vpop.f32.mrb[138].mxu0 }
 0xf05   : > { %v5958_v5 = vpack.c.bf16 %v9595_v4, %v9594_v1  ;;  %v5925_v17 = vpop.f32.mrb[139].mxu0 }
 0xf06   : > { %v5957_v57 = vpack.c.bf16 %v5925_v17, %v5922_v51  ;;  %v15648_v17 = vpack.c.bf16 %v14239_v44, %v14235_v35  ;;  %v15650_v51 = vpack.c.bf16 %v14251_v7, %v14247_v19  ;;  %v15651_v19 = vpack.c.bf16 %v14267_v9, %v14261_v60 }
 0xf07   : > { %v15652_v9 = vpack.c.bf16 %v14263_v27, %v14259_v24 }
 0xf08   : > { %8901 = vmatmul.mubr.msk.bf16.gmra.mrb[96].mxu0 %vm1679_vm0, %v5957_v57  ;;  %v15647_v57 = vpack.c.bf16 %v14243_v30, %v14237_v26 }
 0xf09   : > { %7324 = vmax.xlane.f32.xlu1 %v14335_v37  ;;  %6091 = vmatprep.mubr.bf16.mxu0 %v15442_v55 }
 0xf0d   : > { %7320 = vmax.xlane.f32.xlu1 %v14337_v14 }
 0xf10   : > { %8902 = vmatmul.mubr.msk.bf16.gmra.mrb[100].mxu0 %vm1679_vm0, %v5958_v5  ;;  %v7457_v5 = vpop.permute.xlu1 %7456 }
 0xf11   : > { %6101 = vmatprep.mubr.bf16.mxu0 %v15442_v55 }
 0xf19   : > { %v9598_v48 = vpop.f32.mrb[140].mxu0 }
 0xf1a   : > { %v5938_v61 = vpop.f32.mrb[141].mxu0 }
 0xf1b   : > { %v9599_v45 = vpop.f32.mrb[142].mxu0 }
 0xf1c   : > { %v5960_v11 = vpack.c.bf16 %v9599_v45, %v9598_v48  ;;  %v5941_v2 = vpop.f32.mrb[143].mxu0 }
 0xf1d   : > { %v5959_v1 = vpack.c.bf16 %v5941_v2, %v5938_v61  ;;  %v7459_v2 = vpop.permute.xlu0 %7458 }
 0xf1f   : > { %8903 = vmatmul.mubr.msk.bf16.gmra.mrb[104].mxu0 %vm1679_vm0, %v5959_v1 }
 0xf20   : > { %6111 = vmatprep.mubr.bf16.mxu0 %v15442_v55 }
 0xf21   : > { %v7461_v45 = vpop.permute.xlu0 %7460 }
 0xf27   : > { %8904 = vmatmul.mubr.msk.bf16.gmra.mrb[108].mxu0 %vm1679_vm0, %v5960_v11  ;;  %v15649_v11 = vpack.c.bf16 %v14255_v46, %v14249_v13 }
 0xf28   : > { %6852 = vmatprep.mubr.bf16.mxu0 %v15442_v55 }
 0xf2f   : > { %8917 = vmatmul.mubr.msk.bf16.vlgmr.msra.gmra.mrb[80].mxu0 %vm1679_vm0, %v15647_v57 }
 0xf30   : > { %9697 = vmatpush3.bf16.msra.mxu0 %v14279_v23  ;;  %6862 = vmatprep.mubr.bf16.mxu0 %v15442_v55 }
 0xf31   : > { %9698 = vmatprep.subr.bf16.mxu0 %v7457_v5 }
 0xf34   : > { %9699 = vmatpush3.bf16.msra.mxu0 %v7457_v5 }
 0xf35   : > { %9700 = vmatprep.subr.bf16.mxu0 %v7459_v2 }
 0xf37   : > { %8918 = vmatmul.mubr.msk.bf16.gmra.mrb[84].mxu0 %vm1679_vm0, %v15648_v17 }
 0xf38   : > { %9701 = vmatpush3.bf16.msra.mxu0 %v7459_v2  ;;  %6872 = vmatprep.mubr.bf16.mxu0 %v15442_v55 }
 0xf39   : > { %9702 = vmatprep.subr.bf16.mxu0 %v7461_v45 }
 0xf3c   : > { %9703 = vmatpush3.bf16.msra.mxu0 %v7461_v45 }
 0xf3f   : > { %8919 = vmatmul.mubr.msk.bf16.gmra.mrb[88].mxu0 %vm1679_vm0, %v15649_v11 }
 0xf40   : > { %6882 = vmatprep.mubr.bf16.mxu0 %v15442_v55 }
 0xf41   : > { %v7299_v26 = vpop.xlane.xlu1 %7298 }
 0xf42   : > { %v7328_v30 = vsub.f32 %v14290_v39, %v7299_v26 }
 0xf44   : > { %v7346_v23 = vmul.f32 1.442695, %v7328_v30 }
 0xf45   : > { %v7295_v35 = vpop.xlane.xlu1 %7294 }
 0xf46   : > { %10835 = vpow2.f32 %v7346_v23  ;;  %v7326_v44 = vsub.f32 %v14293_v25, %v7295_v35  ;;  %v15653_v23 = vpack.c.bf16 %v14283_v58, %v14275_v16 }
 0xf47   : > { %8920 = vmatmul.mubr.msk.bf16.gmra.mrb[92].mxu0 %vm1679_vm0, %v15650_v51 }
 0xf48   : > { %v7342_v4 = vmul.f32 1.442695, %v7326_v44  ;;  %6892 = vmatprep.mubr.bf16.mxu0 %v15442_v55 }
 0xf49   : > { %v7307_v13 = vpop.xlane.xlu0 %7306  ;;  %v7301_v46 = vpop.xlane.xlu1 %7300 }
 0xf4a   : > { %10837 = vpow2.f32 %v7342_v4  ;;  %v7332_v48 = vsub.f32 %v14300_v6, %v7307_v13  ;;  %v7329_v39 = vsub.f32 %v14295_v18, %v7301_v46  ;;  %v15654_v13 = vpack.c.bf16 %v14277_v53, %v14273_v12 }
 0xf4c   : > { %v7354_v61 = vmul.f32 1.442695, %v7332_v48  ;;  %v7348_v1 = vmul.f32 1.442695, %v7329_v39 }
 0xf4d   : > { %v7297_v57 = vpop.xlane.xlu1 %7296 }
 0xf4e   : > { %10839 = vpow2.f32 %v7354_v61  ;;  %v7327_v25 = vsub.f32 %v14297_v43, %v7297_v57 }
 0xf4f   : > { %10841 = vpow2.f32 %v7348_v1  ;;  %8921 = vmatmul.mubr.msk.bf16.gmra.mrb[96].mxu0 %vm1679_vm0, %v15651_v19 }
 0xf50   : > { %v14384_v7 = vpop.eup %10835  ;;  %v7344_v5 = vmul.f32 1.442695, %v7327_v25  ;;  %6902 = vmatprep.mubr.bf16.mxu0 %v15442_v55 }
 0xf51   : > { %7378 = vadd.xlane.f32.xlu1 %v14384_v7  ;;  %v7303_v18 = vpop.xlane.xlu1 %7302  ;;  %v7315_v24 = vpop.xlane.xlu0 %7314 }
 0xf52   : > { %10843 = vpow2.f32 %v7344_v5  ;;  %v7330_v6 = vsub.f32 %v14304_v28, %v7303_v18  ;;  %v7336_v61 = vsub.f32 %v14311_v54, %v7315_v24 }
 0xf54   : > { %v14389_v2 = vpop.eup %10837  ;;  %v7350_v43 = vmul.f32 1.442695, %v7330_v6  ;;  %v7362_v19 = vmul.f32 1.442695, %v7336_v61 }
 0xf55   : > { %7374 = vadd.xlane.f32.xlu1 %v14389_v2  ;;  %v7309_v17 = vpop.xlane.xlu1 %7308  ;;  %v7311_v44 = vpop.xlane.xlu0 %7310 }
 0xf56   : > { %v7333_v60 = vsub.f32 %v14306_v63, %v7309_v17  ;;  %10845 = vpow2.f32 %v7350_v43  ;;  %v7334_v53 = vsub.f32 %v14315_v10, %v7311_v44 }
 0xf57   : > { %8922 = vmatmul.mubr.msk.bf16.gmra.mrb[100].mxu0 %vm1679_vm0, %v15652_v9 }
 0xf58   : > { %v14397_v45 = vpop.eup %10839  ;;  %v7356_v11 = vmul.f32 1.442695, %v7333_v60  ;;  %6912 = vmatprep.mubr.bf16.mxu0 %v15442_v55  ;;  %v7358_v57 = vmul.f32 1.442695, %v7334_v53 }
 0xf59   : > { %v14400_v28 = vpop.eup %10841  ;;  %7386 = vadd.xlane.f32.xlu0 %v14397_v45  ;;  %v7305_v26 = vpop.xlane.xlu1 %7304 }
 0xf5a   : > { %7380 = vadd.xlane.f32.xlu1 %v14400_v28  ;;  %v7331_v63 = vsub.f32 %v14308_v32, %v7305_v26  ;;  %10847 = vpow2.f32 %v7356_v11 }
 0xf5c   : > { %v14405_v30 = vpop.eup %10843  ;;  %v7352_v27 = vmul.f32 1.442695, %v7331_v63 }
 0xf5d   : > { %v7317_v32 = vpop.xlane.xlu1 %7316 }
 0xf5e   : > { %10849 = vpow2.f32 %v7352_v27  ;;  %7376 = vadd.xlane.f32.xlu1 %v14405_v30  ;;  %v7337_v25 = vsub.f32 %v14317_v49, %v7317_v32 }
 0xf5f   : > { %8923 = vmatmul.mubr.msk.bf16.gmra.mrb[104].mxu0 %vm1679_vm0, %v15653_v23 }
 0xf60   : > { %6922 = vmatprep.mubr.bf16.mxu0 %v15442_v55  ;;  %v14413_v35 = vpop.eup %10845  ;;  %v7364_v18 = vmul.f32 1.442695, %v7337_v25 }
 0xf61   : > { %7382 = vadd.xlane.f32.xlu0 %v14413_v35  ;;  %v7313_v58 = vpop.xlane.xlu1 %7312 }
 0xf62   : > { %v7335_v12 = vsub.f32 %v14319_v15, %v7313_v58 }
 0xf64   : > { %v14416_v51 = vpop.eup %10847  ;;  %v7360_v1 = vmul.f32 1.442695, %v7335_v12 }
 0xf65   : > { %7388 = vadd.xlane.f32.xlu0 %v14416_v51  ;;  %v7465_v39 = vpop.permute.xlu1 %7464 }
 0xf66   : > { %v7323_v4 = vpop.xlane.xlu0 %7322  ;;  %10851 = vpow2.f32 %v7360_v1 }
 0xf67   : > { %8924 = vmatmul.mubr.msk.bf16.gmra.mrb[108].mxu0 %vm1679_vm0, %v15654_v13  ;;  %10853 = vpow2.f32 %v7358_v57 }
 0xf68   : > { %v14423_v16 = vpop.eup %10849  ;;  %10855 = vpow2.f32 %v7362_v19 }
 0xf69   : > { %7384 = vadd.xlane.f32.xlu1 %v14423_v16  ;;  %10857 = vpow2.f32 %v7364_v18 }
 0xf6a   : > { %v7319_v46 = vpop.xlane.xlu0 %7318 }
 0xf6b   : > { %v7338_v5 = vsub.f32 %v14333_v34, %v7319_v46 }
 0xf6e   : > { %v7463_v48 = vpop.permute.xlu0 %7462 }
 0xf6f   : > { %9704 = vmatprep.subr.bf16.mxu0 %v7463_v48 }
 0xf70   : > { %9705 = vmatpush3.bf16.msra.mxu0 %v7463_v48  ;;  %v14436_v10 = vpop.eup %10851 }
 0xf71   : > { %9706 = vmatprep.subr.bf16.mxu0 %v7465_v39  ;;  %v14441_v34 = vpop.eup %10853 }
 0xf72   : > { %v14443_v60 = vpop.eup %10855 }
 0xf73   : > { %v14447_v9 = vpop.eup %10857 }
 0xf74   : > { %9707 = vmatpush3.bf16.msra.mxu0 %v7465_v39 }
 0xf7a   : > { %7468 = vrot.lane.b32.xlu1 %v15601_v0, %s11216_s3  ;;  %v7340_v0 = vsub.f32 %v14329_v50, %v7323_v4 }
 0xf7b   : > { %7466 = vrot.lane.b32.xlu0 %v15600_v42, %s11216_s3  ;;  %v7366_v42 = vmul.f32 1.442695, %v7338_v5 }
 0xf7c   : > { %v7370_v15 = vmul.f32 1.442695, %v7340_v0 }
 0xf7d   : > { %10859 = vpow2.f32 %v7366_v42 }
 0xf7e   : > { %10861 = vpow2.f32 %v7370_v15  ;;  %v10383_v15 = vld [vmem:[#allocation13 + $0xe4] ss:$8 sps:$4 sm:$0xff]  }
 0xf87   : > { %v14449_v11 = vpop.eup %10859 }
 0xf96   : > { %v7325_v6 = vpop.xlane.xlu1 %7324 }
 0xf97   : > { %v7341_v43 = vsub.f32 %v14335_v37, %v7325_v6  ;;  %v14453_v37 = vpop.eup %10861 }
 0xf99   : > { %v7372_v50 = vmul.f32 1.442695, %v7341_v43  ;;  %v10381_v43 = vld [vmem:[#allocation13 + $0xe0] ss:$8 sps:$4 sm:$0xff]  }
 0xf9a   : > { %v7321_v54 = vpop.xlane.xlu1 %7320  ;;  %7392 = vadd.xlane.f32.xlu0 %v14436_v10 }
 0xf9b   : > { %v7339_v49 = vsub.f32 %v14337_v14, %v7321_v54 }
 0xf9d   : > { %v7368_v17 = vmul.f32 1.442695, %v7339_v49 }
 0xf9e   : > { %7390 = vadd.xlane.f32.xlu1 %v14441_v34  ;;  %7394 = vadd.xlane.f32.xlu0 %v14443_v60 }
 0xf9f   : > { %10863 = vpow2.f32 %v7368_v17 }
 0xfa0   : > { %10865 = vpow2.f32 %v7372_v50 }
 0xfa2   : > { %7396 = vadd.xlane.f32.xlu1 %v14447_v9  ;;  %7398 = vadd.xlane.f32.xlu0 %v14449_v11 }
 0xfa6   : > { %7402 = vadd.xlane.f32.xlu0 %v14453_v37 }
 0xfa9   : > { %v14456_v14 = vpop.eup %10863 }
 0xfaa   : > { %7400 = vadd.xlane.f32.xlu1 %v14456_v14  ;;  %v14459_v26 = vpop.eup %10865 }
 0xfae   : > { %7404 = vadd.xlane.f32.xlu1 %v14459_v26 }
 0xfde   : > { %v7379_v63 = vpop.xlane.xlu1 %7378 }
 0xfdf   : > { %10867 = vrcp.f32 %v7379_v63 }
 0xfe2   : > { %v7375_v24 = vpop.xlane.xlu1 %7374 }
 0xfe3   : > { %10869 = vrcp.f32 %v7375_v24 }
 0xfe6   : > { %v7387_v27 = vpop.xlane.xlu0 %7386 }
 0xfe7   : > { %10871 = vrcp.f32 %v7387_v27  ;;  %v7381_v23 = vpop.xlane.xlu1 %7380 }
 0xfe8   : > { %10873 = vrcp.f32 %v7381_v23 }
 0xfe9   : > { %v10868_v44 = vpop.eup %10867 }
 0xfea   : > { %v7424_v32 = vmul.f32 %v10868_v44, %v14384_v7 }
 0xfeb   : > { %v7377_v4 = vpop.xlane.xlu1 %7376 }
 0xfec   : > { %v7762_v13 = vadd.f32 %v7424_v32, %v14025_v62  ;;  %10875 = vrcp.f32 %v7377_v4  ;;  %v5320_v4 = vld [vmem:[%s12224_s16 + $0x48] sm:$0xff] }
 0xfed   : > { %v10870_v58 = vpop.eup %10869 }
 0xfee   : > { %v7906_v46 = vmul.f32 0.125, %v7762_v13  ;;  %v7422_v48 = vmul.f32 %v10870_v58, %v14389_v2  ;;  %v7383_v39 = vpop.xlane.xlu0 %7382  ;;  %v15655_v58 = vld [vmem:[#allocation82_spill] sm:$0xff] }
 0xfef   : > { %10877 = vrcp.f32 %v7383_v39 }
 0xff0   : > { %7922 = vst [vmem:[%s12224_s16 + $0x10] sm:$0xff] %v7906_v46  ;;  %v7760_v12 = vadd.f32 %v7422_v48, %v14028_v3  ;;  %v5336_v46 = vadd.f32 %v5320_v4, %v15655_v58 }
 0xff1   : > { %v10872_v53 = vpop.eup %10871 }
 0xff2   : > { %v10874_v61 = vpop.eup %10873  ;;  %v7904_v1 = vmul.f32 0.125, %v7760_v12  ;;  %v7428_v7 = vmul.f32 %v10872_v53, %v14397_v45  ;;  %v7389_v57 = vpop.xlane.xlu0 %7388  ;;  %v6147_v39 = vadd.f32 %v14206_v22, %v5336_v46  ;;  %v15656_v53 = vld [vmem:[#allocation76_spill] sm:$0xff] }
 0xff3   : > { %v7425_v62 = vmul.f32 %v10874_v61, %v14400_v28  ;;  %10879 = vrcp.f32 %v7389_v57  ;;  %v5323_v57 = vld [vmem:[%s12224_s16 + $0x60] sm:$0xff] }
 0xff4   : > { %7920 = vst [vmem:[%s12224_s16] sm:$0xff] %v7904_v1  ;;  %v7766_v25 = vadd.f32 %v7428_v7, %v14160_v31  ;;  %v5322_v1 = vld [vmem:[%s12224_s16 + $0x58] sm:$0xff] }
 0xff5   : > { %v7763_v2 = vadd.f32 %v7425_v62, %v14049_v21  ;;  %v7439_v17 = vpack.c.bf16 %v7425_v62, %v7424_v32 }
 0xff6   : > { %v10876_v19 = vpop.eup %10875  ;;  %v7385_v5 = vpop.xlane.xlu1 %7384  ;;  %v7910_v18 = vmul.f32 0.125, %v7766_v25 }
 0xff7   : > { %v7907_v3 = vmul.f32 0.125, %v7763_v2  ;;  %v7467_v0 = vpop.permute.xlu0 %7466  ;;  %10881 = vrcp.f32 %v7385_v5  ;;  %v7423_v42 = vmul.f32 %v10876_v19, %v14405_v30 }
 0xff8   : > { %9708 = vmatprep.subr.bf16.mxu0 %v7467_v0  ;;  %7926 = vst [vmem:[%s12224_s16 + $0x30] sm:$0xff] %v7910_v18  ;;  %v6958_v18 = vadd.f32 %v14135_v38, %v6147_v39  ;;  %v15665_v39 = vld [vmem:[#allocation103_spill] sm:$0xff] }
 0xff9   : > { %7923 = vst [vmem:[%s12224_s16 + $0x18] sm:$0xff] %v7907_v3  ;;  %9709 = vmatpush3.bf16.msra.mxu0 %v7467_v0  ;;  %v7438_v45 = vpack.c.bf16 %v7423_v42, %v7422_v48  ;;  %v7761_v28 = vadd.f32 %v7423_v42, %v14055_v40  ;;  %v10878_v6 = vpop.eup %10877  ;;  %v15658_v3 = vld [vmem:[#allocation78_spill] sm:$0xff]  ;;  %v15659_v42 = vld [vmem:[#allocation84_spill] sm:$0xff] }
 0xffa   : > { %v7469_v31 = vpop.permute.xlu1 %7468  ;;  %v7426_v54 = vmul.f32 %v10878_v6, %v14413_v35  ;;  %v5338_v0 = vadd.f32 %v5322_v1, %v15658_v3 }
 0xffb   : > { %9712 = vmatprep.mubr.bf16.mxu0 %v7438_v45  ;;  %v7905_v21 = vmul.f32 0.125, %v7761_v28  ;;  %9710 = vmatprep.subr.bf16.mxu0 %v7469_v31  ;;  %v5339_v45 = vadd.f32 %v5323_v57, %v15659_v42 }
 0xffc   : > { %v7764_v30 = vadd.f32 %v7426_v54, %v14128_v33 }
 0xffd   : > { %7921 = vst [vmem:[%s12224_s16 + $0x8] sm:$0xff] %v7905_v21  ;;  %9711 = vmatpush3.bf16.msra.mxu0 %v7469_v31  ;;  %v10880_v49 = vpop.eup %10879 }
 0xffe   : > { %7631 = vmatprep.subr.bf16.mxu0 %v10383_v15  ;;  %v7908_v40 = vmul.f32 0.125, %v7764_v30  ;;  %v7429_v50 = vmul.f32 %v10880_v49, %v14416_v51  ;;  %v6149_v15 = vadd.f32 %v14214_v29, %v5338_v0  ;;  %v15669_v0 = vld [vmem:[#allocation98_spill] sm:$0xff] }
0x1000   : > { %9713 = vmatmul.mubr.bf16.vlgmr.msra.gmra.mrb[144].mxu0 %v7439_v17  ;;  %7924 = vst [vmem:[%s12224_s16 + $0x20] sm:$0xff] %v7908_v40  ;;  %v7767_v24 = vadd.f32 %v7429_v50, %v14199_v36  ;;  %v7441_v32 = vpack.c.bf16 %v7429_v50, %v7428_v7  ;;  %v15657_v7 = vld [vmem:[#allocation85_spill] sm:$0xff]  ;;  %v5324_v50 = vld [vmem:[%s12224_s16 + $0x68] sm:$0xff] }
0x1001   : > { %v10882_v63 = vpop.eup %10881  ;;  %7632 = vmatpush1.bf16.msra.mxu0 %v10381_v43 }
0x1002   : > { %v7427_v35 = vmul.f32 %v10882_v63, %v14423_v16  ;;  %v7911_v27 = vmul.f32 0.125, %v7767_v24  ;;  %v5319_v16 = vld [vmem:[%s12224_s16 + $0x40] sm:$0xff]  ;;  %v15660_v63 = vld [vmem:[#allocation86_spill] sm:$0xff] }
0x1003   : > { %v5335_v61 = vadd.f32 %v5319_v16, %v15656_v53  ;;  %v5326_v16 = vld [vmem:[%s12224_s16 + $0x78] sm:$0xff]  ;;  %v15666_v53 = vld [vmem:[#allocation75_spill] sm:$0xff] }
0x1004   : > { %v7440_v33 = vpack.c.bf16 %v7427_v35, %v7426_v54  ;;  %v7765_v23 = vadd.f32 %v7427_v35, %v14144_v41  ;;  %7927 = vst [vmem:[%s12224_s16 + $0x38] sm:$0xff] %v7911_v27  ;;  %v5321_v41 = vld [vmem:[%s12224_s16 + $0x50] sm:$0xff]  ;;  %v6960_v35 = vadd.f32 %v14155_v56, %v6149_v15 }
0x1005   : > { %v5337_v62 = vadd.f32 %v5321_v41, %v15657_v7  ;;  %v6146_v2 = vadd.f32 %v14203_v47, %v5335_v61  ;;  %v6150_v47 = vadd.f32 %v14222_v8, %v5339_v45  ;;  %v5342_v61 = vadd.f32 %v5326_v16, %v15666_v53  ;;  %v10384_v15 = vld [vmem:[#allocation13 + $0xf0] ss:$8 sps:$4 sm:$0xff]   ;;  %v7943_v16 = vld [vmem:[%s11523_s18 + $0x8] sm:$0xff] }
0x1006   : > { %9716 = vmatprep.mubr.bf16.mxu0 %v7440_v33  ;;  %v7909_v44 = vmul.f32 0.125, %v7765_v23  ;;  %v15662_v33 = vld [vmem:[#allocation62_spill] sm:$0xff]  ;;  %v9738_v53 = vld [vmem:[%s12326_s0 + $0x18] sm:$0xff] }
0x1007   : > { %v6148_v19 = vadd.f32 %v14211_v59, %v5337_v62  ;;  %v5325_v59 = vld [vmem:[%s12224_s16 + $0x70] sm:$0xff]  ;;  %v6957_v38 = vadd.f32 %v14142_v52, %v6146_v2  ;;  %v15667_v62 = vld [vmem:[#allocation61_spill] sm:$0xff] }
0x1008   : > { %7925 = vst [vmem:[%s12224_s16 + $0x28] sm:$0xff] %v7909_v44  ;;  %9717 = vmatmul.mubr.bf16.gmra.mrb[148].mxu0 %v7441_v32  ;;  %v5341_v29 = vadd.f32 %v5325_v59, %v15660_v63  ;;  %v6153_v57 = vadd.f32 %v15667_v62, %v5342_v61 }
0x1009   : > { %v6959_v30 = vadd.f32 %v14163_v20, %v6148_v19 }
0x100a   : > { %v6152_v23 = vadd.f32 %v15662_v33, %v5341_v29  ;;  %v6964_v42 = vadd.f32 %v15669_v0, %v6153_v57  ;;  %v7946_v0 = vld [vmem:[%s11523_s18 + $0x20] sm:$0xff] }
0x1027   : > { %v7393_v51 = vpop.xlane.xlu0 %7392 }
0x1028   : > { %10883 = vrcp.f32 %v7393_v51  ;;  %v15663_v51 = vld [vmem:[#allocation77_spill] sm:$0xff] }
0x1029   : > { %v5340_v4 = vadd.f32 %v5324_v50, %v15663_v51  ;;  %v7942_v51 = vld [vmem:[%s11523_s18] sm:$0xff] }
0x102b   : > { %v7391_v36 = vpop.xlane.xlu1 %7390  ;;  %v7395_v13 = vpop.xlane.xlu0 %7394 }
0x102c   : > { %10885 = vrcp.f32 %v7391_v36 }
0x102d   : > { %10887 = vrcp.f32 %v7395_v13 }
0x102f   : > { %v7397_v48 = vpop.xlane.xlu1 %7396  ;;  %v7399_v12 = vpop.xlane.xlu0 %7398 }
0x1030   : > { %10889 = vrcp.f32 %v7397_v48 }
0x1031   : > { %10891 = vrcp.f32 %v7399_v12  ;;  %v6963_v12 = vadd.f32 %v15665_v39, %v6152_v23  ;;  %v8945_v23 = vld [vmem:[%s15151_s5 + $0x3] ss:$8 sm:$0x3]  ;;  %v7944_v39 = vld [vmem:[%s11523_s18 + $0x10] sm:$0xff] }
0x1032   : > { %v10884_v25 = vpop.eup %10883 }
0x1033   : > { %v7403_v5 = vpop.xlane.xlu0 %7402  ;;  %v7431_v22 = vmul.f32 %v10884_v25, %v14436_v10  ;;  %v15668_v25 = vld [vmem:[#allocation92_spill] sm:$0xff] }
0x1034   : > { %10893 = vrcp.f32 %v7403_v5 }
0x1035   : > { %v7769_v6 = vadd.f32 %v7431_v22, %v6958_v18 }
0x1036   : > { %v10886_v28 = vpop.eup %10885 }
0x1037   : > { %v10888_v31 = vpop.eup %10887  ;;  %v7401_v21 = vpop.xlane.xlu1 %7400  ;;  %v7430_v10 = vmul.f32 %v10886_v28, %v14441_v34  ;;  %v7913_v54 = vmul.f32 0.125, %v7769_v6 }
0x1038   : > { %10895 = vrcp.f32 %v7401_v21  ;;  %v7432_v43 = vmul.f32 %v10888_v31, %v14443_v60  ;;  %v15661_v60 = vld [vmem:[#allocation99_spill] sm:$0xff] }
0x1039   : > { %v7442_v49 = vpack.c.bf16 %v7431_v22, %v7430_v10  ;;  %v7768_v17 = vadd.f32 %v7430_v10, %v6957_v38  ;;  %7929 = vst [vmem:[%s12224_s16 + $0x48] sm:$0xff] %v7913_v54  ;;  %v6961_v27 = vadd.f32 %v15661_v60, %v6150_v47 }
0x103a   : > { %v10890_v40 = vpop.eup %10889  ;;  %v7770_v8 = vadd.f32 %v7432_v43, %v6959_v30 }
0x103b   : > { %v10892_v24 = vpop.eup %10891  ;;  %9720 = vmatprep.mubr.bf16.mxu0 %v7442_v49  ;;  %v7912_v52 = vmul.f32 0.125, %v7768_v17  ;;  %v7405_v34 = vpop.xlane.xlu1 %7404  ;;  %v7433_v20 = vmul.f32 %v10890_v40, %v14447_v9  ;;  %v15664_v9 = vld [vmem:[#allocation29_spill] sm:$0xff] }
0x103c   : > { %10897 = vrcp.f32 %v7405_v34  ;;  %v7914_v44 = vmul.f32 0.125, %v7770_v8  ;;  %v7434_v32 = vmul.f32 %v10892_v24, %v14449_v11  ;;  %v6151_v46 = vadd.f32 %v15664_v9, %v5340_v4 }
0x103d   : > { %7928 = vst [vmem:[%s12224_s16 + $0x40] sm:$0xff] %v7912_v52  ;;  %v7443_v36 = vpack.c.bf16 %v7433_v20, %v7432_v43  ;;  %v7771_v13 = vadd.f32 %v7433_v20, %v6960_v35 }
0x103e   : > { %7930 = vst [vmem:[%s12224_s16 + $0x50] sm:$0xff] %v7914_v44  ;;  %v7772_v56 = vadd.f32 %v7434_v32, %v6961_v27  ;;  %v10894_v58 = vpop.eup %10893  ;;  %v6962_v2 = vadd.f32 %v15668_v25, %v6151_v46  ;;  %v9735_v46 = vld [vmem:[%s12326_s0 + $0x10] sm:$0xff] }
0x103f   : > { %9721 = vmatmul.mubr.bf16.gmra.mrb[152].mxu0 %v7443_v36  ;;  %v7915_v41 = vmul.f32 0.125, %v7771_v13  ;;  %v7436_v11 = vmul.f32 %v10894_v58, %v14453_v37  ;;  %v9732_v13 = vld [vmem:[%s12326_s0 + $0x8] sm:$0xff] }
0x1040   : > { %v7916_v48 = vmul.f32 0.125, %v7772_v56  ;;  %v15670_v56 = vld [vmem:[#allocation26_spill] sm:$0xff] }
0x1041   : > { %7931 = vst [vmem:[%s12224_s16 + $0x58] sm:$0xff] %v7915_v41  ;;  %v7774_v7 = vadd.f32 %v7436_v11, %v6963_v12  ;;  %v14558_v58 = vrot.slane %v8945_v23, %v15670_v56  ;;  %v15671_v41 = vld [vmem:[#allocation25_spill] sm:$0xff] }
0x1042   : > { %v10896_v1 = vpop.eup %10895  ;;  %7932 = vst [vmem:[%s12224_s16 + $0x60] sm:$0xff] %v7916_v48  ;;  %v14562_v48 = vrot.slane %v8945_v23, %v15671_v41 }
0x1043   : > { %v7435_v19 = vmul.f32 %v10896_v1, %v14456_v14  ;;  %v7918_v5 = vmul.f32 0.125, %v7774_v7  ;;  %v10386_v14 = vld [vmem:[#allocation13 + $0xf4] ss:$8 sps:$4 sm:$0xff]  }
0x1044   : > { %7633 = vmatprep.subr.bf16.mxu0 %v10386_v14  ;;  %v7945_v1 = vld [vmem:[%s11523_s18 + $0x18] sm:$0xff] }
0x1045   : > { %v7444_v18 = vpack.c.bf16 %v7435_v19, %v7434_v32  ;;  %v7773_v22 = vadd.f32 %v7435_v19, %v6962_v2  ;;  %7934 = vst [vmem:[%s12224_s16 + $0x70] sm:$0xff] %v7918_v5  ;;  %7634 = vmatpush1.bf16.msra.mxu0 %v10384_v15  ;;  %v9729_v32 = vld [vmem:[%s12326_s0] sm:$0xff]  ;;  %v9747_v15 = vld [vmem:[%s12326_s0 + $0x30] sm:$0xff] }
0x1046   : > { %v10898_v3 = vpop.eup %10897 }
0x1047   : > { %9724 = vmatprep.mubr.bf16.mxu0 %v7444_v18  ;;  %v7917_v37 = vmul.f32 0.125, %v7773_v22  ;;  %v7437_v45 = vmul.f32 %v10898_v3, %v14459_v26  ;;  %v9741_v22 = vld [vmem:[%s12326_s0 + $0x20] sm:$0xff] }
0x1049   : > { %7933 = vst [vmem:[%s12224_s16 + $0x68] sm:$0xff] %v7917_v37  ;;  %v7445_v28 = vpack.c.bf16 %v7437_v45, %v7436_v11  ;;  %v7775_v6 = vadd.f32 %v7437_v45, %v6964_v42 }
0x104b   : > { %9725 = vmatmul.mubr.bf16.gmra.mrb[156].mxu0 %v7445_v28  ;;  %v7919_v31 = vmul.f32 0.125, %v7775_v6  ;;  %v9744_v28 = vld [vmem:[%s12326_s0 + $0x28] sm:$0xff] }
0x104c   : > { %7663 = vmatprep.mubr.bf16.mxu0 %v15442_v55  ;;  %v7947_v6 = vld [vmem:[%s11523_s18 + $0x28] sm:$0xff] }
0x104d   : > { %7935 = vst [vmem:[%s12224_s16 + $0x78] sm:$0xff] %v7919_v31 }
0x10d3   : > { %v9714_v47 = vpop.f32.mrb[144].mxu0 }
0x10d4   : > { %v7512_v59 = vpop.f32.mrb[145].mxu0 }
0x10d5   : > { %v9715_v21 = vpop.f32.mrb[146].mxu0 }
0x10d6   : > { %v7576_v38 = vpack.c.bf16 %v9715_v21, %v9714_v47  ;;  %v7515_v10 = vpop.f32.mrb[147].mxu0 }
0x10d7   : > { %v7575_v54 = vpack.c.bf16 %v7515_v10, %v7512_v59  ;;  %v7948_v59 = vld [vmem:[%s11523_s18 + $0x30] sm:$0xff]  ;;  %v9750_v10 = vld [vmem:[%s12326_s0 + $0x38] sm:$0xff] }
0x10d9   : > { %8937 = vmatmul.mubr.msk.bf16.vlgmr.msra.gmra.mrb[80].mxu0 %vm1679_vm0, %v7575_v54 }
0x10da   : > { %7673 = vmatprep.mubr.bf16.mxu0 %v15442_v55 }
0x10db   : > { %v9718_v26 = vpop.f32.mrb[148].mxu0 }
0x10dc   : > { %v7528_v30 = vpop.f32.mrb[149].mxu0 }
0x10dd   : > { %v9719_v43 = vpop.f32.mrb[150].mxu0 }
0x10de   : > { %v7578_v49 = vpack.c.bf16 %v9719_v43, %v9718_v26  ;;  %v7531_v17 = vpop.f32.mrb[151].mxu0  ;;  %v7949_v26 = vld [vmem:[%s11523_s18 + $0x38] sm:$0xff] }
0x10df   : > { %v7577_v40 = vpack.c.bf16 %v7531_v17, %v7528_v30 }
0x10e1   : > { %8938 = vmatmul.mubr.msk.bf16.gmra.mrb[84].mxu0 %vm1679_vm0, %v7576_v38 }
0x10e2   : > { %7683 = vmatprep.mubr.bf16.mxu0 %v15442_v55 }
0x10e9   : > { %8939 = vmatmul.mubr.msk.bf16.gmra.mrb[88].mxu0 %vm1679_vm0, %v7577_v40 }
0x10ea   : > { %7693 = vmatprep.mubr.bf16.mxu0 %v15442_v55 }
0x10f1   : > { %8940 = vmatmul.mubr.msk.bf16.gmra.mrb[92].mxu0 %vm1679_vm0, %v7578_v49 }
0x10f2   : > { %7703 = vmatprep.mubr.bf16.mxu0 %v15442_v55 }
0x1112   : > { %v9722_v50 = vpop.f32.mrb[152].mxu0 }
0x1113   : > { %v7544_v63 = vpop.f32.mrb[153].mxu0 }
0x1114   : > { %v9723_v29 = vpop.f32.mrb[154].mxu0 }
0x1115   : > { %v7580_v8 = vpack.c.bf16 %v9723_v29, %v9722_v50  ;;  %v7547_v24 = vpop.f32.mrb[155].mxu0 }
0x1116   : > { %v7579_v52 = vpack.c.bf16 %v7547_v24, %v7544_v63 }
0x1118   : > { %8941 = vmatmul.mubr.msk.bf16.gmra.mrb[96].mxu0 %vm1679_vm0, %v7579_v52 }
0x1119   : > { %7713 = vmatprep.mubr.bf16.mxu0 %v15442_v55 }
0x111e   : > { %v9726_v34 = vpop.f32.mrb[156].mxu0 }
0x111f   : > { %v7560_v35 = vpop.f32.mrb[157].mxu0 }
0x1120   : > { %v9727_v20 = vpop.f32.mrb[158].mxu0  ;;  %8942 = vmatmul.mubr.msk.bf16.gmra.mrb[100].mxu0 %vm1679_vm0, %v7580_v8  ;;  %v9753_v8 = vld [vmem:[%s12326_s0 + $0x40] sm:$0xff] }
0x1121   : > { %v7582_v60 = vpack.c.bf16 %v9727_v20, %v9726_v34  ;;  %v7563_v27 = vpop.f32.mrb[159].mxu0  ;;  %7723 = vmatprep.mubr.bf16.mxu0 %v15442_v55  ;;  %v7950_v34 = vld [vmem:[%s11523_s18 + $0x40] sm:$0xff] }
0x1122   : > { %v7581_v33 = vpack.c.bf16 %v7563_v27, %v7560_v35  ;;  %v7951_v27 = vld [vmem:[%s11523_s18 + $0x48] sm:$0xff] }
0x1128   : > { %8943 = vmatmul.mubr.msk.bf16.gmra.mrb[104].mxu0 %vm1679_vm0, %v7581_v33 }
0x1129   : > { %7733 = vmatprep.mubr.bf16.mxu0 %v15442_v55 }
0x1130   : > { %8944 = vmatmul.mubr.msk.bf16.gmra.mrb[108].mxu0 %vm1679_vm0, %v7582_v60  ;;  %v9756_v60 = vld [vmem:[%s12326_s0 + $0x48] sm:$0xff] }
0x11ac   : > { %v7665_v44 = vpop.f32.mrb[80].mxu0 }
0x11ad   : > { %v9730_v4 = vadd.f32 %v9729_v32, %v7665_v44  ;;  %v7667_v36 = vpop.f32.mrb[81].mxu0  ;;  %v9759_v44 = vld [vmem:[%s12326_s0 + $0x50] sm:$0xff] }
0x11ae   : > { %v9733_v9 = vadd.f32 %v9732_v13, %v7667_v36  ;;  %v7669_v55 = vpop.f32.mrb[82].mxu0  ;;  %v9762_v13 = vld [vmem:[%s12326_s0 + $0x58] sm:$0xff] }
0x11af   : > { %v9736_v12 = vadd.f32 %v9735_v46, %v7669_v55  ;;  %v7671_v11 = vpop.f32.mrb[83].mxu0  ;;  %v8006_v61 = vadd.f32 %v9730_v4, %v7942_v51  ;;  %v7952_v51 = vld [vmem:[%s11523_s18 + $0x50] sm:$0xff] }
0x11b0   : > { %v9739_v7 = vadd.f32 %v9738_v53, %v7671_v11  ;;  %v8007_v62 = vadd.f32 %v9733_v9, %v7943_v16  ;;  %v7953_v9 = vld [vmem:[%s11523_s18 + $0x58] sm:$0xff] }
0x11b1   : > { %v14568_v57 = vadd.f32 %v14558_v58, %v8006_v61  ;;  %v8008_v25 = vadd.f32 %v9736_v12, %v7944_v39 }
0x11b2   : > { %v14571_v2 = vadd.f32 %v14562_v48, %v8007_v62  ;;  %v8009_v19 = vadd.f32 %v9739_v7, %v7945_v1  ;;  %v9765_v7 = vld [vmem:[%s12326_s0 + $0x60] sm:$0xff] }
0x11b3   : > { %v14574_v5 = vadd.f32 %v14558_v58, %v8008_v25 }
0x11b4   : > { %v7675_v18 = vpop.f32.mrb[84].mxu0  ;;  %v8081_v3 = vadd.f32 %v14571_v2, %v14568_v57  ;;  %v14580_v37 = vadd.f32 %v14562_v48, %v8009_v19  ;;  %v7954_v19 = vld [vmem:[%s11523_s18 + $0x60] sm:$0xff] }
0x11b5   : > { %v9742_v42 = vadd.f32 %v9741_v22, %v7675_v18  ;;  %v7677_v45 = vpop.f32.mrb[85].mxu0 }
0x11b6   : > { %v9745_v31 = vadd.f32 %v9744_v28, %v7677_v45  ;;  %v7679_v14 = vpop.f32.mrb[86].mxu0  ;;  %8082 = vadd.xlane.f32.xlu0 %v8081_v3  ;;  %v8084_v47 = vadd.f32 %v14580_v37, %v14574_v5  ;;  %v9768_v3 = vld [vmem:[%s12326_s0 + $0x68] sm:$0xff]  ;;  %v9771_v28 = vld [vmem:[%s12326_s0 + $0x70] sm:$0xff] }
0x11b7   : > { %v9748_v21 = vadd.f32 %v9747_v15, %v7679_v14  ;;  %v7681_v38 = vpop.f32.mrb[87].mxu0  ;;  %v8010_v54 = vadd.f32 %v9742_v42, %v7946_v0  ;;  %v7955_v0 = vld [vmem:[%s11523_s18 + $0x68] sm:$0xff] }
0x11b8   : > { %v9751_v30 = vadd.f32 %v9750_v10, %v7681_v38  ;;  %8085 = vadd.xlane.f32.xlu1 %v8084_v47  ;;  %v8011_v43 = vadd.f32 %v9745_v31, %v7947_v6  ;;  %v7956_v31 = vld [vmem:[%s11523_s18 + $0x70] sm:$0xff]  ;;  %v9774_v47 = vld [vmem:[%s12326_s0 + $0x78] sm:$0xff] }
0x11b9   : > { %v14592_v49 = vadd.f32 %v14558_v58, %v8010_v54  ;;  %v8012_v17 = vadd.f32 %v9748_v21, %v7948_v59  ;;  %v7957_v21 = vld [vmem:[%s11523_s18 + $0x78] sm:$0xff] }
0x11ba   : > { %v14595_v40 = vadd.f32 %v14562_v48, %v8011_v43  ;;  %v8013_v50 = vadd.f32 %v9751_v30, %v7949_v26 }
0x11bb   : > { %v14598_v63 = vadd.f32 %v14558_v58, %v8012_v17 }
0x11bc   : > { %v7685_v29 = vpop.f32.mrb[88].mxu0  ;;  %v8087_v24 = vadd.f32 %v14595_v40, %v14592_v49  ;;  %v14604_v52 = vadd.f32 %v14562_v48, %v8013_v50 }
0x11bd   : > { %v9754_v35 = vadd.f32 %v9753_v8, %v7685_v29  ;;  %v7687_v20 = vpop.f32.mrb[89].mxu0 }
0x11be   : > { %v9757_v33 = vadd.f32 %v9756_v60, %v7687_v20  ;;  %v7689_v23 = vpop.f32.mrb[90].mxu0  ;;  %8088 = vadd.xlane.f32.xlu0 %v8087_v24  ;;  %v8090_v32 = vadd.f32 %v14604_v52, %v14598_v63 }
0x11bf   : > { %v9760_v4 = vadd.f32 %v9759_v44, %v7689_v23  ;;  %v7691_v36 = vpop.f32.mrb[91].mxu0  ;;  %v8014_v16 = vadd.f32 %v9754_v35, %v7950_v34  ;;  %v9777_v34 = vld [vmem:[%s12326_s0 + $0x80] sm:$0xff] }
0x11c0   : > { %v9763_v55 = vadd.f32 %v9762_v13, %v7691_v36  ;;  %8091 = vadd.xlane.f32.xlu1 %v8090_v32  ;;  %v8015_v46 = vadd.f32 %v9757_v33, %v7951_v27  ;;  %v7958_v35 = vld [vmem:[%s11523_s18 + $0x80] sm:$0xff]  ;;  %v9780_v27 = vld [vmem:[%s12326_s0 + $0x88] sm:$0xff]  ;;  %v9783_v32 = vld [vmem:[%s12326_s0 + $0x90] sm:$0xff] }
0x11c1   : > { %v14616_v39 = vadd.f32 %v14558_v58, %v8014_v16  ;;  %v8016_v12 = vadd.f32 %v9760_v4, %v7952_v51  ;;  %v7959_v33 = vld [vmem:[%s11523_s18 + $0x88] sm:$0xff]  ;;  %v7960_v51 = vld [vmem:[%s11523_s18 + $0x90] sm:$0xff]  ;;  %v9786_v13 = vld [vmem:[%s12326_s0 + $0x98] sm:$0xff] }
0x11c2   : > { %v14619_v11 = vadd.f32 %v14562_v48, %v8015_v46  ;;  %v8017_v53 = vadd.f32 %v9763_v55, %v7953_v9  ;;  %v7961_v9 = vld [vmem:[%s11523_s18 + $0x98] sm:$0xff] }
0x11c3   : > { %v14622_v61 = vadd.f32 %v14558_v58, %v8016_v12 }
0x11c4   : > { %v7695_v1 = vpop.f32.mrb[92].mxu0  ;;  %v8093_v62 = vadd.f32 %v14619_v11, %v14616_v39  ;;  %v14628_v25 = vadd.f32 %v14562_v48, %v8017_v53 }
0x11c5   : > { %v9766_v18 = vadd.f32 %v9765_v7, %v7695_v1  ;;  %v7697_v22 = vpop.f32.mrb[93].mxu0 }
0x11c6   : > { %v9769_v42 = vadd.f32 %v9768_v3, %v7697_v22  ;;  %v7699_v45 = vpop.f32.mrb[94].mxu0  ;;  %8094 = vadd.xlane.f32.xlu0 %v8093_v62  ;;  %v8096_v6 = vadd.f32 %v14628_v25, %v14622_v61 }
0x11c7   : > { %v9772_v14 = vadd.f32 %v9771_v28, %v7699_v45  ;;  %v7701_v15 = vpop.f32.mrb[95].mxu0  ;;  %v8018_v59 = vadd.f32 %v9766_v18, %v7954_v19  ;;  %v9789_v18 = vld [vmem:[%s12326_s0 + $0xa0] sm:$0xff]  ;;  %v9792_v28 = vld [vmem:[%s12326_s0 + $0xa8] sm:$0xff] }
0x11c8   : > { %v9775_v38 = vadd.f32 %v9774_v47, %v7701_v15  ;;  %8097 = vadd.xlane.f32.xlu1 %v8096_v6  ;;  %v8019_v10 = vadd.f32 %v9769_v42, %v7955_v0  ;;  %v7962_v0 = vld [vmem:[%s11523_s18 + $0xa0] sm:$0xff]  ;;  %v7963_v6 = vld [vmem:[%s11523_s18 + $0xa8] sm:$0xff]  ;;  %v9795_v15 = vld [vmem:[%s12326_s0 + $0xb0] sm:$0xff] }
0x11c9   : > { %v14640_v54 = vadd.f32 %v14558_v58, %v8018_v59  ;;  %v8020_v26 = vadd.f32 %v9772_v14, %v7956_v31  ;;  %v7964_v59 = vld [vmem:[%s11523_s18 + $0xb0] sm:$0xff] }
0x11ca   : > { %v14643_v30 = vadd.f32 %v14562_v48, %v8019_v10  ;;  %v8021_v43 = vadd.f32 %v9775_v38, %v7957_v21  ;;  %v9798_v10 = vld [vmem:[%s12326_s0 + $0xb8] sm:$0xff] }
0x11cb   : > { %v14646_v17 = vadd.f32 %v14558_v58, %v8020_v26 }
0x11cc   : > { %v8099_v50 = vadd.f32 %v14643_v30, %v14640_v54  ;;  %v14651_v29 = vadd.f32 %v14562_v48, %v8021_v43  ;;  %v7965_v43 = vld [vmem:[%s11523_s18 + $0xb8] sm:$0xff] }
0x11ce   : > { %8100 = vadd.xlane.f32.xlu0 %v8099_v50  ;;  %v8102_v8 = vadd.f32 %v14651_v29, %v14646_v17 }
0x11d0   : > { %8103 = vadd.xlane.f32.xlu1 %v8102_v8 }
0x11eb   : > { %v7705_v24 = vpop.f32.mrb[96].mxu0 }
0x11ec   : > { %v9778_v20 = vadd.f32 %v9777_v34, %v7705_v24  ;;  %v7707_v60 = vpop.f32.mrb[97].mxu0 }
0x11ed   : > { %v9781_v23 = vadd.f32 %v9780_v27, %v7707_v60  ;;  %v7709_v44 = vpop.f32.mrb[98].mxu0 }
0x11ee   : > { %v9784_v4 = vadd.f32 %v9783_v32, %v7709_v44  ;;  %v7711_v36 = vpop.f32.mrb[99].mxu0  ;;  %v8022_v16 = vadd.f32 %v9778_v20, %v7958_v35  ;;  %v7966_v32 = vld [vmem:[%s11523_s18 + $0xc0] sm:$0xff] }
0x11ef   : > { %v9787_v55 = vadd.f32 %v9786_v13, %v7711_v36  ;;  %v8023_v46 = vadd.f32 %v9781_v23, %v7959_v33  ;;  %v9801_v33 = vld [vmem:[%s12326_s0 + $0xc0] sm:$0xff]  ;;  %v9804_v36 = vld [vmem:[%s12326_s0 + $0xc8] sm:$0xff] }
0x11f0   : > { %v14664_v12 = vadd.f32 %v14558_v58, %v8022_v16  ;;  %v8024_v53 = vadd.f32 %v9784_v4, %v7960_v51  ;;  %v7967_v13 = vld [vmem:[%s11523_s18 + $0xc8] sm:$0xff] }
0x11f1   : > { %v14667_v1 = vadd.f32 %v14562_v48, %v8023_v46  ;;  %v8025_v7 = vadd.f32 %v9787_v55, %v7961_v9  ;;  %v9807_v55 = vld [vmem:[%s12326_s0 + $0xd0] sm:$0xff] }
0x11f2   : > { %v14670_v62 = vadd.f32 %v14558_v58, %v8024_v53  ;;  %v7968_v53 = vld [vmem:[%s11523_s18 + $0xd0] sm:$0xff] }
0x11f3   : > { %v7715_v19 = vpop.f32.mrb[100].mxu0  ;;  %v8105_v22 = vadd.f32 %v14667_v1, %v14664_v12  ;;  %v14676_v3 = vadd.f32 %v14562_v48, %v8025_v7 }
0x11f4   : > { %v9790_v42 = vadd.f32 %v9789_v18, %v7715_v19  ;;  %v7717_v45 = vpop.f32.mrb[101].mxu0  ;;  %v9810_v18 = vld [vmem:[%s12326_s0 + $0xd8] sm:$0xff] }
0x11f5   : > { %v9793_v31 = vadd.f32 %v9792_v28, %v7717_v45  ;;  %v7719_v14 = vpop.f32.mrb[102].mxu0  ;;  %8106 = vadd.xlane.f32.xlu0 %v8105_v22  ;;  %v8108_v47 = vadd.f32 %v14676_v3, %v14670_v62 }
0x11f6   : > { %v9796_v21 = vadd.f32 %v9795_v15, %v7719_v14  ;;  %v7721_v38 = vpop.f32.mrb[103].mxu0  ;;  %v8026_v26 = vadd.f32 %v9790_v42, %v7962_v0  ;;  %v7969_v0 = vld [vmem:[%s11523_s18 + $0xd8] sm:$0xff] }
0x11f7   : > { %v9799_v50 = vadd.f32 %v9798_v10, %v7721_v38  ;;  %8109 = vadd.xlane.f32.xlu1 %v8108_v47  ;;  %v8027_v8 = vadd.f32 %v9793_v31, %v7963_v6  ;;  %v7970_v10 = vld [vmem:[%s11523_s18 + $0xe0] sm:$0xff] }
0x11f8   : > { %v14688_v24 = vadd.f32 %v14558_v58, %v8026_v26  ;;  %v8028_v34 = vadd.f32 %v9796_v21, %v7964_v59  ;;  %v9813_v59 = vld [vmem:[%s12326_s0 + $0xe0] sm:$0xff] }
0x11f9   : > { %v14691_v35 = vadd.f32 %v14562_v48, %v8027_v8  ;;  %v8029_v20 = vadd.f32 %v9799_v50, %v7965_v43  ;;  %v9816_v50 = vld [vmem:[%s12326_s0 + $0xe8] sm:$0xff] }
0x11fa   : > { %v14694_v60 = vadd.f32 %v14558_v58, %v8028_v34  ;;  %v7971_v8 = vld [vmem:[%s11523_s18 + $0xe8] sm:$0xff] }
0x11fb   : > { %v7725_v27 = vpop.f32.mrb[104].mxu0  ;;  %v8111_v23 = vadd.f32 %v14691_v35, %v14688_v24  ;;  %v14700_v44 = vadd.f32 %v14562_v48, %v8029_v20 }
0x11fc   : > { %v9802_v51 = vadd.f32 %v9801_v33, %v7725_v27  ;;  %v7727_v4 = vpop.f32.mrb[105].mxu0  ;;  %v9819_v27 = vld [vmem:[%s12326_s0 + $0xf0] sm:$0xff] }
0x11fd   : > { %v9805_v16 = vadd.f32 %v9804_v36, %v7727_v4  ;;  %v7729_v9 = vpop.f32.mrb[106].mxu0  ;;  %8112 = vadd.xlane.f32.xlu0 %v8111_v23  ;;  %v8114_v46 = vadd.f32 %v14700_v44, %v14694_v60  ;;  %v7972_v23 = vld [vmem:[%s11523_s18 + $0xf0] sm:$0xff]  ;;  %v9822_v4 = vld [vmem:[%s12326_s0 + $0xf8] sm:$0xff] }
0x11fe   : > { %v9808_v7 = vadd.f32 %v9807_v55, %v7729_v9  ;;  %v7731_v19 = vpop.f32.mrb[107].mxu0  ;;  %v8030_v22 = vadd.f32 %v9802_v51, %v7966_v32 }
0x11ff   : > { %v9811_v42 = vadd.f32 %v9810_v18, %v7731_v19  ;;  %8115 = vadd.xlane.f32.xlu1 %v8114_v46  ;;  %v8031_v45 = vadd.f32 %v9805_v16, %v7967_v13  ;;  %v7973_v13 = vld [vmem:[%s11523_s18 + $0xf8] sm:$0xff]  ;;  %s8959_s18 = sshll.u32 %s11195_s27, 11 }
0x1200   : > { %v14712_v28 = vadd.f32 %v14558_v58, %v8030_v22  ;;  %v8032_v6 = vadd.f32 %v9808_v7, %v7968_v53  ;;  %s14916_s30 = scalar_lea.hbm %s15153_s7, %s8959_s18 }
0x1201   : > { %v14715_v31 = vadd.f32 %v14562_v48, %v8031_v45  ;;  %v8033_v14 = vadd.f32 %v9811_v42, %v7969_v0 }
0x1202   : > { %v14718_v15 = vadd.f32 %v14558_v58, %v8032_v6 }
0x1203   : > { %v7735_v47 = vpop.f32.mrb[108].mxu0  ;;  %v8117_v21 = vadd.f32 %v14715_v31, %v14712_v28  ;;  %v14724_v38 = vadd.f32 %v14562_v48, %v8033_v14 }
0x1204   : > { %v9814_v26 = vadd.f32 %v9813_v59, %v7735_v47  ;;  %v7737_v43 = vpop.f32.mrb[109].mxu0 }
0x1205   : > { %v9817_v34 = vadd.f32 %v9816_v50, %v7737_v43  ;;  %v7739_v20 = vpop.f32.mrb[110].mxu0  ;;  %8118 = vadd.xlane.f32.xlu0 %v8117_v21  ;;  %v8120_v33 = vadd.f32 %v14724_v38, %v14718_v15 }
0x1206   : > { %v9820_v32 = vadd.f32 %v9819_v27, %v7739_v20  ;;  %v7741_v51 = vpop.f32.mrb[111].mxu0  ;;  %v8034_v36 = vadd.f32 %v9814_v26, %v7970_v10 }
0x1207   : > { %v9823_v16 = vadd.f32 %v9822_v4, %v7741_v51  ;;  %8121 = vadd.xlane.f32.xlu1 %v8120_v33  ;;  %v8035_v9 = vadd.f32 %v9817_v34, %v7971_v8 }
0x1208   : > { %v14736_v55 = vadd.f32 %v14558_v58, %v8034_v36  ;;  %v8036_v46 = vadd.f32 %v9820_v32, %v7972_v23 }
0x1209   : > { %v14739_v53 = vadd.f32 %v14562_v48, %v8035_v9  ;;  %v8037_v7 = vadd.f32 %v9823_v16, %v7973_v13 }
0x120a   : > { %v14742_v19 = vadd.f32 %v14558_v58, %v8036_v46 }
0x120b   : > { %v8123_v18 = vadd.f32 %v14739_v53, %v14736_v55  ;;  %v14747_v22 = vadd.f32 %v14562_v48, %v8037_v7 }
0x120d   : > { %8124 = vadd.xlane.f32.xlu0 %v8123_v18  ;;  %v8126_v0 = vadd.f32 %v14747_v22, %v14742_v19 }
0x120f   : > { %8127 = vadd.xlane.f32.xlu1 %v8126_v0 }
0x1243   : > { %v8083_v42 = vpop.xlane.xlu0 %8082 }
0x1244   : > { %v8130_v45 = vmul.f32 0.00390625, %v8083_v42 }
0x1245   : > { %v8086_v6 = vpop.xlane.xlu1 %8085 }
0x1246   : > { %v14752_v14 = vsub.f32 %v14568_v57, %v8130_v45  ;;  %v14755_v58 = vsub.f32 %v14571_v2, %v8130_v45  ;;  %v8131_v47 = vmul.f32 0.00390625, %v8086_v6 }
0x1248   : > { %v8178_v59 = vmul.f32 %v14752_v14, %v14752_v14  ;;  %v8179_v48 = vmul.f32 %v14755_v58, %v14755_v58  ;;  %v14762_v21 = vsub.f32 %v14574_v5, %v8131_v47  ;;  %v14765_v10 = vsub.f32 %v14580_v37, %v8131_v47 }
0x124a   : > { %v8180_v57 = vmul.f32 %v14762_v21, %v14762_v21  ;;  %v8181_v2 = vmul.f32 %v14765_v10, %v14765_v10  ;;  %v8210_v26 = vadd.f32 %v8179_v48, %v8178_v59 }
0x124b   : > { %v8089_v43 = vpop.xlane.xlu0 %8088 }
0x124c   : > { %v8132_v50 = vmul.f32 0.00390625, %v8089_v43  ;;  %8211 = vadd.xlane.f32.xlu0 %v8210_v26  ;;  %v8213_v8 = vadd.f32 %v8181_v2, %v8180_v57 }
0x124d   : > { %v8092_v34 = vpop.xlane.xlu1 %8091 }
0x124e   : > { %v14772_v20 = vsub.f32 %v14592_v49, %v8132_v50  ;;  %v14775_v5 = vsub.f32 %v14595_v40, %v8132_v50  ;;  %v8133_v37 = vmul.f32 0.00390625, %v8092_v34  ;;  %8214 = vadd.xlane.f32.xlu1 %v8213_v8 }
0x1250   : > { %v8182_v27 = vmul.f32 %v14772_v20, %v14772_v20  ;;  %v8183_v33 = vmul.f32 %v14775_v5, %v14775_v5  ;;  %v14782_v23 = vsub.f32 %v14598_v63, %v8133_v37  ;;  %v14785_v32 = vsub.f32 %v14604_v52, %v8133_v37 }
0x1252   : > { %v8184_v49 = vmul.f32 %v14782_v23, %v14782_v23  ;;  %v8185_v40 = vmul.f32 %v14785_v32, %v14785_v32  ;;  %v8216_v51 = vadd.f32 %v8183_v33, %v8182_v27 }
0x1253   : > { %v8095_v4 = vpop.xlane.xlu0 %8094 }
0x1254   : > { %v8134_v36 = vmul.f32 0.00390625, %v8095_v4  ;;  %8217 = vadd.xlane.f32.xlu0 %v8216_v51  ;;  %v8219_v13 = vadd.f32 %v8185_v40, %v8184_v49 }
0x1255   : > { %v8098_v16 = vpop.xlane.xlu1 %8097 }
0x1256   : > { %v14792_v9 = vsub.f32 %v14616_v39, %v8134_v36  ;;  %v14795_v63 = vsub.f32 %v14619_v11, %v8134_v36  ;;  %v8135_v52 = vmul.f32 0.00390625, %v8098_v16  ;;  %8220 = vadd.xlane.f32.xlu1 %v8219_v13 }
0x1258   : > { %v8186_v46 = vmul.f32 %v14792_v9, %v14792_v9  ;;  %v8187_v7 = vmul.f32 %v14795_v63, %v14795_v63  ;;  %v14802_v18 = vsub.f32 %v14622_v61, %v8135_v52  ;;  %v14805_v0 = vsub.f32 %v14628_v25, %v8135_v52 }
0x125a   : > { %v8188_v39 = vmul.f32 %v14802_v18, %v14802_v18  ;;  %v8189_v11 = vmul.f32 %v14805_v0, %v14805_v0  ;;  %v8222_v42 = vadd.f32 %v8187_v7, %v8186_v46 }
0x125b   : > { %v8101_v45 = vpop.xlane.xlu0 %8100 }
0x125c   : > { %v8136_v6 = vmul.f32 0.00390625, %v8101_v45  ;;  %8223 = vadd.xlane.f32.xlu0 %v8222_v42  ;;  %v8225_v47 = vadd.f32 %v8189_v11, %v8188_v39 }
0x125d   : > { %v8104_v59 = vpop.xlane.xlu1 %8103 }
0x125e   : > { %v14812_v48 = vsub.f32 %v14640_v54, %v8136_v6  ;;  %v14815_v61 = vsub.f32 %v14643_v30, %v8136_v6  ;;  %v8137_v25 = vmul.f32 0.00390625, %v8104_v59  ;;  %8226 = vadd.xlane.f32.xlu1 %v8225_v47 }
0x1260   : > { %v8190_v57 = vmul.f32 %v14812_v48, %v14812_v48  ;;  %v8191_v2 = vmul.f32 %v14815_v61, %v14815_v61  ;;  %v14822_v26 = vsub.f32 %v14646_v17, %v8137_v25  ;;  %v14825_v43 = vsub.f32 %v14651_v29, %v8137_v25 }
0x1262   : > { %v8192_v54 = vmul.f32 %v14822_v26, %v14822_v26  ;;  %v8193_v30 = vmul.f32 %v14825_v43, %v14825_v43  ;;  %v8228_v50 = vadd.f32 %v8191_v2, %v8190_v57 }
0x1264   : > { %8229 = vadd.xlane.f32.xlu0 %v8228_v50  ;;  %v8231_v8 = vadd.f32 %v8193_v30, %v8192_v54 }
0x1266   : > { %8232 = vadd.xlane.f32.xlu1 %v8231_v8 }
0x1282   : > { %v8107_v34 = vpop.xlane.xlu0 %8106 }
0x1283   : > { %v8138_v37 = vmul.f32 0.00390625, %v8107_v34 }
0x1284   : > { %v8110_v27 = vpop.xlane.xlu1 %8109 }
0x1285   : > { %v14832_v33 = vsub.f32 %v14664_v12, %v8138_v37  ;;  %v14835_v17 = vsub.f32 %v14667_v1, %v8138_v37  ;;  %v8139_v29 = vmul.f32 0.00390625, %v8110_v27 }
0x1287   : > { %v8194_v49 = vmul.f32 %v14832_v33, %v14832_v33  ;;  %v8195_v40 = vmul.f32 %v14835_v17, %v14835_v17  ;;  %v14842_v51 = vsub.f32 %v14670_v62, %v8139_v29  ;;  %v14845_v4 = vsub.f32 %v14676_v3, %v8139_v29 }
0x1289   : > { %v8196_v12 = vmul.f32 %v14842_v51, %v14842_v51  ;;  %v8197_v1 = vmul.f32 %v14845_v4, %v14845_v4  ;;  %v8234_v36 = vadd.f32 %v8195_v40, %v8194_v49 }
0x128a   : > { %v8113_v13 = vpop.xlane.xlu0 %8112 }
0x128b   : > { %v8140_v16 = vmul.f32 0.00390625, %v8113_v13  ;;  %8235 = vadd.xlane.f32.xlu0 %v8234_v36  ;;  %v8237_v52 = vadd.f32 %v8197_v1, %v8196_v12 }
0x128c   : > { %v8116_v46 = vpop.xlane.xlu1 %8115 }
0x128d   : > { %v14852_v7 = vsub.f32 %v14688_v24, %v8140_v16  ;;  %v14855_v62 = vsub.f32 %v14691_v35, %v8140_v16  ;;  %v8141_v3 = vmul.f32 0.00390625, %v8116_v46  ;;  %8238 = vadd.xlane.f32.xlu1 %v8237_v52 }
0x128f   : > { %v8198_v39 = vmul.f32 %v14852_v7, %v14852_v7  ;;  %v8199_v11 = vmul.f32 %v14855_v62, %v14855_v62  ;;  %v14862_v42 = vsub.f32 %v14694_v60, %v8141_v3  ;;  %v14865_v45 = vsub.f32 %v14700_v44, %v8141_v3 }
0x1291   : > { %v8200_v24 = vmul.f32 %v14862_v42, %v14862_v42  ;;  %v8201_v35 = vmul.f32 %v14865_v45, %v14865_v45  ;;  %v8240_v6 = vadd.f32 %v8199_v11, %v8198_v39 }
0x1292   : > { %v8119_v47 = vpop.xlane.xlu0 %8118 }
0x1293   : > { %v8142_v59 = vmul.f32 0.00390625, %v8119_v47  ;;  %8241 = vadd.xlane.f32.xlu0 %v8240_v6  ;;  %v8243_v25 = vadd.f32 %v8201_v35, %v8200_v24 }
0x1294   : > { %v8122_v57 = vpop.xlane.xlu1 %8121 }
0x1295   : > { %v14872_v2 = vsub.f32 %v14712_v28, %v8142_v59  ;;  %v14875_v60 = vsub.f32 %v14715_v31, %v8142_v59  ;;  %v8143_v44 = vmul.f32 0.00390625, %v8122_v57  ;;  %8244 = vadd.xlane.f32.xlu1 %v8243_v25 }
0x1297   : > { %v8202_v54 = vmul.f32 %v14872_v2, %v14872_v2  ;;  %v8203_v30 = vmul.f32 %v14875_v60, %v14875_v60  ;;  %v14882_v50 = vsub.f32 %v14718_v15, %v8143_v44  ;;  %v14885_v8 = vsub.f32 %v14724_v38, %v8143_v44 }
0x1299   : > { %v8204_v28 = vmul.f32 %v14882_v50, %v14882_v50  ;;  %v8205_v31 = vmul.f32 %v14885_v8, %v14885_v8  ;;  %v8246_v34 = vadd.f32 %v8203_v30, %v8202_v54 }
0x129a   : > { %v8125_v37 = vpop.xlane.xlu0 %8124 }
0x129b   : > { %v8144_v27 = vmul.f32 0.00390625, %v8125_v37  ;;  %8247 = vadd.xlane.f32.xlu0 %v8246_v34  ;;  %v8249_v29 = vadd.f32 %v8205_v31, %v8204_v28 }
0x129c   : > { %v8128_v49 = vpop.xlane.xlu1 %8127 }
0x129d   : > { %v14892_v15 = vsub.f32 %v14736_v55, %v8144_v27  ;;  %v14895_v38 = vsub.f32 %v14739_v53, %v8144_v27  ;;  %v8145_v40 = vmul.f32 0.00390625, %v8128_v49  ;;  %8250 = vadd.xlane.f32.xlu1 %v8249_v29 }
0x129f   : > { %v8206_v12 = vmul.f32 %v14892_v15, %v14892_v15  ;;  %v8207_v1 = vmul.f32 %v14895_v38, %v14895_v38  ;;  %v14902_v36 = vsub.f32 %v14742_v19, %v8145_v40  ;;  %v14905_v13 = vsub.f32 %v14747_v22, %v8145_v40 }
0x12a1   : > { %v8208_v55 = vmul.f32 %v14902_v36, %v14902_v36  ;;  %v8209_v53 = vmul.f32 %v14905_v13, %v14905_v13  ;;  %v8252_v16 = vadd.f32 %v8207_v1, %v8206_v12 }
0x12a3   : > { %8253 = vadd.xlane.f32.xlu0 %v8252_v16  ;;  %v8255_v52 = vadd.f32 %v8209_v53, %v8208_v55 }
0x12a5   : > { %8256 = vadd.xlane.f32.xlu1 %v8255_v52 }
0x12a6   : > { %11090 = shalt.err (!%p11087_p5)
}
0x12a7   : > { %s11091_s24 = scalar_lea.hbm %s14916_s30, 2048  ;;  %s11095_s12 = scalar_lea.hbm %s15153_s7, 4096 }
0x12a8   : > { %p11092_p12 = scmp.ne.s32.totalorder %s14916_s30, %s11091_s24  ;;  %p11096_p9 = scmp.lt.u32.totalorder %s14916_s30, %s15153_s7 }
0x12a9   : > { %p11097_p0 = scmp.lt.u32.totalorder %s11095_s12, %s11091_s24  ;;  %p11099_p4 = scmp.lt.u32.totalorder %s11091_s24, %s14916_s30 }
0x12aa   : > { %p11093_p6 = pnand %p11092_p12, %p11417_p3 }
0x12ab   : > { %p11098_p2 = por %p11097_p0, %p11096_p9 }
0x12ac   : > { %p11094_p7 = pneg %p11093_p6 }
0x12ad   : > { %p11100_p8 = por %p11099_p4, %p11098_p2 }
0x12af   : > { %p11101_p1 = pnand %p11100_p8, %p11094_p7 }
0x12b1   : > { %11104 = shalt.err (!%p11101_p1)
}
0x12b2   : > { %s11219_s15 = smov 128   ;;  %s11220_s18 = smov 8   ;;  %v8946_v47 = vld [vmem:[%s15151_s5 + $0x4] ss:$8 sm:$0x3] }
0x12b3   : > { %10097 = dma.vmem_to_hbm [thread:$0]  (%p11417_p3), %s14918_s11, 2048, %s14916_s30, %s8462_s9, %s11219_s15, %s11219_s15, %s11220_s18   ;;  %v14951_v54 = vrot.slane %v8946_v47, %v15670_v56  ;;  %v14954_v30 = vrot.slane %v8946_v47, %v15671_v41 }
0x12b4   : > { %v8947_v57 = vld [vmem:[%s15151_s5 + $0x5] ss:$8 sm:$0x3]  ;;  %s8958_s11 = sshll.u32 %s11195_s27, 12  ;;  %s8478_s30 = sshll.u32 %s12326_s0, 4  ;;  %s15091_s30 = int_to_ptr.vmem [resolvable:$true] %s8478_s30 }
0x12b5   : > { %v14957_v31 = vrot.slane %v8947_v57, %v15670_v56  ;;  %v14960_v34 = vrot.slane %v8947_v57, %v15671_v41  ;;  %s15089_s4 = scalar_lea.hbm %s15152_s6, %s8958_s11  ;;  %s8457_s27 = scalar_lea.sflag [#allocation7], %s11516_s10 }
0x12b6   : > { %s11105_s24 = scalar_lea.vmem %s15091_s30, 4096  ;;  %s11221_s23 = smov [#allocation14]  }
0x12b7   : > { %p11106_p13 = scmp.ne.s32.totalorder %s15091_s30, %s11105_s24  ;;  %s11109_s3 = sshll.u32 %s11221_s23, 4  ;;  %s11110_s3 = int_to_ptr.vmem [resolvable:$false] %s11109_s3 }
0x12b8   : > { %s11111_s12 = scalar_lea.vmem %s11110_s3, 8192  ;;  %p11112_p5 = scmp.lt.s32.totalorder %s15091_s30, %s11110_s3 }
0x12b9   : > { %p11107_p10 = pnand %p11106_p13, %p11417_p3  ;;  %p11113_p12 = scmp.lt.s32.totalorder %s11111_s12, %s11105_s24 }
0x12bb   : > { %p11108_p11 = pneg %p11107_p10  ;;  %p11114_p6 = por %p11113_p12, %p11112_p5 }
0x12bd   : > { %p11115_p7 = pnand %p11114_p6, %p11108_p11 }
0x12d9   : > { %v8212_v19 = vpop.xlane.xlu0 %8211 }
0x12da   : > { %v8258_v22 = vmul.f32 0.00390625, %v8212_v19 }
0x12db   : > { %v8215_v46 = vpop.xlane.xlu1 %8214 }
0x12dc   : > { %v8274_v3 = vadd.f32 1e-05, %v8258_v22  ;;  %v8259_v39 = vmul.f32 0.00390625, %v8215_v46 }
0x12de   : > { %10899 = vrsqrt.f32 %v8274_v3  ;;  %v8275_v11 = vadd.f32 1e-05, %v8259_v39 }
0x12e0   : > { %10901 = vrsqrt.f32 %v8275_v11 }
0x12e1   : > { %v8218_v24 = vpop.xlane.xlu0 %8217 }
0x12e2   : > { %v8260_v35 = vmul.f32 0.00390625, %v8218_v24 }
0x12e3   : > { %v8221_v6 = vpop.xlane.xlu1 %8220 }
0x12e4   : > { %v8276_v59 = vadd.f32 1e-05, %v8260_v35  ;;  %v8261_v25 = vmul.f32 0.00390625, %v8221_v6 }
0x12e6   : > { %10903 = vrsqrt.f32 %v8276_v59  ;;  %v8277_v44 = vadd.f32 1e-05, %v8261_v25 }
0x12e8   : > { %v10900_v28 = vpop.eup %10899  ;;  %10905 = vrsqrt.f32 %v8277_v44 }
0x12e9   : > { %v8306_v37 = vmul.f32 %v10900_v28, %v14752_v14  ;;  %v8307_v27 = vmul.f32 %v10900_v28, %v14755_v58  ;;  %v8224_v29 = vpop.xlane.xlu0 %8223 }
0x12ea   : > { %v10902_v49 = vpop.eup %10901  ;;  %v8262_v40 = vmul.f32 0.00390625, %v8224_v29 }
0x12eb   : > { %v8349_v12 = vmul.f32 %v14951_v54, %v8306_v37  ;;  %v8350_v1 = vmul.f32 %v14954_v30, %v8307_v27  ;;  %v8308_v55 = vmul.f32 %v10902_v49, %v14762_v21  ;;  %v8309_v56 = vmul.f32 %v10902_v49, %v14765_v10  ;;  %v8227_v41 = vpop.xlane.xlu1 %8226 }
0x12ec   : > { %v8278_v53 = vadd.f32 1e-05, %v8262_v40  ;;  %v8263_v14 = vmul.f32 0.00390625, %v8227_v41 }
0x12ed   : > { %v8392_v58 = vadd.f32 %v14957_v31, %v8349_v12  ;;  %v8393_v16 = vadd.f32 %v14960_v34, %v8350_v1  ;;  %v8351_v52 = vmul.f32 %v14951_v54, %v8308_v55  ;;  %v8352_v19 = vmul.f32 %v14954_v30, %v8309_v56 }
0x12ee   : > { %10907 = vrsqrt.f32 %v8278_v53  ;;  %v8279_v22 = vadd.f32 1e-05, %v8263_v14 }
0x12ef   : > { %8424 = vst [vmem:[%s12326_s0] sm:$0xff] %v8392_v58  ;;  %8425 = vst [vmem:[%s12326_s0 + $0x8] sm:$0xff] %v8393_v16  ;;  %v8394_v21 = vadd.f32 %v14957_v31, %v8351_v52  ;;  %v8395_v10 = vadd.f32 %v14960_v34, %v8352_v19 }
0x12f0   : > { %v10904_v46 = vpop.eup %10903  ;;  %10909 = vrsqrt.f32 %v8279_v22 }
0x12f1   : > { %8426 = vst [vmem:[%s12326_s0 + $0x10] sm:$0xff] %v8394_v21  ;;  %8427 = vst [vmem:[%s12326_s0 + $0x18] sm:$0xff] %v8395_v10  ;;  %v8310_v3 = vmul.f32 %v10904_v46, %v14772_v20  ;;  %v8311_v39 = vmul.f32 %v10904_v46, %v14775_v5  ;;  %v8230_v11 = vpop.xlane.xlu0 %8229 }
0x12f2   : > { %v10906_v24 = vpop.eup %10905  ;;  %v8264_v35 = vmul.f32 0.00390625, %v8230_v11 }
0x12f3   : > { %v8353_v6 = vmul.f32 %v14951_v54, %v8310_v3  ;;  %v8354_v47 = vmul.f32 %v14954_v30, %v8311_v39  ;;  %v8312_v59 = vmul.f32 %v10906_v24, %v14782_v23  ;;  %v8313_v25 = vmul.f32 %v10906_v24, %v14785_v32  ;;  %v8233_v57 = vpop.xlane.xlu1 %8232 }
0x12f4   : > { %v8280_v44 = vadd.f32 1e-05, %v8264_v35  ;;  %v8265_v20 = vmul.f32 0.00390625, %v8233_v57 }
0x12f5   : > { %v8396_v5 = vadd.f32 %v14957_v31, %v8353_v6  ;;  %v8397_v28 = vadd.f32 %v14960_v34, %v8354_v47  ;;  %v8355_v37 = vmul.f32 %v14951_v54, %v8312_v59  ;;  %v8356_v27 = vmul.f32 %v14954_v30, %v8313_v25 }
0x12f6   : > { %10911 = vrsqrt.f32 %v8280_v44  ;;  %v8281_v29 = vadd.f32 1e-05, %v8265_v20 }
0x12f7   : > { %8428 = vst [vmem:[%s12326_s0 + $0x20] sm:$0xff] %v8396_v5  ;;  %8429 = vst [vmem:[%s12326_s0 + $0x28] sm:$0xff] %v8397_v28  ;;  %v8398_v23 = vadd.f32 %v14957_v31, %v8355_v37  ;;  %v8399_v32 = vadd.f32 %v14960_v34, %v8356_v27 }
0x12f8   : > { %v10908_v49 = vpop.eup %10907  ;;  %10913 = vrsqrt.f32 %v8281_v29 }
0x12f9   : > { %8430 = vst [vmem:[%s12326_s0 + $0x30] sm:$0xff] %v8398_v23  ;;  %8431 = vst [vmem:[%s12326_s0 + $0x38] sm:$0xff] %v8399_v32  ;;  %v8314_v40 = vmul.f32 %v10908_v49, %v14792_v9  ;;  %v8315_v12 = vmul.f32 %v10908_v49, %v14795_v63 }
0x12fa   : > { %v10910_v1 = vpop.eup %10909 }
0x12fb   : > { %v8357_v55 = vmul.f32 %v14951_v54, %v8314_v40  ;;  %v8358_v56 = vmul.f32 %v14954_v30, %v8315_v12  ;;  %v8316_v41 = vmul.f32 %v10910_v1, %v14802_v18  ;;  %v8317_v53 = vmul.f32 %v10910_v1, %v14805_v0 }
0x12fd   : > { %v8400_v14 = vadd.f32 %v14957_v31, %v8357_v55  ;;  %v8401_v58 = vadd.f32 %v14960_v34, %v8358_v56  ;;  %v8359_v16 = vmul.f32 %v14951_v54, %v8316_v41  ;;  %v8360_v9 = vmul.f32 %v14954_v30, %v8317_v53 }
0x12ff   : > { %8432 = vst [vmem:[%s12326_s0 + $0x40] sm:$0xff] %v8400_v14  ;;  %8433 = vst [vmem:[%s12326_s0 + $0x48] sm:$0xff] %v8401_v58  ;;  %v8402_v63 = vadd.f32 %v14957_v31, %v8359_v16  ;;  %v8403_v52 = vadd.f32 %v14960_v34, %v8360_v9 }
0x1300   : > { %v10912_v19 = vpop.eup %10911 }
0x1301   : > { %8434 = vst [vmem:[%s12326_s0 + $0x50] sm:$0xff] %v8402_v63  ;;  %8435 = vst [vmem:[%s12326_s0 + $0x58] sm:$0xff] %v8403_v52  ;;  %v8318_v18 = vmul.f32 %v10912_v19, %v14812_v48  ;;  %v8319_v0 = vmul.f32 %v10912_v19, %v14815_v61 }
0x1302   : > { %v10914_v22 = vpop.eup %10913 }
0x1303   : > { %v8361_v21 = vmul.f32 %v14951_v54, %v8318_v18  ;;  %v8362_v10 = vmul.f32 %v14954_v30, %v8319_v0  ;;  %v8320_v46 = vmul.f32 %v10914_v22, %v14822_v26  ;;  %v8321_v3 = vmul.f32 %v10914_v22, %v14825_v43 }
0x1305   : > { %v8404_v39 = vadd.f32 %v14957_v31, %v8361_v21  ;;  %v8405_v11 = vadd.f32 %v14960_v34, %v8362_v10  ;;  %v8363_v24 = vmul.f32 %v14951_v54, %v8320_v46  ;;  %v8364_v48 = vmul.f32 %v14954_v30, %v8321_v3 }
0x1307   : > { %8436 = vst [vmem:[%s12326_s0 + $0x60] sm:$0xff] %v8404_v39  ;;  %8437 = vst [vmem:[%s12326_s0 + $0x68] sm:$0xff] %v8405_v11  ;;  %v8406_v61 = vadd.f32 %v14957_v31, %v8363_v24  ;;  %v8407_v35 = vadd.f32 %v14960_v34, %v8364_v48 }
0x1309   : > { %8438 = vst [vmem:[%s12326_s0 + $0x70] sm:$0xff] %v8406_v61  ;;  %8439 = vst [vmem:[%s12326_s0 + $0x78] sm:$0xff] %v8407_v35 }
0x1318   : > { %v8236_v6 = vpop.xlane.xlu0 %8235 }
0x1319   : > { %v8266_v26 = vmul.f32 0.00390625, %v8236_v6 }
0x131a   : > { %v8239_v47 = vpop.xlane.xlu1 %8238 }
0x131b   : > { %v8282_v43 = vadd.f32 1e-05, %v8266_v26  ;;  %v8267_v59 = vmul.f32 0.00390625, %v8239_v47 }
0x131d   : > { %10915 = vrsqrt.f32 %v8282_v43  ;;  %v8283_v25 = vadd.f32 1e-05, %v8267_v59 }
0x131f   : > { %10917 = vrsqrt.f32 %v8283_v25 }
0x1320   : > { %v8242_v57 = vpop.xlane.xlu0 %8241 }
0x1321   : > { %v8268_v44 = vmul.f32 0.00390625, %v8242_v57 }
0x1322   : > { %v8245_v20 = vpop.xlane.xlu1 %8244 }
0x1323   : > { %v8284_v5 = vadd.f32 1e-05, %v8268_v44  ;;  %v8269_v28 = vmul.f32 0.00390625, %v8245_v20 }
0x1325   : > { %10919 = vrsqrt.f32 %v8284_v5  ;;  %v8285_v37 = vadd.f32 1e-05, %v8269_v28 }
0x1327   : > { %v10916_v27 = vpop.eup %10915  ;;  %10921 = vrsqrt.f32 %v8285_v37 }
0x1328   : > { %v8322_v29 = vmul.f32 %v10916_v27, %v14832_v33  ;;  %v8323_v23 = vmul.f32 %v10916_v27, %v14835_v17  ;;  %v8248_v32 = vpop.xlane.xlu0 %8247 }
0x1329   : > { %v10918_v49 = vpop.eup %10917  ;;  %v8270_v40 = vmul.f32 0.00390625, %v8248_v32 }
0x132a   : > { %v8365_v12 = vmul.f32 %v14951_v54, %v8322_v29  ;;  %v8366_v1 = vmul.f32 %v14954_v30, %v8323_v23  ;;  %v8324_v55 = vmul.f32 %v10918_v49, %v14842_v51  ;;  %v8325_v56 = vmul.f32 %v10918_v49, %v14845_v4  ;;  %v8251_v41 = vpop.xlane.xlu1 %8250 }
0x132b   : > { %v8286_v53 = vadd.f32 1e-05, %v8270_v40  ;;  %v8271_v33 = vmul.f32 0.00390625, %v8251_v41 }
0x132c   : > { %v8408_v17 = vadd.f32 %v14957_v31, %v8365_v12  ;;  %v8409_v14 = vadd.f32 %v14960_v34, %v8366_v1  ;;  %v8367_v58 = vmul.f32 %v14951_v54, %v8324_v55  ;;  %v8368_v16 = vmul.f32 %v14954_v30, %v8325_v56 }
0x132d   : > { %10923 = vrsqrt.f32 %v8286_v53  ;;  %v8287_v9 = vadd.f32 1e-05, %v8271_v33 }
0x132e   : > { %8440 = vst [vmem:[%s12326_s0 + $0x80] sm:$0xff] %v8408_v17  ;;  %8441 = vst [vmem:[%s12326_s0 + $0x88] sm:$0xff] %v8409_v14  ;;  %v8410_v51 = vadd.f32 %v14957_v31, %v8367_v58  ;;  %v8411_v4 = vadd.f32 %v14960_v34, %v8368_v16 }
0x132f   : > { %v10920_v63 = vpop.eup %10919  ;;  %10925 = vrsqrt.f32 %v8287_v9 }
0x1330   : > { %8442 = vst [vmem:[%s12326_s0 + $0x90] sm:$0xff] %v8410_v51  ;;  %8443 = vst [vmem:[%s12326_s0 + $0x98] sm:$0xff] %v8411_v4  ;;  %v8326_v52 = vmul.f32 %v10920_v63, %v14852_v7  ;;  %v8327_v19 = vmul.f32 %v10920_v63, %v14855_v62  ;;  %v8254_v18 = vpop.xlane.xlu0 %8253 }
0x1331   : > { %v10922_v0 = vpop.eup %10921  ;;  %v8272_v22 = vmul.f32 0.00390625, %v8254_v18 }
0x1332   : > { %v8369_v21 = vmul.f32 %v14951_v54, %v8326_v52  ;;  %v8370_v10 = vmul.f32 %v14954_v30, %v8327_v19  ;;  %v8328_v46 = vmul.f32 %v10922_v0, %v14862_v42  ;;  %v8329_v3 = vmul.f32 %v10922_v0, %v14865_v45  ;;  %v8257_v39 = vpop.xlane.xlu1 %8256 }
0x1333   : > { %v8288_v11 = vadd.f32 1e-05, %v8272_v22  ;;  %v8273_v7 = vmul.f32 0.00390625, %v8257_v39 }
0x1334   : > { %v8412_v62 = vadd.f32 %v14957_v31, %v8369_v21  ;;  %v8413_v24 = vadd.f32 %v14960_v34, %v8370_v10  ;;  %v8371_v48 = vmul.f32 %v14951_v54, %v8328_v46  ;;  %v8372_v61 = vmul.f32 %v14954_v30, %v8329_v3 }
0x1335   : > { %10927 = vrsqrt.f32 %v8288_v11  ;;  %v8289_v35 = vadd.f32 1e-05, %v8273_v7 }
0x1336   : > { %8444 = vst [vmem:[%s12326_s0 + $0xa0] sm:$0xff] %v8412_v62  ;;  %8445 = vst [vmem:[%s12326_s0 + $0xa8] sm:$0xff] %v8413_v24  ;;  %v8414_v42 = vadd.f32 %v14957_v31, %v8371_v48  ;;  %v8415_v45 = vadd.f32 %v14960_v34, %v8372_v61 }
0x1337   : > { %v10924_v6 = vpop.eup %10923  ;;  %10929 = vrsqrt.f32 %v8289_v35 }
0x1338   : > { %8446 = vst [vmem:[%s12326_s0 + $0xb0] sm:$0xff] %v8414_v42  ;;  %8447 = vst [vmem:[%s12326_s0 + $0xb8] sm:$0xff] %v8415_v45  ;;  %v8330_v26 = vmul.f32 %v10924_v6, %v14872_v2  ;;  %v8331_v47 = vmul.f32 %v10924_v6, %v14875_v60 }
0x1339   : > { %v10926_v43 = vpop.eup %10925 }
0x133a   : > { %v8373_v59 = vmul.f32 %v14951_v54, %v8330_v26  ;;  %v8374_v25 = vmul.f32 %v14954_v30, %v8331_v47  ;;  %v8332_v57 = vmul.f32 %v10926_v43, %v14882_v50  ;;  %v8333_v44 = vmul.f32 %v10926_v43, %v14885_v8 }
0x133c   : > { %v8416_v20 = vadd.f32 %v14957_v31, %v8373_v59  ;;  %v8417_v5 = vadd.f32 %v14960_v34, %v8374_v25  ;;  %v8375_v28 = vmul.f32 %v14951_v54, %v8332_v57  ;;  %v8376_v2 = vmul.f32 %v14954_v30, %v8333_v44 }
0x133e   : > { %8448 = vst [vmem:[%s12326_s0 + $0xc0] sm:$0xff] %v8416_v20  ;;  %8449 = vst [vmem:[%s12326_s0 + $0xc8] sm:$0xff] %v8417_v5  ;;  %v8418_v60 = vadd.f32 %v14957_v31, %v8375_v28  ;;  %v8419_v37 = vadd.f32 %v14960_v34, %v8376_v2 }
0x133f   : > { %v10928_v27 = vpop.eup %10927 }
0x1340   : > { %8450 = vst [vmem:[%s12326_s0 + $0xd0] sm:$0xff] %v8418_v60  ;;  %8451 = vst [vmem:[%s12326_s0 + $0xd8] sm:$0xff] %v8419_v37  ;;  %v8334_v50 = vmul.f32 %v10928_v27, %v14892_v15  ;;  %v8335_v8 = vmul.f32 %v10928_v27, %v14895_v38 }
0x1341   : > { %v10930_v29 = vpop.eup %10929 }
0x1342   : > { %v8377_v23 = vmul.f32 %v14951_v54, %v8334_v50  ;;  %v8378_v32 = vmul.f32 %v14954_v30, %v8335_v8  ;;  %v8336_v49 = vmul.f32 %v10930_v29, %v14902_v36  ;;  %v8337_v40 = vmul.f32 %v10930_v29, %v14905_v13 }
0x1344   : > { %v8420_v15 = vadd.f32 %v14957_v31, %v8377_v23  ;;  %v8421_v12 = vadd.f32 %v14960_v34, %v8378_v32  ;;  %v8379_v38 = vmul.f32 %v14951_v54, %v8336_v49  ;;  %v8380_v1 = vmul.f32 %v14954_v30, %v8337_v40 }
0x1346   : > { %8452 = vst [vmem:[%s12326_s0 + $0xe0] sm:$0xff] %v8420_v15  ;;  %8453 = vst [vmem:[%s12326_s0 + $0xe8] sm:$0xff] %v8421_v12  ;;  %v8422_v36 = vadd.f32 %v14957_v31, %v8379_v38  ;;  %v8423_v13 = vadd.f32 %v14960_v34, %v8380_v1 }
0x1348   : > { %8454 = vst [vmem:[%s12326_s0 + $0xf0] sm:$0xff] %v8422_v36  ;;  %8455 = vst [vmem:[%s12326_s0 + $0xf8] sm:$0xff] %v8423_v13 }
0x1349   : > { %11118 = shalt.err (!%p11115_p7)
}
0x134a   : > { %s11119_s0 = scalar_lea.hbm %s15089_s4, 4096  ;;  %s11123_s15 = scalar_lea.hbm %s15152_s6, 8192 }
0x134b   : > { %p11120_p9 = scmp.ne.s32.totalorder %s15089_s4, %s11119_s0  ;;  %p11124_p4 = scmp.lt.u32.totalorder %s15089_s4, %s15152_s6 }
0x134c   : > { %p11125_p8 = scmp.lt.u32.totalorder %s11123_s15, %s11119_s0  ;;  %p11127_p13 = scmp.lt.u32.totalorder %s11119_s0, %s15089_s4 }
0x134d   : > { %p11121_p0 = pnand %p11120_p9, %p11417_p3 }
0x134e   : > { %p11126_p1 = por %p11125_p8, %p11124_p4 }
0x134f   : > { %p11122_p2 = pneg %p11121_p0 }
0x1350   : > { %p11128_p10 = por %p11127_p13, %p11126_p1 }
0x1352   : > { %p11129_p11 = pnand %p11128_p10, %p11122_p2 }
0x1354   : > { %11132 = shalt.err (!%p11129_p11)
}
0x1355   : > { %s11222_s8 = smov 256   ;;  %s11223_s13 = smov 16  }
0x1356   : > { %10096 = dma.vmem_to_hbm [thread:$0]  (%p11417_p3), %s15091_s30, 4096, %s15089_s4, %s8457_s27, %s11222_s8, %s11222_s8, %s11223_s13  }
0x1357 PF: > { %s15672_s14 = sld [smem:[#allocation23_spill]]  ;;  %s15673_s11 = sld [smem:[#allocation24_spill]] }
0x1358   : > { %p15675_p12 = scmp.ge.s32.totalorder %s11203_s29, 2 }
0x135d   : > { %s8511_s9 = sand.u32 1, %s15672_s14   ;;  %p15674_p5 = scmp.ne.s32.totalorder %s15673_s11, 0 }
0x135e   : > { %s8512_s22 = scalar_lea.sflag [#allocation7], %s8511_s9 }
0x135f   : > { %p10118_p6 = pnand %p15675_p12, %p15674_p5 }
0x1361   : > { %11174 = dma.done.wait (!%p10118_p6), %s8512_s22, 4096  }
0x1362   : > { %11176 = vsyncadd (!%p10118_p6), %s8512_s22, 4294963200  ;;  %s8521_s24 = scalar_lea.sflag [#allocation16], %s8511_s9 }
0x1363   : > { %11178 = dma.done.wait (!%p10118_p6), %s8521_s24, 2048  }
0x1364   : > { %11180 = vsyncadd (!%p10118_p6), %s8521_s24, 4294965248  ;;  %s31_s29 = sadd.s32 1, %s11203_s29   ;;  %s15676_s24 = smov %s11187_s25 }
0x1365   : > { %p28_p7 = scmp.ge.s32.totalorder %s31_s29, 4   ;;  %s15677_s25 = smov %s11191_s26 }
0x1366   : > { %s15678_s26 = smov %s11426_s20  ;;  %s15679_s27 = smov %s11199_s28 }
0x1367   : > { %s15680_s28 = smov %s15682_s2  ;;  %30 = sbr.rel (!%p28_p7) target bundleno = 16 (0x10), region = 140 }
0x136e   :  { %8526 = vsyncpa [#allocation6], 1 }
0x136f   :  { %8528 = vsyncpa [#allocation6 + $0x1], 1 }
0x1370   :  { %8529 = vsyncpa [#allocation9], 1 }
0x1371   :  { %8531 = vsyncpa [#allocation9 + $0x1], 1 }
0x1372   :  { %8532 = vsyncpa [#allocation12], 1 }
0x1373   :  { %8533 = vsyncpa [#allocation7], 1 }
0x1374   :  { %8535 = vsyncpa [#allocation7 + $0x1], 1 }
0x1375   :  { %8536 = vsyncpa [#allocation16], 1 }
0x1376   :  { %8538 = vsyncpa [#allocation16 + $0x1], 1 }

</bundles_post_ra>
